<compile_context>
chip_gen: v7x
topology: tpu7x:2x2x1
jax: 0.10.0
libtpu: 0.0.40
codegen_flags: <defaults>
</compile_context>

<pallas_src>
import jax
import jax.numpy as jnp
from jax import lax
from jax.experimental import pallas as pl
from jax.experimental.pallas import tpu as pltpu

# ---- model config (consistent with the module's __init__) --------------------
D_MODEL = 32        # dim_embed
NHEAD = 4           # cfg['nhead']
DHEAD = D_MODEL // NHEAD
DFF = 64            # cfg['hidden_size']
N_ENC = 2           # cfg['n_encoder_layers']
N_DEC = 2           # cfg['n_decoder_layers']
NUM_SEGMENTS = 8    # num_segments
LN_EPS = 1e-5

# ---- static indices into the stacked weight arrays ----------------------------
LN_ENC_SA = tuple(range(0, N_ENC))                              # encoder norm1
LN_ENC_FF = tuple(range(N_ENC, 2 * N_ENC))                      # encoder norm2
LN_DEC_SA = tuple(range(2 * N_ENC, 2 * N_ENC + N_DEC))          # decoder norm1
LN_DEC_CA = tuple(range(2 * N_ENC + N_DEC, 2 * N_ENC + 2 * N_DEC))   # decoder norm2
LN_DEC_FF = tuple(range(2 * N_ENC + 2 * N_DEC, 2 * N_ENC + 3 * N_DEC))  # decoder norm3
LN_ENC_FINAL = 2 * N_ENC + 3 * N_DEC                            # encoder.norm
LN_DEC_FINAL = LN_ENC_FINAL + 1                                 # decoder.norm
N_LN = LN_DEC_FINAL + 1                                         # 12

AT_ENC_SA = tuple(range(0, N_ENC))                              # enc self-attn
AT_DEC_SA = tuple(range(N_ENC, N_ENC + N_DEC))                  # dec self-attn
AT_DEC_CA = tuple(range(N_ENC + N_DEC, N_ENC + 2 * N_DEC))      # dec cross-attn
N_ATTN = N_ENC + 2 * N_DEC                                      # 6

FF_ENC = tuple(range(0, N_ENC))
FF_DEC = tuple(range(N_ENC, N_ENC + N_DEC))
N_FFN = N_ENC + N_DEC                                           # 4

_WEIGHT_KEYS = ('ln_w', 'ln_b', 'qkv_w', 'qkv_b', 'out_w', 'out_b',
                'ff1_w', 'ff1_b', 'ff2_w', 'ff2_b', 'actor_w', 'actor_b')


# ---- in-kernel helpers --------------------------------------------------------
def _layer_norm(x, w, b):
    mu = jnp.mean(x, axis=-1, keepdims=True)
    var = jnp.mean(jnp.square(x - mu), axis=-1, keepdims=True)
    return (x - mu) * lax.rsqrt(var + LN_EPS) * w + b


def _gelu(x):
    # TODO(synk): PyTorch F.gelu defaults to the exact erf form; tanh approximation
    # is used since erf has no guaranteed Mosaic lowering (~1e-3 deviation).
    c = 0.7978845608028654  # sqrt(2/pi)
    return 0.5 * x * (1.0 + jnp.tanh(c * (x + 0.044715 * x * x * x)))


def _mm_t(x2d, w):
    # x2d: (M, K), w: (N, K)  ->  x2d @ w.T : (M, N)   (PyTorch Linear layout)
    return lax.dot_general(x2d, w, (((1,), (1,)), ((), ())),
                           preferred_element_type=jnp.float32)


def _softmax_last(s):
    m = jnp.max(s, axis=-1, keepdims=True)
    e = jnp.exp(s - m)
    return e / jnp.sum(e, axis=-1, keepdims=True)


# ---- fused forward-pass kernel -------------------------------------------------
def _fused_actor_kernel(ts_ref, src_ref, tgt_ref, mask_ref,
                        ln_w_ref, ln_b_ref, qkv_w_ref, qkv_b_ref,
                        out_w_ref, out_b_ref, ff1_w_ref, ff1_b_ref,
                        ff2_w_ref, ff2_b_ref, actor_w_ref, actor_b_ref,
                        o_ref, y_scr, g_scr):
    Bc, S, D = src_ref.shape
    T = tgt_ref.shape[1]
    bb = pl.program_id(0)

    # Causal additive bias, built once per grid step; shared by both decoder
    # self-attention layers (large-negative, diagonal unmasked -> no NaN risk).
    row = lax.broadcasted_iota(jnp.int32, (T, T), 0)
    col = lax.broadcasted_iota(jnp.int32, (T, T), 1)
    causal_bias = jnp.where(col > row, jnp.float32(-1e9), jnp.float32(0.0))

    def norm(x, ln_i):
        return _layer_norm(x, ln_w_ref[ln_i], ln_b_ref[ln_i])

    def attn_block(x2d, tq, mem2d, tk, ln_i, at_i, bias=None):
        """Pre-LN residual MHA: x + MHA(LN(x), memory or LN(x)) over stacked rows."""
        xn = norm(x2d, ln_i)
        w_in = qkv_w_ref[at_i]                      # (3D, D)
        b_in = qkv_b_ref[at_i]                      # (3D,)   (Q third pre-scaled)
        if mem2d is None:
            qkv = _mm_t(xn, w_in) + b_in            # one wide QKV matmul
            q = qkv[:, :D]
            k = qkv[:, D:2 * D]
            v = qkv[:, 2 * D:]
        else:
            # Cross-attention: Q from LN(x), K/V from the raw encoder memory.
            q = _mm_t(xn, w_in[:D]) + b_in[:D]
            kv = _mm_t(mem2d, w_in[D:]) + b_in[D:]
            k = kv[:, :D]
            v = kv[:, D:]
        q3 = q.reshape(Bc, tq, D)
        k3 = k.reshape(Bc, tk, D)
        v3 = v.reshape(Bc, tk, D)
        w_out = out_w_ref[at_i]                     # (D, D)
        acc = jnp.zeros((Bc * tq, D), jnp.float32)
        for h in range(NHEAD):
            sl = slice(h * DHEAD, (h + 1) * DHEAD)
            s = jnp.einsum('bqd,bkd->bqk', q3[:, :, sl], k3[:, :, sl],
                           preferred_element_type=jnp.float32)
            if bias is not None:
                s = s + bias
            p = _softmax_last(s)
            oh = jnp.einsum('bqk,bkd->bqd', p, v3[:, :, sl],
                            preferred_element_type=jnp.float32)
            # Accumulate the output projection per head (no concat of head slabs).
            acc = acc + lax.dot_general(oh.reshape(Bc * tq, DHEAD), w_out[:, sl],
                                        (((1,), (1,)), ((), ())),
                                        preferred_element_type=jnp.float32)
        return x2d + acc + out_b_ref[at_i]

    def ffn_block(x2d, ln_i, ff_i):
        xn = norm(x2d, ln_i)
        h = _gelu(_mm_t(xn, ff1_w_ref[ff_i]) + ff1_b_ref[ff_i])
        return x2d + _mm_t(h, ff2_w_ref[ff_i]) + ff2_b_ref[ff_i]

    # ---- encoder (all Bc items stacked into (Bc*S, D) rows) ----
    mem = src_ref[...].reshape(Bc * S, D).astype(jnp.float32)
    for l in range(N_ENC):
        mem = attn_block(mem, S, None, S, LN_ENC_SA[l], AT_ENC_SA[l])
        mem = ffn_block(mem, LN_ENC_FF[l], FF_ENC[l])
    mem = norm(mem, LN_ENC_FINAL)

    # ---- decoder ----
    y = tgt_ref[...].reshape(Bc * T, D).astype(jnp.float32)
    for l in range(N_DEC):
        y = attn_block(y, T, None, T, LN_DEC_SA[l], AT_DEC_SA[l], bias=causal_bias)
        y = attn_block(y, T, mem, S, LN_DEC_CA[l], AT_DEC_CA[l])
        y = ffn_block(y, LN_DEC_FF[l], FF_DEC[l])

    # ---- gather (timestep+1) token per item BEFORE the final decoder norm ----
    # (per-row LayerNorm commutes with the gather, so norm/GELU/head only run on
    #  Bc rows instead of Bc*T).  Timesteps come from SMEM (scalar prefetch).
    y_scr[...] = y
    base = bb * Bc

    @pl.loop(0, Bc)
    def _(i):
        idx = ts_ref[base + i] + 1
        idx = jnp.clip(idx, 0, T - 1)   # PyTorch would raise on OOB; clamp defensively
        g_scr[pl.ds(i, 1), :] = y_scr[pl.ds(i * T + idx, 1), :]

    g = norm(g_scr[...], LN_DEC_FINAL)                            # (Bc, D)
    h = _gelu(g)
    logits = _mm_t(h, actor_w_ref[...]) + actor_b_ref[...]        # (Bc, NUM_SEGMENTS)

    # MaskedStableSoftmax
    valid = mask_ref[...] > 0
    masked = jnp.where(valid, logits, jnp.float32(-1e9))
    m = jnp.max(masked, axis=-1, keepdims=True)
    e = jnp.exp(masked - m)
    o_ref[...] = (e / jnp.sum(e, axis=-1, keepdims=True)).astype(o_ref.dtype)


# ---- wrapper: one pallas_call for the whole forward pass ----------------------
def actor_forward(params, src_inputs, tgt_inputs, timesteps, valid_action_mask,
                  block_batch=128):
    # NOTE: src/tgt key_padding_masks are None in this call path (non-pointer
    # branch of Actor.forward); tgt_mask is the causal triu mask (built in-kernel).
    B, S, D = src_inputs.shape
    T = tgt_inputs.shape[1]
    assert D == D_MODEL

    # Batch blocking: whole batch in one grid step if it fits, else blocks of
    # `block_batch` (multiple of 8 to satisfy the (8,128) block constraint).
    if B <= block_batch:
        Bc, B_pad = B, B
    else:
        Bc = block_batch
        B_pad = pl.cdiv(B, Bc) * Bc

    ts = timesteps.reshape(-1).astype(jnp.int32)            # (B,), SMEM-friendly 1-D
    mask = valid_action_mask.astype(jnp.float32)
    if B_pad != B:
        pad = B_pad - B
        src_inputs = jnp.pad(src_inputs, ((0, pad), (0, 0), (0, 0)))
        tgt_inputs = jnp.pad(tgt_inputs, ((0, pad), (0, 0), (0, 0)))
        ts = jnp.pad(ts, ((0, pad),))
        mask = jnp.pad(mask, ((0, pad), (0, 0)), constant_values=1.0)

    # Fold the 1/sqrt(dh) attention scale into the Q third of the in-projection
    # (consistent with the cross-attention w_in[:D]/b_in[:D] split in the kernel).
    scale = 1.0 / (DHEAD ** 0.5)
    qkv_w = params['qkv_w'].at[:, :D_MODEL, :].multiply(scale)
    qkv_b = params['qkv_b'].at[:, :D_MODEL].multiply(scale)

    weights = [params['ln_w'], params['ln_b'], qkv_w, qkv_b,
               params['out_w'], params['out_b'],
               params['ff1_w'], params['ff1_b'],
               params['ff2_w'], params['ff2_b'],
               params['actor_w'], params['actor_b']]

    # Weights: full-array VMEM blocks with constant block index -> DMA'd once,
    # resident across all batch grid steps.
    weight_specs = [
        pl.BlockSpec(w.shape, lambda b, t, _nd=w.ndim: (0,) * _nd)
        for w in weights
    ]

    grid_spec = pltpu.PrefetchScalarGridSpec(
        num_scalar_prefetch=1,                               # timesteps -> SMEM
        grid=(B_pad // Bc,),
        in_specs=[
            pl.BlockSpec((Bc, S, D), lambda b, t: (b, 0, 0)),           # src
            pl.BlockSpec((Bc, T, D), lambda b, t: (b, 0, 0)),           # tgt
            pl.BlockSpec((Bc, NUM_SEGMENTS), lambda b, t: (b, 0)),      # valid mask
            *weight_specs,
        ],
        out_specs=pl.BlockSpec((Bc, NUM_SEGMENTS), lambda b, t: (b, 0)),
        scratch_shapes=[pltpu.VMEM((Bc * T, D_MODEL), jnp.float32),     # dec tokens
                        pltpu.VMEM((Bc, D_MODEL), jnp.float32)],        # gathered rows
    )

    out = pl.pallas_call(
        _fused_actor_kernel,
        grid_spec=grid_spec,
        out_shape=jax.ShapeDtypeStruct((B_pad, NUM_SEGMENTS), src_inputs.dtype),
        compiler_params=pltpu.CompilerParams(
            dimension_semantics=("parallel",)),
    )(ts, src_inputs, tgt_inputs, mask, *weights)
    return out[:B]


# ---- deterministic parameter init (stacked per parameter kind) ----------------
def init_params(key):
    keys = jax.random.split(key, 8)

    def nrm(k, shape, fan_in):
        return jax.random.normal(k, shape, jnp.float32) / jnp.sqrt(fan_in)

    return {
        'ln_w': jnp.ones((N_LN, D_MODEL), jnp.float32),
        'ln_b': jnp.zeros((N_LN, D_MODEL), jnp.float32),
        'qkv_w': nrm(keys[0], (N_ATTN, 3 * D_MODEL, D_MODEL), D_MODEL),
        'qkv_b': jnp.zeros((N_ATTN, 3 * D_MODEL), jnp.float32),
        'out_w': nrm(keys[1], (N_ATTN, D_MODEL, D_MODEL), D_MODEL),
        'out_b': jnp.zeros((N_ATTN, D_MODEL), jnp.float32),
        'ff1_w': nrm(keys[2], (N_FFN, DFF, D_MODEL), D_MODEL),
        'ff1_b': jnp.zeros((N_FFN, DFF), jnp.float32),
        'ff2_w': nrm(keys[3], (N_FFN, D_MODEL, DFF), DFF),
        'ff2_b': jnp.zeros((N_FFN, D_MODEL), jnp.float32),
        'actor_w': nrm(keys[4], (NUM_SEGMENTS, D_MODEL), D_MODEL),
        'actor_b': jnp.zeros((1, NUM_SEGMENTS), jnp.float32),
    }


if __name__ == "__main__":
    key = jax.random.PRNGKey(0)
    k_par, k_src, k_tgt, k_mask = jax.random.split(key, 4)

    B, S, T = 2, 8, 8
    params = init_params(k_par)
    src_inputs = jax.random.normal(k_src, (B, S, D_MODEL), jnp.float32)
    tgt_inputs = jax.random.normal(k_tgt, (B, T, D_MODEL), jnp.float32)
    timesteps = jnp.array([[1], [3]], dtype=jnp.int32)                  # (B, 1)
    valid_action_mask = (jax.random.uniform(k_mask, (B, NUM_SEGMENTS)) > 0.5
                         ).astype(jnp.float32)
    valid_action_mask = valid_action_mask.at[:, 0].set(1.0)             # >=1 valid

    fwd = jax.jit(actor_forward)
    policy_pred = fwd(params, src_inputs, tgt_inputs, timesteps, valid_action_mask)
    policy_pred = jax.block_until_ready(policy_pred)

    assert policy_pred.shape == (B, NUM_SEGMENTS)
    assert bool(jnp.all(jnp.isfinite(policy_pred)))
    assert bool(jnp.allclose(jnp.sum(policy_pred, axis=-1), 1.0, atol=1e-5))
    # invalid actions must receive ~zero probability
    invalid_mass = jnp.max(jnp.where(valid_action_mask > 0, 0.0, policy_pred))
    assert float(invalid_mass) < 1e-6
    print("KERNEL_OK")
</pallas_src>

<mosaic_0001>
module attributes {stable_mosaic.version = 11 : i64} {
  func.func @_fused_actor_kernel(%arg0: i32, %arg1: memref<2xi32, #tpu.memory_space<smem>>, %arg2: memref<2x8x32xf32, #tpu.memory_space<vmem>>, %arg3: memref<2x8x32xf32, #tpu.memory_space<vmem>>, %arg4: memref<2x8xf32, #tpu.memory_space<vmem>>, %arg5: memref<12x32xf32, #tpu.memory_space<vmem>>, %arg6: memref<12x32xf32, #tpu.memory_space<vmem>>, %arg7: memref<6x96x32xf32, #tpu.memory_space<vmem>>, %arg8: memref<6x96xf32, #tpu.memory_space<vmem>>, %arg9: memref<6x32x32xf32, #tpu.memory_space<vmem>>, %arg10: memref<6x32xf32, #tpu.memory_space<vmem>>, %arg11: memref<4x64x32xf32, #tpu.memory_space<vmem>>, %arg12: memref<4x64xf32, #tpu.memory_space<vmem>>, %arg13: memref<4x32x64xf32, #tpu.memory_space<vmem>>, %arg14: memref<4x32xf32, #tpu.memory_space<vmem>>, %arg15: memref<8x32xf32, #tpu.memory_space<vmem>>, %arg16: memref<1x8xf32, #tpu.memory_space<vmem>>, %arg17: memref<2x8xf32, #tpu.memory_space<vmem>>, %arg18: memref<16x32xf32, #tpu.memory_space<vmem>>, %arg19: memref<2x32xf32, #tpu.memory_space<vmem>>) attributes {dimension_semantics = [#tpu.dimension_semantics<parallel>], iteration_bounds = array<i64: 1>, scalar_prefetch = 1 : i64, scratch_operands = 2 : i64, tpu.core_type = #tpu.core_type<tc>, window_params = [{transform_indices = @transform_0, window_bounds = array<i64: 2, 8, 32>}, {transform_indices = @transform_1, window_bounds = array<i64: 2, 8, 32>}, {transform_indices = @transform_2, window_bounds = array<i64: 2, 8>}, {pipeline_mode = #tpu.pipeline_mode<synchronous>, transform_indices = @transform_3, window_bounds = array<i64: 12, 32>}, {pipeline_mode = #tpu.pipeline_mode<synchronous>, transform_indices = @transform_4, window_bounds = array<i64: 12, 32>}, {pipeline_mode = #tpu.pipeline_mode<synchronous>, transform_indices = @transform_5, window_bounds = array<i64: 6, 96, 32>}, {pipeline_mode = #tpu.pipeline_mode<synchronous>, transform_indices = @transform_6, window_bounds = array<i64: 6, 96>}, {pipeline_mode = #tpu.pipeline_mode<synchronous>, transform_indices = @transform_7, window_bounds = array<i64: 6, 32, 32>}, {pipeline_mode = #tpu.pipeline_mode<synchronous>, transform_indices = @transform_8, window_bounds = array<i64: 6, 32>}, {pipeline_mode = #tpu.pipeline_mode<synchronous>, transform_indices = @transform_9, window_bounds = array<i64: 4, 64, 32>}, {pipeline_mode = #tpu.pipeline_mode<synchronous>, transform_indices = @transform_10, window_bounds = array<i64: 4, 64>}, {pipeline_mode = #tpu.pipeline_mode<synchronous>, transform_indices = @transform_11, window_bounds = array<i64: 4, 32, 64>}, {pipeline_mode = #tpu.pipeline_mode<synchronous>, transform_indices = @transform_12, window_bounds = array<i64: 4, 32>}, {pipeline_mode = #tpu.pipeline_mode<synchronous>, transform_indices = @transform_13, window_bounds = array<i64: 8, 32>}, {pipeline_mode = #tpu.pipeline_mode<synchronous>, transform_indices = @transform_14, window_bounds = array<i64: 1, 8>}, {transform_indices = @transform_15, window_bounds = array<i64: 2, 8>}]} {
    %0 = tpu.iota {dimensions = array<i32: 0>} : vector<8x8xi32>
    %1 = tpu.iota {dimensions = array<i32: 1>} : vector<8x8xi32>
    %2 = arith.cmpi sgt, %1, %0 : vector<8x8xi32>
    %cst = arith.constant -1.000000e+09 : f32
    %cst_0 = arith.constant 0.000000e+00 : f32
    %3 = vector.broadcast %cst : f32 to vector<8x8xf32>
    %4 = vector.broadcast %cst_0 : f32 to vector<8x8xf32>
    %5 = arith.select %2, %3, %4 : vector<8x8xi1>, vector<8x8xf32>
    %c0 = arith.constant 0 : index
    %c0_1 = arith.constant 0 : index
    %c0_2 = arith.constant 0 : index
    %6 = vector.load %arg2[%c0, %c0_1, %c0_2] : memref<2x8x32xf32, #tpu.memory_space<vmem>>, vector<2x8x32xf32>
    %7 = vector.shape_cast %6 : vector<2x8x32xf32> to vector<16x32xf32>
    %c0_3 = arith.constant 0 : index
    %c0_4 = arith.constant 0 : index
    %8 = vector.load %arg5[%c0_3, %c0_4] : memref<12x32xf32, #tpu.memory_space<vmem>>, vector<1x32xf32>
    %9 = vector.shape_cast %8 : vector<1x32xf32> to vector<32xf32>
    %c0_5 = arith.constant 0 : index
    %c0_6 = arith.constant 0 : index
    %10 = vector.load %arg6[%c0_5, %c0_6] : memref<12x32xf32, #tpu.memory_space<vmem>>, vector<1x32xf32>
    %11 = vector.shape_cast %10 : vector<1x32xf32> to vector<32xf32>
    %cst_7 = arith.constant dense<0.000000e+00> : vector<16xf32>
    %12 = vector.multi_reduction <add>, %7, %cst_7 [1] : vector<16x32xf32> to vector<16xf32>
    %13 = vector.shape_cast %12 : vector<16xf32> to vector<16x1xf32>
    %cst_8 = arith.constant 3.200000e+01 : f32
    %14 = vector.broadcast %cst_8 : f32 to vector<16x1xf32>
    %15 = arith.divf %13, %14 : vector<16x1xf32>
    %16 = vector.broadcast %15 : vector<16x1xf32> to vector<16x32xf32>
    %17 = arith.subf %7, %16 : vector<16x32xf32>
    %18 = arith.mulf %17, %17 : vector<16x32xf32>
    %cst_9 = arith.constant dense<0.000000e+00> : vector<16xf32>
    %19 = vector.multi_reduction <add>, %18, %cst_9 [1] : vector<16x32xf32> to vector<16xf32>
    %20 = vector.shape_cast %19 : vector<16xf32> to vector<16x1xf32>
    %cst_10 = arith.constant 3.200000e+01 : f32
    %21 = vector.broadcast %cst_10 : f32 to vector<16x1xf32>
    %22 = arith.divf %20, %21 : vector<16x1xf32>
    %23 = vector.broadcast %15 : vector<16x1xf32> to vector<16x32xf32>
    %24 = arith.subf %7, %23 : vector<16x32xf32>
    %cst_11 = arith.constant 9.99999974E-6 : f32
    %25 = vector.broadcast %cst_11 : f32 to vector<16x1xf32>
    %26 = arith.addf %22, %25 : vector<16x1xf32>
    %27 = math.rsqrt %26 : vector<16x1xf32>
    %28 = vector.broadcast %27 : vector<16x1xf32> to vector<16x32xf32>
    %29 = arith.mulf %24, %28 : vector<16x32xf32>
    %30 = vector.shape_cast %9 : vector<32xf32> to vector<1x32xf32>
    %31 = vector.broadcast %30 : vector<1x32xf32> to vector<16x32xf32>
    %32 = arith.mulf %29, %31 : vector<16x32xf32>
    %33 = vector.shape_cast %11 : vector<32xf32> to vector<1x32xf32>
    %34 = vector.broadcast %33 : vector<1x32xf32> to vector<16x32xf32>
    %35 = arith.addf %32, %34 : vector<16x32xf32>
    %c0_12 = arith.constant 0 : index
    %c0_13 = arith.constant 0 : index
    %c0_14 = arith.constant 0 : index
    %36 = vector.load %arg7[%c0_12, %c0_13, %c0_14] : memref<6x96x32xf32, #tpu.memory_space<vmem>>, vector<1x96x32xf32>
    %37 = vector.shape_cast %36 : vector<1x96x32xf32> to vector<96x32xf32>
    %c0_15 = arith.constant 0 : index
    %c0_16 = arith.constant 0 : index
    %38 = vector.load %arg8[%c0_15, %c0_16] : memref<6x96xf32, #tpu.memory_space<vmem>>, vector<1x96xf32>
    %39 = vector.shape_cast %38 : vector<1x96xf32> to vector<96xf32>
    %cst_17 = arith.constant dense<0.000000e+00> : vector<16x96xf32>
    %40 = tpu.matmul %35, %37, %cst_17 {dimension_numbers = #tpu.dot_dimension_numbers<[1], [1], [0], [0], [0, 0, 1, 0], [], []>} : vector<16x32xf32>, vector<96x32xf32>, vector<16x96xf32> -> vector<16x96xf32>
    %41 = vector.shape_cast %39 : vector<96xf32> to vector<1x96xf32>
    %42 = vector.broadcast %41 : vector<1x96xf32> to vector<16x96xf32>
    %43 = arith.addf %40, %42 : vector<16x96xf32>
    %44 = vector.extract_strided_slice %43 {offsets = [0, 0], sizes = [16, 32], strides = [1, 1]} : vector<16x96xf32> to vector<16x32xf32>
    %45 = vector.extract_strided_slice %43 {offsets = [0, 32], sizes = [16, 32], strides = [1, 1]} : vector<16x96xf32> to vector<16x32xf32>
    %46 = vector.extract_strided_slice %43 {offsets = [0, 64], sizes = [16, 32], strides = [1, 1]} : vector<16x96xf32> to vector<16x32xf32>
    %47 = vector.shape_cast %44 : vector<16x32xf32> to vector<2x8x32xf32>
    %48 = vector.shape_cast %45 : vector<16x32xf32> to vector<2x8x32xf32>
    %49 = vector.shape_cast %46 : vector<16x32xf32> to vector<2x8x32xf32>
    %c0_18 = arith.constant 0 : index
    %c0_19 = arith.constant 0 : index
    %c0_20 = arith.constant 0 : index
    %50 = vector.load %arg9[%c0_18, %c0_19, %c0_20] : memref<6x32x32xf32, #tpu.memory_space<vmem>>, vector<1x32x32xf32>
    %51 = vector.shape_cast %50 : vector<1x32x32xf32> to vector<32x32xf32>
    %cst_21 = arith.constant 0.000000e+00 : f32
    %52 = vector.broadcast %cst_21 : f32 to vector<16x32xf32>
    %53 = vector.extract_strided_slice %47 {offsets = [0, 0, 0], sizes = [2, 8, 8], strides = [1, 1, 1]} : vector<2x8x32xf32> to vector<2x8x8xf32>
    %54 = vector.extract_strided_slice %48 {offsets = [0, 0, 0], sizes = [2, 8, 8], strides = [1, 1, 1]} : vector<2x8x32xf32> to vector<2x8x8xf32>
    "tpu.trace_start"() <{level = 10 : i32, message = "bqd,bkd->bqk"}> : () -> ()
    %cst_22 = arith.constant dense<0.000000e+00> : vector<2x8x8xf32>
    %55 = tpu.matmul %53, %54, %cst_22 {dimension_numbers = #tpu.dot_dimension_numbers<[2], [2], [1], [1], [0, 0, 0, 1, 1, 1], [0], [0]>} : vector<2x8x8xf32>, vector<2x8x8xf32>, vector<2x8x8xf32> -> vector<2x8x8xf32>
    "tpu.trace_stop"() : () -> ()
    %cst_23 = arith.constant dense<0xFF800000> : vector<2x8xf32>
    %56 = vector.multi_reduction <maximumf>, %55, %cst_23 [2] : vector<2x8x8xf32> to vector<2x8xf32>
    %57 = vector.shape_cast %56 : vector<2x8xf32> to vector<2x8x1xf32>
    %58 = vector.broadcast %57 : vector<2x8x1xf32> to vector<2x8x8xf32>
    %59 = arith.subf %55, %58 : vector<2x8x8xf32>
    %60 = math.exp %59 : vector<2x8x8xf32>
    %cst_24 = arith.constant dense<0.000000e+00> : vector<2x8xf32>
    %61 = vector.multi_reduction <add>, %60, %cst_24 [2] : vector<2x8x8xf32> to vector<2x8xf32>
    %62 = vector.shape_cast %61 : vector<2x8xf32> to vector<2x8x1xf32>
    %63 = vector.broadcast %62 : vector<2x8x1xf32> to vector<2x8x8xf32>
    %64 = arith.divf %60, %63 : vector<2x8x8xf32>
    %65 = vector.extract_strided_slice %49 {offsets = [0, 0, 0], sizes = [2, 8, 8], strides = [1, 1, 1]} : vector<2x8x32xf32> to vector<2x8x8xf32>
    "tpu.trace_start"() <{level = 10 : i32, message = "bqk,bkd->bqd"}> : () -> ()
    %cst_25 = arith.constant dense<0.000000e+00> : vector<2x8x8xf32>
    %66 = tpu.matmul %64, %65, %cst_25 {dimension_numbers = #tpu.dot_dimension_numbers<[2], [1], [1], [2], [0, 0, 0, 1, 1, 2], [0], [0]>} : vector<2x8x8xf32>, vector<2x8x8xf32>, vector<2x8x8xf32> -> vector<2x8x8xf32>
    "tpu.trace_stop"() : () -> ()
    %67 = vector.shape_cast %66 : vector<2x8x8xf32> to vector<16x8xf32>
    %68 = vector.extract_strided_slice %51 {offsets = [0, 0], sizes = [32, 8], strides = [1, 1]} : vector<32x32xf32> to vector<32x8xf32>
    %cst_26 = arith.constant dense<0.000000e+00> : vector<16x32xf32>
    %69 = tpu.matmul %67, %68, %cst_26 {dimension_numbers = #tpu.dot_dimension_numbers<[1], [1], [0], [0], [0, 0, 1, 0], [], []>} : vector<16x8xf32>, vector<32x8xf32>, vector<16x32xf32> -> vector<16x32xf32>
    %70 = arith.addf %52, %69 : vector<16x32xf32>
    %71 = vector.extract_strided_slice %47 {offsets = [0, 0, 8], sizes = [2, 8, 8], strides = [1, 1, 1]} : vector<2x8x32xf32> to vector<2x8x8xf32>
    %72 = vector.extract_strided_slice %48 {offsets = [0, 0, 8], sizes = [2, 8, 8], strides = [1, 1, 1]} : vector<2x8x32xf32> to vector<2x8x8xf32>
    "tpu.trace_start"() <{level = 10 : i32, message = "bqd,bkd->bqk"}> : () -> ()
    %cst_27 = arith.constant dense<0.000000e+00> : vector<2x8x8xf32>
    %73 = tpu.matmul %71, %72, %cst_27 {dimension_numbers = #tpu.dot_dimension_numbers<[2], [2], [1], [1], [0, 0, 0, 1, 1, 1], [0], [0]>} : vector<2x8x8xf32>, vector<2x8x8xf32>, vector<2x8x8xf32> -> vector<2x8x8xf32>
    "tpu.trace_stop"() : () -> ()
    %cst_28 = arith.constant dense<0xFF800000> : vector<2x8xf32>
    %74 = vector.multi_reduction <maximumf>, %73, %cst_28 [2] : vector<2x8x8xf32> to vector<2x8xf32>
    %75 = vector.shape_cast %74 : vector<2x8xf32> to vector<2x8x1xf32>
    %76 = vector.broadcast %75 : vector<2x8x1xf32> to vector<2x8x8xf32>
    %77 = arith.subf %73, %76 : vector<2x8x8xf32>
    %78 = math.exp %77 : vector<2x8x8xf32>
    %cst_29 = arith.constant dense<0.000000e+00> : vector<2x8xf32>
    %79 = vector.multi_reduction <add>, %78, %cst_29 [2] : vector<2x8x8xf32> to vector<2x8xf32>
    %80 = vector.shape_cast %79 : vector<2x8xf32> to vector<2x8x1xf32>
    %81 = vector.broadcast %80 : vector<2x8x1xf32> to vector<2x8x8xf32>
    %82 = arith.divf %78, %81 : vector<2x8x8xf32>
    %83 = vector.extract_strided_slice %49 {offsets = [0, 0, 8], sizes = [2, 8, 8], strides = [1, 1, 1]} : vector<2x8x32xf32> to vector<2x8x8xf32>
    "tpu.trace_start"() <{level = 10 : i32, message = "bqk,bkd->bqd"}> : () -> ()
    %cst_30 = arith.constant dense<0.000000e+00> : vector<2x8x8xf32>
    %84 = tpu.matmul %82, %83, %cst_30 {dimension_numbers = #tpu.dot_dimension_numbers<[2], [1], [1], [2], [0, 0, 0, 1, 1, 2], [0], [0]>} : vector<2x8x8xf32>, vector<2x8x8xf32>, vector<2x8x8xf32> -> vector<2x8x8xf32>
    "tpu.trace_stop"() : () -> ()
    %85 = vector.shape_cast %84 : vector<2x8x8xf32> to vector<16x8xf32>
    %86 = vector.extract_strided_slice %51 {offsets = [0, 8], sizes = [32, 8], strides = [1, 1]} : vector<32x32xf32> to vector<32x8xf32>
    %cst_31 = arith.constant dense<0.000000e+00> : vector<16x32xf32>
    %87 = tpu.matmul %85, %86, %cst_31 {dimension_numbers = #tpu.dot_dimension_numbers<[1], [1], [0], [0], [0, 0, 1, 0], [], []>} : vector<16x8xf32>, vector<32x8xf32>, vector<16x32xf32> -> vector<16x32xf32>
    %88 = arith.addf %70, %87 : vector<16x32xf32>
    %89 = vector.extract_strided_slice %47 {offsets = [0, 0, 16], sizes = [2, 8, 8], strides = [1, 1, 1]} : vector<2x8x32xf32> to vector<2x8x8xf32>
    %90 = vector.extract_strided_slice %48 {offsets = [0, 0, 16], sizes = [2, 8, 8], strides = [1, 1, 1]} : vector<2x8x32xf32> to vector<2x8x8xf32>
    "tpu.trace_start"() <{level = 10 : i32, message = "bqd,bkd->bqk"}> : () -> ()
    %cst_32 = arith.constant dense<0.000000e+00> : vector<2x8x8xf32>
    %91 = tpu.matmul %89, %90, %cst_32 {dimension_numbers = #tpu.dot_dimension_numbers<[2], [2], [1], [1], [0, 0, 0, 1, 1, 1], [0], [0]>} : vector<2x8x8xf32>, vector<2x8x8xf32>, vector<2x8x8xf32> -> vector<2x8x8xf32>
    "tpu.trace_stop"() : () -> ()
    %cst_33 = arith.constant dense<0xFF800000> : vector<2x8xf32>
    %92 = vector.multi_reduction <maximumf>, %91, %cst_33 [2] : vector<2x8x8xf32> to vector<2x8xf32>
    %93 = vector.shape_cast %92 : vector<2x8xf32> to vector<2x8x1xf32>
    %94 = vector.broadcast %93 : vector<2x8x1xf32> to vector<2x8x8xf32>
    %95 = arith.subf %91, %94 : vector<2x8x8xf32>
    %96 = math.exp %95 : vector<2x8x8xf32>
    %cst_34 = arith.constant dense<0.000000e+00> : vector<2x8xf32>
    %97 = vector.multi_reduction <add>, %96, %cst_34 [2] : vector<2x8x8xf32> to vector<2x8xf32>
    %98 = vector.shape_cast %97 : vector<2x8xf32> to vector<2x8x1xf32>
    %99 = vector.broadcast %98 : vector<2x8x1xf32> to vector<2x8x8xf32>
    %100 = arith.divf %96, %99 : vector<2x8x8xf32>
    %101 = vector.extract_strided_slice %49 {offsets = [0, 0, 16], sizes = [2, 8, 8], strides = [1, 1, 1]} : vector<2x8x32xf32> to vector<2x8x8xf32>
    "tpu.trace_start"() <{level = 10 : i32, message = "bqk,bkd->bqd"}> : () -> ()
    %cst_35 = arith.constant dense<0.000000e+00> : vector<2x8x8xf32>
    %102 = tpu.matmul %100, %101, %cst_35 {dimension_numbers = #tpu.dot_dimension_numbers<[2], [1], [1], [2], [0, 0, 0, 1, 1, 2], [0], [0]>} : vector<2x8x8xf32>, vector<2x8x8xf32>, vector<2x8x8xf32> -> vector<2x8x8xf32>
    "tpu.trace_stop"() : () -> ()
    %103 = vector.shape_cast %102 : vector<2x8x8xf32> to vector<16x8xf32>
    %104 = vector.extract_strided_slice %51 {offsets = [0, 16], sizes = [32, 8], strides = [1, 1]} : vector<32x32xf32> to vector<32x8xf32>
    %cst_36 = arith.constant dense<0.000000e+00> : vector<16x32xf32>
    %105 = tpu.matmul %103, %104, %cst_36 {dimension_numbers = #tpu.dot_dimension_numbers<[1], [1], [0], [0], [0, 0, 1, 0], [], []>} : vector<16x8xf32>, vector<32x8xf32>, vector<16x32xf32> -> vector<16x32xf32>
    %106 = arith.addf %88, %105 : vector<16x32xf32>
    %107 = vector.extract_strided_slice %47 {offsets = [0, 0, 24], sizes = [2, 8, 8], strides = [1, 1, 1]} : vector<2x8x32xf32> to vector<2x8x8xf32>
    %108 = vector.extract_strided_slice %48 {offsets = [0, 0, 24], sizes = [2, 8, 8], strides = [1, 1, 1]} : vector<2x8x32xf32> to vector<2x8x8xf32>
    "tpu.trace_start"() <{level = 10 : i32, message = "bqd,bkd->bqk"}> : () -> ()
    %cst_37 = arith.constant dense<0.000000e+00> : vector<2x8x8xf32>
    %109 = tpu.matmul %107, %108, %cst_37 {dimension_numbers = #tpu.dot_dimension_numbers<[2], [2], [1], [1], [0, 0, 0, 1, 1, 1], [0], [0]>} : vector<2x8x8xf32>, vector<2x8x8xf32>, vector<2x8x8xf32> -> vector<2x8x8xf32>
    "tpu.trace_stop"() : () -> ()
    %cst_38 = arith.constant dense<0xFF800000> : vector<2x8xf32>
    %110 = vector.multi_reduction <maximumf>, %109, %cst_38 [2] : vector<2x8x8xf32> to vector<2x8xf32>
    %111 = vector.shape_cast %110 : vector<2x8xf32> to vector<2x8x1xf32>
    %112 = vector.broadcast %111 : vector<2x8x1xf32> to vector<2x8x8xf32>
    %113 = arith.subf %109, %112 : vector<2x8x8xf32>
    %114 = math.exp %113 : vector<2x8x8xf32>
    %cst_39 = arith.constant dense<0.000000e+00> : vector<2x8xf32>
    %115 = vector.multi_reduction <add>, %114, %cst_39 [2] : vector<2x8x8xf32> to vector<2x8xf32>
    %116 = vector.shape_cast %115 : vector<2x8xf32> to vector<2x8x1xf32>
    %117 = vector.broadcast %116 : vector<2x8x1xf32> to vector<2x8x8xf32>
    %118 = arith.divf %114, %117 : vector<2x8x8xf32>
    %119 = vector.extract_strided_slice %49 {offsets = [0, 0, 24], sizes = [2, 8, 8], strides = [1, 1, 1]} : vector<2x8x32xf32> to vector<2x8x8xf32>
    "tpu.trace_start"() <{level = 10 : i32, message = "bqk,bkd->bqd"}> : () -> ()
    %cst_40 = arith.constant dense<0.000000e+00> : vector<2x8x8xf32>
    %120 = tpu.matmul %118, %119, %cst_40 {dimension_numbers = #tpu.dot_dimension_numbers<[2], [1], [1], [2], [0, 0, 0, 1, 1, 2], [0], [0]>} : vector<2x8x8xf32>, vector<2x8x8xf32>, vector<2x8x8xf32> -> vector<2x8x8xf32>
    "tpu.trace_stop"() : () -> ()
    %121 = vector.shape_cast %120 : vector<2x8x8xf32> to vector<16x8xf32>
    %122 = vector.extract_strided_slice %51 {offsets = [0, 24], sizes = [32, 8], strides = [1, 1]} : vector<32x32xf32> to vector<32x8xf32>
    %cst_41 = arith.constant dense<0.000000e+00> : vector<16x32xf32>
    %123 = tpu.matmul %121, %122, %cst_41 {dimension_numbers = #tpu.dot_dimension_numbers<[1], [1], [0], [0], [0, 0, 1, 0], [], []>} : vector<16x8xf32>, vector<32x8xf32>, vector<16x32xf32> -> vector<16x32xf32>
    %124 = arith.addf %106, %123 : vector<16x32xf32>
    %125 = arith.addf %7, %124 : vector<16x32xf32>
    %c0_42 = arith.constant 0 : index
    %c0_43 = arith.constant 0 : index
    %126 = vector.load %arg10[%c0_42, %c0_43] : memref<6x32xf32, #tpu.memory_space<vmem>>, vector<1x32xf32>
    %127 = vector.shape_cast %126 : vector<1x32xf32> to vector<32xf32>
    %128 = vector.shape_cast %127 : vector<32xf32> to vector<1x32xf32>
    %129 = vector.broadcast %128 : vector<1x32xf32> to vector<16x32xf32>
    %130 = arith.addf %125, %129 : vector<16x32xf32>
    %c2 = arith.constant 2 : index
    %c0_44 = arith.constant 0 : index
    %131 = vector.load %arg5[%c2, %c0_44] : memref<12x32xf32, #tpu.memory_space<vmem>>, vector<1x32xf32>
    %132 = vector.shape_cast %131 : vector<1x32xf32> to vector<32xf32>
    %c2_45 = arith.constant 2 : index
    %c0_46 = arith.constant 0 : index
    %133 = vector.load %arg6[%c2_45, %c0_46] : memref<12x32xf32, #tpu.memory_space<vmem>>, vector<1x32xf32>
    %134 = vector.shape_cast %133 : vector<1x32xf32> to vector<32xf32>
    %cst_47 = arith.constant dense<0.000000e+00> : vector<16xf32>
    %135 = vector.multi_reduction <add>, %130, %cst_47 [1] : vector<16x32xf32> to vector<16xf32>
    %136 = vector.shape_cast %135 : vector<16xf32> to vector<16x1xf32>
    %cst_48 = arith.constant 3.200000e+01 : f32
    %137 = vector.broadcast %cst_48 : f32 to vector<16x1xf32>
    %138 = arith.divf %136, %137 : vector<16x1xf32>
    %139 = vector.broadcast %138 : vector<16x1xf32> to vector<16x32xf32>
    %140 = arith.subf %130, %139 : vector<16x32xf32>
    %141 = arith.mulf %140, %140 : vector<16x32xf32>
    %cst_49 = arith.constant dense<0.000000e+00> : vector<16xf32>
    %142 = vector.multi_reduction <add>, %141, %cst_49 [1] : vector<16x32xf32> to vector<16xf32>
    %143 = vector.shape_cast %142 : vector<16xf32> to vector<16x1xf32>
    %cst_50 = arith.constant 3.200000e+01 : f32
    %144 = vector.broadcast %cst_50 : f32 to vector<16x1xf32>
    %145 = arith.divf %143, %144 : vector<16x1xf32>
    %146 = vector.broadcast %138 : vector<16x1xf32> to vector<16x32xf32>
    %147 = arith.subf %130, %146 : vector<16x32xf32>
    %cst_51 = arith.constant 9.99999974E-6 : f32
    %148 = vector.broadcast %cst_51 : f32 to vector<16x1xf32>
    %149 = arith.addf %145, %148 : vector<16x1xf32>
    %150 = math.rsqrt %149 : vector<16x1xf32>
    %151 = vector.broadcast %150 : vector<16x1xf32> to vector<16x32xf32>
    %152 = arith.mulf %147, %151 : vector<16x32xf32>
    %153 = vector.shape_cast %132 : vector<32xf32> to vector<1x32xf32>
    %154 = vector.broadcast %153 : vector<1x32xf32> to vector<16x32xf32>
    %155 = arith.mulf %152, %154 : vector<16x32xf32>
    %156 = vector.shape_cast %134 : vector<32xf32> to vector<1x32xf32>
    %157 = vector.broadcast %156 : vector<1x32xf32> to vector<16x32xf32>
    %158 = arith.addf %155, %157 : vector<16x32xf32>
    %c0_52 = arith.constant 0 : index
    %c0_53 = arith.constant 0 : index
    %c0_54 = arith.constant 0 : index
    %159 = vector.load %arg11[%c0_52, %c0_53, %c0_54] : memref<4x64x32xf32, #tpu.memory_space<vmem>>, vector<1x64x32xf32>
    %160 = vector.shape_cast %159 : vector<1x64x32xf32> to vector<64x32xf32>
    %cst_55 = arith.constant dense<0.000000e+00> : vector<16x64xf32>
    %161 = tpu.matmul %158, %160, %cst_55 {dimension_numbers = #tpu.dot_dimension_numbers<[1], [1], [0], [0], [0, 0, 1, 0], [], []>} : vector<16x32xf32>, vector<64x32xf32>, vector<16x64xf32> -> vector<16x64xf32>
    %c0_56 = arith.constant 0 : index
    %c0_57 = arith.constant 0 : index
    %162 = vector.load %arg12[%c0_56, %c0_57] : memref<4x64xf32, #tpu.memory_space<vmem>>, vector<1x64xf32>
    %163 = vector.shape_cast %162 : vector<1x64xf32> to vector<64xf32>
    %164 = vector.shape_cast %163 : vector<64xf32> to vector<1x64xf32>
    %165 = vector.broadcast %164 : vector<1x64xf32> to vector<16x64xf32>
    %166 = arith.addf %161, %165 : vector<16x64xf32>
    %cst_58 = arith.constant 5.000000e-01 : f32
    %167 = vector.broadcast %cst_58 : f32 to vector<16x64xf32>
    %168 = arith.mulf %167, %166 : vector<16x64xf32>
    %cst_59 = arith.constant 4.471500e-02 : f32
    %169 = vector.broadcast %cst_59 : f32 to vector<16x64xf32>
    %170 = arith.mulf %169, %166 : vector<16x64xf32>
    %171 = arith.mulf %170, %166 : vector<16x64xf32>
    %172 = arith.mulf %171, %166 : vector<16x64xf32>
    %173 = arith.addf %166, %172 : vector<16x64xf32>
    %cst_60 = arith.constant 0.797884583 : f32
    %174 = vector.broadcast %cst_60 : f32 to vector<16x64xf32>
    %175 = arith.mulf %174, %173 : vector<16x64xf32>
    %176 = math.tanh %175 : vector<16x64xf32>
    %cst_61 = arith.constant 1.000000e+00 : f32
    %177 = vector.broadcast %cst_61 : f32 to vector<16x64xf32>
    %178 = arith.addf %177, %176 : vector<16x64xf32>
    %179 = arith.mulf %168, %178 : vector<16x64xf32>
    %c0_62 = arith.constant 0 : index
    %c0_63 = arith.constant 0 : index
    %c0_64 = arith.constant 0 : index
    %180 = vector.load %arg13[%c0_62, %c0_63, %c0_64] : memref<4x32x64xf32, #tpu.memory_space<vmem>>, vector<1x32x64xf32>
    %181 = vector.shape_cast %180 : vector<1x32x64xf32> to vector<32x64xf32>
    %cst_65 = arith.constant dense<0.000000e+00> : vector<16x32xf32>
    %182 = tpu.matmul %179, %181, %cst_65 {dimension_numbers = #tpu.dot_dimension_numbers<[1], [1], [0], [0], [0, 0, 1, 0], [], []>} : vector<16x64xf32>, vector<32x64xf32>, vector<16x32xf32> -> vector<16x32xf32>
    %183 = arith.addf %130, %182 : vector<16x32xf32>
    %c0_66 = arith.constant 0 : index
    %c0_67 = arith.constant 0 : index
    %184 = vector.load %arg14[%c0_66, %c0_67] : memref<4x32xf32, #tpu.memory_space<vmem>>, vector<1x32xf32>
    %185 = vector.shape_cast %184 : vector<1x32xf32> to vector<32xf32>
    %186 = vector.shape_cast %185 : vector<32xf32> to vector<1x32xf32>
    %187 = vector.broadcast %186 : vector<1x32xf32> to vector<16x32xf32>
    %188 = arith.addf %183, %187 : vector<16x32xf32>
    %c1 = arith.constant 1 : index
    %c0_68 = arith.constant 0 : index
    %189 = vector.load %arg5[%c1, %c0_68] : memref<12x32xf32, #tpu.memory_space<vmem>>, vector<1x32xf32>
    %190 = vector.shape_cast %189 : vector<1x32xf32> to vector<32xf32>
    %c1_69 = arith.constant 1 : index
    %c0_70 = arith.constant 0 : index
    %191 = vector.load %arg6[%c1_69, %c0_70] : memref<12x32xf32, #tpu.memory_space<vmem>>, vector<1x32xf32>
    %192 = vector.shape_cast %191 : vector<1x32xf32> to vector<32xf32>
    %cst_71 = arith.constant dense<0.000000e+00> : vector<16xf32>
    %193 = vector.multi_reduction <add>, %188, %cst_71 [1] : vector<16x32xf32> to vector<16xf32>
    %194 = vector.shape_cast %193 : vector<16xf32> to vector<16x1xf32>
    %cst_72 = arith.constant 3.200000e+01 : f32
    %195 = vector.broadcast %cst_72 : f32 to vector<16x1xf32>
    %196 = arith.divf %194, %195 : vector<16x1xf32>
    %197 = vector.broadcast %196 : vector<16x1xf32> to vector<16x32xf32>
    %198 = arith.subf %188, %197 : vector<16x32xf32>
    %199 = arith.mulf %198, %198 : vector<16x32xf32>
    %cst_73 = arith.constant dense<0.000000e+00> : vector<16xf32>
    %200 = vector.multi_reduction <add>, %199, %cst_73 [1] : vector<16x32xf32> to vector<16xf32>
    %201 = vector.shape_cast %200 : vector<16xf32> to vector<16x1xf32>
    %cst_74 = arith.constant 3.200000e+01 : f32
    %202 = vector.broadcast %cst_74 : f32 to vector<16x1xf32>
    %203 = arith.divf %201, %202 : vector<16x1xf32>
    %204 = vector.broadcast %196 : vector<16x1xf32> to vector<16x32xf32>
    %205 = arith.subf %188, %204 : vector<16x32xf32>
    %cst_75 = arith.constant 9.99999974E-6 : f32
    %206 = vector.broadcast %cst_75 : f32 to vector<16x1xf32>
    %207 = arith.addf %203, %206 : vector<16x1xf32>
    %208 = math.rsqrt %207 : vector<16x1xf32>
    %209 = vector.broadcast %208 : vector<16x1xf32> to vector<16x32xf32>
    %210 = arith.mulf %205, %209 : vector<16x32xf32>
    %211 = vector.shape_cast %190 : vector<32xf32> to vector<1x32xf32>
    %212 = vector.broadcast %211 : vector<1x32xf32> to vector<16x32xf32>
    %213 = arith.mulf %210, %212 : vector<16x32xf32>
    %214 = vector.shape_cast %192 : vector<32xf32> to vector<1x32xf32>
    %215 = vector.broadcast %214 : vector<1x32xf32> to vector<16x32xf32>
    %216 = arith.addf %213, %215 : vector<16x32xf32>
    %c1_76 = arith.constant 1 : index
    %c0_77 = arith.constant 0 : index
    %c0_78 = arith.constant 0 : index
    %217 = vector.load %arg7[%c1_76, %c0_77, %c0_78] : memref<6x96x32xf32, #tpu.memory_space<vmem>>, vector<1x96x32xf32>
    %218 = vector.shape_cast %217 : vector<1x96x32xf32> to vector<96x32xf32>
    %c1_79 = arith.constant 1 : index
    %c0_80 = arith.constant 0 : index
    %219 = vector.load %arg8[%c1_79, %c0_80] : memref<6x96xf32, #tpu.memory_space<vmem>>, vector<1x96xf32>
    %220 = vector.shape_cast %219 : vector<1x96xf32> to vector<96xf32>
    %cst_81 = arith.constant dense<0.000000e+00> : vector<16x96xf32>
    %221 = tpu.matmul %216, %218, %cst_81 {dimension_numbers = #tpu.dot_dimension_numbers<[1], [1], [0], [0], [0, 0, 1, 0], [], []>} : vector<16x32xf32>, vector<96x32xf32>, vector<16x96xf32> -> vector<16x96xf32>
    %222 = vector.shape_cast %220 : vector<96xf32> to vector<1x96xf32>
    %223 = vector.broadcast %222 : vector<1x96xf32> to vector<16x96xf32>
    %224 = arith.addf %221, %223 : vector<16x96xf32>
    %225 = vector.extract_strided_slice %224 {offsets = [0, 0], sizes = [16, 32], strides = [1, 1]} : vector<16x96xf32> to vector<16x32xf32>
    %226 = vector.extract_strided_slice %224 {offsets = [0, 32], sizes = [16, 32], strides = [1, 1]} : vector<16x96xf32> to vector<16x32xf32>
    %227 = vector.extract_strided_slice %224 {offsets = [0, 64], sizes = [16, 32], strides = [1, 1]} : vector<16x96xf32> to vector<16x32xf32>
    %228 = vector.shape_cast %225 : vector<16x32xf32> to vector<2x8x32xf32>
    %229 = vector.shape_cast %226 : vector<16x32xf32> to vector<2x8x32xf32>
    %230 = vector.shape_cast %227 : vector<16x32xf32> to vector<2x8x32xf32>
    %c1_82 = arith.constant 1 : index
    %c0_83 = arith.constant 0 : index
    %c0_84 = arith.constant 0 : index
    %231 = vector.load %arg9[%c1_82, %c0_83, %c0_84] : memref<6x32x32xf32, #tpu.memory_space<vmem>>, vector<1x32x32xf32>
    %232 = vector.shape_cast %231 : vector<1x32x32xf32> to vector<32x32xf32>
    %cst_85 = arith.constant 0.000000e+00 : f32
    %233 = vector.broadcast %cst_85 : f32 to vector<16x32xf32>
    %234 = vector.extract_strided_slice %228 {offsets = [0, 0, 0], sizes = [2, 8, 8], strides = [1, 1, 1]} : vector<2x8x32xf32> to vector<2x8x8xf32>
    %235 = vector.extract_strided_slice %229 {offsets = [0, 0, 0], sizes = [2, 8, 8], strides = [1, 1, 1]} : vector<2x8x32xf32> to vector<2x8x8xf32>
    "tpu.trace_start"() <{level = 10 : i32, message = "bqd,bkd->bqk"}> : () -> ()
    %cst_86 = arith.constant dense<0.000000e+00> : vector<2x8x8xf32>
    %236 = tpu.matmul %234, %235, %cst_86 {dimension_numbers = #tpu.dot_dimension_numbers<[2], [2], [1], [1], [0, 0, 0, 1, 1, 1], [0], [0]>} : vector<2x8x8xf32>, vector<2x8x8xf32>, vector<2x8x8xf32> -> vector<2x8x8xf32>
    "tpu.trace_stop"() : () -> ()
    %cst_87 = arith.constant dense<0xFF800000> : vector<2x8xf32>
    %237 = vector.multi_reduction <maximumf>, %236, %cst_87 [2] : vector<2x8x8xf32> to vector<2x8xf32>
    %238 = vector.shape_cast %237 : vector<2x8xf32> to vector<2x8x1xf32>
    %239 = vector.broadcast %238 : vector<2x8x1xf32> to vector<2x8x8xf32>
    %240 = arith.subf %236, %239 : vector<2x8x8xf32>
    %241 = math.exp %240 : vector<2x8x8xf32>
    %cst_88 = arith.constant dense<0.000000e+00> : vector<2x8xf32>
    %242 = vector.multi_reduction <add>, %241, %cst_88 [2] : vector<2x8x8xf32> to vector<2x8xf32>
    %243 = vector.shape_cast %242 : vector<2x8xf32> to vector<2x8x1xf32>
    %244 = vector.broadcast %243 : vector<2x8x1xf32> to vector<2x8x8xf32>
    %245 = arith.divf %241, %244 : vector<2x8x8xf32>
    %246 = vector.extract_strided_slice %230 {offsets = [0, 0, 0], sizes = [2, 8, 8], strides = [1, 1, 1]} : vector<2x8x32xf32> to vector<2x8x8xf32>
    "tpu.trace_start"() <{level = 10 : i32, message = "bqk,bkd->bqd"}> : () -> ()
    %cst_89 = arith.constant dense<0.000000e+00> : vector<2x8x8xf32>
    %247 = tpu.matmul %245, %246, %cst_89 {dimension_numbers = #tpu.dot_dimension_numbers<[2], [1], [1], [2], [0, 0, 0, 1, 1, 2], [0], [0]>} : vector<2x8x8xf32>, vector<2x8x8xf32>, vector<2x8x8xf32> -> vector<2x8x8xf32>
    "tpu.trace_stop"() : () -> ()
    %248 = vector.shape_cast %247 : vector<2x8x8xf32> to vector<16x8xf32>
    %249 = vector.extract_strided_slice %232 {offsets = [0, 0], sizes = [32, 8], strides = [1, 1]} : vector<32x32xf32> to vector<32x8xf32>
    %cst_90 = arith.constant dense<0.000000e+00> : vector<16x32xf32>
    %250 = tpu.matmul %248, %249, %cst_90 {dimension_numbers = #tpu.dot_dimension_numbers<[1], [1], [0], [0], [0, 0, 1, 0], [], []>} : vector<16x8xf32>, vector<32x8xf32>, vector<16x32xf32> -> vector<16x32xf32>
    %251 = arith.addf %233, %250 : vector<16x32xf32>
    %252 = vector.extract_strided_slice %228 {offsets = [0, 0, 8], sizes = [2, 8, 8], strides = [1, 1, 1]} : vector<2x8x32xf32> to vector<2x8x8xf32>
    %253 = vector.extract_strided_slice %229 {offsets = [0, 0, 8], sizes = [2, 8, 8], strides = [1, 1, 1]} : vector<2x8x32xf32> to vector<2x8x8xf32>
    "tpu.trace_start"() <{level = 10 : i32, message = "bqd,bkd->bqk"}> : () -> ()
    %cst_91 = arith.constant dense<0.000000e+00> : vector<2x8x8xf32>
    %254 = tpu.matmul %252, %253, %cst_91 {dimension_numbers = #tpu.dot_dimension_numbers<[2], [2], [1], [1], [0, 0, 0, 1, 1, 1], [0], [0]>} : vector<2x8x8xf32>, vector<2x8x8xf32>, vector<2x8x8xf32> -> vector<2x8x8xf32>
    "tpu.trace_stop"() : () -> ()
    %cst_92 = arith.constant dense<0xFF800000> : vector<2x8xf32>
    %255 = vector.multi_reduction <maximumf>, %254, %cst_92 [2] : vector<2x8x8xf32> to vector<2x8xf32>
    %256 = vector.shape_cast %255 : vector<2x8xf32> to vector<2x8x1xf32>
    %257 = vector.broadcast %256 : vector<2x8x1xf32> to vector<2x8x8xf32>
    %258 = arith.subf %254, %257 : vector<2x8x8xf32>
    %259 = math.exp %258 : vector<2x8x8xf32>
    %cst_93 = arith.constant dense<0.000000e+00> : vector<2x8xf32>
    %260 = vector.multi_reduction <add>, %259, %cst_93 [2] : vector<2x8x8xf32> to vector<2x8xf32>
    %261 = vector.shape_cast %260 : vector<2x8xf32> to vector<2x8x1xf32>
    %262 = vector.broadcast %261 : vector<2x8x1xf32> to vector<2x8x8xf32>
    %263 = arith.divf %259, %262 : vector<2x8x8xf32>
    %264 = vector.extract_strided_slice %230 {offsets = [0, 0, 8], sizes = [2, 8, 8], strides = [1, 1, 1]} : vector<2x8x32xf32> to vector<2x8x8xf32>
    "tpu.trace_start"() <{level = 10 : i32, message = "bqk,bkd->bqd"}> : () -> ()
    %cst_94 = arith.constant dense<0.000000e+00> : vector<2x8x8xf32>
    %265 = tpu.matmul %263, %264, %cst_94 {dimension_numbers = #tpu.dot_dimension_numbers<[2], [1], [1], [2], [0, 0, 0, 1, 1, 2], [0], [0]>} : vector<2x8x8xf32>, vector<2x8x8xf32>, vector<2x8x8xf32> -> vector<2x8x8xf32>
    "tpu.trace_stop"() : () -> ()
    %266 = vector.shape_cast %265 : vector<2x8x8xf32> to vector<16x8xf32>
    %267 = vector.extract_strided_slice %232 {offsets = [0, 8], sizes = [32, 8], strides = [1, 1]} : vector<32x32xf32> to vector<32x8xf32>
    %cst_95 = arith.constant dense<0.000000e+00> : vector<16x32xf32>
    %268 = tpu.matmul %266, %267, %cst_95 {dimension_numbers = #tpu.dot_dimension_numbers<[1], [1], [0], [0], [0, 0, 1, 0], [], []>} : vector<16x8xf32>, vector<32x8xf32>, vector<16x32xf32> -> vector<16x32xf32>
    %269 = arith.addf %251, %268 : vector<16x32xf32>
    %270 = vector.extract_strided_slice %228 {offsets = [0, 0, 16], sizes = [2, 8, 8], strides = [1, 1, 1]} : vector<2x8x32xf32> to vector<2x8x8xf32>
    %271 = vector.extract_strided_slice %229 {offsets = [0, 0, 16], sizes = [2, 8, 8], strides = [1, 1, 1]} : vector<2x8x32xf32> to vector<2x8x8xf32>
    "tpu.trace_start"() <{level = 10 : i32, message = "bqd,bkd->bqk"}> : () -> ()
    %cst_96 = arith.constant dense<0.000000e+00> : vector<2x8x8xf32>
    %272 = tpu.matmul %270, %271, %cst_96 {dimension_numbers = #tpu.dot_dimension_numbers<[2], [2], [1], [1], [0, 0, 0, 1, 1, 1], [0], [0]>} : vector<2x8x8xf32>, vector<2x8x8xf32>, vector<2x8x8xf32> -> vector<2x8x8xf32>
    "tpu.trace_stop"() : () -> ()
    %cst_97 = arith.constant dense<0xFF800000> : vector<2x8xf32>
    %273 = vector.multi_reduction <maximumf>, %272, %cst_97 [2] : vector<2x8x8xf32> to vector<2x8xf32>
    %274 = vector.shape_cast %273 : vector<2x8xf32> to vector<2x8x1xf32>
    %275 = vector.broadcast %274 : vector<2x8x1xf32> to vector<2x8x8xf32>
    %276 = arith.subf %272, %275 : vector<2x8x8xf32>
    %277 = math.exp %276 : vector<2x8x8xf32>
    %cst_98 = arith.constant dense<0.000000e+00> : vector<2x8xf32>
    %278 = vector.multi_reduction <add>, %277, %cst_98 [2] : vector<2x8x8xf32> to vector<2x8xf32>
    %279 = vector.shape_cast %278 : vector<2x8xf32> to vector<2x8x1xf32>
    %280 = vector.broadcast %279 : vector<2x8x1xf32> to vector<2x8x8xf32>
    %281 = arith.divf %277, %280 : vector<2x8x8xf32>
    %282 = vector.extract_strided_slice %230 {offsets = [0, 0, 16], sizes = [2, 8, 8], strides = [1, 1, 1]} : vector<2x8x32xf32> to vector<2x8x8xf32>
    "tpu.trace_start"() <{level = 10 : i32, message = "bqk,bkd->bqd"}> : () -> ()
    %cst_99 = arith.constant dense<0.000000e+00> : vector<2x8x8xf32>
    %283 = tpu.matmul %281, %282, %cst_99 {dimension_numbers = #tpu.dot_dimension_numbers<[2], [1], [1], [2], [0, 0, 0, 1, 1, 2], [0], [0]>} : vector<2x8x8xf32>, vector<2x8x8xf32>, vector<2x8x8xf32> -> vector<2x8x8xf32>
    "tpu.trace_stop"() : () -> ()
    %284 = vector.shape_cast %283 : vector<2x8x8xf32> to vector<16x8xf32>
    %285 = vector.extract_strided_slice %232 {offsets = [0, 16], sizes = [32, 8], strides = [1, 1]} : vector<32x32xf32> to vector<32x8xf32>
    %cst_100 = arith.constant dense<0.000000e+00> : vector<16x32xf32>
    %286 = tpu.matmul %284, %285, %cst_100 {dimension_numbers = #tpu.dot_dimension_numbers<[1], [1], [0], [0], [0, 0, 1, 0], [], []>} : vector<16x8xf32>, vector<32x8xf32>, vector<16x32xf32> -> vector<16x32xf32>
    %287 = arith.addf %269, %286 : vector<16x32xf32>
    %288 = vector.extract_strided_slice %228 {offsets = [0, 0, 24], sizes = [2, 8, 8], strides = [1, 1, 1]} : vector<2x8x32xf32> to vector<2x8x8xf32>
    %289 = vector.extract_strided_slice %229 {offsets = [0, 0, 24], sizes = [2, 8, 8], strides = [1, 1, 1]} : vector<2x8x32xf32> to vector<2x8x8xf32>
    "tpu.trace_start"() <{level = 10 : i32, message = "bqd,bkd->bqk"}> : () -> ()
    %cst_101 = arith.constant dense<0.000000e+00> : vector<2x8x8xf32>
    %290 = tpu.matmul %288, %289, %cst_101 {dimension_numbers = #tpu.dot_dimension_numbers<[2], [2], [1], [1], [0, 0, 0, 1, 1, 1], [0], [0]>} : vector<2x8x8xf32>, vector<2x8x8xf32>, vector<2x8x8xf32> -> vector<2x8x8xf32>
    "tpu.trace_stop"() : () -> ()
    %cst_102 = arith.constant dense<0xFF800000> : vector<2x8xf32>
    %291 = vector.multi_reduction <maximumf>, %290, %cst_102 [2] : vector<2x8x8xf32> to vector<2x8xf32>
    %292 = vector.shape_cast %291 : vector<2x8xf32> to vector<2x8x1xf32>
    %293 = vector.broadcast %292 : vector<2x8x1xf32> to vector<2x8x8xf32>
    %294 = arith.subf %290, %293 : vector<2x8x8xf32>
    %295 = math.exp %294 : vector<2x8x8xf32>
    %cst_103 = arith.constant dense<0.000000e+00> : vector<2x8xf32>
    %296 = vector.multi_reduction <add>, %295, %cst_103 [2] : vector<2x8x8xf32> to vector<2x8xf32>
    %297 = vector.shape_cast %296 : vector<2x8xf32> to vector<2x8x1xf32>
    %298 = vector.broadcast %297 : vector<2x8x1xf32> to vector<2x8x8xf32>
    %299 = arith.divf %295, %298 : vector<2x8x8xf32>
    %300 = vector.extract_strided_slice %230 {offsets = [0, 0, 24], sizes = [2, 8, 8], strides = [1, 1, 1]} : vector<2x8x32xf32> to vector<2x8x8xf32>
    "tpu.trace_start"() <{level = 10 : i32, message = "bqk,bkd->bqd"}> : () -> ()
    %cst_104 = arith.constant dense<0.000000e+00> : vector<2x8x8xf32>
    %301 = tpu.matmul %299, %300, %cst_104 {dimension_numbers = #tpu.dot_dimension_numbers<[2], [1], [1], [2], [0, 0, 0, 1, 1, 2], [0], [0]>} : vector<2x8x8xf32>, vector<2x8x8xf32>, vector<2x8x8xf32> -> vector<2x8x8xf32>
    "tpu.trace_stop"() : () -> ()
    %302 = vector.shape_cast %301 : vector<2x8x8xf32> to vector<16x8xf32>
    %303 = vector.extract_strided_slice %232 {offsets = [0, 24], sizes = [32, 8], strides = [1, 1]} : vector<32x32xf32> to vector<32x8xf32>
    %cst_105 = arith.constant dense<0.000000e+00> : vector<16x32xf32>
    %304 = tpu.matmul %302, %303, %cst_105 {dimension_numbers = #tpu.dot_dimension_numbers<[1], [1], [0], [0], [0, 0, 1, 0], [], []>} : vector<16x8xf32>, vector<32x8xf32>, vector<16x32xf32> -> vector<16x32xf32>
    %305 = arith.addf %287, %304 : vector<16x32xf32>
    %306 = arith.addf %188, %305 : vector<16x32xf32>
    %c1_106 = arith.constant 1 : index
    %c0_107 = arith.constant 0 : index
    %307 = vector.load %arg10[%c1_106, %c0_107] : memref<6x32xf32, #tpu.memory_space<vmem>>, vector<1x32xf32>
    %308 = vector.shape_cast %307 : vector<1x32xf32> to vector<32xf32>
    %309 = vector.shape_cast %308 : vector<32xf32> to vector<1x32xf32>
    %310 = vector.broadcast %309 : vector<1x32xf32> to vector<16x32xf32>
    %311 = arith.addf %306, %310 : vector<16x32xf32>
    %c3 = arith.constant 3 : index
    %c0_108 = arith.constant 0 : index
    %312 = vector.load %arg5[%c3, %c0_108] : memref<12x32xf32, #tpu.memory_space<vmem>>, vector<1x32xf32>
    %313 = vector.shape_cast %312 : vector<1x32xf32> to vector<32xf32>
    %c3_109 = arith.constant 3 : index
    %c0_110 = arith.constant 0 : index
    %314 = vector.load %arg6[%c3_109, %c0_110] : memref<12x32xf32, #tpu.memory_space<vmem>>, vector<1x32xf32>
    %315 = vector.shape_cast %314 : vector<1x32xf32> to vector<32xf32>
    %cst_111 = arith.constant dense<0.000000e+00> : vector<16xf32>
    %316 = vector.multi_reduction <add>, %311, %cst_111 [1] : vector<16x32xf32> to vector<16xf32>
    %317 = vector.shape_cast %316 : vector<16xf32> to vector<16x1xf32>
    %cst_112 = arith.constant 3.200000e+01 : f32
    %318 = vector.broadcast %cst_112 : f32 to vector<16x1xf32>
    %319 = arith.divf %317, %318 : vector<16x1xf32>
    %320 = vector.broadcast %319 : vector<16x1xf32> to vector<16x32xf32>
    %321 = arith.subf %311, %320 : vector<16x32xf32>
    %322 = arith.mulf %321, %321 : vector<16x32xf32>
    %cst_113 = arith.constant dense<0.000000e+00> : vector<16xf32>
    %323 = vector.multi_reduction <add>, %322, %cst_113 [1] : vector<16x32xf32> to vector<16xf32>
    %324 = vector.shape_cast %323 : vector<16xf32> to vector<16x1xf32>
    %cst_114 = arith.constant 3.200000e+01 : f32
    %325 = vector.broadcast %cst_114 : f32 to vector<16x1xf32>
    %326 = arith.divf %324, %325 : vector<16x1xf32>
    %327 = vector.broadcast %319 : vector<16x1xf32> to vector<16x32xf32>
    %328 = arith.subf %311, %327 : vector<16x32xf32>
    %cst_115 = arith.constant 9.99999974E-6 : f32
    %329 = vector.broadcast %cst_115 : f32 to vector<16x1xf32>
    %330 = arith.addf %326, %329 : vector<16x1xf32>
    %331 = math.rsqrt %330 : vector<16x1xf32>
    %332 = vector.broadcast %331 : vector<16x1xf32> to vector<16x32xf32>
    %333 = arith.mulf %328, %332 : vector<16x32xf32>
    %334 = vector.shape_cast %313 : vector<32xf32> to vector<1x32xf32>
    %335 = vector.broadcast %334 : vector<1x32xf32> to vector<16x32xf32>
    %336 = arith.mulf %333, %335 : vector<16x32xf32>
    %337 = vector.shape_cast %315 : vector<32xf32> to vector<1x32xf32>
    %338 = vector.broadcast %337 : vector<1x32xf32> to vector<16x32xf32>
    %339 = arith.addf %336, %338 : vector<16x32xf32>
    %c1_116 = arith.constant 1 : index
    %c0_117 = arith.constant 0 : index
    %c0_118 = arith.constant 0 : index
    %340 = vector.load %arg11[%c1_116, %c0_117, %c0_118] : memref<4x64x32xf32, #tpu.memory_space<vmem>>, vector<1x64x32xf32>
    %341 = vector.shape_cast %340 : vector<1x64x32xf32> to vector<64x32xf32>
    %cst_119 = arith.constant dense<0.000000e+00> : vector<16x64xf32>
    %342 = tpu.matmul %339, %341, %cst_119 {dimension_numbers = #tpu.dot_dimension_numbers<[1], [1], [0], [0], [0, 0, 1, 0], [], []>} : vector<16x32xf32>, vector<64x32xf32>, vector<16x64xf32> -> vector<16x64xf32>
    %c1_120 = arith.constant 1 : index
    %c0_121 = arith.constant 0 : index
    %343 = vector.load %arg12[%c1_120, %c0_121] : memref<4x64xf32, #tpu.memory_space<vmem>>, vector<1x64xf32>
    %344 = vector.shape_cast %343 : vector<1x64xf32> to vector<64xf32>
    %345 = vector.shape_cast %344 : vector<64xf32> to vector<1x64xf32>
    %346 = vector.broadcast %345 : vector<1x64xf32> to vector<16x64xf32>
    %347 = arith.addf %342, %346 : vector<16x64xf32>
    %cst_122 = arith.constant 5.000000e-01 : f32
    %348 = vector.broadcast %cst_122 : f32 to vector<16x64xf32>
    %349 = arith.mulf %348, %347 : vector<16x64xf32>
    %cst_123 = arith.constant 4.471500e-02 : f32
    %350 = vector.broadcast %cst_123 : f32 to vector<16x64xf32>
    %351 = arith.mulf %350, %347 : vector<16x64xf32>
    %352 = arith.mulf %351, %347 : vector<16x64xf32>
    %353 = arith.mulf %352, %347 : vector<16x64xf32>
    %354 = arith.addf %347, %353 : vector<16x64xf32>
    %cst_124 = arith.constant 0.797884583 : f32
    %355 = vector.broadcast %cst_124 : f32 to vector<16x64xf32>
    %356 = arith.mulf %355, %354 : vector<16x64xf32>
    %357 = math.tanh %356 : vector<16x64xf32>
    %cst_125 = arith.constant 1.000000e+00 : f32
    %358 = vector.broadcast %cst_125 : f32 to vector<16x64xf32>
    %359 = arith.addf %358, %357 : vector<16x64xf32>
    %360 = arith.mulf %349, %359 : vector<16x64xf32>
    %c1_126 = arith.constant 1 : index
    %c0_127 = arith.constant 0 : index
    %c0_128 = arith.constant 0 : index
    %361 = vector.load %arg13[%c1_126, %c0_127, %c0_128] : memref<4x32x64xf32, #tpu.memory_space<vmem>>, vector<1x32x64xf32>
    %362 = vector.shape_cast %361 : vector<1x32x64xf32> to vector<32x64xf32>
    %cst_129 = arith.constant dense<0.000000e+00> : vector<16x32xf32>
    %363 = tpu.matmul %360, %362, %cst_129 {dimension_numbers = #tpu.dot_dimension_numbers<[1], [1], [0], [0], [0, 0, 1, 0], [], []>} : vector<16x64xf32>, vector<32x64xf32>, vector<16x32xf32> -> vector<16x32xf32>
    %364 = arith.addf %311, %363 : vector<16x32xf32>
    %c1_130 = arith.constant 1 : index
    %c0_131 = arith.constant 0 : index
    %365 = vector.load %arg14[%c1_130, %c0_131] : memref<4x32xf32, #tpu.memory_space<vmem>>, vector<1x32xf32>
    %366 = vector.shape_cast %365 : vector<1x32xf32> to vector<32xf32>
    %367 = vector.shape_cast %366 : vector<32xf32> to vector<1x32xf32>
    %368 = vector.broadcast %367 : vector<1x32xf32> to vector<16x32xf32>
    %369 = arith.addf %364, %368 : vector<16x32xf32>
    %c10 = arith.constant 10 : index
    %c0_132 = arith.constant 0 : index
    %370 = vector.load %arg5[%c10, %c0_132] : memref<12x32xf32, #tpu.memory_space<vmem>>, vector<1x32xf32>
    %371 = vector.shape_cast %370 : vector<1x32xf32> to vector<32xf32>
    %c10_133 = arith.constant 10 : index
    %c0_134 = arith.constant 0 : index
    %372 = vector.load %arg6[%c10_133, %c0_134] : memref<12x32xf32, #tpu.memory_space<vmem>>, vector<1x32xf32>
    %373 = vector.shape_cast %372 : vector<1x32xf32> to vector<32xf32>
    %cst_135 = arith.constant dense<0.000000e+00> : vector<16xf32>
    %374 = vector.multi_reduction <add>, %369, %cst_135 [1] : vector<16x32xf32> to vector<16xf32>
    %375 = vector.shape_cast %374 : vector<16xf32> to vector<16x1xf32>
    %cst_136 = arith.constant 3.200000e+01 : f32
    %376 = vector.broadcast %cst_136 : f32 to vector<16x1xf32>
    %377 = arith.divf %375, %376 : vector<16x1xf32>
    %378 = vector.broadcast %377 : vector<16x1xf32> to vector<16x32xf32>
    %379 = arith.subf %369, %378 : vector<16x32xf32>
    %380 = arith.mulf %379, %379 : vector<16x32xf32>
    %cst_137 = arith.constant dense<0.000000e+00> : vector<16xf32>
    %381 = vector.multi_reduction <add>, %380, %cst_137 [1] : vector<16x32xf32> to vector<16xf32>
    %382 = vector.shape_cast %381 : vector<16xf32> to vector<16x1xf32>
    %cst_138 = arith.constant 3.200000e+01 : f32
    %383 = vector.broadcast %cst_138 : f32 to vector<16x1xf32>
    %384 = arith.divf %382, %383 : vector<16x1xf32>
    %385 = vector.broadcast %377 : vector<16x1xf32> to vector<16x32xf32>
    %386 = arith.subf %369, %385 : vector<16x32xf32>
    %cst_139 = arith.constant 9.99999974E-6 : f32
    %387 = vector.broadcast %cst_139 : f32 to vector<16x1xf32>
    %388 = arith.addf %384, %387 : vector<16x1xf32>
    %389 = math.rsqrt %388 : vector<16x1xf32>
    %390 = vector.broadcast %389 : vector<16x1xf32> to vector<16x32xf32>
    %391 = arith.mulf %386, %390 : vector<16x32xf32>
    %392 = vector.shape_cast %371 : vector<32xf32> to vector<1x32xf32>
    %393 = vector.broadcast %392 : vector<1x32xf32> to vector<16x32xf32>
    %394 = arith.mulf %391, %393 : vector<16x32xf32>
    %395 = vector.shape_cast %373 : vector<32xf32> to vector<1x32xf32>
    %396 = vector.broadcast %395 : vector<1x32xf32> to vector<16x32xf32>
    %397 = arith.addf %394, %396 : vector<16x32xf32>
    %c0_140 = arith.constant 0 : index
    %c0_141 = arith.constant 0 : index
    %c0_142 = arith.constant 0 : index
    %398 = vector.load %arg3[%c0_140, %c0_141, %c0_142] : memref<2x8x32xf32, #tpu.memory_space<vmem>>, vector<2x8x32xf32>
    %399 = vector.shape_cast %398 : vector<2x8x32xf32> to vector<16x32xf32>
    %c4 = arith.constant 4 : index
    %c0_143 = arith.constant 0 : index
    %400 = vector.load %arg5[%c4, %c0_143] : memref<12x32xf32, #tpu.memory_space<vmem>>, vector<1x32xf32>
    %401 = vector.shape_cast %400 : vector<1x32xf32> to vector<32xf32>
    %c4_144 = arith.constant 4 : index
    %c0_145 = arith.constant 0 : index
    %402 = vector.load %arg6[%c4_144, %c0_145] : memref<12x32xf32, #tpu.memory_space<vmem>>, vector<1x32xf32>
    %403 = vector.shape_cast %402 : vector<1x32xf32> to vector<32xf32>
    %cst_146 = arith.constant dense<0.000000e+00> : vector<16xf32>
    %404 = vector.multi_reduction <add>, %399, %cst_146 [1] : vector<16x32xf32> to vector<16xf32>
    %405 = vector.shape_cast %404 : vector<16xf32> to vector<16x1xf32>
    %cst_147 = arith.constant 3.200000e+01 : f32
    %406 = vector.broadcast %cst_147 : f32 to vector<16x1xf32>
    %407 = arith.divf %405, %406 : vector<16x1xf32>
    %408 = vector.broadcast %407 : vector<16x1xf32> to vector<16x32xf32>
    %409 = arith.subf %399, %408 : vector<16x32xf32>
    %410 = arith.mulf %409, %409 : vector<16x32xf32>
    %cst_148 = arith.constant dense<0.000000e+00> : vector<16xf32>
    %411 = vector.multi_reduction <add>, %410, %cst_148 [1] : vector<16x32xf32> to vector<16xf32>
    %412 = vector.shape_cast %411 : vector<16xf32> to vector<16x1xf32>
    %cst_149 = arith.constant 3.200000e+01 : f32
    %413 = vector.broadcast %cst_149 : f32 to vector<16x1xf32>
    %414 = arith.divf %412, %413 : vector<16x1xf32>
    %415 = vector.broadcast %407 : vector<16x1xf32> to vector<16x32xf32>
    %416 = arith.subf %399, %415 : vector<16x32xf32>
    %cst_150 = arith.constant 9.99999974E-6 : f32
    %417 = vector.broadcast %cst_150 : f32 to vector<16x1xf32>
    %418 = arith.addf %414, %417 : vector<16x1xf32>
    %419 = math.rsqrt %418 : vector<16x1xf32>
    %420 = vector.broadcast %419 : vector<16x1xf32> to vector<16x32xf32>
    %421 = arith.mulf %416, %420 : vector<16x32xf32>
    %422 = vector.shape_cast %401 : vector<32xf32> to vector<1x32xf32>
    %423 = vector.broadcast %422 : vector<1x32xf32> to vector<16x32xf32>
    %424 = arith.mulf %421, %423 : vector<16x32xf32>
    %425 = vector.shape_cast %403 : vector<32xf32> to vector<1x32xf32>
    %426 = vector.broadcast %425 : vector<1x32xf32> to vector<16x32xf32>
    %427 = arith.addf %424, %426 : vector<16x32xf32>
    %c2_151 = arith.constant 2 : index
    %c0_152 = arith.constant 0 : index
    %c0_153 = arith.constant 0 : index
    %428 = vector.load %arg7[%c2_151, %c0_152, %c0_153] : memref<6x96x32xf32, #tpu.memory_space<vmem>>, vector<1x96x32xf32>
    %429 = vector.shape_cast %428 : vector<1x96x32xf32> to vector<96x32xf32>
    %c2_154 = arith.constant 2 : index
    %c0_155 = arith.constant 0 : index
    %430 = vector.load %arg8[%c2_154, %c0_155] : memref<6x96xf32, #tpu.memory_space<vmem>>, vector<1x96xf32>
    %431 = vector.shape_cast %430 : vector<1x96xf32> to vector<96xf32>
    %cst_156 = arith.constant dense<0.000000e+00> : vector<16x96xf32>
    %432 = tpu.matmul %427, %429, %cst_156 {dimension_numbers = #tpu.dot_dimension_numbers<[1], [1], [0], [0], [0, 0, 1, 0], [], []>} : vector<16x32xf32>, vector<96x32xf32>, vector<16x96xf32> -> vector<16x96xf32>
    %433 = vector.shape_cast %431 : vector<96xf32> to vector<1x96xf32>
    %434 = vector.broadcast %433 : vector<1x96xf32> to vector<16x96xf32>
    %435 = arith.addf %432, %434 : vector<16x96xf32>
    %436 = vector.extract_strided_slice %435 {offsets = [0, 0], sizes = [16, 32], strides = [1, 1]} : vector<16x96xf32> to vector<16x32xf32>
    %437 = vector.extract_strided_slice %435 {offsets = [0, 32], sizes = [16, 32], strides = [1, 1]} : vector<16x96xf32> to vector<16x32xf32>
    %438 = vector.extract_strided_slice %435 {offsets = [0, 64], sizes = [16, 32], strides = [1, 1]} : vector<16x96xf32> to vector<16x32xf32>
    %439 = vector.shape_cast %436 : vector<16x32xf32> to vector<2x8x32xf32>
    %440 = vector.shape_cast %437 : vector<16x32xf32> to vector<2x8x32xf32>
    %441 = vector.shape_cast %438 : vector<16x32xf32> to vector<2x8x32xf32>
    %c2_157 = arith.constant 2 : index
    %c0_158 = arith.constant 0 : index
    %c0_159 = arith.constant 0 : index
    %442 = vector.load %arg9[%c2_157, %c0_158, %c0_159] : memref<6x32x32xf32, #tpu.memory_space<vmem>>, vector<1x32x32xf32>
    %443 = vector.shape_cast %442 : vector<1x32x32xf32> to vector<32x32xf32>
    %cst_160 = arith.constant 0.000000e+00 : f32
    %444 = vector.broadcast %cst_160 : f32 to vector<16x32xf32>
    %445 = vector.extract_strided_slice %439 {offsets = [0, 0, 0], sizes = [2, 8, 8], strides = [1, 1, 1]} : vector<2x8x32xf32> to vector<2x8x8xf32>
    %446 = vector.extract_strided_slice %440 {offsets = [0, 0, 0], sizes = [2, 8, 8], strides = [1, 1, 1]} : vector<2x8x32xf32> to vector<2x8x8xf32>
    "tpu.trace_start"() <{level = 10 : i32, message = "bqd,bkd->bqk"}> : () -> ()
    %cst_161 = arith.constant dense<0.000000e+00> : vector<2x8x8xf32>
    %447 = tpu.matmul %445, %446, %cst_161 {dimension_numbers = #tpu.dot_dimension_numbers<[2], [2], [1], [1], [0, 0, 0, 1, 1, 1], [0], [0]>} : vector<2x8x8xf32>, vector<2x8x8xf32>, vector<2x8x8xf32> -> vector<2x8x8xf32>
    "tpu.trace_stop"() : () -> ()
    %448 = vector.shape_cast %5 : vector<8x8xf32> to vector<1x8x8xf32>
    %449 = vector.broadcast %448 : vector<1x8x8xf32> to vector<2x8x8xf32>
    %450 = arith.addf %447, %449 : vector<2x8x8xf32>
    %cst_162 = arith.constant dense<0xFF800000> : vector<2x8xf32>
    %451 = vector.multi_reduction <maximumf>, %450, %cst_162 [2] : vector<2x8x8xf32> to vector<2x8xf32>
    %452 = vector.shape_cast %451 : vector<2x8xf32> to vector<2x8x1xf32>
    %453 = vector.broadcast %452 : vector<2x8x1xf32> to vector<2x8x8xf32>
    %454 = arith.subf %450, %453 : vector<2x8x8xf32>
    %455 = math.exp %454 : vector<2x8x8xf32>
    %cst_163 = arith.constant dense<0.000000e+00> : vector<2x8xf32>
    %456 = vector.multi_reduction <add>, %455, %cst_163 [2] : vector<2x8x8xf32> to vector<2x8xf32>
    %457 = vector.shape_cast %456 : vector<2x8xf32> to vector<2x8x1xf32>
    %458 = vector.broadcast %457 : vector<2x8x1xf32> to vector<2x8x8xf32>
    %459 = arith.divf %455, %458 : vector<2x8x8xf32>
    %460 = vector.extract_strided_slice %441 {offsets = [0, 0, 0], sizes = [2, 8, 8], strides = [1, 1, 1]} : vector<2x8x32xf32> to vector<2x8x8xf32>
    "tpu.trace_start"() <{level = 10 : i32, message = "bqk,bkd->bqd"}> : () -> ()
    %cst_164 = arith.constant dense<0.000000e+00> : vector<2x8x8xf32>
    %461 = tpu.matmul %459, %460, %cst_164 {dimension_numbers = #tpu.dot_dimension_numbers<[2], [1], [1], [2], [0, 0, 0, 1, 1, 2], [0], [0]>} : vector<2x8x8xf32>, vector<2x8x8xf32>, vector<2x8x8xf32> -> vector<2x8x8xf32>
    "tpu.trace_stop"() : () -> ()
    %462 = vector.shape_cast %461 : vector<2x8x8xf32> to vector<16x8xf32>
    %463 = vector.extract_strided_slice %443 {offsets = [0, 0], sizes = [32, 8], strides = [1, 1]} : vector<32x32xf32> to vector<32x8xf32>
    %cst_165 = arith.constant dense<0.000000e+00> : vector<16x32xf32>
    %464 = tpu.matmul %462, %463, %cst_165 {dimension_numbers = #tpu.dot_dimension_numbers<[1], [1], [0], [0], [0, 0, 1, 0], [], []>} : vector<16x8xf32>, vector<32x8xf32>, vector<16x32xf32> -> vector<16x32xf32>
    %465 = arith.addf %444, %464 : vector<16x32xf32>
    %466 = vector.extract_strided_slice %439 {offsets = [0, 0, 8], sizes = [2, 8, 8], strides = [1, 1, 1]} : vector<2x8x32xf32> to vector<2x8x8xf32>
    %467 = vector.extract_strided_slice %440 {offsets = [0, 0, 8], sizes = [2, 8, 8], strides = [1, 1, 1]} : vector<2x8x32xf32> to vector<2x8x8xf32>
    "tpu.trace_start"() <{level = 10 : i32, message = "bqd,bkd->bqk"}> : () -> ()
    %cst_166 = arith.constant dense<0.000000e+00> : vector<2x8x8xf32>
    %468 = tpu.matmul %466, %467, %cst_166 {dimension_numbers = #tpu.dot_dimension_numbers<[2], [2], [1], [1], [0, 0, 0, 1, 1, 1], [0], [0]>} : vector<2x8x8xf32>, vector<2x8x8xf32>, vector<2x8x8xf32> -> vector<2x8x8xf32>
    "tpu.trace_stop"() : () -> ()
    %469 = vector.shape_cast %5 : vector<8x8xf32> to vector<1x8x8xf32>
    %470 = vector.broadcast %469 : vector<1x8x8xf32> to vector<2x8x8xf32>
    %471 = arith.addf %468, %470 : vector<2x8x8xf32>
    %cst_167 = arith.constant dense<0xFF800000> : vector<2x8xf32>
    %472 = vector.multi_reduction <maximumf>, %471, %cst_167 [2] : vector<2x8x8xf32> to vector<2x8xf32>
    %473 = vector.shape_cast %472 : vector<2x8xf32> to vector<2x8x1xf32>
    %474 = vector.broadcast %473 : vector<2x8x1xf32> to vector<2x8x8xf32>
    %475 = arith.subf %471, %474 : vector<2x8x8xf32>
    %476 = math.exp %475 : vector<2x8x8xf32>
    %cst_168 = arith.constant dense<0.000000e+00> : vector<2x8xf32>
    %477 = vector.multi_reduction <add>, %476, %cst_168 [2] : vector<2x8x8xf32> to vector<2x8xf32>
    %478 = vector.shape_cast %477 : vector<2x8xf32> to vector<2x8x1xf32>
    %479 = vector.broadcast %478 : vector<2x8x1xf32> to vector<2x8x8xf32>
    %480 = arith.divf %476, %479 : vector<2x8x8xf32>
    %481 = vector.extract_strided_slice %441 {offsets = [0, 0, 8], sizes = [2, 8, 8], strides = [1, 1, 1]} : vector<2x8x32xf32> to vector<2x8x8xf32>
    "tpu.trace_start"() <{level = 10 : i32, message = "bqk,bkd->bqd"}> : () -> ()
    %cst_169 = arith.constant dense<0.000000e+00> : vector<2x8x8xf32>
    %482 = tpu.matmul %480, %481, %cst_169 {dimension_numbers = #tpu.dot_dimension_numbers<[2], [1], [1], [2], [0, 0, 0, 1, 1, 2], [0], [0]>} : vector<2x8x8xf32>, vector<2x8x8xf32>, vector<2x8x8xf32> -> vector<2x8x8xf32>
    "tpu.trace_stop"() : () -> ()
    %483 = vector.shape_cast %482 : vector<2x8x8xf32> to vector<16x8xf32>
    %484 = vector.extract_strided_slice %443 {offsets = [0, 8], sizes = [32, 8], strides = [1, 1]} : vector<32x32xf32> to vector<32x8xf32>
    %cst_170 = arith.constant dense<0.000000e+00> : vector<16x32xf32>
    %485 = tpu.matmul %483, %484, %cst_170 {dimension_numbers = #tpu.dot_dimension_numbers<[1], [1], [0], [0], [0, 0, 1, 0], [], []>} : vector<16x8xf32>, vector<32x8xf32>, vector<16x32xf32> -> vector<16x32xf32>
    %486 = arith.addf %465, %485 : vector<16x32xf32>
    %487 = vector.extract_strided_slice %439 {offsets = [0, 0, 16], sizes = [2, 8, 8], strides = [1, 1, 1]} : vector<2x8x32xf32> to vector<2x8x8xf32>
    %488 = vector.extract_strided_slice %440 {offsets = [0, 0, 16], sizes = [2, 8, 8], strides = [1, 1, 1]} : vector<2x8x32xf32> to vector<2x8x8xf32>
    "tpu.trace_start"() <{level = 10 : i32, message = "bqd,bkd->bqk"}> : () -> ()
    %cst_171 = arith.constant dense<0.000000e+00> : vector<2x8x8xf32>
    %489 = tpu.matmul %487, %488, %cst_171 {dimension_numbers = #tpu.dot_dimension_numbers<[2], [2], [1], [1], [0, 0, 0, 1, 1, 1], [0], [0]>} : vector<2x8x8xf32>, vector<2x8x8xf32>, vector<2x8x8xf32> -> vector<2x8x8xf32>
    "tpu.trace_stop"() : () -> ()
    %490 = vector.shape_cast %5 : vector<8x8xf32> to vector<1x8x8xf32>
    %491 = vector.broadcast %490 : vector<1x8x8xf32> to vector<2x8x8xf32>
    %492 = arith.addf %489, %491 : vector<2x8x8xf32>
    %cst_172 = arith.constant dense<0xFF800000> : vector<2x8xf32>
    %493 = vector.multi_reduction <maximumf>, %492, %cst_172 [2] : vector<2x8x8xf32> to vector<2x8xf32>
    %494 = vector.shape_cast %493 : vector<2x8xf32> to vector<2x8x1xf32>
    %495 = vector.broadcast %494 : vector<2x8x1xf32> to vector<2x8x8xf32>
    %496 = arith.subf %492, %495 : vector<2x8x8xf32>
    %497 = math.exp %496 : vector<2x8x8xf32>
    %cst_173 = arith.constant dense<0.000000e+00> : vector<2x8xf32>
    %498 = vector.multi_reduction <add>, %497, %cst_173 [2] : vector<2x8x8xf32> to vector<2x8xf32>
    %499 = vector.shape_cast %498 : vector<2x8xf32> to vector<2x8x1xf32>
    %500 = vector.broadcast %499 : vector<2x8x1xf32> to vector<2x8x8xf32>
    %501 = arith.divf %497, %500 : vector<2x8x8xf32>
    %502 = vector.extract_strided_slice %441 {offsets = [0, 0, 16], sizes = [2, 8, 8], strides = [1, 1, 1]} : vector<2x8x32xf32> to vector<2x8x8xf32>
    "tpu.trace_start"() <{level = 10 : i32, message = "bqk,bkd->bqd"}> : () -> ()
    %cst_174 = arith.constant dense<0.000000e+00> : vector<2x8x8xf32>
    %503 = tpu.matmul %501, %502, %cst_174 {dimension_numbers = #tpu.dot_dimension_numbers<[2], [1], [1], [2], [0, 0, 0, 1, 1, 2], [0], [0]>} : vector<2x8x8xf32>, vector<2x8x8xf32>, vector<2x8x8xf32> -> vector<2x8x8xf32>
    "tpu.trace_stop"() : () -> ()
    %504 = vector.shape_cast %503 : vector<2x8x8xf32> to vector<16x8xf32>
    %505 = vector.extract_strided_slice %443 {offsets = [0, 16], sizes = [32, 8], strides = [1, 1]} : vector<32x32xf32> to vector<32x8xf32>
    %cst_175 = arith.constant dense<0.000000e+00> : vector<16x32xf32>
    %506 = tpu.matmul %504, %505, %cst_175 {dimension_numbers = #tpu.dot_dimension_numbers<[1], [1], [0], [0], [0, 0, 1, 0], [], []>} : vector<16x8xf32>, vector<32x8xf32>, vector<16x32xf32> -> vector<16x32xf32>
    %507 = arith.addf %486, %506 : vector<16x32xf32>
    %508 = vector.extract_strided_slice %439 {offsets = [0, 0, 24], sizes = [2, 8, 8], strides = [1, 1, 1]} : vector<2x8x32xf32> to vector<2x8x8xf32>
    %509 = vector.extract_strided_slice %440 {offsets = [0, 0, 24], sizes = [2, 8, 8], strides = [1, 1, 1]} : vector<2x8x32xf32> to vector<2x8x8xf32>
    "tpu.trace_start"() <{level = 10 : i32, message = "bqd,bkd->bqk"}> : () -> ()
    %cst_176 = arith.constant dense<0.000000e+00> : vector<2x8x8xf32>
    %510 = tpu.matmul %508, %509, %cst_176 {dimension_numbers = #tpu.dot_dimension_numbers<[2], [2], [1], [1], [0, 0, 0, 1, 1, 1], [0], [0]>} : vector<2x8x8xf32>, vector<2x8x8xf32>, vector<2x8x8xf32> -> vector<2x8x8xf32>
    "tpu.trace_stop"() : () -> ()
    %511 = vector.shape_cast %5 : vector<8x8xf32> to vector<1x8x8xf32>
    %512 = vector.broadcast %511 : vector<1x8x8xf32> to vector<2x8x8xf32>
    %513 = arith.addf %510, %512 : vector<2x8x8xf32>
    %cst_177 = arith.constant dense<0xFF800000> : vector<2x8xf32>
    %514 = vector.multi_reduction <maximumf>, %513, %cst_177 [2] : vector<2x8x8xf32> to vector<2x8xf32>
    %515 = vector.shape_cast %514 : vector<2x8xf32> to vector<2x8x1xf32>
    %516 = vector.broadcast %515 : vector<2x8x1xf32> to vector<2x8x8xf32>
    %517 = arith.subf %513, %516 : vector<2x8x8xf32>
    %518 = math.exp %517 : vector<2x8x8xf32>
    %cst_178 = arith.constant dense<0.000000e+00> : vector<2x8xf32>
    %519 = vector.multi_reduction <add>, %518, %cst_178 [2] : vector<2x8x8xf32> to vector<2x8xf32>
    %520 = vector.shape_cast %519 : vector<2x8xf32> to vector<2x8x1xf32>
    %521 = vector.broadcast %520 : vector<2x8x1xf32> to vector<2x8x8xf32>
    %522 = arith.divf %518, %521 : vector<2x8x8xf32>
    %523 = vector.extract_strided_slice %441 {offsets = [0, 0, 24], sizes = [2, 8, 8], strides = [1, 1, 1]} : vector<2x8x32xf32> to vector<2x8x8xf32>
    "tpu.trace_start"() <{level = 10 : i32, message = "bqk,bkd->bqd"}> : () -> ()
    %cst_179 = arith.constant dense<0.000000e+00> : vector<2x8x8xf32>
    %524 = tpu.matmul %522, %523, %cst_179 {dimension_numbers = #tpu.dot_dimension_numbers<[2], [1], [1], [2], [0, 0, 0, 1, 1, 2], [0], [0]>} : vector<2x8x8xf32>, vector<2x8x8xf32>, vector<2x8x8xf32> -> vector<2x8x8xf32>
    "tpu.trace_stop"() : () -> ()
    %525 = vector.shape_cast %524 : vector<2x8x8xf32> to vector<16x8xf32>
    %526 = vector.extract_strided_slice %443 {offsets = [0, 24], sizes = [32, 8], strides = [1, 1]} : vector<32x32xf32> to vector<32x8xf32>
    %cst_180 = arith.constant dense<0.000000e+00> : vector<16x32xf32>
    %527 = tpu.matmul %525, %526, %cst_180 {dimension_numbers = #tpu.dot_dimension_numbers<[1], [1], [0], [0], [0, 0, 1, 0], [], []>} : vector<16x8xf32>, vector<32x8xf32>, vector<16x32xf32> -> vector<16x32xf32>
    %528 = arith.addf %507, %527 : vector<16x32xf32>
    %529 = arith.addf %399, %528 : vector<16x32xf32>
    %c2_181 = arith.constant 2 : index
    %c0_182 = arith.constant 0 : index
    %530 = vector.load %arg10[%c2_181, %c0_182] : memref<6x32xf32, #tpu.memory_space<vmem>>, vector<1x32xf32>
    %531 = vector.shape_cast %530 : vector<1x32xf32> to vector<32xf32>
    %532 = vector.shape_cast %531 : vector<32xf32> to vector<1x32xf32>
    %533 = vector.broadcast %532 : vector<1x32xf32> to vector<16x32xf32>
    %534 = arith.addf %529, %533 : vector<16x32xf32>
    %c6 = arith.constant 6 : index
    %c0_183 = arith.constant 0 : index
    %535 = vector.load %arg5[%c6, %c0_183] : memref<12x32xf32, #tpu.memory_space<vmem>>, vector<1x32xf32>
    %536 = vector.shape_cast %535 : vector<1x32xf32> to vector<32xf32>
    %c6_184 = arith.constant 6 : index
    %c0_185 = arith.constant 0 : index
    %537 = vector.load %arg6[%c6_184, %c0_185] : memref<12x32xf32, #tpu.memory_space<vmem>>, vector<1x32xf32>
    %538 = vector.shape_cast %537 : vector<1x32xf32> to vector<32xf32>
    %cst_186 = arith.constant dense<0.000000e+00> : vector<16xf32>
    %539 = vector.multi_reduction <add>, %534, %cst_186 [1] : vector<16x32xf32> to vector<16xf32>
    %540 = vector.shape_cast %539 : vector<16xf32> to vector<16x1xf32>
    %cst_187 = arith.constant 3.200000e+01 : f32
    %541 = vector.broadcast %cst_187 : f32 to vector<16x1xf32>
    %542 = arith.divf %540, %541 : vector<16x1xf32>
    %543 = vector.broadcast %542 : vector<16x1xf32> to vector<16x32xf32>
    %544 = arith.subf %534, %543 : vector<16x32xf32>
    %545 = arith.mulf %544, %544 : vector<16x32xf32>
    %cst_188 = arith.constant dense<0.000000e+00> : vector<16xf32>
    %546 = vector.multi_reduction <add>, %545, %cst_188 [1] : vector<16x32xf32> to vector<16xf32>
    %547 = vector.shape_cast %546 : vector<16xf32> to vector<16x1xf32>
    %cst_189 = arith.constant 3.200000e+01 : f32
    %548 = vector.broadcast %cst_189 : f32 to vector<16x1xf32>
    %549 = arith.divf %547, %548 : vector<16x1xf32>
    %550 = vector.broadcast %542 : vector<16x1xf32> to vector<16x32xf32>
    %551 = arith.subf %534, %550 : vector<16x32xf32>
    %cst_190 = arith.constant 9.99999974E-6 : f32
    %552 = vector.broadcast %cst_190 : f32 to vector<16x1xf32>
    %553 = arith.addf %549, %552 : vector<16x1xf32>
    %554 = math.rsqrt %553 : vector<16x1xf32>
    %555 = vector.broadcast %554 : vector<16x1xf32> to vector<16x32xf32>
    %556 = arith.mulf %551, %555 : vector<16x32xf32>
    %557 = vector.shape_cast %536 : vector<32xf32> to vector<1x32xf32>
    %558 = vector.broadcast %557 : vector<1x32xf32> to vector<16x32xf32>
    %559 = arith.mulf %556, %558 : vector<16x32xf32>
    %560 = vector.shape_cast %538 : vector<32xf32> to vector<1x32xf32>
    %561 = vector.broadcast %560 : vector<1x32xf32> to vector<16x32xf32>
    %562 = arith.addf %559, %561 : vector<16x32xf32>
    %c4_191 = arith.constant 4 : index
    %c0_192 = arith.constant 0 : index
    %c0_193 = arith.constant 0 : index
    %563 = vector.load %arg7[%c4_191, %c0_192, %c0_193] : memref<6x96x32xf32, #tpu.memory_space<vmem>>, vector<1x96x32xf32>
    %564 = vector.shape_cast %563 : vector<1x96x32xf32> to vector<96x32xf32>
    %c4_194 = arith.constant 4 : index
    %c0_195 = arith.constant 0 : index
    %565 = vector.load %arg8[%c4_194, %c0_195] : memref<6x96xf32, #tpu.memory_space<vmem>>, vector<1x96xf32>
    %566 = vector.shape_cast %565 : vector<1x96xf32> to vector<96xf32>
    %567 = vector.extract_strided_slice %564 {offsets = [0, 0], sizes = [32, 32], strides = [1, 1]} : vector<96x32xf32> to vector<32x32xf32>
    %cst_196 = arith.constant dense<0.000000e+00> : vector<16x32xf32>
    %568 = tpu.matmul %562, %567, %cst_196 {dimension_numbers = #tpu.dot_dimension_numbers<[1], [1], [0], [0], [0, 0, 1, 0], [], []>} : vector<16x32xf32>, vector<32x32xf32>, vector<16x32xf32> -> vector<16x32xf32>
    %569 = vector.extract_strided_slice %566 {offsets = [0], sizes = [32], strides = [1]} : vector<96xf32> to vector<32xf32>
    %570 = vector.shape_cast %569 : vector<32xf32> to vector<1x32xf32>
    %571 = vector.broadcast %570 : vector<1x32xf32> to vector<16x32xf32>
    %572 = arith.addf %568, %571 : vector<16x32xf32>
    %573 = vector.extract_strided_slice %564 {offsets = [32, 0], sizes = [64, 32], strides = [1, 1]} : vector<96x32xf32> to vector<64x32xf32>
    %cst_197 = arith.constant dense<0.000000e+00> : vector<16x64xf32>
    %574 = tpu.matmul %397, %573, %cst_197 {dimension_numbers = #tpu.dot_dimension_numbers<[1], [1], [0], [0], [0, 0, 1, 0], [], []>} : vector<16x32xf32>, vector<64x32xf32>, vector<16x64xf32> -> vector<16x64xf32>
    %575 = vector.extract_strided_slice %566 {offsets = [32], sizes = [64], strides = [1]} : vector<96xf32> to vector<64xf32>
    %576 = vector.shape_cast %575 : vector<64xf32> to vector<1x64xf32>
    %577 = vector.broadcast %576 : vector<1x64xf32> to vector<16x64xf32>
    %578 = arith.addf %574, %577 : vector<16x64xf32>
    %579 = vector.extract_strided_slice %578 {offsets = [0, 0], sizes = [16, 32], strides = [1, 1]} : vector<16x64xf32> to vector<16x32xf32>
    %580 = vector.extract_strided_slice %578 {offsets = [0, 32], sizes = [16, 32], strides = [1, 1]} : vector<16x64xf32> to vector<16x32xf32>
    %581 = vector.shape_cast %572 : vector<16x32xf32> to vector<2x8x32xf32>
    %582 = vector.shape_cast %579 : vector<16x32xf32> to vector<2x8x32xf32>
    %583 = vector.shape_cast %580 : vector<16x32xf32> to vector<2x8x32xf32>
    %c4_198 = arith.constant 4 : index
    %c0_199 = arith.constant 0 : index
    %c0_200 = arith.constant 0 : index
    %584 = vector.load %arg9[%c4_198, %c0_199, %c0_200] : memref<6x32x32xf32, #tpu.memory_space<vmem>>, vector<1x32x32xf32>
    %585 = vector.shape_cast %584 : vector<1x32x32xf32> to vector<32x32xf32>
    %cst_201 = arith.constant 0.000000e+00 : f32
    %586 = vector.broadcast %cst_201 : f32 to vector<16x32xf32>
    %587 = vector.extract_strided_slice %581 {offsets = [0, 0, 0], sizes = [2, 8, 8], strides = [1, 1, 1]} : vector<2x8x32xf32> to vector<2x8x8xf32>
    %588 = vector.extract_strided_slice %582 {offsets = [0, 0, 0], sizes = [2, 8, 8], strides = [1, 1, 1]} : vector<2x8x32xf32> to vector<2x8x8xf32>
    "tpu.trace_start"() <{level = 10 : i32, message = "bqd,bkd->bqk"}> : () -> ()
    %cst_202 = arith.constant dense<0.000000e+00> : vector<2x8x8xf32>
    %589 = tpu.matmul %587, %588, %cst_202 {dimension_numbers = #tpu.dot_dimension_numbers<[2], [2], [1], [1], [0, 0, 0, 1, 1, 1], [0], [0]>} : vector<2x8x8xf32>, vector<2x8x8xf32>, vector<2x8x8xf32> -> vector<2x8x8xf32>
    "tpu.trace_stop"() : () -> ()
    %cst_203 = arith.constant dense<0xFF800000> : vector<2x8xf32>
    %590 = vector.multi_reduction <maximumf>, %589, %cst_203 [2] : vector<2x8x8xf32> to vector<2x8xf32>
    %591 = vector.shape_cast %590 : vector<2x8xf32> to vector<2x8x1xf32>
    %592 = vector.broadcast %591 : vector<2x8x1xf32> to vector<2x8x8xf32>
    %593 = arith.subf %589, %592 : vector<2x8x8xf32>
    %594 = math.exp %593 : vector<2x8x8xf32>
    %cst_204 = arith.constant dense<0.000000e+00> : vector<2x8xf32>
    %595 = vector.multi_reduction <add>, %594, %cst_204 [2] : vector<2x8x8xf32> to vector<2x8xf32>
    %596 = vector.shape_cast %595 : vector<2x8xf32> to vector<2x8x1xf32>
    %597 = vector.broadcast %596 : vector<2x8x1xf32> to vector<2x8x8xf32>
    %598 = arith.divf %594, %597 : vector<2x8x8xf32>
    %599 = vector.extract_strided_slice %583 {offsets = [0, 0, 0], sizes = [2, 8, 8], strides = [1, 1, 1]} : vector<2x8x32xf32> to vector<2x8x8xf32>
    "tpu.trace_start"() <{level = 10 : i32, message = "bqk,bkd->bqd"}> : () -> ()
    %cst_205 = arith.constant dense<0.000000e+00> : vector<2x8x8xf32>
    %600 = tpu.matmul %598, %599, %cst_205 {dimension_numbers = #tpu.dot_dimension_numbers<[2], [1], [1], [2], [0, 0, 0, 1, 1, 2], [0], [0]>} : vector<2x8x8xf32>, vector<2x8x8xf32>, vector<2x8x8xf32> -> vector<2x8x8xf32>
    "tpu.trace_stop"() : () -> ()
    %601 = vector.shape_cast %600 : vector<2x8x8xf32> to vector<16x8xf32>
    %602 = vector.extract_strided_slice %585 {offsets = [0, 0], sizes = [32, 8], strides = [1, 1]} : vector<32x32xf32> to vector<32x8xf32>
    %cst_206 = arith.constant dense<0.000000e+00> : vector<16x32xf32>
    %603 = tpu.matmul %601, %602, %cst_206 {dimension_numbers = #tpu.dot_dimension_numbers<[1], [1], [0], [0], [0, 0, 1, 0], [], []>} : vector<16x8xf32>, vector<32x8xf32>, vector<16x32xf32> -> vector<16x32xf32>
    %604 = arith.addf %586, %603 : vector<16x32xf32>
    %605 = vector.extract_strided_slice %581 {offsets = [0, 0, 8], sizes = [2, 8, 8], strides = [1, 1, 1]} : vector<2x8x32xf32> to vector<2x8x8xf32>
    %606 = vector.extract_strided_slice %582 {offsets = [0, 0, 8], sizes = [2, 8, 8], strides = [1, 1, 1]} : vector<2x8x32xf32> to vector<2x8x8xf32>
    "tpu.trace_start"() <{level = 10 : i32, message = "bqd,bkd->bqk"}> : () -> ()
    %cst_207 = arith.constant dense<0.000000e+00> : vector<2x8x8xf32>
    %607 = tpu.matmul %605, %606, %cst_207 {dimension_numbers = #tpu.dot_dimension_numbers<[2], [2], [1], [1], [0, 0, 0, 1, 1, 1], [0], [0]>} : vector<2x8x8xf32>, vector<2x8x8xf32>, vector<2x8x8xf32> -> vector<2x8x8xf32>
    "tpu.trace_stop"() : () -> ()
    %cst_208 = arith.constant dense<0xFF800000> : vector<2x8xf32>
    %608 = vector.multi_reduction <maximumf>, %607, %cst_208 [2] : vector<2x8x8xf32> to vector<2x8xf32>
    %609 = vector.shape_cast %608 : vector<2x8xf32> to vector<2x8x1xf32>
    %610 = vector.broadcast %609 : vector<2x8x1xf32> to vector<2x8x8xf32>
    %611 = arith.subf %607, %610 : vector<2x8x8xf32>
    %612 = math.exp %611 : vector<2x8x8xf32>
    %cst_209 = arith.constant dense<0.000000e+00> : vector<2x8xf32>
    %613 = vector.multi_reduction <add>, %612, %cst_209 [2] : vector<2x8x8xf32> to vector<2x8xf32>
    %614 = vector.shape_cast %613 : vector<2x8xf32> to vector<2x8x1xf32>
    %615 = vector.broadcast %614 : vector<2x8x1xf32> to vector<2x8x8xf32>
    %616 = arith.divf %612, %615 : vector<2x8x8xf32>
    %617 = vector.extract_strided_slice %583 {offsets = [0, 0, 8], sizes = [2, 8, 8], strides = [1, 1, 1]} : vector<2x8x32xf32> to vector<2x8x8xf32>
    "tpu.trace_start"() <{level = 10 : i32, message = "bqk,bkd->bqd"}> : () -> ()
    %cst_210 = arith.constant dense<0.000000e+00> : vector<2x8x8xf32>
    %618 = tpu.matmul %616, %617, %cst_210 {dimension_numbers = #tpu.dot_dimension_numbers<[2], [1], [1], [2], [0, 0, 0, 1, 1, 2], [0], [0]>} : vector<2x8x8xf32>, vector<2x8x8xf32>, vector<2x8x8xf32> -> vector<2x8x8xf32>
    "tpu.trace_stop"() : () -> ()
    %619 = vector.shape_cast %618 : vector<2x8x8xf32> to vector<16x8xf32>
    %620 = vector.extract_strided_slice %585 {offsets = [0, 8], sizes = [32, 8], strides = [1, 1]} : vector<32x32xf32> to vector<32x8xf32>
    %cst_211 = arith.constant dense<0.000000e+00> : vector<16x32xf32>
    %621 = tpu.matmul %619, %620, %cst_211 {dimension_numbers = #tpu.dot_dimension_numbers<[1], [1], [0], [0], [0, 0, 1, 0], [], []>} : vector<16x8xf32>, vector<32x8xf32>, vector<16x32xf32> -> vector<16x32xf32>
    %622 = arith.addf %604, %621 : vector<16x32xf32>
    %623 = vector.extract_strided_slice %581 {offsets = [0, 0, 16], sizes = [2, 8, 8], strides = [1, 1, 1]} : vector<2x8x32xf32> to vector<2x8x8xf32>
    %624 = vector.extract_strided_slice %582 {offsets = [0, 0, 16], sizes = [2, 8, 8], strides = [1, 1, 1]} : vector<2x8x32xf32> to vector<2x8x8xf32>
    "tpu.trace_start"() <{level = 10 : i32, message = "bqd,bkd->bqk"}> : () -> ()
    %cst_212 = arith.constant dense<0.000000e+00> : vector<2x8x8xf32>
    %625 = tpu.matmul %623, %624, %cst_212 {dimension_numbers = #tpu.dot_dimension_numbers<[2], [2], [1], [1], [0, 0, 0, 1, 1, 1], [0], [0]>} : vector<2x8x8xf32>, vector<2x8x8xf32>, vector<2x8x8xf32> -> vector<2x8x8xf32>
    "tpu.trace_stop"() : () -> ()
    %cst_213 = arith.constant dense<0xFF800000> : vector<2x8xf32>
    %626 = vector.multi_reduction <maximumf>, %625, %cst_213 [2] : vector<2x8x8xf32> to vector<2x8xf32>
    %627 = vector.shape_cast %626 : vector<2x8xf32> to vector<2x8x1xf32>
    %628 = vector.broadcast %627 : vector<2x8x1xf32> to vector<2x8x8xf32>
    %629 = arith.subf %625, %628 : vector<2x8x8xf32>
    %630 = math.exp %629 : vector<2x8x8xf32>
    %cst_214 = arith.constant dense<0.000000e+00> : vector<2x8xf32>
    %631 = vector.multi_reduction <add>, %630, %cst_214 [2] : vector<2x8x8xf32> to vector<2x8xf32>
    %632 = vector.shape_cast %631 : vector<2x8xf32> to vector<2x8x1xf32>
    %633 = vector.broadcast %632 : vector<2x8x1xf32> to vector<2x8x8xf32>
    %634 = arith.divf %630, %633 : vector<2x8x8xf32>
    %635 = vector.extract_strided_slice %583 {offsets = [0, 0, 16], sizes = [2, 8, 8], strides = [1, 1, 1]} : vector<2x8x32xf32> to vector<2x8x8xf32>
    "tpu.trace_start"() <{level = 10 : i32, message = "bqk,bkd->bqd"}> : () -> ()
    %cst_215 = arith.constant dense<0.000000e+00> : vector<2x8x8xf32>
    %636 = tpu.matmul %634, %635, %cst_215 {dimension_numbers = #tpu.dot_dimension_numbers<[2], [1], [1], [2], [0, 0, 0, 1, 1, 2], [0], [0]>} : vector<2x8x8xf32>, vector<2x8x8xf32>, vector<2x8x8xf32> -> vector<2x8x8xf32>
    "tpu.trace_stop"() : () -> ()
    %637 = vector.shape_cast %636 : vector<2x8x8xf32> to vector<16x8xf32>
    %638 = vector.extract_strided_slice %585 {offsets = [0, 16], sizes = [32, 8], strides = [1, 1]} : vector<32x32xf32> to vector<32x8xf32>
    %cst_216 = arith.constant dense<0.000000e+00> : vector<16x32xf32>
    %639 = tpu.matmul %637, %638, %cst_216 {dimension_numbers = #tpu.dot_dimension_numbers<[1], [1], [0], [0], [0, 0, 1, 0], [], []>} : vector<16x8xf32>, vector<32x8xf32>, vector<16x32xf32> -> vector<16x32xf32>
    %640 = arith.addf %622, %639 : vector<16x32xf32>
    %641 = vector.extract_strided_slice %581 {offsets = [0, 0, 24], sizes = [2, 8, 8], strides = [1, 1, 1]} : vector<2x8x32xf32> to vector<2x8x8xf32>
    %642 = vector.extract_strided_slice %582 {offsets = [0, 0, 24], sizes = [2, 8, 8], strides = [1, 1, 1]} : vector<2x8x32xf32> to vector<2x8x8xf32>
    "tpu.trace_start"() <{level = 10 : i32, message = "bqd,bkd->bqk"}> : () -> ()
    %cst_217 = arith.constant dense<0.000000e+00> : vector<2x8x8xf32>
    %643 = tpu.matmul %641, %642, %cst_217 {dimension_numbers = #tpu.dot_dimension_numbers<[2], [2], [1], [1], [0, 0, 0, 1, 1, 1], [0], [0]>} : vector<2x8x8xf32>, vector<2x8x8xf32>, vector<2x8x8xf32> -> vector<2x8x8xf32>
    "tpu.trace_stop"() : () -> ()
    %cst_218 = arith.constant dense<0xFF800000> : vector<2x8xf32>
    %644 = vector.multi_reduction <maximumf>, %643, %cst_218 [2] : vector<2x8x8xf32> to vector<2x8xf32>
    %645 = vector.shape_cast %644 : vector<2x8xf32> to vector<2x8x1xf32>
    %646 = vector.broadcast %645 : vector<2x8x1xf32> to vector<2x8x8xf32>
    %647 = arith.subf %643, %646 : vector<2x8x8xf32>
    %648 = math.exp %647 : vector<2x8x8xf32>
    %cst_219 = arith.constant dense<0.000000e+00> : vector<2x8xf32>
    %649 = vector.multi_reduction <add>, %648, %cst_219 [2] : vector<2x8x8xf32> to vector<2x8xf32>
    %650 = vector.shape_cast %649 : vector<2x8xf32> to vector<2x8x1xf32>
    %651 = vector.broadcast %650 : vector<2x8x1xf32> to vector<2x8x8xf32>
    %652 = arith.divf %648, %651 : vector<2x8x8xf32>
    %653 = vector.extract_strided_slice %583 {offsets = [0, 0, 24], sizes = [2, 8, 8], strides = [1, 1, 1]} : vector<2x8x32xf32> to vector<2x8x8xf32>
    "tpu.trace_start"() <{level = 10 : i32, message = "bqk,bkd->bqd"}> : () -> ()
    %cst_220 = arith.constant dense<0.000000e+00> : vector<2x8x8xf32>
    %654 = tpu.matmul %652, %653, %cst_220 {dimension_numbers = #tpu.dot_dimension_numbers<[2], [1], [1], [2], [0, 0, 0, 1, 1, 2], [0], [0]>} : vector<2x8x8xf32>, vector<2x8x8xf32>, vector<2x8x8xf32> -> vector<2x8x8xf32>
    "tpu.trace_stop"() : () -> ()
    %655 = vector.shape_cast %654 : vector<2x8x8xf32> to vector<16x8xf32>
    %656 = vector.extract_strided_slice %585 {offsets = [0, 24], sizes = [32, 8], strides = [1, 1]} : vector<32x32xf32> to vector<32x8xf32>
    %cst_221 = arith.constant dense<0.000000e+00> : vector<16x32xf32>
    %657 = tpu.matmul %655, %656, %cst_221 {dimension_numbers = #tpu.dot_dimension_numbers<[1], [1], [0], [0], [0, 0, 1, 0], [], []>} : vector<16x8xf32>, vector<32x8xf32>, vector<16x32xf32> -> vector<16x32xf32>
    %658 = arith.addf %640, %657 : vector<16x32xf32>
    %659 = arith.addf %534, %658 : vector<16x32xf32>
    %c4_222 = arith.constant 4 : index
    %c0_223 = arith.constant 0 : index
    %660 = vector.load %arg10[%c4_222, %c0_223] : memref<6x32xf32, #tpu.memory_space<vmem>>, vector<1x32xf32>
    %661 = vector.shape_cast %660 : vector<1x32xf32> to vector<32xf32>
    %662 = vector.shape_cast %661 : vector<32xf32> to vector<1x32xf32>
    %663 = vector.broadcast %662 : vector<1x32xf32> to vector<16x32xf32>
    %664 = arith.addf %659, %663 : vector<16x32xf32>
    %c8 = arith.constant 8 : index
    %c0_224 = arith.constant 0 : index
    %665 = vector.load %arg5[%c8, %c0_224] : memref<12x32xf32, #tpu.memory_space<vmem>>, vector<1x32xf32>
    %666 = vector.shape_cast %665 : vector<1x32xf32> to vector<32xf32>
    %c8_225 = arith.constant 8 : index
    %c0_226 = arith.constant 0 : index
    %667 = vector.load %arg6[%c8_225, %c0_226] : memref<12x32xf32, #tpu.memory_space<vmem>>, vector<1x32xf32>
    %668 = vector.shape_cast %667 : vector<1x32xf32> to vector<32xf32>
    %cst_227 = arith.constant dense<0.000000e+00> : vector<16xf32>
    %669 = vector.multi_reduction <add>, %664, %cst_227 [1] : vector<16x32xf32> to vector<16xf32>
    %670 = vector.shape_cast %669 : vector<16xf32> to vector<16x1xf32>
    %cst_228 = arith.constant 3.200000e+01 : f32
    %671 = vector.broadcast %cst_228 : f32 to vector<16x1xf32>
    %672 = arith.divf %670, %671 : vector<16x1xf32>
    %673 = vector.broadcast %672 : vector<16x1xf32> to vector<16x32xf32>
    %674 = arith.subf %664, %673 : vector<16x32xf32>
    %675 = arith.mulf %674, %674 : vector<16x32xf32>
    %cst_229 = arith.constant dense<0.000000e+00> : vector<16xf32>
    %676 = vector.multi_reduction <add>, %675, %cst_229 [1] : vector<16x32xf32> to vector<16xf32>
    %677 = vector.shape_cast %676 : vector<16xf32> to vector<16x1xf32>
    %cst_230 = arith.constant 3.200000e+01 : f32
    %678 = vector.broadcast %cst_230 : f32 to vector<16x1xf32>
    %679 = arith.divf %677, %678 : vector<16x1xf32>
    %680 = vector.broadcast %672 : vector<16x1xf32> to vector<16x32xf32>
    %681 = arith.subf %664, %680 : vector<16x32xf32>
    %cst_231 = arith.constant 9.99999974E-6 : f32
    %682 = vector.broadcast %cst_231 : f32 to vector<16x1xf32>
    %683 = arith.addf %679, %682 : vector<16x1xf32>
    %684 = math.rsqrt %683 : vector<16x1xf32>
    %685 = vector.broadcast %684 : vector<16x1xf32> to vector<16x32xf32>
    %686 = arith.mulf %681, %685 : vector<16x32xf32>
    %687 = vector.shape_cast %666 : vector<32xf32> to vector<1x32xf32>
    %688 = vector.broadcast %687 : vector<1x32xf32> to vector<16x32xf32>
    %689 = arith.mulf %686, %688 : vector<16x32xf32>
    %690 = vector.shape_cast %668 : vector<32xf32> to vector<1x32xf32>
    %691 = vector.broadcast %690 : vector<1x32xf32> to vector<16x32xf32>
    %692 = arith.addf %689, %691 : vector<16x32xf32>
    %c2_232 = arith.constant 2 : index
    %c0_233 = arith.constant 0 : index
    %c0_234 = arith.constant 0 : index
    %693 = vector.load %arg11[%c2_232, %c0_233, %c0_234] : memref<4x64x32xf32, #tpu.memory_space<vmem>>, vector<1x64x32xf32>
    %694 = vector.shape_cast %693 : vector<1x64x32xf32> to vector<64x32xf32>
    %cst_235 = arith.constant dense<0.000000e+00> : vector<16x64xf32>
    %695 = tpu.matmul %692, %694, %cst_235 {dimension_numbers = #tpu.dot_dimension_numbers<[1], [1], [0], [0], [0, 0, 1, 0], [], []>} : vector<16x32xf32>, vector<64x32xf32>, vector<16x64xf32> -> vector<16x64xf32>
    %c2_236 = arith.constant 2 : index
    %c0_237 = arith.constant 0 : index
    %696 = vector.load %arg12[%c2_236, %c0_237] : memref<4x64xf32, #tpu.memory_space<vmem>>, vector<1x64xf32>
    %697 = vector.shape_cast %696 : vector<1x64xf32> to vector<64xf32>
    %698 = vector.shape_cast %697 : vector<64xf32> to vector<1x64xf32>
    %699 = vector.broadcast %698 : vector<1x64xf32> to vector<16x64xf32>
    %700 = arith.addf %695, %699 : vector<16x64xf32>
    %cst_238 = arith.constant 5.000000e-01 : f32
    %701 = vector.broadcast %cst_238 : f32 to vector<16x64xf32>
    %702 = arith.mulf %701, %700 : vector<16x64xf32>
    %cst_239 = arith.constant 4.471500e-02 : f32
    %703 = vector.broadcast %cst_239 : f32 to vector<16x64xf32>
    %704 = arith.mulf %703, %700 : vector<16x64xf32>
    %705 = arith.mulf %704, %700 : vector<16x64xf32>
    %706 = arith.mulf %705, %700 : vector<16x64xf32>
    %707 = arith.addf %700, %706 : vector<16x64xf32>
    %cst_240 = arith.constant 0.797884583 : f32
    %708 = vector.broadcast %cst_240 : f32 to vector<16x64xf32>
    %709 = arith.mulf %708, %707 : vector<16x64xf32>
    %710 = math.tanh %709 : vector<16x64xf32>
    %cst_241 = arith.constant 1.000000e+00 : f32
    %711 = vector.broadcast %cst_241 : f32 to vector<16x64xf32>
    %712 = arith.addf %711, %710 : vector<16x64xf32>
    %713 = arith.mulf %702, %712 : vector<16x64xf32>
    %c2_242 = arith.constant 2 : index
    %c0_243 = arith.constant 0 : index
    %c0_244 = arith.constant 0 : index
    %714 = vector.load %arg13[%c2_242, %c0_243, %c0_244] : memref<4x32x64xf32, #tpu.memory_space<vmem>>, vector<1x32x64xf32>
    %715 = vector.shape_cast %714 : vector<1x32x64xf32> to vector<32x64xf32>
    %cst_245 = arith.constant dense<0.000000e+00> : vector<16x32xf32>
    %716 = tpu.matmul %713, %715, %cst_245 {dimension_numbers = #tpu.dot_dimension_numbers<[1], [1], [0], [0], [0, 0, 1, 0], [], []>} : vector<16x64xf32>, vector<32x64xf32>, vector<16x32xf32> -> vector<16x32xf32>
    %717 = arith.addf %664, %716 : vector<16x32xf32>
    %c2_246 = arith.constant 2 : index
    %c0_247 = arith.constant 0 : index
    %718 = vector.load %arg14[%c2_246, %c0_247] : memref<4x32xf32, #tpu.memory_space<vmem>>, vector<1x32xf32>
    %719 = vector.shape_cast %718 : vector<1x32xf32> to vector<32xf32>
    %720 = vector.shape_cast %719 : vector<32xf32> to vector<1x32xf32>
    %721 = vector.broadcast %720 : vector<1x32xf32> to vector<16x32xf32>
    %722 = arith.addf %717, %721 : vector<16x32xf32>
    %c5 = arith.constant 5 : index
    %c0_248 = arith.constant 0 : index
    %723 = vector.load %arg5[%c5, %c0_248] : memref<12x32xf32, #tpu.memory_space<vmem>>, vector<1x32xf32>
    %724 = vector.shape_cast %723 : vector<1x32xf32> to vector<32xf32>
    %c5_249 = arith.constant 5 : index
    %c0_250 = arith.constant 0 : index
    %725 = vector.load %arg6[%c5_249, %c0_250] : memref<12x32xf32, #tpu.memory_space<vmem>>, vector<1x32xf32>
    %726 = vector.shape_cast %725 : vector<1x32xf32> to vector<32xf32>
    %cst_251 = arith.constant dense<0.000000e+00> : vector<16xf32>
    %727 = vector.multi_reduction <add>, %722, %cst_251 [1] : vector<16x32xf32> to vector<16xf32>
    %728 = vector.shape_cast %727 : vector<16xf32> to vector<16x1xf32>
    %cst_252 = arith.constant 3.200000e+01 : f32
    %729 = vector.broadcast %cst_252 : f32 to vector<16x1xf32>
    %730 = arith.divf %728, %729 : vector<16x1xf32>
    %731 = vector.broadcast %730 : vector<16x1xf32> to vector<16x32xf32>
    %732 = arith.subf %722, %731 : vector<16x32xf32>
    %733 = arith.mulf %732, %732 : vector<16x32xf32>
    %cst_253 = arith.constant dense<0.000000e+00> : vector<16xf32>
    %734 = vector.multi_reduction <add>, %733, %cst_253 [1] : vector<16x32xf32> to vector<16xf32>
    %735 = vector.shape_cast %734 : vector<16xf32> to vector<16x1xf32>
    %cst_254 = arith.constant 3.200000e+01 : f32
    %736 = vector.broadcast %cst_254 : f32 to vector<16x1xf32>
    %737 = arith.divf %735, %736 : vector<16x1xf32>
    %738 = vector.broadcast %730 : vector<16x1xf32> to vector<16x32xf32>
    %739 = arith.subf %722, %738 : vector<16x32xf32>
    %cst_255 = arith.constant 9.99999974E-6 : f32
    %740 = vector.broadcast %cst_255 : f32 to vector<16x1xf32>
    %741 = arith.addf %737, %740 : vector<16x1xf32>
    %742 = math.rsqrt %741 : vector<16x1xf32>
    %743 = vector.broadcast %742 : vector<16x1xf32> to vector<16x32xf32>
    %744 = arith.mulf %739, %743 : vector<16x32xf32>
    %745 = vector.shape_cast %724 : vector<32xf32> to vector<1x32xf32>
    %746 = vector.broadcast %745 : vector<1x32xf32> to vector<16x32xf32>
    %747 = arith.mulf %744, %746 : vector<16x32xf32>
    %748 = vector.shape_cast %726 : vector<32xf32> to vector<1x32xf32>
    %749 = vector.broadcast %748 : vector<1x32xf32> to vector<16x32xf32>
    %750 = arith.addf %747, %749 : vector<16x32xf32>
    %c3_256 = arith.constant 3 : index
    %c0_257 = arith.constant 0 : index
    %c0_258 = arith.constant 0 : index
    %751 = vector.load %arg7[%c3_256, %c0_257, %c0_258] : memref<6x96x32xf32, #tpu.memory_space<vmem>>, vector<1x96x32xf32>
    %752 = vector.shape_cast %751 : vector<1x96x32xf32> to vector<96x32xf32>
    %c3_259 = arith.constant 3 : index
    %c0_260 = arith.constant 0 : index
    %753 = vector.load %arg8[%c3_259, %c0_260] : memref<6x96xf32, #tpu.memory_space<vmem>>, vector<1x96xf32>
    %754 = vector.shape_cast %753 : vector<1x96xf32> to vector<96xf32>
    %cst_261 = arith.constant dense<0.000000e+00> : vector<16x96xf32>
    %755 = tpu.matmul %750, %752, %cst_261 {dimension_numbers = #tpu.dot_dimension_numbers<[1], [1], [0], [0], [0, 0, 1, 0], [], []>} : vector<16x32xf32>, vector<96x32xf32>, vector<16x96xf32> -> vector<16x96xf32>
    %756 = vector.shape_cast %754 : vector<96xf32> to vector<1x96xf32>
    %757 = vector.broadcast %756 : vector<1x96xf32> to vector<16x96xf32>
    %758 = arith.addf %755, %757 : vector<16x96xf32>
    %759 = vector.extract_strided_slice %758 {offsets = [0, 0], sizes = [16, 32], strides = [1, 1]} : vector<16x96xf32> to vector<16x32xf32>
    %760 = vector.extract_strided_slice %758 {offsets = [0, 32], sizes = [16, 32], strides = [1, 1]} : vector<16x96xf32> to vector<16x32xf32>
    %761 = vector.extract_strided_slice %758 {offsets = [0, 64], sizes = [16, 32], strides = [1, 1]} : vector<16x96xf32> to vector<16x32xf32>
    %762 = vector.shape_cast %759 : vector<16x32xf32> to vector<2x8x32xf32>
    %763 = vector.shape_cast %760 : vector<16x32xf32> to vector<2x8x32xf32>
    %764 = vector.shape_cast %761 : vector<16x32xf32> to vector<2x8x32xf32>
    %c3_262 = arith.constant 3 : index
    %c0_263 = arith.constant 0 : index
    %c0_264 = arith.constant 0 : index
    %765 = vector.load %arg9[%c3_262, %c0_263, %c0_264] : memref<6x32x32xf32, #tpu.memory_space<vmem>>, vector<1x32x32xf32>
    %766 = vector.shape_cast %765 : vector<1x32x32xf32> to vector<32x32xf32>
    %cst_265 = arith.constant 0.000000e+00 : f32
    %767 = vector.broadcast %cst_265 : f32 to vector<16x32xf32>
    %768 = vector.extract_strided_slice %762 {offsets = [0, 0, 0], sizes = [2, 8, 8], strides = [1, 1, 1]} : vector<2x8x32xf32> to vector<2x8x8xf32>
    %769 = vector.extract_strided_slice %763 {offsets = [0, 0, 0], sizes = [2, 8, 8], strides = [1, 1, 1]} : vector<2x8x32xf32> to vector<2x8x8xf32>
    "tpu.trace_start"() <{level = 10 : i32, message = "bqd,bkd->bqk"}> : () -> ()
    %cst_266 = arith.constant dense<0.000000e+00> : vector<2x8x8xf32>
    %770 = tpu.matmul %768, %769, %cst_266 {dimension_numbers = #tpu.dot_dimension_numbers<[2], [2], [1], [1], [0, 0, 0, 1, 1, 1], [0], [0]>} : vector<2x8x8xf32>, vector<2x8x8xf32>, vector<2x8x8xf32> -> vector<2x8x8xf32>
    "tpu.trace_stop"() : () -> ()
    %771 = vector.shape_cast %5 : vector<8x8xf32> to vector<1x8x8xf32>
    %772 = vector.broadcast %771 : vector<1x8x8xf32> to vector<2x8x8xf32>
    %773 = arith.addf %770, %772 : vector<2x8x8xf32>
    %cst_267 = arith.constant dense<0xFF800000> : vector<2x8xf32>
    %774 = vector.multi_reduction <maximumf>, %773, %cst_267 [2] : vector<2x8x8xf32> to vector<2x8xf32>
    %775 = vector.shape_cast %774 : vector<2x8xf32> to vector<2x8x1xf32>
    %776 = vector.broadcast %775 : vector<2x8x1xf32> to vector<2x8x8xf32>
    %777 = arith.subf %773, %776 : vector<2x8x8xf32>
    %778 = math.exp %777 : vector<2x8x8xf32>
    %cst_268 = arith.constant dense<0.000000e+00> : vector<2x8xf32>
    %779 = vector.multi_reduction <add>, %778, %cst_268 [2] : vector<2x8x8xf32> to vector<2x8xf32>
    %780 = vector.shape_cast %779 : vector<2x8xf32> to vector<2x8x1xf32>
    %781 = vector.broadcast %780 : vector<2x8x1xf32> to vector<2x8x8xf32>
    %782 = arith.divf %778, %781 : vector<2x8x8xf32>
    %783 = vector.extract_strided_slice %764 {offsets = [0, 0, 0], sizes = [2, 8, 8], strides = [1, 1, 1]} : vector<2x8x32xf32> to vector<2x8x8xf32>
    "tpu.trace_start"() <{level = 10 : i32, message = "bqk,bkd->bqd"}> : () -> ()
    %cst_269 = arith.constant dense<0.000000e+00> : vector<2x8x8xf32>
    %784 = tpu.matmul %782, %783, %cst_269 {dimension_numbers = #tpu.dot_dimension_numbers<[2], [1], [1], [2], [0, 0, 0, 1, 1, 2], [0], [0]>} : vector<2x8x8xf32>, vector<2x8x8xf32>, vector<2x8x8xf32> -> vector<2x8x8xf32>
    "tpu.trace_stop"() : () -> ()
    %785 = vector.shape_cast %784 : vector<2x8x8xf32> to vector<16x8xf32>
    %786 = vector.extract_strided_slice %766 {offsets = [0, 0], sizes = [32, 8], strides = [1, 1]} : vector<32x32xf32> to vector<32x8xf32>
    %cst_270 = arith.constant dense<0.000000e+00> : vector<16x32xf32>
    %787 = tpu.matmul %785, %786, %cst_270 {dimension_numbers = #tpu.dot_dimension_numbers<[1], [1], [0], [0], [0, 0, 1, 0], [], []>} : vector<16x8xf32>, vector<32x8xf32>, vector<16x32xf32> -> vector<16x32xf32>
    %788 = arith.addf %767, %787 : vector<16x32xf32>
    %789 = vector.extract_strided_slice %762 {offsets = [0, 0, 8], sizes = [2, 8, 8], strides = [1, 1, 1]} : vector<2x8x32xf32> to vector<2x8x8xf32>
    %790 = vector.extract_strided_slice %763 {offsets = [0, 0, 8], sizes = [2, 8, 8], strides = [1, 1, 1]} : vector<2x8x32xf32> to vector<2x8x8xf32>
    "tpu.trace_start"() <{level = 10 : i32, message = "bqd,bkd->bqk"}> : () -> ()
    %cst_271 = arith.constant dense<0.000000e+00> : vector<2x8x8xf32>
    %791 = tpu.matmul %789, %790, %cst_271 {dimension_numbers = #tpu.dot_dimension_numbers<[2], [2], [1], [1], [0, 0, 0, 1, 1, 1], [0], [0]>} : vector<2x8x8xf32>, vector<2x8x8xf32>, vector<2x8x8xf32> -> vector<2x8x8xf32>
    "tpu.trace_stop"() : () -> ()
    %792 = vector.shape_cast %5 : vector<8x8xf32> to vector<1x8x8xf32>
    %793 = vector.broadcast %792 : vector<1x8x8xf32> to vector<2x8x8xf32>
    %794 = arith.addf %791, %793 : vector<2x8x8xf32>
    %cst_272 = arith.constant dense<0xFF800000> : vector<2x8xf32>
    %795 = vector.multi_reduction <maximumf>, %794, %cst_272 [2] : vector<2x8x8xf32> to vector<2x8xf32>
    %796 = vector.shape_cast %795 : vector<2x8xf32> to vector<2x8x1xf32>
    %797 = vector.broadcast %796 : vector<2x8x1xf32> to vector<2x8x8xf32>
    %798 = arith.subf %794, %797 : vector<2x8x8xf32>
    %799 = math.exp %798 : vector<2x8x8xf32>
    %cst_273 = arith.constant dense<0.000000e+00> : vector<2x8xf32>
    %800 = vector.multi_reduction <add>, %799, %cst_273 [2] : vector<2x8x8xf32> to vector<2x8xf32>
    %801 = vector.shape_cast %800 : vector<2x8xf32> to vector<2x8x1xf32>
    %802 = vector.broadcast %801 : vector<2x8x1xf32> to vector<2x8x8xf32>
    %803 = arith.divf %799, %802 : vector<2x8x8xf32>
    %804 = vector.extract_strided_slice %764 {offsets = [0, 0, 8], sizes = [2, 8, 8], strides = [1, 1, 1]} : vector<2x8x32xf32> to vector<2x8x8xf32>
    "tpu.trace_start"() <{level = 10 : i32, message = "bqk,bkd->bqd"}> : () -> ()
    %cst_274 = arith.constant dense<0.000000e+00> : vector<2x8x8xf32>
    %805 = tpu.matmul %803, %804, %cst_274 {dimension_numbers = #tpu.dot_dimension_numbers<[2], [1], [1], [2], [0, 0, 0, 1, 1, 2], [0], [0]>} : vector<2x8x8xf32>, vector<2x8x8xf32>, vector<2x8x8xf32> -> vector<2x8x8xf32>
    "tpu.trace_stop"() : () -> ()
    %806 = vector.shape_cast %805 : vector<2x8x8xf32> to vector<16x8xf32>
    %807 = vector.extract_strided_slice %766 {offsets = [0, 8], sizes = [32, 8], strides = [1, 1]} : vector<32x32xf32> to vector<32x8xf32>
    %cst_275 = arith.constant dense<0.000000e+00> : vector<16x32xf32>
    %808 = tpu.matmul %806, %807, %cst_275 {dimension_numbers = #tpu.dot_dimension_numbers<[1], [1], [0], [0], [0, 0, 1, 0], [], []>} : vector<16x8xf32>, vector<32x8xf32>, vector<16x32xf32> -> vector<16x32xf32>
    %809 = arith.addf %788, %808 : vector<16x32xf32>
    %810 = vector.extract_strided_slice %762 {offsets = [0, 0, 16], sizes = [2, 8, 8], strides = [1, 1, 1]} : vector<2x8x32xf32> to vector<2x8x8xf32>
    %811 = vector.extract_strided_slice %763 {offsets = [0, 0, 16], sizes = [2, 8, 8], strides = [1, 1, 1]} : vector<2x8x32xf32> to vector<2x8x8xf32>
    "tpu.trace_start"() <{level = 10 : i32, message = "bqd,bkd->bqk"}> : () -> ()
    %cst_276 = arith.constant dense<0.000000e+00> : vector<2x8x8xf32>
    %812 = tpu.matmul %810, %811, %cst_276 {dimension_numbers = #tpu.dot_dimension_numbers<[2], [2], [1], [1], [0, 0, 0, 1, 1, 1], [0], [0]>} : vector<2x8x8xf32>, vector<2x8x8xf32>, vector<2x8x8xf32> -> vector<2x8x8xf32>
    "tpu.trace_stop"() : () -> ()
    %813 = vector.shape_cast %5 : vector<8x8xf32> to vector<1x8x8xf32>
    %814 = vector.broadcast %813 : vector<1x8x8xf32> to vector<2x8x8xf32>
    %815 = arith.addf %812, %814 : vector<2x8x8xf32>
    %cst_277 = arith.constant dense<0xFF800000> : vector<2x8xf32>
    %816 = vector.multi_reduction <maximumf>, %815, %cst_277 [2] : vector<2x8x8xf32> to vector<2x8xf32>
    %817 = vector.shape_cast %816 : vector<2x8xf32> to vector<2x8x1xf32>
    %818 = vector.broadcast %817 : vector<2x8x1xf32> to vector<2x8x8xf32>
    %819 = arith.subf %815, %818 : vector<2x8x8xf32>
    %820 = math.exp %819 : vector<2x8x8xf32>
    %cst_278 = arith.constant dense<0.000000e+00> : vector<2x8xf32>
    %821 = vector.multi_reduction <add>, %820, %cst_278 [2] : vector<2x8x8xf32> to vector<2x8xf32>
    %822 = vector.shape_cast %821 : vector<2x8xf32> to vector<2x8x1xf32>
    %823 = vector.broadcast %822 : vector<2x8x1xf32> to vector<2x8x8xf32>
    %824 = arith.divf %820, %823 : vector<2x8x8xf32>
    %825 = vector.extract_strided_slice %764 {offsets = [0, 0, 16], sizes = [2, 8, 8], strides = [1, 1, 1]} : vector<2x8x32xf32> to vector<2x8x8xf32>
    "tpu.trace_start"() <{level = 10 : i32, message = "bqk,bkd->bqd"}> : () -> ()
    %cst_279 = arith.constant dense<0.000000e+00> : vector<2x8x8xf32>
    %826 = tpu.matmul %824, %825, %cst_279 {dimension_numbers = #tpu.dot_dimension_numbers<[2], [1], [1], [2], [0, 0, 0, 1, 1, 2], [0], [0]>} : vector<2x8x8xf32>, vector<2x8x8xf32>, vector<2x8x8xf32> -> vector<2x8x8xf32>
    "tpu.trace_stop"() : () -> ()
    %827 = vector.shape_cast %826 : vector<2x8x8xf32> to vector<16x8xf32>
    %828 = vector.extract_strided_slice %766 {offsets = [0, 16], sizes = [32, 8], strides = [1, 1]} : vector<32x32xf32> to vector<32x8xf32>
    %cst_280 = arith.constant dense<0.000000e+00> : vector<16x32xf32>
    %829 = tpu.matmul %827, %828, %cst_280 {dimension_numbers = #tpu.dot_dimension_numbers<[1], [1], [0], [0], [0, 0, 1, 0], [], []>} : vector<16x8xf32>, vector<32x8xf32>, vector<16x32xf32> -> vector<16x32xf32>
    %830 = arith.addf %809, %829 : vector<16x32xf32>
    %831 = vector.extract_strided_slice %762 {offsets = [0, 0, 24], sizes = [2, 8, 8], strides = [1, 1, 1]} : vector<2x8x32xf32> to vector<2x8x8xf32>
    %832 = vector.extract_strided_slice %763 {offsets = [0, 0, 24], sizes = [2, 8, 8], strides = [1, 1, 1]} : vector<2x8x32xf32> to vector<2x8x8xf32>
    "tpu.trace_start"() <{level = 10 : i32, message = "bqd,bkd->bqk"}> : () -> ()
    %cst_281 = arith.constant dense<0.000000e+00> : vector<2x8x8xf32>
    %833 = tpu.matmul %831, %832, %cst_281 {dimension_numbers = #tpu.dot_dimension_numbers<[2], [2], [1], [1], [0, 0, 0, 1, 1, 1], [0], [0]>} : vector<2x8x8xf32>, vector<2x8x8xf32>, vector<2x8x8xf32> -> vector<2x8x8xf32>
    "tpu.trace_stop"() : () -> ()
    %834 = vector.shape_cast %5 : vector<8x8xf32> to vector<1x8x8xf32>
    %835 = vector.broadcast %834 : vector<1x8x8xf32> to vector<2x8x8xf32>
    %836 = arith.addf %833, %835 : vector<2x8x8xf32>
    %cst_282 = arith.constant dense<0xFF800000> : vector<2x8xf32>
    %837 = vector.multi_reduction <maximumf>, %836, %cst_282 [2] : vector<2x8x8xf32> to vector<2x8xf32>
    %838 = vector.shape_cast %837 : vector<2x8xf32> to vector<2x8x1xf32>
    %839 = vector.broadcast %838 : vector<2x8x1xf32> to vector<2x8x8xf32>
    %840 = arith.subf %836, %839 : vector<2x8x8xf32>
    %841 = math.exp %840 : vector<2x8x8xf32>
    %cst_283 = arith.constant dense<0.000000e+00> : vector<2x8xf32>
    %842 = vector.multi_reduction <add>, %841, %cst_283 [2] : vector<2x8x8xf32> to vector<2x8xf32>
    %843 = vector.shape_cast %842 : vector<2x8xf32> to vector<2x8x1xf32>
    %844 = vector.broadcast %843 : vector<2x8x1xf32> to vector<2x8x8xf32>
    %845 = arith.divf %841, %844 : vector<2x8x8xf32>
    %846 = vector.extract_strided_slice %764 {offsets = [0, 0, 24], sizes = [2, 8, 8], strides = [1, 1, 1]} : vector<2x8x32xf32> to vector<2x8x8xf32>
    "tpu.trace_start"() <{level = 10 : i32, message = "bqk,bkd->bqd"}> : () -> ()
    %cst_284 = arith.constant dense<0.000000e+00> : vector<2x8x8xf32>
    %847 = tpu.matmul %845, %846, %cst_284 {dimension_numbers = #tpu.dot_dimension_numbers<[2], [1], [1], [2], [0, 0, 0, 1, 1, 2], [0], [0]>} : vector<2x8x8xf32>, vector<2x8x8xf32>, vector<2x8x8xf32> -> vector<2x8x8xf32>
    "tpu.trace_stop"() : () -> ()
    %848 = vector.shape_cast %847 : vector<2x8x8xf32> to vector<16x8xf32>
    %849 = vector.extract_strided_slice %766 {offsets = [0, 24], sizes = [32, 8], strides = [1, 1]} : vector<32x32xf32> to vector<32x8xf32>
    %cst_285 = arith.constant dense<0.000000e+00> : vector<16x32xf32>
    %850 = tpu.matmul %848, %849, %cst_285 {dimension_numbers = #tpu.dot_dimension_numbers<[1], [1], [0], [0], [0, 0, 1, 0], [], []>} : vector<16x8xf32>, vector<32x8xf32>, vector<16x32xf32> -> vector<16x32xf32>
    %851 = arith.addf %830, %850 : vector<16x32xf32>
    %852 = arith.addf %722, %851 : vector<16x32xf32>
    %c3_286 = arith.constant 3 : index
    %c0_287 = arith.constant 0 : index
    %853 = vector.load %arg10[%c3_286, %c0_287] : memref<6x32xf32, #tpu.memory_space<vmem>>, vector<1x32xf32>
    %854 = vector.shape_cast %853 : vector<1x32xf32> to vector<32xf32>
    %855 = vector.shape_cast %854 : vector<32xf32> to vector<1x32xf32>
    %856 = vector.broadcast %855 : vector<1x32xf32> to vector<16x32xf32>
    %857 = arith.addf %852, %856 : vector<16x32xf32>
    %c7 = arith.constant 7 : index
    %c0_288 = arith.constant 0 : index
    %858 = vector.load %arg5[%c7, %c0_288] : memref<12x32xf32, #tpu.memory_space<vmem>>, vector<1x32xf32>
    %859 = vector.shape_cast %858 : vector<1x32xf32> to vector<32xf32>
    %c7_289 = arith.constant 7 : index
    %c0_290 = arith.constant 0 : index
    %860 = vector.load %arg6[%c7_289, %c0_290] : memref<12x32xf32, #tpu.memory_space<vmem>>, vector<1x32xf32>
    %861 = vector.shape_cast %860 : vector<1x32xf32> to vector<32xf32>
    %cst_291 = arith.constant dense<0.000000e+00> : vector<16xf32>
    %862 = vector.multi_reduction <add>, %857, %cst_291 [1] : vector<16x32xf32> to vector<16xf32>
    %863 = vector.shape_cast %862 : vector<16xf32> to vector<16x1xf32>
    %cst_292 = arith.constant 3.200000e+01 : f32
    %864 = vector.broadcast %cst_292 : f32 to vector<16x1xf32>
    %865 = arith.divf %863, %864 : vector<16x1xf32>
    %866 = vector.broadcast %865 : vector<16x1xf32> to vector<16x32xf32>
    %867 = arith.subf %857, %866 : vector<16x32xf32>
    %868 = arith.mulf %867, %867 : vector<16x32xf32>
    %cst_293 = arith.constant dense<0.000000e+00> : vector<16xf32>
    %869 = vector.multi_reduction <add>, %868, %cst_293 [1] : vector<16x32xf32> to vector<16xf32>
    %870 = vector.shape_cast %869 : vector<16xf32> to vector<16x1xf32>
    %cst_294 = arith.constant 3.200000e+01 : f32
    %871 = vector.broadcast %cst_294 : f32 to vector<16x1xf32>
    %872 = arith.divf %870, %871 : vector<16x1xf32>
    %873 = vector.broadcast %865 : vector<16x1xf32> to vector<16x32xf32>
    %874 = arith.subf %857, %873 : vector<16x32xf32>
    %cst_295 = arith.constant 9.99999974E-6 : f32
    %875 = vector.broadcast %cst_295 : f32 to vector<16x1xf32>
    %876 = arith.addf %872, %875 : vector<16x1xf32>
    %877 = math.rsqrt %876 : vector<16x1xf32>
    %878 = vector.broadcast %877 : vector<16x1xf32> to vector<16x32xf32>
    %879 = arith.mulf %874, %878 : vector<16x32xf32>
    %880 = vector.shape_cast %859 : vector<32xf32> to vector<1x32xf32>
    %881 = vector.broadcast %880 : vector<1x32xf32> to vector<16x32xf32>
    %882 = arith.mulf %879, %881 : vector<16x32xf32>
    %883 = vector.shape_cast %861 : vector<32xf32> to vector<1x32xf32>
    %884 = vector.broadcast %883 : vector<1x32xf32> to vector<16x32xf32>
    %885 = arith.addf %882, %884 : vector<16x32xf32>
    %c5_296 = arith.constant 5 : index
    %c0_297 = arith.constant 0 : index
    %c0_298 = arith.constant 0 : index
    %886 = vector.load %arg7[%c5_296, %c0_297, %c0_298] : memref<6x96x32xf32, #tpu.memory_space<vmem>>, vector<1x96x32xf32>
    %887 = vector.shape_cast %886 : vector<1x96x32xf32> to vector<96x32xf32>
    %c5_299 = arith.constant 5 : index
    %c0_300 = arith.constant 0 : index
    %888 = vector.load %arg8[%c5_299, %c0_300] : memref<6x96xf32, #tpu.memory_space<vmem>>, vector<1x96xf32>
    %889 = vector.shape_cast %888 : vector<1x96xf32> to vector<96xf32>
    %890 = vector.extract_strided_slice %887 {offsets = [0, 0], sizes = [32, 32], strides = [1, 1]} : vector<96x32xf32> to vector<32x32xf32>
    %cst_301 = arith.constant dense<0.000000e+00> : vector<16x32xf32>
    %891 = tpu.matmul %885, %890, %cst_301 {dimension_numbers = #tpu.dot_dimension_numbers<[1], [1], [0], [0], [0, 0, 1, 0], [], []>} : vector<16x32xf32>, vector<32x32xf32>, vector<16x32xf32> -> vector<16x32xf32>
    %892 = vector.extract_strided_slice %889 {offsets = [0], sizes = [32], strides = [1]} : vector<96xf32> to vector<32xf32>
    %893 = vector.shape_cast %892 : vector<32xf32> to vector<1x32xf32>
    %894 = vector.broadcast %893 : vector<1x32xf32> to vector<16x32xf32>
    %895 = arith.addf %891, %894 : vector<16x32xf32>
    %896 = vector.extract_strided_slice %887 {offsets = [32, 0], sizes = [64, 32], strides = [1, 1]} : vector<96x32xf32> to vector<64x32xf32>
    %cst_302 = arith.constant dense<0.000000e+00> : vector<16x64xf32>
    %897 = tpu.matmul %397, %896, %cst_302 {dimension_numbers = #tpu.dot_dimension_numbers<[1], [1], [0], [0], [0, 0, 1, 0], [], []>} : vector<16x32xf32>, vector<64x32xf32>, vector<16x64xf32> -> vector<16x64xf32>
    %898 = vector.extract_strided_slice %889 {offsets = [32], sizes = [64], strides = [1]} : vector<96xf32> to vector<64xf32>
    %899 = vector.shape_cast %898 : vector<64xf32> to vector<1x64xf32>
    %900 = vector.broadcast %899 : vector<1x64xf32> to vector<16x64xf32>
    %901 = arith.addf %897, %900 : vector<16x64xf32>
    %902 = vector.extract_strided_slice %901 {offsets = [0, 0], sizes = [16, 32], strides = [1, 1]} : vector<16x64xf32> to vector<16x32xf32>
    %903 = vector.extract_strided_slice %901 {offsets = [0, 32], sizes = [16, 32], strides = [1, 1]} : vector<16x64xf32> to vector<16x32xf32>
    %904 = vector.shape_cast %895 : vector<16x32xf32> to vector<2x8x32xf32>
    %905 = vector.shape_cast %902 : vector<16x32xf32> to vector<2x8x32xf32>
    %906 = vector.shape_cast %903 : vector<16x32xf32> to vector<2x8x32xf32>
    %c5_303 = arith.constant 5 : index
    %c0_304 = arith.constant 0 : index
    %c0_305 = arith.constant 0 : index
    %907 = vector.load %arg9[%c5_303, %c0_304, %c0_305] : memref<6x32x32xf32, #tpu.memory_space<vmem>>, vector<1x32x32xf32>
    %908 = vector.shape_cast %907 : vector<1x32x32xf32> to vector<32x32xf32>
    %cst_306 = arith.constant 0.000000e+00 : f32
    %909 = vector.broadcast %cst_306 : f32 to vector<16x32xf32>
    %910 = vector.extract_strided_slice %904 {offsets = [0, 0, 0], sizes = [2, 8, 8], strides = [1, 1, 1]} : vector<2x8x32xf32> to vector<2x8x8xf32>
    %911 = vector.extract_strided_slice %905 {offsets = [0, 0, 0], sizes = [2, 8, 8], strides = [1, 1, 1]} : vector<2x8x32xf32> to vector<2x8x8xf32>
    "tpu.trace_start"() <{level = 10 : i32, message = "bqd,bkd->bqk"}> : () -> ()
    %cst_307 = arith.constant dense<0.000000e+00> : vector<2x8x8xf32>
    %912 = tpu.matmul %910, %911, %cst_307 {dimension_numbers = #tpu.dot_dimension_numbers<[2], [2], [1], [1], [0, 0, 0, 1, 1, 1], [0], [0]>} : vector<2x8x8xf32>, vector<2x8x8xf32>, vector<2x8x8xf32> -> vector<2x8x8xf32>
    "tpu.trace_stop"() : () -> ()
    %cst_308 = arith.constant dense<0xFF800000> : vector<2x8xf32>
    %913 = vector.multi_reduction <maximumf>, %912, %cst_308 [2] : vector<2x8x8xf32> to vector<2x8xf32>
    %914 = vector.shape_cast %913 : vector<2x8xf32> to vector<2x8x1xf32>
    %915 = vector.broadcast %914 : vector<2x8x1xf32> to vector<2x8x8xf32>
    %916 = arith.subf %912, %915 : vector<2x8x8xf32>
    %917 = math.exp %916 : vector<2x8x8xf32>
    %cst_309 = arith.constant dense<0.000000e+00> : vector<2x8xf32>
    %918 = vector.multi_reduction <add>, %917, %cst_309 [2] : vector<2x8x8xf32> to vector<2x8xf32>
    %919 = vector.shape_cast %918 : vector<2x8xf32> to vector<2x8x1xf32>
    %920 = vector.broadcast %919 : vector<2x8x1xf32> to vector<2x8x8xf32>
    %921 = arith.divf %917, %920 : vector<2x8x8xf32>
    %922 = vector.extract_strided_slice %906 {offsets = [0, 0, 0], sizes = [2, 8, 8], strides = [1, 1, 1]} : vector<2x8x32xf32> to vector<2x8x8xf32>
    "tpu.trace_start"() <{level = 10 : i32, message = "bqk,bkd->bqd"}> : () -> ()
    %cst_310 = arith.constant dense<0.000000e+00> : vector<2x8x8xf32>
    %923 = tpu.matmul %921, %922, %cst_310 {dimension_numbers = #tpu.dot_dimension_numbers<[2], [1], [1], [2], [0, 0, 0, 1, 1, 2], [0], [0]>} : vector<2x8x8xf32>, vector<2x8x8xf32>, vector<2x8x8xf32> -> vector<2x8x8xf32>
    "tpu.trace_stop"() : () -> ()
    %924 = vector.shape_cast %923 : vector<2x8x8xf32> to vector<16x8xf32>
    %925 = vector.extract_strided_slice %908 {offsets = [0, 0], sizes = [32, 8], strides = [1, 1]} : vector<32x32xf32> to vector<32x8xf32>
    %cst_311 = arith.constant dense<0.000000e+00> : vector<16x32xf32>
    %926 = tpu.matmul %924, %925, %cst_311 {dimension_numbers = #tpu.dot_dimension_numbers<[1], [1], [0], [0], [0, 0, 1, 0], [], []>} : vector<16x8xf32>, vector<32x8xf32>, vector<16x32xf32> -> vector<16x32xf32>
    %927 = arith.addf %909, %926 : vector<16x32xf32>
    %928 = vector.extract_strided_slice %904 {offsets = [0, 0, 8], sizes = [2, 8, 8], strides = [1, 1, 1]} : vector<2x8x32xf32> to vector<2x8x8xf32>
    %929 = vector.extract_strided_slice %905 {offsets = [0, 0, 8], sizes = [2, 8, 8], strides = [1, 1, 1]} : vector<2x8x32xf32> to vector<2x8x8xf32>
    "tpu.trace_start"() <{level = 10 : i32, message = "bqd,bkd->bqk"}> : () -> ()
    %cst_312 = arith.constant dense<0.000000e+00> : vector<2x8x8xf32>
    %930 = tpu.matmul %928, %929, %cst_312 {dimension_numbers = #tpu.dot_dimension_numbers<[2], [2], [1], [1], [0, 0, 0, 1, 1, 1], [0], [0]>} : vector<2x8x8xf32>, vector<2x8x8xf32>, vector<2x8x8xf32> -> vector<2x8x8xf32>
    "tpu.trace_stop"() : () -> ()
    %cst_313 = arith.constant dense<0xFF800000> : vector<2x8xf32>
    %931 = vector.multi_reduction <maximumf>, %930, %cst_313 [2] : vector<2x8x8xf32> to vector<2x8xf32>
    %932 = vector.shape_cast %931 : vector<2x8xf32> to vector<2x8x1xf32>
    %933 = vector.broadcast %932 : vector<2x8x1xf32> to vector<2x8x8xf32>
    %934 = arith.subf %930, %933 : vector<2x8x8xf32>
    %935 = math.exp %934 : vector<2x8x8xf32>
    %cst_314 = arith.constant dense<0.000000e+00> : vector<2x8xf32>
    %936 = vector.multi_reduction <add>, %935, %cst_314 [2] : vector<2x8x8xf32> to vector<2x8xf32>
    %937 = vector.shape_cast %936 : vector<2x8xf32> to vector<2x8x1xf32>
    %938 = vector.broadcast %937 : vector<2x8x1xf32> to vector<2x8x8xf32>
    %939 = arith.divf %935, %938 : vector<2x8x8xf32>
    %940 = vector.extract_strided_slice %906 {offsets = [0, 0, 8], sizes = [2, 8, 8], strides = [1, 1, 1]} : vector<2x8x32xf32> to vector<2x8x8xf32>
    "tpu.trace_start"() <{level = 10 : i32, message = "bqk,bkd->bqd"}> : () -> ()
    %cst_315 = arith.constant dense<0.000000e+00> : vector<2x8x8xf32>
    %941 = tpu.matmul %939, %940, %cst_315 {dimension_numbers = #tpu.dot_dimension_numbers<[2], [1], [1], [2], [0, 0, 0, 1, 1, 2], [0], [0]>} : vector<2x8x8xf32>, vector<2x8x8xf32>, vector<2x8x8xf32> -> vector<2x8x8xf32>
    "tpu.trace_stop"() : () -> ()
    %942 = vector.shape_cast %941 : vector<2x8x8xf32> to vector<16x8xf32>
    %943 = vector.extract_strided_slice %908 {offsets = [0, 8], sizes = [32, 8], strides = [1, 1]} : vector<32x32xf32> to vector<32x8xf32>
    %cst_316 = arith.constant dense<0.000000e+00> : vector<16x32xf32>
    %944 = tpu.matmul %942, %943, %cst_316 {dimension_numbers = #tpu.dot_dimension_numbers<[1], [1], [0], [0], [0, 0, 1, 0], [], []>} : vector<16x8xf32>, vector<32x8xf32>, vector<16x32xf32> -> vector<16x32xf32>
    %945 = arith.addf %927, %944 : vector<16x32xf32>
    %946 = vector.extract_strided_slice %904 {offsets = [0, 0, 16], sizes = [2, 8, 8], strides = [1, 1, 1]} : vector<2x8x32xf32> to vector<2x8x8xf32>
    %947 = vector.extract_strided_slice %905 {offsets = [0, 0, 16], sizes = [2, 8, 8], strides = [1, 1, 1]} : vector<2x8x32xf32> to vector<2x8x8xf32>
    "tpu.trace_start"() <{level = 10 : i32, message = "bqd,bkd->bqk"}> : () -> ()
    %cst_317 = arith.constant dense<0.000000e+00> : vector<2x8x8xf32>
    %948 = tpu.matmul %946, %947, %cst_317 {dimension_numbers = #tpu.dot_dimension_numbers<[2], [2], [1], [1], [0, 0, 0, 1, 1, 1], [0], [0]>} : vector<2x8x8xf32>, vector<2x8x8xf32>, vector<2x8x8xf32> -> vector<2x8x8xf32>
    "tpu.trace_stop"() : () -> ()
    %cst_318 = arith.constant dense<0xFF800000> : vector<2x8xf32>
    %949 = vector.multi_reduction <maximumf>, %948, %cst_318 [2] : vector<2x8x8xf32> to vector<2x8xf32>
    %950 = vector.shape_cast %949 : vector<2x8xf32> to vector<2x8x1xf32>
    %951 = vector.broadcast %950 : vector<2x8x1xf32> to vector<2x8x8xf32>
    %952 = arith.subf %948, %951 : vector<2x8x8xf32>
    %953 = math.exp %952 : vector<2x8x8xf32>
    %cst_319 = arith.constant dense<0.000000e+00> : vector<2x8xf32>
    %954 = vector.multi_reduction <add>, %953, %cst_319 [2] : vector<2x8x8xf32> to vector<2x8xf32>
    %955 = vector.shape_cast %954 : vector<2x8xf32> to vector<2x8x1xf32>
    %956 = vector.broadcast %955 : vector<2x8x1xf32> to vector<2x8x8xf32>
    %957 = arith.divf %953, %956 : vector<2x8x8xf32>
    %958 = vector.extract_strided_slice %906 {offsets = [0, 0, 16], sizes = [2, 8, 8], strides = [1, 1, 1]} : vector<2x8x32xf32> to vector<2x8x8xf32>
    "tpu.trace_start"() <{level = 10 : i32, message = "bqk,bkd->bqd"}> : () -> ()
    %cst_320 = arith.constant dense<0.000000e+00> : vector<2x8x8xf32>
    %959 = tpu.matmul %957, %958, %cst_320 {dimension_numbers = #tpu.dot_dimension_numbers<[2], [1], [1], [2], [0, 0, 0, 1, 1, 2], [0], [0]>} : vector<2x8x8xf32>, vector<2x8x8xf32>, vector<2x8x8xf32> -> vector<2x8x8xf32>
    "tpu.trace_stop"() : () -> ()
    %960 = vector.shape_cast %959 : vector<2x8x8xf32> to vector<16x8xf32>
    %961 = vector.extract_strided_slice %908 {offsets = [0, 16], sizes = [32, 8], strides = [1, 1]} : vector<32x32xf32> to vector<32x8xf32>
    %cst_321 = arith.constant dense<0.000000e+00> : vector<16x32xf32>
    %962 = tpu.matmul %960, %961, %cst_321 {dimension_numbers = #tpu.dot_dimension_numbers<[1], [1], [0], [0], [0, 0, 1, 0], [], []>} : vector<16x8xf32>, vector<32x8xf32>, vector<16x32xf32> -> vector<16x32xf32>
    %963 = arith.addf %945, %962 : vector<16x32xf32>
    %964 = vector.extract_strided_slice %904 {offsets = [0, 0, 24], sizes = [2, 8, 8], strides = [1, 1, 1]} : vector<2x8x32xf32> to vector<2x8x8xf32>
    %965 = vector.extract_strided_slice %905 {offsets = [0, 0, 24], sizes = [2, 8, 8], strides = [1, 1, 1]} : vector<2x8x32xf32> to vector<2x8x8xf32>
    "tpu.trace_start"() <{level = 10 : i32, message = "bqd,bkd->bqk"}> : () -> ()
    %cst_322 = arith.constant dense<0.000000e+00> : vector<2x8x8xf32>
    %966 = tpu.matmul %964, %965, %cst_322 {dimension_numbers = #tpu.dot_dimension_numbers<[2], [2], [1], [1], [0, 0, 0, 1, 1, 1], [0], [0]>} : vector<2x8x8xf32>, vector<2x8x8xf32>, vector<2x8x8xf32> -> vector<2x8x8xf32>
    "tpu.trace_stop"() : () -> ()
    %cst_323 = arith.constant dense<0xFF800000> : vector<2x8xf32>
    %967 = vector.multi_reduction <maximumf>, %966, %cst_323 [2] : vector<2x8x8xf32> to vector<2x8xf32>
    %968 = vector.shape_cast %967 : vector<2x8xf32> to vector<2x8x1xf32>
    %969 = vector.broadcast %968 : vector<2x8x1xf32> to vector<2x8x8xf32>
    %970 = arith.subf %966, %969 : vector<2x8x8xf32>
    %971 = math.exp %970 : vector<2x8x8xf32>
    %cst_324 = arith.constant dense<0.000000e+00> : vector<2x8xf32>
    %972 = vector.multi_reduction <add>, %971, %cst_324 [2] : vector<2x8x8xf32> to vector<2x8xf32>
    %973 = vector.shape_cast %972 : vector<2x8xf32> to vector<2x8x1xf32>
    %974 = vector.broadcast %973 : vector<2x8x1xf32> to vector<2x8x8xf32>
    %975 = arith.divf %971, %974 : vector<2x8x8xf32>
    %976 = vector.extract_strided_slice %906 {offsets = [0, 0, 24], sizes = [2, 8, 8], strides = [1, 1, 1]} : vector<2x8x32xf32> to vector<2x8x8xf32>
    "tpu.trace_start"() <{level = 10 : i32, message = "bqk,bkd->bqd"}> : () -> ()
    %cst_325 = arith.constant dense<0.000000e+00> : vector<2x8x8xf32>
    %977 = tpu.matmul %975, %976, %cst_325 {dimension_numbers = #tpu.dot_dimension_numbers<[2], [1], [1], [2], [0, 0, 0, 1, 1, 2], [0], [0]>} : vector<2x8x8xf32>, vector<2x8x8xf32>, vector<2x8x8xf32> -> vector<2x8x8xf32>
    "tpu.trace_stop"() : () -> ()
    %978 = vector.shape_cast %977 : vector<2x8x8xf32> to vector<16x8xf32>
    %979 = vector.extract_strided_slice %908 {offsets = [0, 24], sizes = [32, 8], strides = [1, 1]} : vector<32x32xf32> to vector<32x8xf32>
    %cst_326 = arith.constant dense<0.000000e+00> : vector<16x32xf32>
    %980 = tpu.matmul %978, %979, %cst_326 {dimension_numbers = #tpu.dot_dimension_numbers<[1], [1], [0], [0], [0, 0, 1, 0], [], []>} : vector<16x8xf32>, vector<32x8xf32>, vector<16x32xf32> -> vector<16x32xf32>
    %981 = arith.addf %963, %980 : vector<16x32xf32>
    %982 = arith.addf %857, %981 : vector<16x32xf32>
    %c5_327 = arith.constant 5 : index
    %c0_328 = arith.constant 0 : index
    %983 = vector.load %arg10[%c5_327, %c0_328] : memref<6x32xf32, #tpu.memory_space<vmem>>, vector<1x32xf32>
    %984 = vector.shape_cast %983 : vector<1x32xf32> to vector<32xf32>
    %985 = vector.shape_cast %984 : vector<32xf32> to vector<1x32xf32>
    %986 = vector.broadcast %985 : vector<1x32xf32> to vector<16x32xf32>
    %987 = arith.addf %982, %986 : vector<16x32xf32>
    %c9 = arith.constant 9 : index
    %c0_329 = arith.constant 0 : index
    %988 = vector.load %arg5[%c9, %c0_329] : memref<12x32xf32, #tpu.memory_space<vmem>>, vector<1x32xf32>
    %989 = vector.shape_cast %988 : vector<1x32xf32> to vector<32xf32>
    %c9_330 = arith.constant 9 : index
    %c0_331 = arith.constant 0 : index
    %990 = vector.load %arg6[%c9_330, %c0_331] : memref<12x32xf32, #tpu.memory_space<vmem>>, vector<1x32xf32>
    %991 = vector.shape_cast %990 : vector<1x32xf32> to vector<32xf32>
    %cst_332 = arith.constant dense<0.000000e+00> : vector<16xf32>
    %992 = vector.multi_reduction <add>, %987, %cst_332 [1] : vector<16x32xf32> to vector<16xf32>
    %993 = vector.shape_cast %992 : vector<16xf32> to vector<16x1xf32>
    %cst_333 = arith.constant 3.200000e+01 : f32
    %994 = vector.broadcast %cst_333 : f32 to vector<16x1xf32>
    %995 = arith.divf %993, %994 : vector<16x1xf32>
    %996 = vector.broadcast %995 : vector<16x1xf32> to vector<16x32xf32>
    %997 = arith.subf %987, %996 : vector<16x32xf32>
    %998 = arith.mulf %997, %997 : vector<16x32xf32>
    %cst_334 = arith.constant dense<0.000000e+00> : vector<16xf32>
    %999 = vector.multi_reduction <add>, %998, %cst_334 [1] : vector<16x32xf32> to vector<16xf32>
    %1000 = vector.shape_cast %999 : vector<16xf32> to vector<16x1xf32>
    %cst_335 = arith.constant 3.200000e+01 : f32
    %1001 = vector.broadcast %cst_335 : f32 to vector<16x1xf32>
    %1002 = arith.divf %1000, %1001 : vector<16x1xf32>
    %1003 = vector.broadcast %995 : vector<16x1xf32> to vector<16x32xf32>
    %1004 = arith.subf %987, %1003 : vector<16x32xf32>
    %cst_336 = arith.constant 9.99999974E-6 : f32
    %1005 = vector.broadcast %cst_336 : f32 to vector<16x1xf32>
    %1006 = arith.addf %1002, %1005 : vector<16x1xf32>
    %1007 = math.rsqrt %1006 : vector<16x1xf32>
    %1008 = vector.broadcast %1007 : vector<16x1xf32> to vector<16x32xf32>
    %1009 = arith.mulf %1004, %1008 : vector<16x32xf32>
    %1010 = vector.shape_cast %989 : vector<32xf32> to vector<1x32xf32>
    %1011 = vector.broadcast %1010 : vector<1x32xf32> to vector<16x32xf32>
    %1012 = arith.mulf %1009, %1011 : vector<16x32xf32>
    %1013 = vector.shape_cast %991 : vector<32xf32> to vector<1x32xf32>
    %1014 = vector.broadcast %1013 : vector<1x32xf32> to vector<16x32xf32>
    %1015 = arith.addf %1012, %1014 : vector<16x32xf32>
    %c3_337 = arith.constant 3 : index
    %c0_338 = arith.constant 0 : index
    %c0_339 = arith.constant 0 : index
    %1016 = vector.load %arg11[%c3_337, %c0_338, %c0_339] : memref<4x64x32xf32, #tpu.memory_space<vmem>>, vector<1x64x32xf32>
    %1017 = vector.shape_cast %1016 : vector<1x64x32xf32> to vector<64x32xf32>
    %cst_340 = arith.constant dense<0.000000e+00> : vector<16x64xf32>
    %1018 = tpu.matmul %1015, %1017, %cst_340 {dimension_numbers = #tpu.dot_dimension_numbers<[1], [1], [0], [0], [0, 0, 1, 0], [], []>} : vector<16x32xf32>, vector<64x32xf32>, vector<16x64xf32> -> vector<16x64xf32>
    %c3_341 = arith.constant 3 : index
    %c0_342 = arith.constant 0 : index
    %1019 = vector.load %arg12[%c3_341, %c0_342] : memref<4x64xf32, #tpu.memory_space<vmem>>, vector<1x64xf32>
    %1020 = vector.shape_cast %1019 : vector<1x64xf32> to vector<64xf32>
    %1021 = vector.shape_cast %1020 : vector<64xf32> to vector<1x64xf32>
    %1022 = vector.broadcast %1021 : vector<1x64xf32> to vector<16x64xf32>
    %1023 = arith.addf %1018, %1022 : vector<16x64xf32>
    %cst_343 = arith.constant 5.000000e-01 : f32
    %1024 = vector.broadcast %cst_343 : f32 to vector<16x64xf32>
    %1025 = arith.mulf %1024, %1023 : vector<16x64xf32>
    %cst_344 = arith.constant 4.471500e-02 : f32
    %1026 = vector.broadcast %cst_344 : f32 to vector<16x64xf32>
    %1027 = arith.mulf %1026, %1023 : vector<16x64xf32>
    %1028 = arith.mulf %1027, %1023 : vector<16x64xf32>
    %1029 = arith.mulf %1028, %1023 : vector<16x64xf32>
    %1030 = arith.addf %1023, %1029 : vector<16x64xf32>
    %cst_345 = arith.constant 0.797884583 : f32
    %1031 = vector.broadcast %cst_345 : f32 to vector<16x64xf32>
    %1032 = arith.mulf %1031, %1030 : vector<16x64xf32>
    %1033 = math.tanh %1032 : vector<16x64xf32>
    %cst_346 = arith.constant 1.000000e+00 : f32
    %1034 = vector.broadcast %cst_346 : f32 to vector<16x64xf32>
    %1035 = arith.addf %1034, %1033 : vector<16x64xf32>
    %1036 = arith.mulf %1025, %1035 : vector<16x64xf32>
    %c3_347 = arith.constant 3 : index
    %c0_348 = arith.constant 0 : index
    %c0_349 = arith.constant 0 : index
    %1037 = vector.load %arg13[%c3_347, %c0_348, %c0_349] : memref<4x32x64xf32, #tpu.memory_space<vmem>>, vector<1x32x64xf32>
    %1038 = vector.shape_cast %1037 : vector<1x32x64xf32> to vector<32x64xf32>
    %cst_350 = arith.constant dense<0.000000e+00> : vector<16x32xf32>
    %1039 = tpu.matmul %1036, %1038, %cst_350 {dimension_numbers = #tpu.dot_dimension_numbers<[1], [1], [0], [0], [0, 0, 1, 0], [], []>} : vector<16x64xf32>, vector<32x64xf32>, vector<16x32xf32> -> vector<16x32xf32>
    %1040 = arith.addf %987, %1039 : vector<16x32xf32>
    %c3_351 = arith.constant 3 : index
    %c0_352 = arith.constant 0 : index
    %1041 = vector.load %arg14[%c3_351, %c0_352] : memref<4x32xf32, #tpu.memory_space<vmem>>, vector<1x32xf32>
    %1042 = vector.shape_cast %1041 : vector<1x32xf32> to vector<32xf32>
    %1043 = vector.shape_cast %1042 : vector<32xf32> to vector<1x32xf32>
    %1044 = vector.broadcast %1043 : vector<1x32xf32> to vector<16x32xf32>
    %1045 = arith.addf %1040, %1044 : vector<16x32xf32>
    %c0_353 = arith.constant 0 : index
    %c0_354 = arith.constant 0 : index
    %1046 = vector.load %arg18[%c0_353, %c0_354] : memref<16x32xf32, #tpu.memory_space<vmem>>, vector<16x32xf32>
    tpu.vector_store %arg18[%c0_353, %c0_354], %1045 {strides = array<i32>} : memref<16x32xf32, #tpu.memory_space<vmem>>, vector<16x32xf32>,
    %c2_i32 = arith.constant 2 : i32
    %1047 = arith.muli %arg0, %c2_i32 : i32
    %c0_i32 = arith.constant 0 : i32
    %c2_i32_355 = arith.constant 2 : i32
    %1048 = arith.addi %c0_i32, %c2_i32_355 : i32
    %c1_i32 = arith.constant 1 : i32
    scf.for %arg20 = %c0_i32 to %1048 step %c1_i32  : i32 {
      %c1_i32_384 = arith.constant 1 : i32
      %1111 = arith.muli %arg20, %c1_i32_384 : i32
      %c0_i32_385 = arith.constant 0 : i32
      %1112 = arith.addi %c0_i32_385, %1111 : i32
      %1113 = arith.addi %1047, %1112 : i32
      %1114 = arith.index_cast %1113 : i32 to index
      %1115 = memref.load %arg1[%1114] : memref<2xi32, #tpu.memory_space<smem>>
      %c1_i32_386 = arith.constant 1 : i32
      %1116 = arith.addi %1115, %c1_i32_386 : i32
      %c0_i32_387 = arith.constant 0 : i32
      %c7_i32 = arith.constant 7 : i32
      %1117 = arith.maxsi %c0_i32_387, %1116 : i32
      %1118 = arith.minsi %c7_i32, %1117 : i32
      %c8_i32 = arith.constant 8 : i32
      %1119 = arith.muli %1112, %c8_i32 : i32
      %1120 = arith.addi %1119, %1118 : i32
      %1121 = arith.index_cast %1120 : i32 to index
      %c0_388 = arith.constant 0 : index
      %1122 = vector.load %arg18[%1121, %c0_388] : memref<16x32xf32, #tpu.memory_space<vmem>>, vector<1x32xf32>
      %1123 = arith.index_cast %1112 : i32 to index
      %c0_389 = arith.constant 0 : index
      %1124 = vector.load %arg19[%1123, %c0_389] : memref<2x32xf32, #tpu.memory_space<vmem>>, vector<1x32xf32>
      tpu.vector_store %arg19[%1123, %c0_389], %1122 {strides = array<i32>} : memref<2x32xf32, #tpu.memory_space<vmem>>, vector<1x32xf32>,
    }
    %c2_i32_356 = arith.constant 2 : i32
    %c0_357 = arith.constant 0 : index
    %c0_358 = arith.constant 0 : index
    %1049 = vector.load %arg19[%c0_357, %c0_358] : memref<2x32xf32, #tpu.memory_space<vmem>>, vector<2x32xf32>
    %c11 = arith.constant 11 : index
    %c0_359 = arith.constant 0 : index
    %1050 = vector.load %arg5[%c11, %c0_359] : memref<12x32xf32, #tpu.memory_space<vmem>>, vector<1x32xf32>
    %1051 = vector.shape_cast %1050 : vector<1x32xf32> to vector<32xf32>
    %c11_360 = arith.constant 11 : index
    %c0_361 = arith.constant 0 : index
    %1052 = vector.load %arg6[%c11_360, %c0_361] : memref<12x32xf32, #tpu.memory_space<vmem>>, vector<1x32xf32>
    %1053 = vector.shape_cast %1052 : vector<1x32xf32> to vector<32xf32>
    %cst_362 = arith.constant dense<0.000000e+00> : vector<2xf32>
    %1054 = vector.multi_reduction <add>, %1049, %cst_362 [1] : vector<2x32xf32> to vector<2xf32>
    %1055 = vector.shape_cast %1054 : vector<2xf32> to vector<2x1xf32>
    %cst_363 = arith.constant 3.200000e+01 : f32
    %1056 = vector.broadcast %cst_363 : f32 to vector<2x1xf32>
    %1057 = arith.divf %1055, %1056 : vector<2x1xf32>
    %1058 = vector.broadcast %1057 : vector<2x1xf32> to vector<2x32xf32>
    %1059 = arith.subf %1049, %1058 : vector<2x32xf32>
    %1060 = arith.mulf %1059, %1059 : vector<2x32xf32>
    %cst_364 = arith.constant dense<0.000000e+00> : vector<2xf32>
    %1061 = vector.multi_reduction <add>, %1060, %cst_364 [1] : vector<2x32xf32> to vector<2xf32>
    %1062 = vector.shape_cast %1061 : vector<2xf32> to vector<2x1xf32>
    %cst_365 = arith.constant 3.200000e+01 : f32
    %1063 = vector.broadcast %cst_365 : f32 to vector<2x1xf32>
    %1064 = arith.divf %1062, %1063 : vector<2x1xf32>
    %1065 = vector.broadcast %1057 : vector<2x1xf32> to vector<2x32xf32>
    %1066 = arith.subf %1049, %1065 : vector<2x32xf32>
    %cst_366 = arith.constant 9.99999974E-6 : f32
    %1067 = vector.broadcast %cst_366 : f32 to vector<2x1xf32>
    %1068 = arith.addf %1064, %1067 : vector<2x1xf32>
    %1069 = math.rsqrt %1068 : vector<2x1xf32>
    %1070 = vector.broadcast %1069 : vector<2x1xf32> to vector<2x32xf32>
    %1071 = arith.mulf %1066, %1070 : vector<2x32xf32>
    %1072 = vector.shape_cast %1051 : vector<32xf32> to vector<1x32xf32>
    %1073 = vector.broadcast %1072 : vector<1x32xf32> to vector<2x32xf32>
    %1074 = arith.mulf %1071, %1073 : vector<2x32xf32>
    %1075 = vector.shape_cast %1053 : vector<32xf32> to vector<1x32xf32>
    %1076 = vector.broadcast %1075 : vector<1x32xf32> to vector<2x32xf32>
    %1077 = arith.addf %1074, %1076 : vector<2x32xf32>
    %cst_367 = arith.constant 5.000000e-01 : f32
    %1078 = vector.broadcast %cst_367 : f32 to vector<2x32xf32>
    %1079 = arith.mulf %1078, %1077 : vector<2x32xf32>
    %cst_368 = arith.constant 4.471500e-02 : f32
    %1080 = vector.broadcast %cst_368 : f32 to vector<2x32xf32>
    %1081 = arith.mulf %1080, %1077 : vector<2x32xf32>
    %1082 = arith.mulf %1081, %1077 : vector<2x32xf32>
    %1083 = arith.mulf %1082, %1077 : vector<2x32xf32>
    %1084 = arith.addf %1077, %1083 : vector<2x32xf32>
    %cst_369 = arith.constant 0.797884583 : f32
    %1085 = vector.broadcast %cst_369 : f32 to vector<2x32xf32>
    %1086 = arith.mulf %1085, %1084 : vector<2x32xf32>
    %1087 = math.tanh %1086 : vector<2x32xf32>
    %cst_370 = arith.constant 1.000000e+00 : f32
    %1088 = vector.broadcast %cst_370 : f32 to vector<2x32xf32>
    %1089 = arith.addf %1088, %1087 : vector<2x32xf32>
    %1090 = arith.mulf %1079, %1089 : vector<2x32xf32>
    %c0_371 = arith.constant 0 : index
    %c0_372 = arith.constant 0 : index
    %1091 = vector.load %arg15[%c0_371, %c0_372] : memref<8x32xf32, #tpu.memory_space<vmem>>, vector<8x32xf32>
    %cst_373 = arith.constant dense<0.000000e+00> : vector<2x8xf32>
    %1092 = tpu.matmul %1090, %1091, %cst_373 {dimension_numbers = #tpu.dot_dimension_numbers<[1], [1], [0], [0], [0, 0, 1, 0], [], []>} : vector<2x32xf32>, vector<8x32xf32>, vector<2x8xf32> -> vector<2x8xf32>
    %c0_374 = arith.constant 0 : index
    %c0_375 = arith.constant 0 : index
    %1093 = vector.load %arg16[%c0_374, %c0_375] : memref<1x8xf32, #tpu.memory_space<vmem>>, vector<1x8xf32>
    %1094 = vector.broadcast %1093 : vector<1x8xf32> to vector<2x8xf32>
    %1095 = arith.addf %1092, %1094 : vector<2x8xf32>
    %c0_376 = arith.constant 0 : index
    %c0_377 = arith.constant 0 : index
    %1096 = vector.load %arg4[%c0_376, %c0_377] : memref<2x8xf32, #tpu.memory_space<vmem>>, vector<2x8xf32>
    %cst_378 = arith.constant 0.000000e+00 : f32
    %1097 = vector.broadcast %cst_378 : f32 to vector<2x8xf32>
    %1098 = arith.cmpf ogt, %1096, %1097 : vector<2x8xf32>
    %cst_379 = arith.constant -1.000000e+09 : f32
    %1099 = vector.broadcast %cst_379 : f32 to vector<2x8xf32>
    %1100 = arith.select %1098, %1095, %1099 : vector<2x8xi1>, vector<2x8xf32>
    %cst_380 = arith.constant dense<0xFF800000> : vector<2xf32>
    %1101 = vector.multi_reduction <maximumf>, %1100, %cst_380 [1] : vector<2x8xf32> to vector<2xf32>
    %1102 = vector.shape_cast %1101 : vector<2xf32> to vector<2x1xf32>
    %1103 = vector.broadcast %1102 : vector<2x1xf32> to vector<2x8xf32>
    %1104 = arith.subf %1100, %1103 : vector<2x8xf32>
    %1105 = math.exp %1104 : vector<2x8xf32>
    %cst_381 = arith.constant dense<0.000000e+00> : vector<2xf32>
    %1106 = vector.multi_reduction <add>, %1105, %cst_381 [1] : vector<2x8xf32> to vector<2xf32>
    %1107 = vector.shape_cast %1106 : vector<2xf32> to vector<2x1xf32>
    %1108 = vector.broadcast %1107 : vector<2x1xf32> to vector<2x8xf32>
    %1109 = arith.divf %1105, %1108 : vector<2x8xf32>
    %c0_382 = arith.constant 0 : index
    %c0_383 = arith.constant 0 : index
    %1110 = vector.load %arg17[%c0_382, %c0_383] : memref<2x8xf32, #tpu.memory_space<vmem>>, vector<2x8xf32>
    tpu.vector_store %arg17[%c0_382, %c0_383], %1109 {strides = array<i32>} : memref<2x8xf32, #tpu.memory_space<vmem>>, vector<2x8xf32>,
    return
  }
  func.func @transform_0(%arg0: i32, %arg1: memref<2xi32, #tpu.memory_space<smem>>) -> (i32, i32, i32) {
    %c0_i32 = arith.constant 0 : i32
    %c0_i32_0 = arith.constant 0 : i32
    %c0_i32_1 = arith.constant 0 : i32
    return %arg0, %c0_i32, %c0_i32_0 : i32, i32, i32
  }
  func.func @transform_1(%arg0: i32, %arg1: memref<2xi32, #tpu.memory_space<smem>>) -> (i32, i32, i32) {
    %c0_i32 = arith.constant 0 : i32
    %c0_i32_0 = arith.constant 0 : i32
    %c0_i32_1 = arith.constant 0 : i32
    return %arg0, %c0_i32, %c0_i32_0 : i32, i32, i32
  }
  func.func @transform_2(%arg0: i32, %arg1: memref<2xi32, #tpu.memory_space<smem>>) -> (i32, i32) {
    %c0_i32 = arith.constant 0 : i32
    %c0_i32_0 = arith.constant 0 : i32
    return %arg0, %c0_i32 : i32, i32
  }
  func.func @transform_3(%arg0: i32, %arg1: memref<2xi32, #tpu.memory_space<smem>>) -> (i32, i32) {
    %c0_i32 = arith.constant 0 : i32
    %c0_i32_0 = arith.constant 0 : i32
    %c0_i32_1 = arith.constant 0 : i32
    return %c0_i32, %c0_i32_0 : i32, i32
  }
  func.func @transform_4(%arg0: i32, %arg1: memref<2xi32, #tpu.memory_space<smem>>) -> (i32, i32) {
    %c0_i32 = arith.constant 0 : i32
    %c0_i32_0 = arith.constant 0 : i32
    %c0_i32_1 = arith.constant 0 : i32
    return %c0_i32, %c0_i32_0 : i32, i32
  }
  func.func @transform_5(%arg0: i32, %arg1: memref<2xi32, #tpu.memory_space<smem>>) -> (i32, i32, i32) {
    %c0_i32 = arith.constant 0 : i32
    %c0_i32_0 = arith.constant 0 : i32
    %c0_i32_1 = arith.constant 0 : i32
    %c0_i32_2 = arith.constant 0 : i32
    return %c0_i32, %c0_i32_0, %c0_i32_1 : i32, i32, i32
  }
  func.func @transform_6(%arg0: i32, %arg1: memref<2xi32, #tpu.memory_space<smem>>) -> (i32, i32) {
    %c0_i32 = arith.constant 0 : i32
    %c0_i32_0 = arith.constant 0 : i32
    %c0_i32_1 = arith.constant 0 : i32
    return %c0_i32, %c0_i32_0 : i32, i32
  }
  func.func @transform_7(%arg0: i32, %arg1: memref<2xi32, #tpu.memory_space<smem>>) -> (i32, i32, i32) {
    %c0_i32 = arith.constant 0 : i32
    %c0_i32_0 = arith.constant 0 : i32
    %c0_i32_1 = arith.constant 0 : i32
    %c0_i32_2 = arith.constant 0 : i32
    return %c0_i32, %c0_i32_0, %c0_i32_1 : i32, i32, i32
  }
  func.func @transform_8(%arg0: i32, %arg1: memref<2xi32, #tpu.memory_space<smem>>) -> (i32, i32) {
    %c0_i32 = arith.constant 0 : i32
    %c0_i32_0 = arith.constant 0 : i32
    %c0_i32_1 = arith.constant 0 : i32
    return %c0_i32, %c0_i32_0 : i32, i32
  }
  func.func @transform_9(%arg0: i32, %arg1: memref<2xi32, #tpu.memory_space<smem>>) -> (i32, i32, i32) {
    %c0_i32 = arith.constant 0 : i32
    %c0_i32_0 = arith.constant 0 : i32
    %c0_i32_1 = arith.constant 0 : i32
    %c0_i32_2 = arith.constant 0 : i32
    return %c0_i32, %c0_i32_0, %c0_i32_1 : i32, i32, i32
  }
  func.func @transform_10(%arg0: i32, %arg1: memref<2xi32, #tpu.memory_space<smem>>) -> (i32, i32) {
    %c0_i32 = arith.constant 0 : i32
    %c0_i32_0 = arith.constant 0 : i32
    %c0_i32_1 = arith.constant 0 : i32
    return %c0_i32, %c0_i32_0 : i32, i32
  }
  func.func @transform_11(%arg0: i32, %arg1: memref<2xi32, #tpu.memory_space<smem>>) -> (i32, i32, i32) {
    %c0_i32 = arith.constant 0 : i32
    %c0_i32_0 = arith.constant 0 : i32
    %c0_i32_1 = arith.constant 0 : i32
    %c0_i32_2 = arith.constant 0 : i32
    return %c0_i32, %c0_i32_0, %c0_i32_1 : i32, i32, i32
  }
  func.func @transform_12(%arg0: i32, %arg1: memref<2xi32, #tpu.memory_space<smem>>) -> (i32, i32) {
    %c0_i32 = arith.constant 0 : i32
    %c0_i32_0 = arith.constant 0 : i32
    %c0_i32_1 = arith.constant 0 : i32
    return %c0_i32, %c0_i32_0 : i32, i32
  }
  func.func @transform_13(%arg0: i32, %arg1: memref<2xi32, #tpu.memory_space<smem>>) -> (i32, i32) {
    %c0_i32 = arith.constant 0 : i32
    %c0_i32_0 = arith.constant 0 : i32
    %c0_i32_1 = arith.constant 0 : i32
    return %c0_i32, %c0_i32_0 : i32, i32
  }
  func.func @transform_14(%arg0: i32, %arg1: memref<2xi32, #tpu.memory_space<smem>>) -> (i32, i32) {
    %c0_i32 = arith.constant 0 : i32
    %c0_i32_0 = arith.constant 0 : i32
    %c0_i32_1 = arith.constant 0 : i32
    return %c0_i32, %c0_i32_0 : i32, i32
  }
  func.func @transform_15(%arg0: i32, %arg1: memref<2xi32, #tpu.memory_space<smem>>) -> (i32, i32) {
    %c0_i32 = arith.constant 0 : i32
    %c0_i32_0 = arith.constant 0 : i32
    return %arg0, %c0_i32 : i32, i32
  }
}

</mosaic_0001>

<bundles_post_ra>
// kernel: actor_forward.1
= control target key start
LH: loop header
LB: loop body
LE: loop exit
PB: predicated region body
PF: predicated region fallthrough
CT: control target
= control target key end

     0   :  { %s18691_s0 = inlined_call_operand.vmem [shape: s32[2], index: 0, kind: input, shape index: {}]   ;;  %s18692_s1 = inlined_call_operand.vmem [shape: f32[2,8,32], index: 1, kind: input, shape index: {}]   ;;  %s18693_s2 = inlined_call_operand.vmem [shape: f32[2,8,32], index: 2, kind: input, shape index: {}]   ;;  %s18694_s3 = inlined_call_operand.vmem [shape: f32[2,8], index: 3, kind: input, shape index: {}]   ;;  %s18695_s4 = inlined_call_operand.vmem [shape: f32[12,32], index: 4, kind: input, shape index: {}]   ;;  %s18696_s5 = inlined_call_operand.vmem [shape: f32[12,32], index: 5, kind: input, shape index: {}]   ;;  %s18697_s6 = inlined_call_operand.vmem [shape: f32[6,96,32], index: 6, kind: input, shape index: {}]   ;;  %s18698_s7 = inlined_call_operand.vmem [shape: f32[6,96], index: 7, kind: input, shape index: {}]   ;;  %s18699_s8 = inlined_call_operand.vmem [shape: f32[6,32,32], index: 8, kind: input, shape index: {}]   ;;  %s18700_s9 = inlined_call_operand.vmem [shape: f32[6,32], index: 9, kind: input, shape index: {}]   ;;  %s18701_s10 = inlined_call_operand.vmem [shape: f32[4,64,32], index: 10, kind: input, shape index: {}]   ;;  %s18702_s11 = inlined_call_operand.vmem [shape: f32[4,64], index: 11, kind: input, shape index: {}]   ;;  %s18703_s12 = inlined_call_operand.vmem [shape: f32[4,32,64], index: 12, kind: input, shape index: {}]   ;;  %s18704_s13 = inlined_call_operand.vmem [shape: f32[4,32], index: 13, kind: input, shape index: {}]   ;;  %s18705_s14 = inlined_call_operand.vmem [shape: f32[8,32], index: 14, kind: input, shape index: {}]   ;;  %s18706_s15 = inlined_call_operand.vmem [shape: f32[1,8], index: 15, kind: input, shape index: {}]   ;;  %s18707_s16 = inlined_call_operand.hbm [shape: f32[2,8], index: 16, kind: output, shape index: {}]  }
   0x1   :  { %18718 = sst [smem:[#allocation10_spill]] %s18691_s0 }
   0x2   :  { %18719 = sst [smem:[#allocation11_spill]] %s18694_s3  ;;  %s18720_s23 = sld [smem:[#allocation10_spill]] }
   0x8   :  { %s21_s3 = sshll.u32 %s18720_s23, 4  ;;  %s22_s3 = int_to_ptr.vmem [resolvable:$true] %s21_s3 }
   0x9   :  { %s16241_s24 = scalar_lea.vmem %s22_s3, 16  ;;  %p16246_p1 = scmp.lt.s32.totalorder %s22_s3, %s22_s3 }
   0xa   :  { %p16242_p0 = scmp.ne.s32.totalorder %s22_s3, %s16241_s24  ;;  %p16247_p2 = scmp.lt.s32.totalorder %s16241_s24, %s16241_s24 }
   0xc   :  { %p16248_p3 = por %p16247_p2, %p16246_p1 }
   0xe   :  { %p16249_p4 = pnand %p16248_p3, %p16242_p0 }
  0x10   :  { %16252 = shalt.err (!%p16249_p4)  }
  0x11   :  { %s16287_s25 = smov [#allocation5]  }
  0x12   :  { %24 = dma.vmem_to_smem %s22_s3, 16, %s16287_s25, [#allocation4] }
  0x13   :  { %16279 = dma.done.wait [#allocation4], 16 }
  0x14   :  { %16280 = vsyncadd [#allocation4], 4294967280 }
  0x15   :  { %26 = sfence }
  0x16   :  { %v16393_v0 = vld [vmem:[%s18692_s1] sm:$0xff]  ;;  %vm68_vm0 = vcmask 261120   ;;  %v16398_v1 = vld [vmem:[%s18692_s1 + $0x8] sm:$0xff] }
  0x17   :  { %27 = vsyncpa [#allocation7], 0  ;;  %v69_v2 = vsel %vm68_vm0, %v16393_v0, 0.0  ;;  %v72_v3 = vsel %vm68_vm0, %v16398_v1, 0.0  ;;  %v108_v4 = vld [vmem:[%s18697_s6] sm:$0xff]  ;;  %v109_v5 = vld [vmem:[%s18697_s6 + $0x8] sm:$0xff] }
  0x18   :  { %70 = vadd.xlane.f32.xlu0 %v69_v2  ;;  %vm16412_vm1 = vmpackc.low %vm68_vm0, %vm68_vm0  ;;  %v15094_v7 = vpack.c.bf16 %v109_v5, %v108_v4  ;;  %v110_v8 = vld [vmem:[%s18697_s6 + $0x10] sm:$0xff]  ;;  %v111_v9 = vld [vmem:[%s18697_s6 + $0x18] sm:$0xff]  ;;  %v16288_v49 = vmov 0.0   ;;  %vm16289_vm2 = vmmov 0   ;;  %s16290_s26 = smov 96   ;;  %vm249_vm3 = vcmask 64512  }
  0x19   :  { %v15100_v10 = vpack.c.bf16 %v111_v9, %v110_v8  ;;  %v112_v11 = vld [vmem:[%s18697_s6 + $0x20] sm:$0xff]  ;;  %v113_v12 = vld [vmem:[%s18697_s6 + $0x28] sm:$0xff]  ;;  %v114_v24 = vld [vmem:[%s18697_s6 + $0x30] sm:$0xff]  ;;  %14084 = vmatprep.subr.mxu1 %v16288_v49  ;;  %14086 = vmatprep.mubr.msk.f32.mxu1 %vm16289_vm2, %v16288_v49  ;;  %s18716_s27 = smov 64   ;;  %s16292_s28 = smov 88   ;;  %vm2142_vm5 = vcmask 523264  }
  0x1a   :  { %15096 = vmatprep.subr.msk.bf16.mxu0 %vm16412_vm1, %v15094_v7  ;;  %v15106_v13 = vpack.c.bf16 %v113_v12, %v112_v11  ;;  %v115_v25 = vld [vmem:[%s18697_s6 + $0x38] sm:$0xff]  ;;  %v116_v27 = vld [vmem:[%s18697_s6 + $0x40] sm:$0xff]  ;;  %v117_v28 = vld [vmem:[%s18697_s6 + $0x48] sm:$0xff]  ;;  %s16293_s29 = smov 120   ;;  %s18710_s1 = smov 56  }
  0x1b   :  { %15099 = vmatpush3.bf16.xpose.msk.msra.mxu0 %vm16412_vm1, %v15094_v7  ;;  %v15112_v26 = vpack.c.bf16 %v115_v25, %v114_v24  ;;  %v15118_v29 = vpack.c.bf16 %v117_v28, %v116_v27  ;;  %v118_v30 = vld [vmem:[%s18697_s6 + $0x50] sm:$0xff]  ;;  %v119_v31 = vld [vmem:[%s18697_s6 + $0x58] sm:$0xff]  ;;  %v12956_v40 = vld [vmem:[%s18695_s4] ss:$0 sm:$0xff]  ;;  %s16295_s22 = smov 112   ;;  %s16296_s23 = smov 80  }
  0x1c   :  { %73 = vadd.xlane.f32.xlu0 %v72_v3  ;;  %15102 = vmatprep.subr.msk.bf16.mxu0 %vm16412_vm1, %v15100_v10  ;;  %v15124_v32 = vpack.c.bf16 %v119_v31, %v118_v30  ;;  %v12957_v42 = vld [vmem:[%s18696_s5] ss:$0 sm:$0xff]  ;;  %vm16600_vm4 = vmpackc.low %vm249_vm3, %vm249_vm3  ;;  %s18714_s24 = smov 48   ;;  %s18712_s25 = smov 72  }
  0x1d   :  { %v12958_v50 = vld [vmem:[%s18698_s7] ss:$0 sm:$0xff]  ;;  %s16299_s3 = smov 104   ;;  %s18708_s30 = smov 40   ;;  %vm16798_vm6 = vmpackc.low %vm2142_vm5, %vm2142_vm5 }
  0x1e   :  { %s18727_s18 = smov 56   ;;  %s18728_s19 = smov 40  }
  0x1f   :  { %s18730_s20 = smov 72  }
  0x23   :  { %15105 = vmatpush3.bf16.xpose.msk.msra.mxu0 %vm16412_vm1, %v15100_v10 }
  0x24   :  { %15108 = vmatprep.subr.msk.bf16.mxu0 %vm16412_vm1, %v15106_v13 }
  0x2b   :  { %15111 = vmatpush3.bf16.xpose.msk.msra.mxu0 %vm16412_vm1, %v15106_v13 }
  0x2c   :  { %15114 = vmatprep.subr.msk.bf16.mxu0 %vm16412_vm1, %v15112_v26 }
  0x33   :  { %15117 = vmatpush3.bf16.xpose.msk.msra.mxu0 %vm16412_vm1, %v15112_v26 }
  0x34   :  { %15120 = vmatprep.subr.msk.bf16.mxu0 %vm16412_vm1, %v15118_v29 }
  0x3b   :  { %15123 = vmatpush3.bf16.xpose.msk.msra.mxu0 %vm16412_vm1, %v15118_v29 }
  0x3c   :  { %15126 = vmatprep.subr.msk.bf16.mxu0 %vm16412_vm1, %v15124_v32 }
  0x43   :  { %15129 = vmatpush3.bf16.xpose.msk.msra.mxu0 %vm16412_vm1, %v15124_v32 }
  0x44   :  { %14151 = vmatprep.subr.mxu0 %v16288_v49 }
  0xa5   :  { %v71_v14 = vpop.xlane.xlu0 %70 }
  0xa6   :  { %v76_v15 = vmul.f32 0.03125, %v71_v14 }
  0xa8   :  { %v78_v16 = vsub.f32 %v16393_v0, %v76_v15 }
  0xa9   :  { %v74_v17 = vpop.xlane.xlu0 %73 }
  0xaa   :  { %v77_v18 = vmul.f32 0.03125, %v74_v17  ;;  %v80_v19 = vmul.f32 %v78_v16, %v78_v16 }
  0xac   :  { %v79_v20 = vsub.f32 %v16398_v1, %v77_v18  ;;  %v82_v21 = vsel %vm68_vm0, %v80_v19, 0.0 }
  0xad   :  { %83 = vadd.xlane.f32.xlu1 %v82_v21 }
  0xae   :  { %v81_v22 = vmul.f32 %v79_v20, %v79_v20 }
  0xb0   :  { %v85_v23 = vsel %vm68_vm0, %v81_v22, 0.0 }
  0xb1   :  { %86 = vadd.xlane.f32.xlu1 %v85_v23 }
 0x13a   :  { %v84_v33 = vpop.xlane.xlu1 %83 }
 0x13b   :  { %v88_v34 = vmul.f32 0.03125, %v84_v33 }
 0x13d   :  { %v90_v35 = vadd.f32 1e-05, %v88_v34  ;;  %v16554_v34 = vld [vmem:[%s18699_s8] sm:$0xff] }
 0x13e   :  { %v87_v36 = vpop.xlane.xlu1 %86 }
 0x13f   :  { %15981 = vrsqrt.f32 %v90_v35  ;;  %v89_v37 = vmul.f32 0.03125, %v87_v36  ;;  %v16559_v35 = vld [vmem:[%s18699_s8 + $0x8] sm:$0xff] }
 0x140   :  { %v16565_v36 = vpack.i.bf16 %v16559_v35, %v16554_v34 }
 0x141   :  { %v91_v38 = vadd.f32 1e-05, %v89_v37  ;;  %v16570_v37 = vld [vmem:[%s18699_s8 + $0x10] sm:$0xff] }
 0x143   :  { %15983 = vrsqrt.f32 %v91_v38  ;;  %v16575_v38 = vld [vmem:[%s18699_s8 + $0x18] sm:$0xff] }
 0x149   :  { %v15982_v39 = vpop.eup %15981 }
 0x14a   :  { %v94_v41 = vmul.f32 %v15982_v39, %v78_v16  ;;  %v16581_v39 = vpack.i.bf16 %v16575_v38, %v16570_v37 }
 0x14c   :  { %v100_v43 = vmul.f32 %v12956_v40, %v94_v41 }
 0x14d   :  { %v15984_v44 = vpop.eup %15983 }
 0x14e   :  { %v95_v45 = vmul.f32 %v15984_v44, %v79_v20  ;;  %v106_v46 = vadd.f32 %v12957_v42, %v100_v43 }
 0x150   :  { %v101_v47 = vmul.f32 %v12956_v40, %v95_v45  ;;  %14081 = vmatprep.mubr.msk.f32.mxu0 %vm68_vm0, %v106_v46 }
 0x152   :  { %v107_v48 = vadd.f32 %v12957_v42, %v101_v47 }
 0x154   :  { %14082 = vmatmul.mubr.msk.f32.vlgmr.msra.gmra.mrb[0].mxu0 %vm68_vm0, %v107_v48 }
 0x155   :  { %14153 = vmatprep.mubr.msk.f32.mxu0 %vm16289_vm2, %v16288_v49 }
 0x227   :  { %v14083_v51 = vpop.f32.mrb[0].mxu0 }
 0x228   :  { %v16491_v52 = vadd.f32 %v14083_v51, %v12958_v50  ;;  %v233_v53 = vpop.f32.mrb[1].mxu0 }
 0x229   :  { %v16493_v54 = vadd.f32 %v12958_v50, %v233_v53 }
 0x22a   :  { %325 = vrot.lane.b32.xlu1 %v16491_v52, %s16290_s26 }
 0x22b   :  { %247 = vrot.lane.b32.xlu0 %v16493_v54, %s16290_s26 }
 0x29c   :  { %v326_v56 = vpop.permute.xlu1 %325 }
 0x29d   :  { %v248_v55 = vpop.permute.xlu0 %247 }
 0x29e   :  { %14085 = vmatpush3.xpose.msk.msra.mxu1 %vm249_vm3, %v248_v55 }
 0x29f   :  { %14089 = vmatprep.subr.mxu1 %v16288_v49 }
 0x2a1   :  { %14087 = vmatmul.mubr.msk.f32.vlgmr.msra.gmra.mrb[0].mxu1 %vm249_vm3, %v16493_v54 }
 0x2a2   :  { %14090 = vmatpush3.xpose.msk.msra.mxu1 %vm249_vm3, %v326_v56  ;;  %14091 = vmatprep.mubr.msk.f32.mxu1 %vm16289_vm2, %v16288_v49 }
 0x2a3   :  { %14094 = vmatprep.subr.mxu1 %v16288_v49 }
 0x2a5   :  { %14092 = vmatmul.mubr.msk.f32.vlgmr.msra.gmra.mrb[2].mxu1 %vm249_vm3, %v16491_v52 }
 0x2a6   :  { %14096 = vmatprep.mubr.msk.f32.mxu1 %vm16289_vm2, %v16288_v49 }
 0x374   :  { %v320_v57 = vpop.f32.mrb[0].mxu1 }
 0x375   :  { %v14088_v58 = vpop.f32.mrb[1].mxu1  ;;  %v401_v59 = vsel %vm249_vm3, %v320_v57, -inf }
 0x376   :  { %402 = vmax.xlane.f32.xlu1 %v401_v59 }
 0x378   :  { %v397_v60 = vpop.f32.mrb[2].mxu1 }
 0x379   :  { %v14093_v61 = vpop.f32.mrb[3].mxu1  ;;  %v404_v62 = vsel %vm249_vm3, %v397_v60, -inf }
 0x37a   :  { %405 = vmax.xlane.f32.xlu0 %v404_v62 }
 0x387   :  { %499 = vrot.lane.b32.xlu1 %v16491_v52, %s18716_s27 }
 0x38b   :  { %577 = vrot.lane.b32.xlu1 %v16493_v54, %s16292_s28 }
 0x38f   :  { %575 = vrot.lane.b32.xlu1 %v16493_v54, %s16293_s29 }
 0x403   :  { %v403_v63 = vpop.xlane.xlu1 %402 }
 0x404   :  { %v407_v2 = vsub.f32 %v320_v57, %v403_v63 }
 0x406   :  { %v409_v3 = vmul.f32 1.442695, %v407_v2 }
 0x407   :  { %v406_v4 = vpop.xlane.xlu0 %405  ;;  %v500_v12 = vpop.permute.xlu1 %499 }
 0x408   :  { %15985 = vpow2.f32 %v409_v3  ;;  %v408_v5 = vsub.f32 %v397_v60, %v406_v4 }
 0x40a   :  { %v411_v7 = vmul.f32 1.442695, %v408_v5 }
 0x40b   :  { %v578_v13 = vpop.permute.xlu1 %577 }
 0x40c   :  { %15987 = vpow2.f32 %v411_v7 }
 0x40f   :  { %v576_v14 = vpop.permute.xlu1 %575 }
 0x412   :  { %v15986_v8 = vpop.eup %15985 }
 0x413   :  { %v413_v9 = vsel %vm249_vm3, %v15986_v8, 0.0 }
 0x414   :  { %414 = vadd.xlane.f32.xlu0 %v413_v9 }
 0x416   :  { %v15988_v10 = vpop.eup %15987 }
 0x417   :  { %v416_v11 = vsel %vm249_vm3, %v15988_v10, 0.0 }
 0x418   :  { %417 = vadd.xlane.f32.xlu1 %v416_v11 }
 0x429   :  { %653 = vrot.lane.b32.xlu1 %v16491_v52, %s16293_s29 }
 0x42a   :  { %423 = vrot.lane.b32.xlu0 %v16493_v54, %s18716_s27 }
 0x42e   :  { %655 = vrot.lane.b32.xlu0 %v16491_v52, %s16292_s28 }
 0x4a1   :  { %v415_v15 = vpop.xlane.xlu0 %414 }
 0x4a2   :  { %15989 = vrcp.f32 %v415_v15 }
 0x4a5   :  { %v418_v16 = vpop.xlane.xlu1 %417  ;;  %v424_v17 = vpop.permute.xlu0 %423 }
 0x4a6   :  { %15991 = vrcp.f32 %v418_v16  ;;  %14095 = vmatpush3.msra.mxu1 %v424_v17  ;;  %v15148_v16 = vpack.c.bf16 %v16575_v38, %v16570_v37 }
 0x4a7   :  { %14099 = vmatprep.subr.mxu1 %v16288_v49 }
 0x4a9   :  { %v656_v22 = vpop.permute.xlu0 %655  ;;  %v654_v23 = vpop.permute.xlu1 %653 }
 0x4ac   :  { %v15990_v18 = vpop.eup %15989 }
 0x4ad   :  { %v420_v19 = vmul.f32 %v15990_v18, %v15986_v8 }
 0x4af   :  { %14097 = vmatmul.mubr.msk.f32.vlgmr.msra.gmra.mrb[4].mxu1 %vm249_vm3, %v420_v19 }
 0x4b0   :  { %v15992_v20 = vpop.eup %15991  ;;  %14100 = vmatpush3.msra.mxu1 %v500_v12  ;;  %14101 = vmatprep.mubr.msk.f32.mxu1 %vm16289_vm2, %v16288_v49 }
 0x4b1   :  { %v422_v21 = vmul.f32 %v15992_v20, %v15988_v10  ;;  %14104 = vmatprep.subr.mxu1 %v16288_v49 }
 0x4b3   :  { %14102 = vmatmul.mubr.msk.f32.vlgmr.msra.gmra.mrb[6].mxu1 %vm249_vm3, %v422_v21 }
 0x4b4   :  { %14106 = vmatprep.mubr.msk.f32.mxu1 %vm16289_vm2, %v16288_v49 }
 0x4b7   :  { %14105 = vmatpush3.xpose.msk.msra.mxu1 %vm249_vm3, %v578_v13  ;;  %v15142_v13 = vpack.c.bf16 %v16559_v35, %v16554_v34 }
 0x4b8   :  { %14109 = vmatprep.subr.mxu1 %v16288_v49 }
 0x4ba   :  { %14107 = vmatmul.mubr.msk.f32.vlgmr.msra.gmra.mrb[8].mxu1 %vm249_vm3, %v576_v14 }
 0x4bb   :  { %14110 = vmatpush3.xpose.msk.msra.mxu1 %vm249_vm3, %v656_v22  ;;  %14111 = vmatprep.mubr.msk.f32.mxu1 %vm16289_vm2, %v16288_v49 }
 0x4bc   :  { %14114 = vmatprep.subr.mxu1 %v16288_v49 }
 0x4be   :  { %14112 = vmatmul.mubr.msk.f32.vlgmr.msra.gmra.mrb[10].mxu1 %vm249_vm3, %v654_v23 }
 0x4bf   :  { %14116 = vmatprep.mubr.msk.f32.mxu1 %vm16289_vm2, %v16288_v49 }
 0x582   :  { %v16545_v24 = vpop.f32.mrb[4].mxu1 }
 0x583   :  { %v14098_v25 = vpop.f32.mrb[5].mxu1 }
 0x586   :  { %v16547_v26 = vpop.f32.mrb[6].mxu1 }
 0x587   :  { %v14103_v27 = vpop.f32.mrb[7].mxu1 }
 0x58d   :  { %v649_v28 = vpop.f32.mrb[8].mxu1 }
 0x58e   :  { %v14108_v29 = vpop.f32.mrb[9].mxu1  ;;  %v731_v30 = vsel %vm249_vm3, %v649_v28, -inf }
 0x58f   :  { %732 = vmax.xlane.f32.xlu0 %v731_v30 }
 0x591   :  { %v727_v31 = vpop.f32.mrb[10].mxu1 }
 0x592   :  { %v14113_v32 = vpop.f32.mrb[11].mxu1  ;;  %v734_v33 = vsel %vm249_vm3, %v727_v31, -inf }
 0x593   :  { %735 = vmax.xlane.f32.xlu1 %v734_v33 }
 0x5a4   :  { %829 = vrot.lane.b32.xlu1 %v16491_v52, %s18710_s1 }
 0x5a8   :  { %15802 = vrot.lane.b32.xlu1 %v16565_v36, %s16293_s29 }
 0x5ac   :  { %15807 = vrot.lane.b32.xlu1 %v16581_v39, %s16293_s29 }
 0x5b0   :  { %1095 = vrot.lane.b32.xlu1 %v16493_v54, %s16295_s22 }
 0x5b4   :  { %1173 = vrot.lane.b32.xlu1 %v16491_v52, %s16295_s22 }
 0x61c   :  { %v733_v40 = vpop.xlane.xlu0 %732 }
 0x61d   :  { %v737_v41 = vsub.f32 %v649_v28, %v733_v40 }
 0x61f   :  { %v739_v42 = vmul.f32 1.442695, %v737_v41 }
 0x620   :  { %v736_v43 = vpop.xlane.xlu1 %735 }
 0x621   :  { %15993 = vpow2.f32 %v739_v42  ;;  %v738_v44 = vsub.f32 %v727_v31, %v736_v43 }
 0x623   :  { %v741_v45 = vmul.f32 1.442695, %v738_v44 }
 0x624   :  { %v830_v51 = vpop.permute.xlu1 %829 }
 0x625   :  { %15995 = vpow2.f32 %v741_v45 }
 0x628   :  { %v15803_v55 = vpop.permute.xlu1 %15802 }
 0x629   :  { %v15805_v58 = vunpack.i.h.bf16 %v15803_v55  ;;  %v15804_v59 = vunpack.i.l.bf16 %v15803_v55 }
 0x62b   :  { %v15994_v46 = vpop.eup %15993  ;;  %v15130_v62 = vpack.c.bf16 %v15805_v58, %v15804_v59 }
 0x62c   :  { %v743_v47 = vsel %vm249_vm3, %v15994_v46, 0.0  ;;  %v15808_v57 = vpop.permute.xlu1 %15807 }
 0x62d   :  { %744 = vadd.xlane.f32.xlu0 %v743_v47  ;;  %v15810_v7 = vunpack.i.h.bf16 %v15808_v57  ;;  %v15809_v8 = vunpack.i.l.bf16 %v15808_v57 }
 0x62f   :  { %v15996_v48 = vpop.eup %15995  ;;  %v15136_v11 = vpack.c.bf16 %v15810_v7, %v15809_v8 }
 0x630   :  { %v746_v50 = vsel %vm249_vm3, %v15996_v48, 0.0  ;;  %v1096_v3 = vpop.permute.xlu1 %1095 }
 0x631   :  { %747 = vadd.xlane.f32.xlu0 %v746_v50 }
 0x634   :  { %v1174_v12 = vpop.permute.xlu1 %1173 }
 0x647   :  { %753 = vrot.lane.b32.xlu0 %v16493_v54, %s18710_s1  ;;  %s18731_s1 = smov 64  }
 0x64b   :  { %1097 = vrot.lane.b32.xlu0 %v16493_v54, %s16296_s23 }
 0x64f   :  { %1175 = vrot.lane.b32.xlu0 %v16491_v52, %s16296_s23 }
 0x6ba   :  { %v745_v53 = vpop.xlane.xlu0 %744 }
 0x6bb   :  { %15997 = vrcp.f32 %v745_v53 }
 0x6be   :  { %v748_v56 = vpop.xlane.xlu0 %747 }
 0x6bf   :  { %15999 = vrcp.f32 %v748_v56 }
 0x6c2   :  { %v754_v60 = vpop.permute.xlu0 %753 }
 0x6c3   :  { %14115 = vmatpush3.msra.mxu1 %v754_v60 }
 0x6c4   :  { %14119 = vmatprep.subr.mxu1 %v16288_v49 }
 0x6c5   :  { %v15998_v61 = vpop.eup %15997 }
 0x6c6   :  { %v1098_v63 = vpop.permute.xlu0 %1097  ;;  %v750_v2 = vmul.f32 %v15998_v61, %v15994_v46 }
 0x6c8   :  { %14117 = vmatmul.mubr.msk.f32.vlgmr.msra.gmra.mrb[12].mxu1 %vm249_vm3, %v750_v2 }
 0x6c9   :  { %v16000_v5 = vpop.eup %15999  ;;  %14120 = vmatpush3.msra.mxu1 %v830_v51  ;;  %14121 = vmatprep.mubr.msk.f32.mxu1 %vm16289_vm2, %v16288_v49 }
 0x6ca   :  { %v1176_v9 = vpop.permute.xlu0 %1175  ;;  %v752_v10 = vmul.f32 %v16000_v5, %v15996_v48  ;;  %15132 = vmatprep.subr.msk.bf16.mxu1 %vm16600_vm4, %v15130_v62 }
 0x6cb   :  { %14152 = vmatpush3.xpose.msk.msra.mxu0 %vm249_vm3, %v1176_v9 }
 0x6cc   :  { %14122 = vmatmul.mubr.msk.f32.vlgmr.msra.gmra.mrb[14].mxu1 %vm249_vm3, %v752_v10  ;;  %14156 = vmatprep.subr.mxu0 %v16288_v49 }
 0x6ce   :  { %14154 = vmatmul.mubr.msk.f32.vlgmr.msra.gmra.mrb[2].mxu0 %vm249_vm3, %v1174_v12 }
 0x6cf   :  { %14158 = vmatprep.mubr.msk.f32.mxu0 %vm16289_vm2, %v16288_v49 }
 0x6d0   :  { %15135 = vmatpush3.bf16.xpose.msk.msra.mxu1 %vm16600_vm4, %v15130_v62 }
 0x6d1   :  { %15138 = vmatprep.subr.msk.bf16.mxu1 %vm16600_vm4, %v15136_v11 }
 0x6d8   :  { %15141 = vmatpush3.bf16.xpose.msk.msra.mxu1 %vm16600_vm4, %v15136_v11 }
 0x6d9   :  { %15144 = vmatprep.subr.msk.bf16.mxu1 %vm16600_vm4, %v15142_v13 }
 0x79b   :  { %v825_v14 = vpop.f32.mrb[12].mxu1 }
 0x79c   :  { %v14118_v15 = vpop.f32.mrb[13].mxu1  ;;  %14132 = vmatprep.mubr.msk.f32.mxu1 %vm249_vm3, %v825_v14 }
 0x79f   :  { %v901_v17 = vpop.f32.mrb[14].mxu1 }
 0x7a0   :  { %v14123_v18 = vpop.f32.mrb[15].mxu1  ;;  %14133 = vmatmul.mubr.msk.f32.vlgmr.msra.gmra.mrb[16].mxu1 %vm249_vm3, %v901_v17 }
 0x7a1   :  { %15147 = vmatpush3.bf16.xpose.msk.msra.mxu1 %vm16600_vm4, %v15142_v13  ;;  %14143 = vmatprep.mubr.msk.f32.mxu1 %vm249_vm3, %v16545_v24  ;;  %v1247_v19 = vpop.f32.mrb[2].mxu0 }
 0x7a2   :  { %v14155_v20 = vpop.f32.mrb[3].mxu0  ;;  %v1254_v21 = vsel %vm249_vm3, %v1247_v19, -inf  ;;  %15150 = vmatprep.subr.msk.bf16.mxu1 %vm16600_vm4, %v15148_v16 }
 0x7a3   :  { %1255 = vmax.xlane.f32.xlu1 %v1254_v21 }
 0x7a9   :  { %15153 = vmatpush3.bf16.xpose.msk.msra.mxu1 %vm16600_vm4, %v15148_v16 }
 0x7aa   :  { %14146 = vmatprep.subr.mxu1 %v16288_v49 }
 0x7b0   :  { %14144 = vmatmul.mubr.msk.f32.vlgmr.msra.gmra.mrb[16].mxu1 %vm249_vm3, %v16547_v26 }
 0x7b1   :  { %14147 = vmatpush3.xpose.msk.msra.mxu1 %vm249_vm3, %v1098_v63  ;;  %14148 = vmatprep.mubr.msk.f32.mxu1 %vm16289_vm2, %v16288_v49 }
 0x7b4   :  { %14149 = vmatmul.mubr.msk.f32.vlgmr.msra.gmra.mrb[18].mxu1 %vm249_vm3, %v1096_v3  ;;  %1349 = vrot.lane.b32.xlu1 %v16491_v52, %s18714_s24 }
 0x7b8   :  { %1526 = vrot.lane.b32.xlu1 %v16493_v54, %s18712_s25 }
 0x7bc   :  { %1524 = vrot.lane.b32.xlu1 %v16493_v54, %s16299_s3 }
 0x7c0   :  { %1602 = vrot.lane.b32.xlu1 %v16491_v52, %s16299_s3 }
 0x830   :  { %v1256_v22 = vpop.xlane.xlu1 %1255 }
 0x831   :  { %v1258_v23 = vsub.f32 %v1247_v19, %v1256_v22 }
 0x833   :  { %v1261_v24 = vmul.f32 1.442695, %v1258_v23 }
 0x834   :  { %v1350_v40 = vpop.permute.xlu1 %1349 }
 0x835   :  { %16001 = vpow2.f32 %v1261_v24 }
 0x838   :  { %v1527_v44 = vpop.permute.xlu1 %1526 }
 0x83c   :  { %v1525_v46 = vpop.permute.xlu1 %1524 }
 0x83f   :  { %v16002_v28 = vpop.eup %16001 }
 0x840   :  { %v1266_v29 = vsel %vm249_vm3, %v16002_v28, 0.0  ;;  %v1603_v48 = vpop.permute.xlu1 %1602 }
 0x887   :  { %v1169_v25 = vpop.f32.mrb[18].mxu1 }
 0x888   :  { %v14150_v26 = vpop.f32.mrb[19].mxu1  ;;  %v1251_v27 = vsel %vm249_vm3, %v1169_v25, -inf }
 0x889   :  { %1252 = vmax.xlane.f32.xlu0 %v1251_v27 }
 0x88d   :  { %1267 = vadd.xlane.f32.xlu0 %v1266_v29 }
 0x916   :  { %v1253_v30 = vpop.xlane.xlu0 %1252 }
 0x917   :  { %v1257_v31 = vsub.f32 %v1169_v25, %v1253_v30 }
 0x919   :  { %v1259_v32 = vmul.f32 1.442695, %v1257_v31 }
 0x91a   :  { %v1268_v35 = vpop.xlane.xlu0 %1267 }
 0x91b   :  { %16003 = vpow2.f32 %v1259_v32 }
 0x925   :  { %v16004_v33 = vpop.eup %16003 }
 0x926   :  { %v1263_v34 = vsel %vm249_vm3, %v16004_v33, 0.0 }
 0x927   :  { %1264 = vadd.xlane.f32.xlu0 %v1263_v34 }
 0x93d   :  { %1273 = vrot.lane.b32.xlu0 %v16493_v54, %s18714_s24 }
 0x941   :  { %1604 = vrot.lane.b32.xlu0 %v16491_v52, %s18712_s25 }
 0x9b4   :  { %v1265_v37 = vpop.xlane.xlu0 %1264 }
 0x9b5   :  { %16005 = vrcp.f32 %v1265_v37 }
 0x9b6   :  { %16007 = vrcp.f32 %v1268_v35 }
 0x9b8   :  { %v1274_v38 = vpop.permute.xlu0 %1273 }
 0x9b9   :  { %14157 = vmatpush3.msra.mxu0 %v1274_v38  ;;  %v13021_v38 = vld [vmem:[%s18700_s9] ss:$0 sm:$0xff] }
 0x9ba   :  { %14161 = vmatprep.subr.mxu0 %v16288_v49 }
 0x9bc   :  { %v1605_v47 = vpop.permute.xlu0 %1604 }
 0x9bf   :  { %v16006_v41 = vpop.eup %16005 }
 0x9c0   :  { %v1270_v42 = vmul.f32 %v16006_v41, %v16004_v33  ;;  %v16008_v43 = vpop.eup %16007 }
 0x9c1   :  { %v1272_v45 = vmul.f32 %v16008_v43, %v16002_v28 }
 0x9c2   :  { %14159 = vmatmul.mubr.msk.f32.vlgmr.msra.gmra.mrb[4].mxu0 %vm249_vm3, %v1270_v42 }
 0x9c3   :  { %14162 = vmatpush3.msra.mxu0 %v1350_v40  ;;  %14163 = vmatprep.mubr.msk.f32.mxu0 %vm16289_vm2, %v16288_v49 }
 0x9c4   :  { %14177 = vmatprep.subr.mxu0 %v16288_v49 }
 0x9c6   :  { %14164 = vmatmul.mubr.msk.f32.vlgmr.msra.gmra.mrb[6].mxu0 %vm249_vm3, %v1272_v45 }
 0x9c7   :  { %14179 = vmatprep.mubr.msk.f32.mxu0 %vm16289_vm2, %v16288_v49 }
 0x9ca   :  { %14178 = vmatpush3.xpose.msk.msra.mxu0 %vm249_vm3, %v1527_v44 }
 0x9cb   :  { %14182 = vmatprep.subr.mxu0 %v16288_v49 }
 0x9cd   :  { %14180 = vmatmul.mubr.msk.f32.vlgmr.msra.gmra.mrb[8].mxu0 %vm249_vm3, %v1525_v46 }
 0x9ce   :  { %14183 = vmatpush3.xpose.msk.msra.mxu0 %vm249_vm3, %v1605_v47  ;;  %14184 = vmatprep.mubr.msk.f32.mxu0 %vm16289_vm2, %v16288_v49  ;;  %v2002_v47 = vld [vmem:[%s18701_s10] sm:$0xff] }
 0x9cf   :  { %14187 = vmatprep.subr.mxu0 %v16288_v49 }
 0x9d1   :  { %14185 = vmatmul.mubr.msk.f32.vlgmr.msra.gmra.mrb[10].mxu0 %vm249_vm3, %v1603_v48 }
 0x9d2   :  { %14189 = vmatprep.mubr.msk.f32.mxu0 %vm16289_vm2, %v16288_v49 }
 0xa95   :  { %v1345_v50 = vpop.f32.mrb[4].mxu0 }
 0xa96   :  { %v14160_v51 = vpop.f32.mrb[5].mxu0  ;;  %14174 = vmatprep.mubr.msk.f32.mxu1 %vm249_vm3, %v1345_v50 }
 0xa99   :  { %v1421_v53 = vpop.f32.mrb[6].mxu0 }
 0xa9a   :  { %v14165_v55 = vpop.f32.mrb[7].mxu0 }
 0xaa0   :  { %v1598_v56 = vpop.f32.mrb[8].mxu0 }
 0xaa1   :  { %v14181_v57 = vpop.f32.mrb[9].mxu0  ;;  %v1680_v58 = vsel %vm249_vm3, %v1598_v56, -inf }
 0xaa2   :  { %1681 = vmax.xlane.f32.xlu0 %v1680_v58 }
 0xaa4   :  { %v1676_v59 = vpop.f32.mrb[10].mxu0 }
 0xaa5   :  { %v14186_v60 = vpop.f32.mrb[11].mxu0  ;;  %v1683_v61 = vsel %vm249_vm3, %v1676_v59, -inf }
 0xaa6   :  { %1684 = vmax.xlane.f32.xlu1 %v1683_v61  ;;  %v2004_v61 = vld [vmem:[%s18701_s10 + $0x10] sm:$0xff] }
 0xab7   :  { %1778 = vrot.lane.b32.xlu1 %v16491_v52, %s18708_s30 }
 0xabb   :  { %15812 = vrot.lane.b32.xlu1 %v16565_v36, %s16295_s22 }
 0xabf   :  { %15817 = vrot.lane.b32.xlu1 %v16581_v39, %s16295_s22 }
 0xac3   :  { %15827 = vrot.lane.b32.xlu1 %v16581_v39, %s16299_s3 }
 0xb2f   :  { %v1682_v62 = vpop.xlane.xlu0 %1681 }
 0xb30   :  { %v1686_v63 = vsub.f32 %v1598_v56, %v1682_v62  ;;  %v2005_v62 = vld [vmem:[%s18701_s10 + $0x18] sm:$0xff] }
 0xb32   :  { %v1688_v2 = vmul.f32 1.442695, %v1686_v63  ;;  %v15184_v63 = vpack.c.bf16 %v2005_v62, %v2004_v61 }
 0xb33   :  { %v1685_v3 = vpop.xlane.xlu1 %1684 }
 0xb34   :  { %16009 = vpow2.f32 %v1688_v2  ;;  %v1687_v5 = vsub.f32 %v1676_v59, %v1685_v3  ;;  %v2006_v2 = vld [vmem:[%s18701_s10 + $0x20] sm:$0xff]  ;;  %v2007_v3 = vld [vmem:[%s18701_s10 + $0x28] sm:$0xff] }
 0xb36   :  { %v1690_v7 = vmul.f32 1.442695, %v1687_v5  ;;  %v15190_v5 = vpack.c.bf16 %v2007_v3, %v2006_v2 }
 0xb37   :  { %v1779_v8 = vpop.permute.xlu1 %1778 }
 0xb38   :  { %16011 = vpow2.f32 %v1690_v7  ;;  %v2008_v7 = vld [vmem:[%s18701_s10 + $0x30] sm:$0xff] }
 0xb3b   :  { %v15813_v9 = vpop.permute.xlu1 %15812 }
 0xb3c   :  { %v15815_v10 = vunpack.i.h.bf16 %v15813_v9  ;;  %v15814_v11 = vunpack.i.l.bf16 %v15813_v9 }
 0xb3e   :  { %v16010_v12 = vpop.eup %16009  ;;  %v15154_v52 = vpack.c.bf16 %v15815_v10, %v15814_v11 }
 0xb3f   :  { %v1692_v13 = vsel %vm249_vm3, %v16010_v12, 0.0  ;;  %v15818_v14 = vpop.permute.xlu1 %15817 }
 0xb40   :  { %15156 = vmatprep.subr.msk.bf16.mxu1 %vm16600_vm4, %v15154_v52  ;;  %1693 = vadd.xlane.f32.xlu0 %v1692_v13  ;;  %v15820_v15 = vunpack.i.h.bf16 %v15818_v14  ;;  %v15819_v16 = vunpack.i.l.bf16 %v15818_v14 }
 0xb41   :  { %15159 = vmatpush3.bf16.xpose.msk.msra.mxu1 %vm16600_vm4, %v15154_v52 }
 0xb42   :  { %v16012_v17 = vpop.eup %16011  ;;  %v15160_v18 = vpack.c.bf16 %v15820_v15, %v15819_v16  ;;  %v13022_v16 = vld [vmem:[%s18695_s4 + $0x2] ss:$0 sm:$0xff] }
 0xb43   :  { %v1695_v19 = vsel %vm249_vm3, %v16012_v17, 0.0  ;;  %v15828_v23 = vpop.permute.xlu1 %15827 }
 0xb44   :  { %1696 = vadd.xlane.f32.xlu0 %v1695_v19  ;;  %15162 = vmatprep.subr.msk.bf16.mxu1 %vm16600_vm4, %v15160_v18  ;;  %v15830_v25 = vunpack.i.h.bf16 %v15828_v23  ;;  %v15829_v26 = vunpack.i.l.bf16 %v15828_v23 }
 0xb46   :  { %v15172_v30 = vpack.c.bf16 %v15830_v25, %v15829_v26  ;;  %v2138_v25 = vld [vmem:[%s18703_s12] sm:$0xff]  ;;  %v2139_v26 = vld [vmem:[%s18703_s12 + $0x8] sm:$0xff] }
 0xb49   :  { %15165 = vmatpush3.bf16.xpose.msk.msra.mxu1 %vm16600_vm4, %v15160_v18  ;;  %v13023_v18 = vld [vmem:[%s18696_s5 + $0x2] ss:$0 sm:$0xff] }
 0xb50   :  { %14175 = vmatmul.mubr.msk.f32.vlgmr.msra.gmra.mrb[16].mxu1 %vm249_vm3, %v1421_v53 }
 0xb5a   :  { %1702 = vrot.lane.b32.xlu0 %v16493_v54, %s18708_s30 }
 0xb5e   :  { %15822 = vrot.lane.b32.xlu0 %v16565_v36, %s16299_s3 }
 0xbcd   :  { %v1694_v20 = vpop.xlane.xlu0 %1693 }
 0xbce   :  { %16013 = vrcp.f32 %v1694_v20 }
 0xbd1   :  { %v1697_v21 = vpop.xlane.xlu0 %1696 }
 0xbd2   :  { %16015 = vrcp.f32 %v1697_v21 }
 0xbd5   :  { %v1703_v22 = vpop.permute.xlu0 %1702 }
 0xbd6   :  { %14188 = vmatpush3.msra.mxu0 %v1703_v22 }
 0xbd7   :  { %14192 = vmatprep.subr.mxu0 %v16288_v49 }
 0xbd8   :  { %v16014_v24 = vpop.eup %16013 }
 0xbd9   :  { %v1699_v27 = vmul.f32 %v16014_v24, %v16010_v12  ;;  %v15823_v54 = vpop.permute.xlu0 %15822 }
 0xbda   :  { %v15825_v28 = vunpack.i.h.bf16 %v15823_v54  ;;  %v15824_v29 = vunpack.i.l.bf16 %v15823_v54  ;;  %v2140_v54 = vld [vmem:[%s18703_s12 + $0x10] sm:$0xff] }
 0xbdb   :  { %14190 = vmatmul.mubr.msk.f32.vlgmr.msra.gmra.mrb[12].mxu0 %vm249_vm3, %v1699_v27  ;;  %v15202_v27 = vpack.c.bf16 %v2139_v26, %v2138_v25  ;;  %v13052_v25 = vld [vmem:[%s18697_s6 + $0xa0] sm:$0xff]  ;;  %v13053_v26 = vld [vmem:[%s18697_s6 + $0xa8] sm:$0xff] }
 0xbdc   :  { %v16016_v36 = vpop.eup %16015  ;;  %14193 = vmatpush3.msra.mxu0 %v1779_v8  ;;  %14194 = vmatprep.mubr.msk.f32.mxu0 %vm16289_vm2, %v16288_v49  ;;  %v15166_v39 = vpack.c.bf16 %v15825_v28, %v15824_v29  ;;  %v2009_v8 = vld [vmem:[%s18701_s10 + $0x38] sm:$0xff] }
 0xbdd   :  { %v1701_v31 = vmul.f32 %v16016_v36, %v16012_v17  ;;  %v15196_v9 = vpack.c.bf16 %v2009_v8, %v2008_v7  ;;  %v2141_v28 = vld [vmem:[%s18703_s12 + $0x18] sm:$0xff] }
 0xbde   :  { %15168 = vmatprep.subr.msk.bf16.mxu1 %vm16600_vm4, %v15166_v39  ;;  %v15208_v36 = vpack.c.bf16 %v2141_v28, %v2140_v54  ;;  %v13047_v8 = vld [vmem:[%s18697_s6 + $0x78] sm:$0xff]  ;;  %v15238_v54 = vpack.c.bf16 %v13053_v26, %v13052_v25 }
 0xbdf   :  { %14195 = vmatmul.mubr.msk.f32.vlgmr.msra.gmra.mrb[14].mxu0 %vm249_vm3, %v1701_v31  ;;  %15171 = vmatpush3.bf16.xpose.msk.msra.mxu1 %vm16600_vm4, %v15166_v39  ;;  %v13024_v39 = vld [vmem:[%s18702_s11] ss:$0 sm:$0xff]  ;;  %v13055_v28 = vld [vmem:[%s18697_s6 + $0xb8] sm:$0xff] }
 0xbe0   :  { %15174 = vmatprep.subr.msk.bf16.mxu1 %vm16600_vm4, %v15172_v30 }
 0xbe7   :  { %15177 = vmatpush3.bf16.xpose.msk.msra.mxu1 %vm16600_vm4, %v15172_v30 }
 0xbe8   :  { %15204 = vmatprep.subr.msk.bf16.mxu1 %vm16798_vm6, %v15202_v27 }
 0xcae   :  { %v1774_v32 = vpop.f32.mrb[12].mxu0 }
 0xcaf   :  { %v14191_v33 = vpop.f32.mrb[13].mxu0  ;;  %14205 = vmatprep.mubr.msk.f32.mxu1 %vm249_vm3, %v1774_v32 }
 0xcb2   :  { %v1850_v34 = vpop.f32.mrb[14].mxu0 }
 0xcb3   :  { %v14196_v35 = vpop.f32.mrb[15].mxu0  ;;  %14206 = vmatmul.mubr.msk.f32.vlgmr.msra.gmra.mrb[16].mxu1 %vm249_vm3, %v1850_v34 }
 0xcb4   :  { %15207 = vmatpush3.bf16.xpose.msk.msra.mxu1 %vm16798_vm6, %v15202_v27  ;;  %v13054_v27 = vld [vmem:[%s18697_s6 + $0xb0] sm:$0xff] }
 0xcb5   :  { %15210 = vmatprep.subr.msk.bf16.mxu1 %vm16798_vm6, %v15208_v36 }
 0xcbc   :  { %15213 = vmatpush3.bf16.xpose.msk.msra.mxu1 %vm16798_vm6, %v15208_v36  ;;  %v15244_v36 = vpack.c.bf16 %v13055_v28, %v13054_v27 }
 0xcbd   :  { %14265 = vmatprep.subr.mxu1 %v16288_v49 }
 0xd86   :  { %v14207_v37 = vpop.f32.mrb[16].mxu1 }
 0xd87   :  { %v1954_v40 = vadd.f32 %v14207_v37, %v16398_v1  ;;  %v1942_v41 = vpop.f32.mrb[17].mxu1 }
 0xd88   :  { %v1953_v42 = vadd.f32 %v1942_v41, %v16393_v0  ;;  %v2003_v0 = vld [vmem:[%s18701_s10 + $0x8] sm:$0xff] }
 0xd89   :  { %v16724_v43 = vadd.f32 %v13021_v38, %v1954_v40  ;;  %v15178_v1 = vpack.c.bf16 %v2003_v0, %v2002_v47 }
 0xd8a   :  { %v16726_v44 = vadd.f32 %v13021_v38, %v1953_v42 }
 0xd8b   :  { %v1967_v45 = vsel %vm68_vm0, %v16724_v43, 0.0  ;;  %15180 = vmatprep.subr.msk.bf16.mxu0 %vm16412_vm1, %v15178_v1 }
 0xd8c   :  { %1968 = vadd.xlane.f32.xlu1 %v1967_v45  ;;  %v1964_v46 = vsel %vm68_vm0, %v16726_v44, 0.0  ;;  %15183 = vmatpush3.bf16.xpose.msk.msra.mxu0 %vm16412_vm1, %v15178_v1 }
 0xd8d   :  { %1965 = vadd.xlane.f32.xlu0 %v1964_v46  ;;  %15186 = vmatprep.subr.msk.bf16.mxu0 %vm16412_vm1, %v15184_v63 }
 0xd94   :  { %15189 = vmatpush3.bf16.xpose.msk.msra.mxu0 %vm16412_vm1, %v15184_v63 }
 0xd95   :  { %15192 = vmatprep.subr.msk.bf16.mxu0 %vm16412_vm1, %v15190_v5 }
 0xd9c   :  { %15195 = vmatpush3.bf16.xpose.msk.msra.mxu0 %vm16412_vm1, %v15190_v5  ;;  %v13044_v5 = vld [vmem:[%s18697_s6 + $0x60] sm:$0xff] }
 0xd9d   :  { %15198 = vmatprep.subr.msk.bf16.mxu0 %vm16412_vm1, %v15196_v9 }
 0xda4   :  { %15201 = vmatpush3.bf16.xpose.msk.msra.mxu0 %vm16412_vm1, %v15196_v9 }
 0xe19   :  { %v1969_v48 = vpop.xlane.xlu1 %1968 }
 0xe1a   :  { %v1971_v50 = vmul.f32 0.03125, %v1969_v48  ;;  %v1966_v51 = vpop.xlane.xlu0 %1965 }
 0xe1b   :  { %v1970_v53 = vmul.f32 0.03125, %v1966_v51 }
 0xe1c   :  { %v1973_v55 = vsub.f32 %v16724_v43, %v1971_v50 }
 0xe1d   :  { %v1972_v56 = vsub.f32 %v16726_v44, %v1970_v53 }
 0xe1e   :  { %v1975_v59 = vmul.f32 %v1973_v55, %v1973_v55 }
 0xe1f   :  { %v1974_v57 = vmul.f32 %v1972_v56, %v1972_v56 }
 0xe20   :  { %v1979_v60 = vsel %vm68_vm0, %v1975_v59, 0.0 }
 0xe21   :  { %v1976_v58 = vsel %vm68_vm0, %v1974_v57, 0.0 }
 0xe22   :  { %1977 = vadd.xlane.f32.xlu0 %v1976_v58  ;;  %v13041_v58 = vld [vmem:[%s18704_s13] ss:$0 sm:$0xff] }
 0xe26   :  { %1980 = vadd.xlane.f32.xlu0 %v1979_v60 }
 0xeaf   :  { %v1978_v10 = vpop.xlane.xlu0 %1977 }
 0xeb0   :  { %v1982_v11 = vmul.f32 0.03125, %v1978_v10  ;;  %v13048_v10 = vld [vmem:[%s18697_s6 + $0x80] sm:$0xff] }
 0xeb2   :  { %v1984_v12 = vadd.f32 1e-05, %v1982_v11  ;;  %v13049_v11 = vld [vmem:[%s18697_s6 + $0x88] sm:$0xff] }
 0xeb3   :  { %v1981_v52 = vpop.xlane.xlu0 %1980 }
 0xeb4   :  { %16017 = vrsqrt.f32 %v1984_v12  ;;  %v1983_v13 = vmul.f32 0.03125, %v1981_v52  ;;  %v15226_v12 = vpack.c.bf16 %v13049_v11, %v13048_v10  ;;  %v13050_v52 = vld [vmem:[%s18697_s6 + $0x90] sm:$0xff] }
 0xeb6   :  { %v1985_v14 = vadd.f32 1e-05, %v1983_v13  ;;  %v13051_v13 = vld [vmem:[%s18697_s6 + $0x98] sm:$0xff] }
 0xeb8   :  { %16019 = vrsqrt.f32 %v1985_v14  ;;  %v15232_v14 = vpack.c.bf16 %v13051_v13, %v13050_v52 }
 0xebe   :  { %v16018_v15 = vpop.eup %16017 }
 0xebf   :  { %v1988_v17 = vmul.f32 %v16018_v15, %v1972_v56 }
 0xec1   :  { %v1994_v19 = vmul.f32 %v13022_v16, %v1988_v17 }
 0xec2   :  { %v16020_v20 = vpop.eup %16019 }
 0xec3   :  { %v1989_v21 = vmul.f32 %v16020_v20, %v1973_v55  ;;  %v2000_v22 = vadd.f32 %v13023_v18, %v1994_v19 }
 0xec5   :  { %v1995_v23 = vmul.f32 %v13022_v16, %v1989_v21  ;;  %14224 = vmatprep.mubr.msk.f32.mxu0 %vm68_vm0, %v2000_v22 }
 0xec7   :  { %v2001_v24 = vadd.f32 %v13023_v18, %v1995_v23 }
 0xec9   :  { %14225 = vmatmul.mubr.msk.f32.vlgmr.msra.gmra.mrb[16].mxu0 %vm68_vm0, %v2001_v24 }
 0xf9c   :  { %v14226_v30 = vpop.f32.mrb[16].mxu0 }
 0xf9d   :  { %v2117_v31 = vadd.f32 %v14226_v30, %v13024_v39  ;;  %v2111_v32 = vpop.f32.mrb[17].mxu0 }
 0xf9e   :  { %v2112_v33 = vadd.f32 %v13024_v39, %v2111_v32 }
 0xf9f   :  { %v2123_v34 = vmul.f32 0.044715, %v2117_v31  ;;  %v2121_v53 = vmul.f32 0.5, %v2117_v31 }
 0xfa0   :  { %v2122_v35 = vmul.f32 0.044715, %v2112_v33  ;;  %v2120_v50 = vmul.f32 0.5, %v2112_v33 }
 0xfa1   :  { %v2125_v37 = vmul.f32 %v2123_v34, %v2117_v31 }
 0xfa2   :  { %v2124_v38 = vmul.f32 %v2122_v35, %v2112_v33 }
 0xfa3   :  { %v2127_v40 = vmul.f32 %v2125_v37, %v2117_v31  ;;  %v13042_v37 = vld [vmem:[%s18695_s4 + $0x1] ss:$0 sm:$0xff] }
 0xfa4   :  { %v2126_v41 = vmul.f32 %v2124_v38, %v2112_v33 }
 0xfa5   :  { %v2129_v42 = vadd.f32 %v2127_v40, %v2117_v31 }
 0xfa6   :  { %v2128_v45 = vadd.f32 %v2126_v41, %v2112_v33 }
 0xfa7   :  { %v2131_v46 = vmul.f32 0.7978846, %v2129_v42  ;;  %v13043_v42 = vld [vmem:[%s18696_s5 + $0x1] ss:$0 sm:$0xff] }
 0xfa8   :  { %v2130_v47 = vmul.f32 0.7978846, %v2128_v45 }
 0xfa9   :  { %16021 = vtanh.f32 %v2131_v46 }
 0xfaa   :  { %16023 = vtanh.f32 %v2130_v47 }
 0xfb3   :  { %v16022_v0 = vpop.eup %16021 }
 0xfb4   :  { %v16024_v1 = vpop.eup %16023  ;;  %v2135_v48 = vadd.f32 1.0, %v16022_v0 }
 0xfb5   :  { %v2134_v51 = vadd.f32 1.0, %v16024_v1  ;;  %v13056_v1 = vld [vmem:[%s18698_s7 + $0x1] ss:$0 sm:$0xff] }
 0xfb6   :  { %v2137_v56 = vmul.f32 %v2135_v48, %v2121_v53 }
 0xfb7   :  { %v2136_v55 = vmul.f32 %v2134_v51, %v2120_v50 }
 0xfb9   :  { %14235 = vmatprep.mubr.msk.f32.mxu1 %vm2142_vm5, %v2136_v55 }
 0xfba   :  { %14236 = vmatmul.mubr.msk.f32.vlgmr.msra.gmra.mrb[20].mxu1 %vm2142_vm5, %v2137_v56 }
 0xfbb   :  { %14267 = vmatprep.mubr.msk.f32.mxu1 %vm16289_vm2, %v16288_v49 }
0x108d   :  { %v14237_v57 = vpop.f32.mrb[20].mxu1 }
0x108e   :  { %v2237_v59 = vadd.f32 %v14237_v57, %v16724_v43  ;;  %v2227_v60 = vpop.f32.mrb[21].mxu1  ;;  %v13045_v43 = vld [vmem:[%s18697_s6 + $0x68] sm:$0xff] }
0x108f   :  { %v2236_v61 = vadd.f32 %v2227_v60, %v16726_v44  ;;  %v13046_v44 = vld [vmem:[%s18697_s6 + $0x70] sm:$0xff]  ;;  %v15214_v7 = vpack.c.bf16 %v13045_v43, %v13044_v5 }
0x1090   :  { %v16823_v62 = vadd.f32 %v13041_v58, %v2237_v59  ;;  %v15220_v9 = vpack.c.bf16 %v13047_v8, %v13046_v44 }
0x1091   :  { %v16825_v63 = vadd.f32 %v13041_v58, %v2236_v61  ;;  %15216 = vmatprep.subr.msk.bf16.mxu0 %vm16412_vm1, %v15214_v7 }
0x1092   :  { %v2250_v2 = vsel %vm68_vm0, %v16823_v62, 0.0  ;;  %15219 = vmatpush3.bf16.xpose.msk.msra.mxu0 %vm16412_vm1, %v15214_v7 }
0x1093   :  { %2251 = vadd.xlane.f32.xlu1 %v2250_v2  ;;  %v2247_v3 = vsel %vm68_vm0, %v16825_v63, 0.0  ;;  %15222 = vmatprep.subr.msk.bf16.mxu0 %vm16412_vm1, %v15220_v9 }
0x1094   :  { %2248 = vadd.xlane.f32.xlu0 %v2247_v3 }
0x109a   :  { %15225 = vmatpush3.bf16.xpose.msk.msra.mxu0 %vm16412_vm1, %v15220_v9 }
0x109b   :  { %15228 = vmatprep.subr.msk.bf16.mxu0 %vm16412_vm1, %v15226_v12 }
0x10a2   :  { %15231 = vmatpush3.bf16.xpose.msk.msra.mxu0 %vm16412_vm1, %v15226_v12 }
0x10a3   :  { %15234 = vmatprep.subr.msk.bf16.mxu0 %vm16412_vm1, %v15232_v14 }
0x10aa   :  { %15237 = vmatpush3.bf16.xpose.msk.msra.mxu0 %vm16412_vm1, %v15232_v14 }
0x10ab   :  { %15240 = vmatprep.subr.msk.bf16.mxu0 %vm16412_vm1, %v15238_v54 }
0x10b2   :  { %15243 = vmatpush3.bf16.xpose.msk.msra.mxu0 %vm16412_vm1, %v15238_v54 }
0x10b3   :  { %15246 = vmatprep.subr.msk.bf16.mxu0 %vm16412_vm1, %v15244_v36 }
0x10ba   :  { %15249 = vmatpush3.bf16.xpose.msk.msra.mxu0 %vm16412_vm1, %v15244_v36 }
0x10bb   :  { %14327 = vmatprep.subr.mxu0 %v16288_v49 }
0x1120   :  { %v2252_v15 = vpop.xlane.xlu1 %2251 }
0x1121   :  { %v2254_v16 = vmul.f32 0.03125, %v2252_v15  ;;  %v2249_v17 = vpop.xlane.xlu0 %2248 }
0x1122   :  { %v2253_v18 = vmul.f32 0.03125, %v2249_v17 }
0x1123   :  { %v2256_v19 = vsub.f32 %v16823_v62, %v2254_v16 }
0x1124   :  { %v2255_v20 = vsub.f32 %v16825_v63, %v2253_v18 }
0x1125   :  { %v2258_v21 = vmul.f32 %v2256_v19, %v2256_v19 }
0x1126   :  { %v2257_v22 = vmul.f32 %v2255_v20, %v2255_v20 }
0x1127   :  { %v2262_v23 = vsel %vm68_vm0, %v2258_v21, 0.0 }
0x1128   :  { %2263 = vadd.xlane.f32.xlu1 %v2262_v23  ;;  %v2259_v24 = vsel %vm68_vm0, %v2257_v22, 0.0 }
0x1129   :  { %2260 = vadd.xlane.f32.xlu0 %v2259_v24 }
0x11b5   :  { %v2264_v39 = vpop.xlane.xlu1 %2263 }
0x11b6   :  { %v2266_v30 = vmul.f32 0.03125, %v2264_v39  ;;  %v2261_v31 = vpop.xlane.xlu0 %2260 }
0x11b7   :  { %v2265_v32 = vmul.f32 0.03125, %v2261_v31 }
0x11b8   :  { %v2268_v33 = vadd.f32 1e-05, %v2266_v30 }
0x11b9   :  { %v2267_v34 = vadd.f32 1e-05, %v2265_v32 }
0x11ba   :  { %16025 = vrsqrt.f32 %v2268_v33 }
0x11bb   :  { %16027 = vrsqrt.f32 %v2267_v34 }
0x11c4   :  { %v16026_v35 = vpop.eup %16025 }
0x11c5   :  { %v16028_v38 = vpop.eup %16027  ;;  %v2272_v40 = vmul.f32 %v16026_v35, %v2256_v19 }
0x11c6   :  { %v2271_v41 = vmul.f32 %v16028_v38, %v2255_v20 }
0x11c7   :  { %v2278_v45 = vmul.f32 %v13042_v37, %v2272_v40 }
0x11c8   :  { %v2277_v46 = vmul.f32 %v13042_v37, %v2271_v41 }
0x11c9   :  { %v2284_v0 = vadd.f32 %v13043_v42, %v2278_v45 }
0x11ca   :  { %v2283_v47 = vadd.f32 %v13043_v42, %v2277_v46 }
0x11cc   :  { %14262 = vmatprep.mubr.msk.f32.mxu0 %vm68_vm0, %v2283_v47 }
0x11cd   :  { %14263 = vmatmul.mubr.msk.f32.vlgmr.msra.gmra.mrb[18].mxu0 %vm68_vm0, %v2284_v0 }
0x11ce   :  { %14329 = vmatprep.mubr.msk.f32.mxu0 %vm16289_vm2, %v16288_v49 }
0x12a0   :  { %v14264_v48 = vpop.f32.mrb[18].mxu0 }
0x12a1   :  { %v16909_v50 = vadd.f32 %v14264_v48, %v13056_v1  ;;  %v2411_v51 = vpop.f32.mrb[19].mxu0 }
0x12a2   :  { %v16911_v53 = vadd.f32 %v13056_v1, %v2411_v51 }
0x12a3   :  { %2503 = vrot.lane.b32.xlu1 %v16909_v50, %s16290_s26 }
0x12a4   :  { %2426 = vrot.lane.b32.xlu0 %v16911_v53, %s16290_s26 }
0x12a7   :  { %3275 = vrot.lane.b32.xlu1 %v16911_v53, %s16296_s23 }
0x12a8   :  { %3353 = vrot.lane.b32.xlu0 %v16909_v50, %s16296_s23 }
0x12ab   :  { %3273 = vrot.lane.b32.xlu1 %v16911_v53, %s16295_s22 }
0x12af   :  { %3351 = vrot.lane.b32.xlu1 %v16909_v50, %s16295_s22 }
0x1315   :  { %v2504_v55 = vpop.permute.xlu1 %2503 }
0x1316   :  { %v2427_v56 = vpop.permute.xlu0 %2426 }
0x1317   :  { %14266 = vmatpush3.xpose.msk.msra.mxu1 %vm249_vm3, %v2427_v56 }
0x1318   :  { %14270 = vmatprep.subr.mxu1 %v16288_v49 }
0x1319   :  { %v3276_v57 = vpop.permute.xlu1 %3275 }
0x131a   :  { %14268 = vmatmul.mubr.msk.f32.vlgmr.msra.gmra.mrb[22].mxu1 %vm249_vm3, %v16911_v53  ;;  %14328 = vmatpush3.xpose.msk.msra.mxu0 %vm249_vm3, %v3276_v57  ;;  %v3354_v59 = vpop.permute.xlu0 %3353 }
0x131b   :  { %14271 = vmatpush3.xpose.msk.msra.mxu1 %vm249_vm3, %v2504_v55  ;;  %14332 = vmatprep.subr.mxu0 %v16288_v49 }
0x131c   :  { %14272 = vmatprep.mubr.msk.f32.mxu1 %vm16289_vm2, %v16288_v49  ;;  %14275 = vmatprep.subr.mxu1 %v16288_v49 }
0x131d   :  { %v3274_v58 = vpop.permute.xlu1 %3273 }
0x131e   :  { %14273 = vmatmul.mubr.msk.f32.vlgmr.msra.gmra.mrb[24].mxu1 %vm249_vm3, %v16909_v50  ;;  %14330 = vmatmul.mubr.msk.f32.vlgmr.msra.gmra.mrb[20].mxu0 %vm249_vm3, %v3274_v58 }
0x131f   :  { %14333 = vmatpush3.xpose.msk.msra.mxu0 %vm249_vm3, %v3354_v59  ;;  %14334 = vmatprep.mubr.msk.f32.mxu0 %vm16289_vm2, %v16288_v49 }
0x1320   :  { %14277 = vmatprep.mubr.msk.f32.mxu1 %vm16289_vm2, %v16288_v49  ;;  %14337 = vmatprep.subr.mxu0 %v16288_v49 }
0x1321   :  { %v3352_v60 = vpop.permute.xlu1 %3351 }
0x1322   :  { %14335 = vmatmul.mubr.msk.f32.vlgmr.msra.gmra.mrb[22].mxu0 %vm249_vm3, %v3352_v60 }
0x1323   :  { %14339 = vmatprep.mubr.msk.f32.mxu0 %vm16289_vm2, %v16288_v49 }
0x13ed   :  { %v2498_v61 = vpop.f32.mrb[22].mxu1 }
0x13ee   :  { %v14269_v2 = vpop.f32.mrb[23].mxu1  ;;  %v2579_v3 = vsel %vm249_vm3, %v2498_v61, -inf }
0x13ef   :  { %2580 = vmax.xlane.f32.xlu0 %v2579_v3 }
0x13f1   :  { %v2575_v5 = vpop.f32.mrb[24].mxu1  ;;  %v3347_v43 = vpop.f32.mrb[20].mxu0 }
0x13f2   :  { %v14274_v44 = vpop.f32.mrb[25].mxu1  ;;  %v14331_v7 = vpop.f32.mrb[21].mxu0  ;;  %v3429_v8 = vsel %vm249_vm3, %v3347_v43, -inf  ;;  %v2582_v9 = vsel %vm249_vm3, %v2575_v5, -inf }
0x13f3   :  { %3430 = vmax.xlane.f32.xlu0 %v3429_v8  ;;  %2583 = vmax.xlane.f32.xlu1 %v2582_v9 }
0x13f5   :  { %v3425_v10 = vpop.f32.mrb[22].mxu0 }
0x13f6   :  { %v14336_v11 = vpop.f32.mrb[23].mxu0  ;;  %v3432_v12 = vsel %vm249_vm3, %v3425_v10, -inf }
0x13f7   :  { %3433 = vmax.xlane.f32.xlu0 %v3432_v12 }
0x1404   :  { %2677 = vrot.lane.b32.xlu1 %v16909_v50, %s18716_s27 }
0x1408   :  { %2755 = vrot.lane.b32.xlu1 %v16911_v53, %s16292_s28 }
0x140c   :  { %2753 = vrot.lane.b32.xlu1 %v16911_v53, %s16293_s29 }
0x140d   :  { %2601 = vrot.lane.b32.xlu0 %v16911_v53, %s18716_s27 }
0x1410   :  { %2831 = vrot.lane.b32.xlu1 %v16909_v50, %s16293_s29 }
0x1414   :  { %3527 = vrot.lane.b32.xlu1 %v16909_v50, %s18714_s24 }
0x147c   :  { %v2581_v52 = vpop.xlane.xlu0 %2580 }
0x147d   :  { %v2585_v13 = vsub.f32 %v2498_v61, %v2581_v52 }
0x147f   :  { %v2587_v14 = vmul.f32 1.442695, %v2585_v13 }
0x1480   :  { %v2584_v15 = vpop.xlane.xlu1 %2583  ;;  %v3431_v16 = vpop.xlane.xlu0 %3430 }
0x1481   :  { %16029 = vpow2.f32 %v2587_v14  ;;  %v2586_v17 = vsub.f32 %v2575_v5, %v2584_v15  ;;  %v3435_v25 = vsub.f32 %v3347_v43, %v3431_v16 }
0x1483   :  { %v2589_v18 = vmul.f32 1.442695, %v2586_v17  ;;  %v3437_v26 = vmul.f32 1.442695, %v3435_v25 }
0x1484   :  { %v3434_v19 = vpop.xlane.xlu0 %3433  ;;  %v2678_v31 = vpop.permute.xlu1 %2677 }
0x1485   :  { %16031 = vpow2.f32 %v2589_v18  ;;  %v3436_v27 = vsub.f32 %v3425_v10, %v3434_v19 }
0x1486   :  { %16033 = vpow2.f32 %v3437_v26 }
0x1487   :  { %v3439_v54 = vmul.f32 1.442695, %v3436_v27 }
0x1488   :  { %v2602_v20 = vpop.permute.xlu0 %2601  ;;  %v2756_v32 = vpop.permute.xlu1 %2755 }
0x1489   :  { %14276 = vmatpush3.msra.mxu1 %v2602_v20  ;;  %16035 = vpow2.f32 %v3439_v54 }
0x148a   :  { %14280 = vmatprep.subr.mxu1 %v16288_v49 }
0x148b   :  { %v16030_v21 = vpop.eup %16029 }
0x148c   :  { %v2591_v22 = vsel %vm249_vm3, %v16030_v21, 0.0  ;;  %v2754_v33 = vpop.permute.xlu1 %2753 }
0x148d   :  { %2592 = vadd.xlane.f32.xlu0 %v2591_v22 }
0x148f   :  { %v16032_v23 = vpop.eup %16031 }
0x1490   :  { %v2594_v24 = vsel %vm249_vm3, %v16032_v23, 0.0  ;;  %v16034_v28 = vpop.eup %16033  ;;  %v2832_v34 = vpop.permute.xlu1 %2831 }
0x1491   :  { %2595 = vadd.xlane.f32.xlu1 %v2594_v24  ;;  %v3441_v36 = vsel %vm249_vm3, %v16034_v28, 0.0 }
0x1493   :  { %v16036_v39 = vpop.eup %16035 }
0x1494   :  { %v3444_v30 = vsel %vm249_vm3, %v16036_v39, 0.0  ;;  %v3528_v35 = vpop.permute.xlu1 %3527 }
0x14a2   :  { %3702 = vrot.lane.b32.xlu1 %v16911_v53, %s16299_s3 }
0x14a3   :  { %2833 = vrot.lane.b32.xlu0 %v16909_v50, %s16292_s28 }
0x14c2   :  { %3442 = vadd.xlane.f32.xlu0 %v3441_v36 }
0x14c6   :  { %3445 = vadd.xlane.f32.xlu1 %v3444_v30 }
0x14d7   :  { %3780 = vrot.lane.b32.xlu1 %v16909_v50, %s16299_s3 }
0x14d8   :  { %3451 = vrot.lane.b32.xlu0 %v16911_v53, %s18714_s24 }
0x14dc   :  { %3704 = vrot.lane.b32.xlu0 %v16911_v53, %s18712_s25 }
0x14e0   :  { %3782 = vrot.lane.b32.xlu0 %v16909_v50, %s18712_s25 }
0x151a   :  { %v2593_v37 = vpop.xlane.xlu0 %2592 }
0x151b   :  { %16037 = vrcp.f32 %v2593_v37 }
0x151e   :  { %v2596_v38 = vpop.xlane.xlu1 %2595  ;;  %v2834_v46 = vpop.permute.xlu0 %2833 }
0x151f   :  { %16039 = vrcp.f32 %v2596_v38 }
0x1522   :  { %v3703_v47 = vpop.permute.xlu1 %3702 }
0x1525   :  { %v16038_v40 = vpop.eup %16037 }
0x1526   :  { %v2598_v41 = vmul.f32 %v16038_v40, %v16030_v21  ;;  %v13071_v40 = vld [vmem:[%s18699_s8 + $0x20] sm:$0xff] }
0x1528   :  { %14278 = vmatmul.mubr.msk.f32.vlgmr.msra.gmra.mrb[26].mxu1 %vm249_vm3, %v2598_v41  ;;  %v13072_v41 = vld [vmem:[%s18699_s8 + $0x28] sm:$0xff] }
0x1529   :  { %v16040_v42 = vpop.eup %16039  ;;  %14281 = vmatpush3.msra.mxu1 %v2678_v31  ;;  %14282 = vmatprep.mubr.msk.f32.mxu1 %vm16289_vm2, %v16288_v49 }
0x152a   :  { %v2600_v45 = vmul.f32 %v16040_v42, %v16032_v23  ;;  %14285 = vmatprep.subr.mxu1 %v16288_v49  ;;  %v13073_v42 = vld [vmem:[%s18699_s8 + $0x30] sm:$0xff] }
0x152c   :  { %14283 = vmatmul.mubr.msk.f32.vlgmr.msra.gmra.mrb[28].mxu1 %vm249_vm3, %v2600_v45  ;;  %v15831_v45 = vpack.i.bf16 %v13072_v41, %v13071_v40 }
0x152d   :  { %14287 = vmatprep.mubr.msk.f32.mxu1 %vm16289_vm2, %v16288_v49 }
0x1530   :  { %14286 = vmatpush3.xpose.msk.msra.mxu1 %vm249_vm3, %v2756_v32 }
0x1531   :  { %14290 = vmatprep.subr.mxu1 %v16288_v49 }
0x1533   :  { %14288 = vmatmul.mubr.msk.f32.vlgmr.msra.gmra.mrb[30].mxu1 %vm249_vm3, %v2754_v33 }
0x1534   :  { %14291 = vmatpush3.xpose.msk.msra.mxu1 %vm249_vm3, %v2834_v46  ;;  %14292 = vmatprep.mubr.msk.f32.mxu1 %vm16289_vm2, %v16288_v49 }
0x1535   :  { %14295 = vmatprep.subr.mxu1 %v16288_v49 }
0x1537   :  { %14293 = vmatmul.mubr.msk.f32.vlgmr.msra.gmra.mrb[32].mxu1 %vm249_vm3, %v2832_v34 }
0x1538   :  { %14297 = vmatprep.mubr.msk.f32.mxu1 %vm16289_vm2, %v16288_v49 }
0x154f   :  { %v3443_v0 = vpop.xlane.xlu0 %3442 }
0x1550   :  { %16041 = vrcp.f32 %v3443_v0 }
0x1553   :  { %v3446_v1 = vpop.xlane.xlu1 %3445  ;;  %v3452_v48 = vpop.permute.xlu0 %3451 }
0x1554   :  { %16043 = vrcp.f32 %v3446_v1  ;;  %14338 = vmatpush3.msra.mxu0 %v3452_v48 }
0x1555   :  { %14342 = vmatprep.subr.mxu0 %v16288_v49 }
0x1557   :  { %v3705_v58 = vpop.permute.xlu0 %3704  ;;  %v3781_v60 = vpop.permute.xlu1 %3780 }
0x155a   :  { %v16042_v51 = vpop.eup %16041 }
0x155b   :  { %v3448_v55 = vmul.f32 %v16042_v51, %v16034_v28  ;;  %v3783_v59 = vpop.permute.xlu0 %3782 }
0x155d   :  { %14340 = vmatmul.mubr.msk.f32.vlgmr.msra.gmra.mrb[24].mxu0 %vm249_vm3, %v3448_v55 }
0x155e   :  { %v16044_v56 = vpop.eup %16043  ;;  %14343 = vmatpush3.msra.mxu0 %v3528_v35  ;;  %14344 = vmatprep.mubr.msk.f32.mxu0 %vm16289_vm2, %v16288_v49 }
0x155f   :  { %v3450_v57 = vmul.f32 %v16044_v56, %v16036_v39  ;;  %14358 = vmatprep.subr.mxu0 %v16288_v49 }
0x1561   :  { %14345 = vmatmul.mubr.msk.f32.vlgmr.msra.gmra.mrb[26].mxu0 %vm249_vm3, %v3450_v57 }
0x1562   :  { %14360 = vmatprep.mubr.msk.f32.mxu0 %vm16289_vm2, %v16288_v49 }
0x1565   :  { %14359 = vmatpush3.xpose.msk.msra.mxu0 %vm249_vm3, %v3705_v58 }
0x1566   :  { %14363 = vmatprep.subr.mxu0 %v16288_v49 }
0x1568   :  { %14361 = vmatmul.mubr.msk.f32.vlgmr.msra.gmra.mrb[28].mxu0 %vm249_vm3, %v3703_v47 }
0x1569   :  { %14364 = vmatpush3.xpose.msk.msra.mxu0 %vm249_vm3, %v3783_v59  ;;  %14365 = vmatprep.mubr.msk.f32.mxu0 %vm16289_vm2, %v16288_v49 }
0x156a   :  { %14368 = vmatprep.subr.mxu0 %v16288_v49 }
0x156c   :  { %14366 = vmatmul.mubr.msk.f32.vlgmr.msra.gmra.mrb[30].mxu0 %vm249_vm3, %v3781_v60 }
0x156d   :  { %14370 = vmatprep.mubr.msk.f32.mxu0 %vm16289_vm2, %v16288_v49 }
0x15fb   :  { %v17015_v61 = vpop.f32.mrb[26].mxu1 }
0x15fc   :  { %v14279_v2 = vpop.f32.mrb[27].mxu1 }
0x15ff   :  { %v17017_v3 = vpop.f32.mrb[28].mxu1 }
0x1600   :  { %v14284_v5 = vpop.f32.mrb[29].mxu1 }
0x1606   :  { %v2827_v43 = vpop.f32.mrb[30].mxu1 }
0x1607   :  { %v14289_v44 = vpop.f32.mrb[31].mxu1  ;;  %v2909_v7 = vsel %vm249_vm3, %v2827_v43, -inf }
0x1608   :  { %2910 = vmax.xlane.f32.xlu0 %v2909_v7 }
0x160a   :  { %v2905_v8 = vpop.f32.mrb[32].mxu1 }
0x160b   :  { %v14294_v9 = vpop.f32.mrb[33].mxu1  ;;  %v2912_v10 = vsel %vm249_vm3, %v2905_v8, -inf }
0x160c   :  { %2913 = vmax.xlane.f32.xlu1 %v2912_v10 }
0x1630   :  { %v17021_v11 = vpop.f32.mrb[24].mxu0 }
0x1631   :  { %v14341_v12 = vpop.f32.mrb[25].mxu0 }
0x1634   :  { %v17023_v52 = vpop.f32.mrb[26].mxu0 }
0x1635   :  { %v14346_v13 = vpop.f32.mrb[27].mxu0 }
0x163b   :  { %v3776_v14 = vpop.f32.mrb[28].mxu0 }
0x163c   :  { %v14362_v15 = vpop.f32.mrb[29].mxu0  ;;  %v3858_v16 = vsel %vm249_vm3, %v3776_v14, -inf }
0x163d   :  { %3859 = vmax.xlane.f32.xlu0 %v3858_v16  ;;  %v15262_v16 = vpack.c.bf16 %v13072_v41, %v13071_v40 }
0x163f   :  { %v3854_v17 = vpop.f32.mrb[30].mxu0 }
0x1640   :  { %v14367_v18 = vpop.f32.mrb[31].mxu0  ;;  %v3861_v19 = vsel %vm249_vm3, %v3854_v17, -inf }
0x1641   :  { %3862 = vmax.xlane.f32.xlu0 %v3861_v19 }
0x1695   :  { %v2911_v20 = vpop.xlane.xlu0 %2910 }
0x1696   :  { %v2915_v21 = vsub.f32 %v2827_v43, %v2911_v20 }
0x1698   :  { %v2917_v22 = vmul.f32 1.442695, %v2915_v21 }
0x1699   :  { %v2914_v23 = vpop.xlane.xlu1 %2913 }
0x169a   :  { %16045 = vpow2.f32 %v2917_v22  ;;  %v2916_v24 = vsub.f32 %v2905_v8, %v2914_v23 }
0x169c   :  { %v2919_v25 = vmul.f32 1.442695, %v2916_v24 }
0x169e   :  { %16047 = vpow2.f32 %v2919_v25 }
0x16a4   :  { %v16046_v26 = vpop.eup %16045 }
0x16a5   :  { %v2921_v27 = vsel %vm249_vm3, %v16046_v26, 0.0 }
0x16a6   :  { %2922 = vadd.xlane.f32.xlu0 %v2921_v27 }
0x16a8   :  { %v16048_v54 = vpop.eup %16047 }
0x16a9   :  { %v2924_v28 = vsel %vm249_vm3, %v16048_v54, 0.0 }
0x16aa   :  { %2925 = vadd.xlane.f32.xlu1 %v2924_v28 }
0x16bb   :  { %3007 = vrot.lane.b32.xlu1 %v16909_v50, %s18727_s18 }
0x16bc   :  { %2931 = vrot.lane.b32.xlu0 %v16911_v53, %s18727_s18 }
0x16ca   :  { %v3860_v36 = vpop.xlane.xlu0 %3859 }
0x16cb   :  { %v3864_v39 = vsub.f32 %v3776_v14, %v3860_v36 }
0x16cd   :  { %v3866_v30 = vmul.f32 1.442695, %v3864_v39 }
0x16ce   :  { %v3863_v31 = vpop.xlane.xlu0 %3862 }
0x16cf   :  { %v3865_v32 = vsub.f32 %v3854_v17, %v3863_v31  ;;  %16049 = vpow2.f32 %v3866_v30 }
0x16d1   :  { %v3868_v33 = vmul.f32 1.442695, %v3865_v32 }
0x16d3   :  { %16051 = vpow2.f32 %v3868_v33 }
0x16d9   :  { %v16050_v34 = vpop.eup %16049 }
0x16da   :  { %v3870_v37 = vsel %vm249_vm3, %v16050_v34, 0.0 }
0x16dd   :  { %v16052_v35 = vpop.eup %16051 }
0x16de   :  { %v3873_v38 = vsel %vm249_vm3, %v16052_v35, 0.0 }
0x16df   :  { %3871 = vadd.xlane.f32.xlu1 %v3870_v37  ;;  %3874 = vadd.xlane.f32.xlu0 %v3873_v38 }
0x16f0   :  { %3956 = vrot.lane.b32.xlu1 %v16909_v50, %s18728_s19  ;;  %v13074_v50 = vld [vmem:[%s18699_s8 + $0x38] sm:$0xff] }
0x16f1   :  { %v15268_v19 = vpack.c.bf16 %v13074_v50, %v13073_v42 }
0x16f4   :  { %15832 = vrot.lane.b32.xlu1 %v15831_v45, %s16293_s29 }
0x16f5   :  { %3880 = vrot.lane.b32.xlu0 %v16911_v53, %s18728_s19  ;;  %v15836_v53 = vpack.i.bf16 %v13074_v50, %v13073_v42 }
0x16f8   :  { %15837 = vrot.lane.b32.xlu1 %v15836_v53, %s16293_s29 }
0x16f9   :  { %15842 = vrot.lane.b32.xlu0 %v15831_v45, %s16295_s22 }
0x16fc   :  { %15847 = vrot.lane.b32.xlu1 %v15836_v53, %s16295_s22 }
0x16fd   :  { %15852 = vrot.lane.b32.xlu0 %v15831_v45, %s16299_s3 }
0x1700   :  { %15857 = vrot.lane.b32.xlu1 %v15836_v53, %s16299_s3 }
0x1733   :  { %v2923_v46 = vpop.xlane.xlu0 %2922 }
0x1734   :  { %16053 = vrcp.f32 %v2923_v46  ;;  %v17125_v46 = vld [vmem:[%s18693_s2] sm:$0xff] }
0x1737   :  { %v2926_v47 = vpop.xlane.xlu1 %2925  ;;  %v2932_v0 = vpop.permute.xlu0 %2931 }
0x1738   :  { %16055 = vrcp.f32 %v2926_v47  ;;  %14296 = vmatpush3.msra.mxu1 %v2932_v0 }
0x1739   :  { %14300 = vmatprep.subr.mxu1 %v16288_v49 }
0x173b   :  { %v3008_v51 = vpop.permute.xlu1 %3007 }
0x173e   :  { %v16054_v1 = vpop.eup %16053 }
0x173f   :  { %v2928_v48 = vmul.f32 %v16054_v1, %v16046_v26  ;;  %v13126_v1 = vld [vmem:[%s18701_s10 + $0x40] sm:$0xff] }
0x1741   :  { %14298 = vmatmul.mubr.msk.f32.vlgmr.msra.gmra.mrb[34].mxu1 %vm249_vm3, %v2928_v48  ;;  %v13127_v48 = vld [vmem:[%s18701_s10 + $0x48] sm:$0xff] }
0x1742   :  { %v16056_v55 = vpop.eup %16055  ;;  %14301 = vmatpush3.msra.mxu1 %v3008_v51  ;;  %14302 = vmatprep.mubr.msk.f32.mxu1 %vm16289_vm2, %v16288_v49  ;;  %v13128_v51 = vld [vmem:[%s18701_s10 + $0x50] sm:$0xff] }
0x1743   :  { %v2930_v56 = vmul.f32 %v16056_v55, %v16048_v54  ;;  %v15298_v55 = vpack.c.bf16 %v13127_v48, %v13126_v1 }
0x1745   :  { %14303 = vmatmul.mubr.msk.f32.vlgmr.msra.gmra.mrb[36].mxu1 %vm249_vm3, %v2930_v56  ;;  %v13129_v56 = vld [vmem:[%s18701_s10 + $0x58] sm:$0xff] }
0x176c   :  { %v3872_v57 = vpop.xlane.xlu1 %3871  ;;  %v3875_v58 = vpop.xlane.xlu0 %3874 }
0x176d   :  { %16057 = vrcp.f32 %v3872_v57  ;;  %v15304_v57 = vpack.c.bf16 %v13129_v56, %v13128_v51 }
0x176e   :  { %16059 = vrcp.f32 %v3875_v58 }
0x1770   :  { %v3957_v59 = vpop.permute.xlu1 %3956  ;;  %v3881_v60 = vpop.permute.xlu0 %3880 }
0x1771   :  { %14369 = vmatpush3.msra.mxu0 %v3881_v60 }
0x1772   :  { %14373 = vmatprep.subr.mxu0 %v16288_v49 }
0x1774   :  { %v15833_v2 = vpop.permute.xlu1 %15832  ;;  %v15843_v21 = vpop.permute.xlu0 %15842 }
0x1775   :  { %v15835_v5 = vunpack.i.h.bf16 %v15833_v2  ;;  %v15834_v43 = vunpack.i.l.bf16 %v15833_v2  ;;  %v15845_v23 = vunpack.i.h.bf16 %v15843_v21  ;;  %v15844_v24 = vunpack.i.l.bf16 %v15843_v21  ;;  %v13130_v21 = vld [vmem:[%s18701_s10 + $0x60] sm:$0xff] }
0x1777   :  { %v16058_v44 = vpop.eup %16057  ;;  %v15250_v7 = vpack.c.bf16 %v15835_v5, %v15834_v43  ;;  %v15274_v25 = vpack.c.bf16 %v15845_v23, %v15844_v24  ;;  %v13132_v24 = vld [vmem:[%s18701_s10 + $0x70] sm:$0xff] }
0x1778   :  { %v3877_v8 = vmul.f32 %v16058_v44, %v16050_v34  ;;  %v15838_v9 = vpop.permute.xlu1 %15837  ;;  %v16060_v10 = vpop.eup %16059 }
0x1779   :  { %15252 = vmatprep.subr.msk.bf16.mxu1 %vm16600_vm4, %v15250_v7  ;;  %v15840_v12 = vunpack.i.h.bf16 %v15838_v9  ;;  %v15839_v13 = vunpack.i.l.bf16 %v15838_v9  ;;  %v3879_v15 = vmul.f32 %v16060_v10, %v16052_v35  ;;  %v15853_v36 = vpop.permute.xlu0 %15852 }
0x177a   :  { %14371 = vmatmul.mubr.msk.f32.vlgmr.msra.gmra.mrb[32].mxu0 %vm249_vm3, %v3877_v8  ;;  %15255 = vmatpush3.bf16.xpose.msk.msra.mxu1 %vm16600_vm4, %v15250_v7  ;;  %v15854_v39 = vunpack.i.l.bf16 %v15853_v36 }
0x177b   :  { %14374 = vmatpush3.msra.mxu0 %v3957_v59  ;;  %14375 = vmatprep.mubr.msk.f32.mxu0 %vm16289_vm2, %v16288_v49  ;;  %v15256_v14 = vpack.c.bf16 %v15840_v12, %v15839_v13 }
0x177c   :  { %v15848_v26 = vpop.permute.xlu1 %15847  ;;  %15300 = vmatprep.subr.msk.bf16.mxu0 %vm16412_vm1, %v15298_v55 }
0x177d   :  { %15258 = vmatprep.subr.msk.bf16.mxu1 %vm16600_vm4, %v15256_v14  ;;  %v15850_v27 = vunpack.i.h.bf16 %v15848_v26  ;;  %v15849_v54 = vunpack.i.l.bf16 %v15848_v26 }
0x177e   :  { %14376 = vmatmul.mubr.msk.f32.vlgmr.msra.gmra.mrb[34].mxu0 %vm249_vm3, %v3879_v15 }
0x177f   :  { %v15280_v28 = vpack.c.bf16 %v15850_v27, %v15849_v54  ;;  %v13160_v27 = vld [vmem:[%s18697_s6 + $0xc0] sm:$0xff]  ;;  %v13161_v54 = vld [vmem:[%s18697_s6 + $0xc8] sm:$0xff] }
0x1780   :  { %v15858_v31 = vpop.permute.xlu1 %15857 }
0x1781   :  { %v15859_v32 = vunpack.i.l.bf16 %v15858_v31 }
0x1782   :  { %15261 = vmatpush3.bf16.xpose.msk.msra.mxu1 %vm16600_vm4, %v15256_v14  ;;  %15303 = vmatpush3.bf16.xpose.msk.msra.mxu0 %vm16412_vm1, %v15298_v55  ;;  %v13159_v55 = vld [vmem:[%s18696_s5 + $0x4] ss:$0 sm:$0xff] }
0x1783   :  { %15264 = vmatprep.subr.msk.bf16.mxu1 %vm16600_vm4, %v15262_v16  ;;  %15306 = vmatprep.subr.msk.bf16.mxu0 %vm16412_vm1, %v15304_v57 }
0x178a   :  { %15309 = vmatpush3.bf16.xpose.msk.msra.mxu0 %vm16412_vm1, %v15304_v57 }
0x1814   :  { %v3003_v17 = vpop.f32.mrb[34].mxu1 }
0x1815   :  { %v14299_v18 = vpop.f32.mrb[35].mxu1  ;;  %14313 = vmatprep.mubr.msk.f32.mxu1 %vm249_vm3, %v3003_v17 }
0x1818   :  { %v3079_v20 = vpop.f32.mrb[36].mxu1 }
0x1819   :  { %v14304_v22 = vpop.f32.mrb[37].mxu1  ;;  %14314 = vmatmul.mubr.msk.f32.vlgmr.msra.gmra.mrb[38].mxu1 %vm249_vm3, %v3079_v20 }
0x181a   :  { %15267 = vmatpush3.bf16.xpose.msk.msra.mxu1 %vm16600_vm4, %v15262_v16  ;;  %14324 = vmatprep.mubr.msk.f32.mxu1 %vm249_vm3, %v17015_v61  ;;  %v15855_v61 = vunpack.i.h.bf16 %v15853_v36  ;;  %v13131_v22 = vld [vmem:[%s18701_s10 + $0x68] sm:$0xff] }
0x181b   :  { %15270 = vmatprep.subr.msk.bf16.mxu1 %vm16600_vm4, %v15268_v19  ;;  %v15310_v23 = vpack.c.bf16 %v13131_v22, %v13130_v21  ;;  %v13145_v22 = vld [vmem:[%s18703_s12 + $0x20] sm:$0xff] }
0x181c   :  { %v15286_v30 = vpack.c.bf16 %v15855_v61, %v15854_v39 }
0x181d   :  { %15312 = vmatprep.subr.msk.bf16.mxu0 %vm16412_vm1, %v15310_v23 }
0x181e   :  { %15315 = vmatpush3.bf16.xpose.msk.msra.mxu0 %vm16412_vm1, %v15310_v23 }
0x1822   :  { %15273 = vmatpush3.bf16.xpose.msk.msra.mxu1 %vm16600_vm4, %v15268_v19 }
0x1823   :  { %15276 = vmatprep.subr.msk.bf16.mxu1 %vm16600_vm4, %v15274_v25 }
0x1829   :  { %14325 = vmatmul.mubr.msk.f32.vlgmr.msra.gmra.mrb[38].mxu1 %vm249_vm3, %v17017_v3  ;;  %v15860_v3 = vunpack.i.h.bf16 %v15858_v31 }
0x182a   :  { %15279 = vmatpush3.bf16.xpose.msk.msra.mxu1 %vm16600_vm4, %v15274_v25  ;;  %14355 = vmatprep.mubr.msk.f32.mxu1 %vm249_vm3, %v17021_v11  ;;  %v13133_v25 = vld [vmem:[%s18701_s10 + $0x78] sm:$0xff] }
0x182b   :  { %15282 = vmatprep.subr.msk.bf16.mxu1 %vm16600_vm4, %v15280_v28  ;;  %v15292_v33 = vpack.c.bf16 %v15860_v3, %v15859_v32  ;;  %v15316_v26 = vpack.c.bf16 %v13133_v25, %v13132_v24  ;;  %v13147_v24 = vld [vmem:[%s18703_s12 + $0x30] sm:$0xff]  ;;  %v13148_v25 = vld [vmem:[%s18703_s12 + $0x38] sm:$0xff] }
0x182d   :  { %15318 = vmatprep.subr.msk.bf16.mxu0 %vm16412_vm1, %v15316_v26 }
0x182e   :  { %15321 = vmatpush3.bf16.xpose.msk.msra.mxu0 %vm16412_vm1, %v15316_v26  ;;  %v15328_v26 = vpack.c.bf16 %v13148_v25, %v13147_v24 }
0x1832   :  { %15285 = vmatpush3.bf16.xpose.msk.msra.mxu1 %vm16600_vm4, %v15280_v28  ;;  %v15334_v28 = vpack.c.bf16 %v13161_v54, %v13160_v27  ;;  %v13134_v27 = vld [vmem:[%s18702_s11 + $0x1] ss:$0 sm:$0xff] }
0x1833   :  { %15288 = vmatprep.subr.msk.bf16.mxu1 %vm16600_vm4, %v15286_v30 }
0x1834   :  { %15336 = vmatprep.subr.msk.bf16.mxu0 %vm16412_vm1, %v15334_v28 }
0x1839   :  { %14356 = vmatmul.mubr.msk.f32.vlgmr.msra.gmra.mrb[38].mxu1 %vm249_vm3, %v17023_v52  ;;  %v13123_v52 = vld [vmem:[%s18700_s9 + $0x1] ss:$0 sm:$0xff] }
0x183a   :  { %15291 = vmatpush3.bf16.xpose.msk.msra.mxu1 %vm16600_vm4, %v15286_v30 }
0x183b   :  { %15294 = vmatprep.subr.msk.bf16.mxu1 %vm16600_vm4, %v15292_v33 }
0x1842   :  { %15297 = vmatpush3.bf16.xpose.msk.msra.mxu1 %vm16600_vm4, %v15292_v33 }
0x184d   :  { %v3952_v11 = vpop.f32.mrb[32].mxu0 }
0x184e   :  { %v14372_v34 = vpop.f32.mrb[33].mxu0  ;;  %14386 = vmatprep.mubr.msk.f32.mxu1 %vm249_vm3, %v3952_v11 }
0x1851   :  { %v4028_v35 = vpop.f32.mrb[34].mxu0 }
0x1852   :  { %v14377_v37 = vpop.f32.mrb[35].mxu0  ;;  %14387 = vmatmul.mubr.msk.f32.vlgmr.msra.gmra.mrb[38].mxu1 %vm249_vm3, %v4028_v35  ;;  %v13124_v35 = vld [vmem:[%s18695_s4 + $0x3] ss:$0 sm:$0xff] }
0x1925   :  { %v14388_v38 = vpop.f32.mrb[38].mxu1 }
0x1926   :  { %v4132_v40 = vadd.f32 %v14388_v38, %v16823_v62  ;;  %v4120_v41 = vpop.f32.mrb[39].mxu1  ;;  %v4468_v62 = vsel %vm68_vm0, %v17125_v46, 0.0 }
0x1927   :  { %v4131_v42 = vadd.f32 %v4120_v41, %v16825_v63  ;;  %v17134_v63 = vld [vmem:[%s18693_s2 + $0x8] sm:$0xff]  ;;  %s18729_s2 = smov 48  }
0x1928   :  { %v17116_v45 = vadd.f32 %v13123_v52, %v4132_v40  ;;  %v4471_v0 = vsel %vm68_vm0, %v17134_v63, 0.0  ;;  %v13125_v40 = vld [vmem:[%s18696_s5 + $0x3] ss:$0 sm:$0xff] }
0x1929   :  { %v17118_v50 = vadd.f32 %v13123_v52, %v4131_v42 }
0x192a   :  { %v4145_v53 = vsel %vm68_vm0, %v17116_v45, 0.0 }
0x192b   :  { %4146 = vadd.xlane.f32.xlu1 %v4145_v53  ;;  %v4142_v47 = vsel %vm68_vm0, %v17118_v50, 0.0  ;;  %v13162_v53 = vld [vmem:[%s18697_s6 + $0xd0] sm:$0xff] }
0x192c   :  { %4143 = vadd.xlane.f32.xlu0 %v4142_v47  ;;  %v13163_v47 = vld [vmem:[%s18697_s6 + $0xd8] sm:$0xff] }
0x192d   :  { %v15340_v56 = vpack.c.bf16 %v13163_v47, %v13162_v53 }
0x1930   :  { %4469 = vadd.xlane.f32.xlu0 %v4468_v62 }
0x1934   :  { %4472 = vadd.xlane.f32.xlu0 %v4471_v0  ;;  %v13158_v0 = vld [vmem:[%s18695_s4 + $0x4] ss:$0 sm:$0xff] }
0x19b8   :  { %v4147_v58 = vpop.xlane.xlu1 %4146 }
0x19b9   :  { %v4149_v59 = vmul.f32 0.03125, %v4147_v58  ;;  %v4144_v60 = vpop.xlane.xlu0 %4143 }
0x19ba   :  { %v4148_v2 = vmul.f32 0.03125, %v4144_v60  ;;  %v13165_v60 = vld [vmem:[%s18697_s6 + $0xe8] sm:$0xff] }
0x19bb   :  { %v4151_v5 = vsub.f32 %v17116_v45, %v4149_v59  ;;  %v13164_v59 = vld [vmem:[%s18697_s6 + $0xe0] sm:$0xff] }
0x19bc   :  { %v4150_v43 = vsub.f32 %v17118_v50, %v4148_v2  ;;  %v15346_v2 = vpack.c.bf16 %v13165_v60, %v13164_v59 }
0x19bd   :  { %v4470_v44 = vpop.xlane.xlu0 %4469  ;;  %v4153_v7 = vmul.f32 %v4151_v5, %v4151_v5 }
0x19be   :  { %v4474_v8 = vmul.f32 0.03125, %v4470_v44  ;;  %v4152_v9 = vmul.f32 %v4150_v43, %v4150_v43 }
0x19bf   :  { %v4157_v10 = vsel %vm68_vm0, %v4153_v7, 0.0 }
0x19c0   :  { %v4476_v12 = vsub.f32 %v17125_v46, %v4474_v8  ;;  %4158 = vadd.xlane.f32.xlu1 %v4157_v10  ;;  %v4154_v13 = vsel %vm68_vm0, %v4152_v9, 0.0  ;;  %v13168_v9 = vld [vmem:[%s18697_s6 + $0x100] sm:$0xff]  ;;  %v13169_v10 = vld [vmem:[%s18697_s6 + $0x108] sm:$0xff] }
0x19c1   :  { %4155 = vadd.xlane.f32.xlu0 %v4154_v13  ;;  %v4473_v14 = vpop.xlane.xlu0 %4472  ;;  %v15358_v13 = vpack.c.bf16 %v13169_v10, %v13168_v9 }
0x19c2   :  { %v4475_v15 = vmul.f32 0.03125, %v4473_v14  ;;  %v4478_v16 = vmul.f32 %v4476_v12, %v4476_v12  ;;  %v13170_v14 = vld [vmem:[%s18697_s6 + $0x110] sm:$0xff] }
0x19c4   :  { %v17164_v17 = vsub.f32 %v17134_v63, %v4475_v15  ;;  %v4480_v18 = vsel %vm68_vm0, %v4478_v16, 0.0  ;;  %v13171_v15 = vld [vmem:[%s18697_s6 + $0x118] sm:$0xff] }
0x19c5   :  { %4481 = vadd.xlane.f32.xlu0 %v4480_v18  ;;  %v15364_v16 = vpack.c.bf16 %v13171_v15, %v13170_v14 }
0x19c6   :  { %v4479_v19 = vmul.f32 %v17164_v17, %v17164_v17 }
0x19c8   :  { %v4483_v20 = vsel %vm68_vm0, %v4479_v19, 0.0 }
0x19c9   :  { %4484 = vadd.xlane.f32.xlu1 %v4483_v20 }
0x1a4d   :  { %v4159_v36 = vpop.xlane.xlu1 %4158 }
0x1a4e   :  { %v4161_v61 = vmul.f32 0.03125, %v4159_v36  ;;  %v4156_v39 = vpop.xlane.xlu0 %4155 }
0x1a4f   :  { %v4160_v30 = vmul.f32 0.03125, %v4156_v39 }
0x1a50   :  { %v4163_v31 = vadd.f32 1e-05, %v4161_v61 }
0x1a51   :  { %v4162_v3 = vadd.f32 1e-05, %v4160_v30 }
0x1a52   :  { %16061 = vrsqrt.f32 %v4163_v31  ;;  %v4482_v32 = vpop.xlane.xlu0 %4481 }
0x1a53   :  { %16063 = vrsqrt.f32 %v4162_v3  ;;  %v4486_v33 = vmul.f32 0.03125, %v4482_v32 }
0x1a55   :  { %v4488_v11 = vadd.f32 1e-05, %v4486_v33 }
0x1a56   :  { %v4485_v44 = vpop.xlane.xlu1 %4484 }
0x1a57   :  { %16065 = vrsqrt.f32 %v4488_v11  ;;  %v4487_v8 = vmul.f32 0.03125, %v4485_v44  ;;  %v58_v44 = vlaneseq }
0x1a5c   :  { %v16062_v34 = vpop.eup %16061 }
0x1a5d   :  { %v16064_v37 = vpop.eup %16063  ;;  %v4167_v38 = vmul.f32 %v16062_v34, %v4151_v5  ;;  %v13166_v5 = vld [vmem:[%s18697_s6 + $0xf0] sm:$0xff] }
0x1a5e   :  { %v4166_v52 = vmul.f32 %v16064_v37, %v4150_v43  ;;  %v13167_v43 = vld [vmem:[%s18697_s6 + $0xf8] sm:$0xff] }
0x1a5f   :  { %v4173_v41 = vmul.f32 %v13124_v35, %v4167_v38  ;;  %v15352_v7 = vpack.c.bf16 %v13167_v43, %v13166_v5 }
0x1a60   :  { %v4172_v42 = vmul.f32 %v13124_v35, %v4166_v52 }
0x1a61   :  { %v16066_v62 = vpop.eup %16065  ;;  %v4179_v51 = vadd.f32 %v13125_v40, %v4173_v41 }
0x1a62   :  { %v4178_v1 = vadd.f32 %v13125_v40, %v4172_v42  ;;  %v4492_v48 = vmul.f32 %v16066_v62, %v4476_v12  ;;  %v4489_v12 = vadd.f32 1e-05, %v4487_v8  ;;  %v61_v8 = vand.u32 127, %v58_v44 }
0x1a64   :  { %14405 = vmatprep.mubr.msk.f32.mxu0 %vm68_vm0, %v4178_v1  ;;  %v4498_v57 = vmul.f32 %v13158_v0, %v4492_v48  ;;  %16067 = vrsqrt.f32 %v4489_v12 }
0x1a65   :  { %14406 = vmatmul.mubr.msk.f32.vlgmr.msra.gmra.mrb[36].mxu0 %vm68_vm0, %v4179_v51 }
0x1a66   :  { %15339 = vmatpush3.bf16.xpose.msk.msra.mxu0 %vm16412_vm1, %v15334_v28  ;;  %v4504_v58 = vadd.f32 %v13159_v55, %v4498_v57 }
0x1a67   :  { %15342 = vmatprep.subr.msk.bf16.mxu0 %vm16412_vm1, %v15340_v56 }
0x1a68   :  { %14443 = vmatprep.mubr.msk.f32.mxu0 %vm68_vm0, %v4504_v58 }
0x1a6e   :  { %15345 = vmatpush3.bf16.xpose.msk.msra.mxu0 %vm16412_vm1, %v15340_v56  ;;  %v16068_v18 = vpop.eup %16067 }
0x1a6f   :  { %15348 = vmatprep.subr.msk.bf16.mxu0 %vm16412_vm1, %v15346_v2  ;;  %v4493_v19 = vmul.f32 %v16068_v18, %v17164_v17  ;;  %v13146_v17 = vld [vmem:[%s18703_s12 + $0x28] sm:$0xff] }
0x1a70   :  { %v15322_v23 = vpack.c.bf16 %v13146_v17, %v13145_v22 }
0x1a71   :  { %v4499_v20 = vmul.f32 %v13158_v0, %v4493_v19  ;;  %v13172_v0 = vld [vmem:[%s18698_s7 + $0x2] ss:$0 sm:$0xff] }
0x1a72   :  { %15324 = vmatprep.subr.msk.bf16.mxu1 %vm16798_vm6, %v15322_v23 }
0x1a73   :  { %v4505_v21 = vadd.f32 %v13159_v55, %v4499_v20  ;;  %15327 = vmatpush3.bf16.xpose.msk.msra.mxu1 %vm16798_vm6, %v15322_v23 }
0x1a74   :  { %15330 = vmatprep.subr.msk.bf16.mxu1 %vm16798_vm6, %v15328_v26 }
0x1a76   :  { %15351 = vmatpush3.bf16.xpose.msk.msra.mxu0 %vm16412_vm1, %v15346_v2 }
0x1a77   :  { %15354 = vmatprep.subr.msk.bf16.mxu0 %vm16412_vm1, %v15352_v7 }
0x1a7b   :  { %15333 = vmatpush3.bf16.xpose.msk.msra.mxu1 %vm16798_vm6, %v15328_v26 }
0x1a7c   :  { %14446 = vmatprep.subr.mxu1 %v16288_v49 }
0x1a7e   :  { %15357 = vmatpush3.bf16.xpose.msk.msra.mxu0 %vm16412_vm1, %v15352_v7  ;;  %v59_v7 = vshrl.u32 %v58_v44, 7 }
0x1a7f   :  { %15360 = vmatprep.subr.msk.bf16.mxu0 %vm16412_vm1, %v15358_v13 }
0x1a80   :  { %vm62_vm7 = vcmp.gt.s32.totalorder %v61_v8, %v59_v7 }
0x1a81   :  { %v17344_v9 = vsel %vm62_vm7, -1e+09, %v16288_v49 }
0x1a86   :  { %15363 = vmatpush3.bf16.xpose.msk.msra.mxu0 %vm16412_vm1, %v15358_v13 }
0x1a87   :  { %15366 = vmatprep.subr.msk.bf16.mxu0 %vm16412_vm1, %v15364_v16 }
0x1a8e   :  { %15369 = vmatpush3.bf16.xpose.msk.msra.mxu0 %vm16412_vm1, %v15364_v16 }
0x1a8f   :  { %14508 = vmatprep.subr.mxu0 %v16288_v49 }
0x1a95   :  { %14444 = vmatmul.mubr.msk.f32.vlgmr.msra.gmra.mrb[38].mxu0 %vm68_vm0, %v4505_v21 }
0x1a96   :  { %14510 = vmatprep.mubr.msk.f32.mxu0 %vm16289_vm2, %v16288_v49 }
0x1b38   :  { %v14407_v54 = vpop.f32.mrb[36].mxu0 }
0x1b39   :  { %v4296_v28 = vadd.f32 %v14407_v54, %v13134_v27  ;;  %v4290_v36 = vpop.f32.mrb[37].mxu0 }
0x1b3a   :  { %v4291_v61 = vadd.f32 %v13134_v27, %v4290_v36 }
0x1b3b   :  { %v4302_v39 = vmul.f32 0.044715, %v4296_v28  ;;  %v4300_v53 = vmul.f32 0.5, %v4296_v28 }
0x1b3c   :  { %v4301_v30 = vmul.f32 0.044715, %v4291_v61  ;;  %v4299_v41 = vmul.f32 0.5, %v4291_v61 }
0x1b3d   :  { %v4304_v31 = vmul.f32 %v4302_v39, %v4296_v28 }
0x1b3e   :  { %v4303_v3 = vmul.f32 %v4301_v30, %v4291_v61 }
0x1b3f   :  { %v4306_v32 = vmul.f32 %v4304_v31, %v4296_v28 }
0x1b40   :  { %v4305_v33 = vmul.f32 %v4303_v3, %v4291_v61 }
0x1b41   :  { %v4308_v11 = vadd.f32 %v4306_v32, %v4296_v28 }
0x1b42   :  { %v4307_v34 = vadd.f32 %v4305_v33, %v4291_v61 }
0x1b43   :  { %v4310_v35 = vmul.f32 0.7978846, %v4308_v11 }
0x1b44   :  { %v4309_v37 = vmul.f32 0.7978846, %v4307_v34 }
0x1b45   :  { %16069 = vtanh.f32 %v4310_v35 }
0x1b46   :  { %16071 = vtanh.f32 %v4309_v37 }
0x1b4f   :  { %v16070_v38 = vpop.eup %16069 }
0x1b50   :  { %v16072_v52 = vpop.eup %16071  ;;  %v4314_v40 = vadd.f32 1.0, %v16070_v38 }
0x1b51   :  { %v4313_v42 = vadd.f32 1.0, %v16072_v52 }
0x1b52   :  { %v4316_v62 = vmul.f32 %v4314_v40, %v4300_v53 }
0x1b53   :  { %v4315_v47 = vmul.f32 %v4313_v42, %v4299_v41 }
0x1b55   :  { %14416 = vmatprep.mubr.msk.f32.mxu1 %vm2142_vm5, %v4315_v47 }
0x1b56   :  { %14417 = vmatmul.mubr.msk.f32.vlgmr.msra.gmra.mrb[40].mxu1 %vm2142_vm5, %v4316_v62 }
0x1b57   :  { %14448 = vmatprep.mubr.msk.f32.mxu1 %vm16289_vm2, %v16288_v49 }
0x1b68   :  { %v14445_v1 = vpop.f32.mrb[38].mxu0 }
0x1b69   :  { %v17301_v48 = vadd.f32 %v14445_v1, %v13172_v0  ;;  %v4632_v51 = vpop.f32.mrb[39].mxu0 }
0x1b6a   :  { %v17303_v55 = vadd.f32 %v13172_v0, %v4632_v51 }
0x1b6b   :  { %4724 = vrot.lane.b32.xlu1 %v17301_v48, %s16290_s26 }
0x1b6c   :  { %4647 = vrot.lane.b32.xlu0 %v17303_v55, %s16290_s26 }
0x1b6f   :  { %5496 = vrot.lane.b32.xlu1 %v17303_v55, %s16296_s23 }
0x1b70   :  { %5574 = vrot.lane.b32.xlu0 %v17301_v48, %s16296_s23 }
0x1b73   :  { %5494 = vrot.lane.b32.xlu1 %v17303_v55, %s16295_s22 }
0x1b77   :  { %5572 = vrot.lane.b32.xlu1 %v17301_v48, %s16295_s22 }
0x1bdd   :  { %v4725_v56 = vpop.permute.xlu1 %4724 }
0x1bde   :  { %v4648_v57 = vpop.permute.xlu0 %4647 }
0x1bdf   :  { %14447 = vmatpush3.xpose.msk.msra.mxu1 %vm249_vm3, %v4648_v57 }
0x1be0   :  { %14451 = vmatprep.subr.mxu1 %v16288_v49 }
0x1be1   :  { %v5497_v58 = vpop.permute.xlu1 %5496 }
0x1be2   :  { %14449 = vmatmul.mubr.msk.f32.vlgmr.msra.gmra.mrb[42].mxu1 %vm249_vm3, %v17303_v55  ;;  %14509 = vmatpush3.xpose.msk.msra.mxu0 %vm249_vm3, %v5497_v58  ;;  %v5575_v60 = vpop.permute.xlu0 %5574 }
0x1be3   :  { %14452 = vmatpush3.xpose.msk.msra.mxu1 %vm249_vm3, %v4725_v56  ;;  %14513 = vmatprep.subr.mxu0 %v16288_v49 }
0x1be4   :  { %14453 = vmatprep.mubr.msk.f32.mxu1 %vm16289_vm2, %v16288_v49  ;;  %14456 = vmatprep.subr.mxu1 %v16288_v49 }
0x1be5   :  { %v5495_v59 = vpop.permute.xlu1 %5494 }
0x1be6   :  { %14454 = vmatmul.mubr.msk.f32.vlgmr.msra.gmra.mrb[44].mxu1 %vm249_vm3, %v17301_v48  ;;  %14511 = vmatmul.mubr.msk.f32.vlgmr.msra.gmra.mrb[40].mxu0 %vm249_vm3, %v5495_v59 }
0x1be7   :  { %14514 = vmatpush3.xpose.msk.msra.mxu0 %vm249_vm3, %v5575_v60  ;;  %14515 = vmatprep.mubr.msk.f32.mxu0 %vm16289_vm2, %v16288_v49 }
0x1be8   :  { %14458 = vmatprep.mubr.msk.f32.mxu1 %vm16289_vm2, %v16288_v49  ;;  %14518 = vmatprep.subr.mxu0 %v16288_v49 }
0x1be9   :  { %v5573_v2 = vpop.permute.xlu1 %5572 }
0x1bea   :  { %14516 = vmatmul.mubr.msk.f32.vlgmr.msra.gmra.mrb[42].mxu0 %vm249_vm3, %v5573_v2 }
0x1beb   :  { %14520 = vmatprep.mubr.msk.f32.mxu0 %vm16289_vm2, %v16288_v49 }
0x1c29   :  { %v17339_v5 = vpop.f32.mrb[40].mxu1 }
0x1c2a   :  { %v17341_v43 = vpop.f32.mrb[41].mxu1 }
0x1cb5   :  { %v4719_v10 = vpop.f32.mrb[42].mxu1 }
0x1cb6   :  { %v4720_v12 = vadd.f32 %v4719_v10, %v17344_v9  ;;  %v14450_v13 = vpop.f32.mrb[43].mxu1 }
0x1cb8   :  { %v4800_v14 = vsel %vm249_vm3, %v4720_v12, -inf }
0x1cb9   :  { %v4796_v15 = vpop.f32.mrb[44].mxu1  ;;  %v5568_v16 = vpop.f32.mrb[40].mxu0  ;;  %4801 = vmax.xlane.f32.xlu0 %v4800_v14 }
0x1cba   :  { %v4797_v18 = vadd.f32 %v4796_v15, %v17344_v9  ;;  %v5569_v19 = vadd.f32 %v5568_v16, %v17344_v9  ;;  %v14455_v20 = vpop.f32.mrb[45].mxu1  ;;  %v14512_v21 = vpop.f32.mrb[41].mxu0 }
0x1cbc   :  { %v4803_v22 = vsel %vm249_vm3, %v4797_v18, -inf  ;;  %v5650_v17 = vsel %vm249_vm3, %v5569_v19, -inf }
0x1cbd   :  { %v5646_v23 = vpop.f32.mrb[42].mxu0  ;;  %4804 = vmax.xlane.f32.xlu1 %v4803_v22  ;;  %5651 = vmax.xlane.f32.xlu0 %v5650_v17 }
0x1cbe   :  { %v5647_v24 = vadd.f32 %v5646_v23, %v17344_v9  ;;  %v14517_v25 = vpop.f32.mrb[43].mxu0 }
0x1cc0   :  { %v5653_v26 = vsel %vm249_vm3, %v5647_v24, -inf }
0x1cc1   :  { %5654 = vmax.xlane.f32.xlu0 %v5653_v26 }
0x1cce   :  { %4898 = vrot.lane.b32.xlu1 %v17301_v48, %s18716_s27 }
0x1cd2   :  { %4976 = vrot.lane.b32.xlu1 %v17303_v55, %s16292_s28 }
0x1cd6   :  { %4974 = vrot.lane.b32.xlu1 %v17303_v55, %s16293_s29 }
0x1cd7   :  { %4822 = vrot.lane.b32.xlu0 %v17303_v55, %s18716_s27 }
0x1cda   :  { %5052 = vrot.lane.b32.xlu1 %v17301_v48, %s16293_s29 }
0x1cde   :  { %5748 = vrot.lane.b32.xlu1 %v17301_v48, %s18729_s2 }
0x1d46   :  { %v4802_v27 = vpop.xlane.xlu0 %4801 }
0x1d47   :  { %v4806_v54 = vsub.f32 %v4720_v12, %v4802_v27 }
0x1d49   :  { %v4808_v28 = vmul.f32 1.442695, %v4806_v54 }
0x1d4a   :  { %v4805_v36 = vpop.xlane.xlu1 %4804  ;;  %v5652_v61 = vpop.xlane.xlu0 %5651 }
0x1d4b   :  { %16073 = vpow2.f32 %v4808_v28  ;;  %v4807_v39 = vsub.f32 %v4797_v18, %v4805_v36  ;;  %v5656_v35 = vsub.f32 %v5569_v19, %v5652_v61 }
0x1d4d   :  { %v4810_v30 = vmul.f32 1.442695, %v4807_v39  ;;  %v5658_v37 = vmul.f32 1.442695, %v5656_v35 }
0x1d4e   :  { %v5655_v31 = vpop.xlane.xlu0 %5654  ;;  %v4899_v47 = vpop.permute.xlu1 %4898 }
0x1d4f   :  { %16075 = vpow2.f32 %v4810_v30  ;;  %v5657_v38 = vsub.f32 %v5647_v24, %v5655_v31 }
0x1d50   :  { %16077 = vpow2.f32 %v5658_v37 }
0x1d51   :  { %v5660_v52 = vmul.f32 1.442695, %v5657_v38 }
0x1d52   :  { %v4823_v3 = vpop.permute.xlu0 %4822  ;;  %v4977_v62 = vpop.permute.xlu1 %4976 }
0x1d53   :  { %14457 = vmatpush3.msra.mxu1 %v4823_v3  ;;  %16079 = vpow2.f32 %v5660_v52 }
0x1d54   :  { %14461 = vmatprep.subr.mxu1 %v16288_v49 }
0x1d55   :  { %v16074_v32 = vpop.eup %16073 }
0x1d56   :  { %v4812_v33 = vsel %vm249_vm3, %v16074_v32, 0.0  ;;  %v4975_v0 = vpop.permute.xlu1 %4974 }
0x1d57   :  { %4813 = vadd.xlane.f32.xlu0 %v4812_v33 }
0x1d59   :  { %v16076_v11 = vpop.eup %16075 }
0x1d5a   :  { %v4815_v34 = vsel %vm249_vm3, %v16076_v11, 0.0  ;;  %v16078_v40 = vpop.eup %16077  ;;  %v5053_v1 = vpop.permute.xlu1 %5052 }
0x1d5b   :  { %4816 = vadd.xlane.f32.xlu1 %v4815_v34  ;;  %v5662_v41 = vsel %vm249_vm3, %v16078_v40, 0.0 }
0x1d5d   :  { %v16080_v42 = vpop.eup %16079 }
0x1d5e   :  { %v5665_v53 = vsel %vm249_vm3, %v16080_v42, 0.0  ;;  %v5749_v51 = vpop.permute.xlu1 %5748 }
0x1d6c   :  { %5923 = vrot.lane.b32.xlu1 %v17303_v55, %s16299_s3 }
0x1d6d   :  { %5054 = vrot.lane.b32.xlu0 %v17301_v48, %s16292_s28 }
0x1d8c   :  { %5663 = vadd.xlane.f32.xlu0 %v5662_v41 }
0x1d90   :  { %5666 = vadd.xlane.f32.xlu1 %v5665_v53 }
0x1da1   :  { %6001 = vrot.lane.b32.xlu1 %v17301_v48, %s16299_s3 }
0x1da2   :  { %5672 = vrot.lane.b32.xlu0 %v17303_v55, %s18729_s2 }
0x1da6   :  { %5925 = vrot.lane.b32.xlu0 %v17303_v55, %s18730_s20 }
0x1daa   :  { %6003 = vrot.lane.b32.xlu0 %v17301_v48, %s18730_s20 }
0x1de4   :  { %v4814_v56 = vpop.xlane.xlu0 %4813 }
0x1de5   :  { %16081 = vrcp.f32 %v4814_v56 }
0x1de8   :  { %v4817_v57 = vpop.xlane.xlu1 %4816  ;;  %v5055_v44 = vpop.permute.xlu0 %5054 }
0x1de9   :  { %16083 = vrcp.f32 %v4817_v57 }
0x1dec   :  { %v5924_v7 = vpop.permute.xlu1 %5923 }
0x1def   :  { %v16082_v58 = vpop.eup %16081 }
0x1df0   :  { %v4819_v59 = vmul.f32 %v16082_v58, %v16074_v32 }
0x1df2   :  { %14459 = vmatmul.mubr.msk.f32.vlgmr.msra.gmra.mrb[46].mxu1 %vm249_vm3, %v4819_v59 }
0x1df3   :  { %v16084_v60 = vpop.eup %16083  ;;  %14462 = vmatpush3.msra.mxu1 %v4899_v47  ;;  %14463 = vmatprep.mubr.msk.f32.mxu1 %vm16289_vm2, %v16288_v49 }
0x1df4   :  { %v4821_v2 = vmul.f32 %v16084_v60, %v16076_v11  ;;  %14466 = vmatprep.subr.mxu1 %v16288_v49 }
0x1df6   :  { %14464 = vmatmul.mubr.msk.f32.vlgmr.msra.gmra.mrb[48].mxu1 %vm249_vm3, %v4821_v2 }
0x1df7   :  { %14468 = vmatprep.mubr.msk.f32.mxu1 %vm16289_vm2, %v16288_v49 }
0x1dfa   :  { %14467 = vmatpush3.xpose.msk.msra.mxu1 %vm249_vm3, %v4977_v62 }
0x1dfb   :  { %14471 = vmatprep.subr.mxu1 %v16288_v49 }
0x1dfd   :  { %14469 = vmatmul.mubr.msk.f32.vlgmr.msra.gmra.mrb[50].mxu1 %vm249_vm3, %v4975_v0 }
0x1dfe   :  { %14472 = vmatpush3.xpose.msk.msra.mxu1 %vm249_vm3, %v5055_v44  ;;  %14473 = vmatprep.mubr.msk.f32.mxu1 %vm16289_vm2, %v16288_v49 }
0x1dff   :  { %14476 = vmatprep.subr.mxu1 %v16288_v49 }
0x1e01   :  { %14474 = vmatmul.mubr.msk.f32.vlgmr.msra.gmra.mrb[52].mxu1 %vm249_vm3, %v5053_v1 }
0x1e02   :  { %14478 = vmatprep.mubr.msk.f32.mxu1 %vm16289_vm2, %v16288_v49 }
0x1e19   :  { %v5664_v8 = vpop.xlane.xlu0 %5663 }
0x1e1a   :  { %16085 = vrcp.f32 %v5664_v8 }
0x1e1d   :  { %v5667_v10 = vpop.xlane.xlu1 %5666  ;;  %v5673_v12 = vpop.permute.xlu0 %5672 }
0x1e1e   :  { %16087 = vrcp.f32 %v5667_v10  ;;  %14519 = vmatpush3.msra.mxu0 %v5673_v12 }
0x1e1f   :  { %14523 = vmatprep.subr.mxu0 %v16288_v49 }
0x1e21   :  { %v5926_v18 = vpop.permute.xlu0 %5925  ;;  %v6002_v20 = vpop.permute.xlu1 %6001 }
0x1e24   :  { %v16086_v13 = vpop.eup %16085 }
0x1e25   :  { %v5669_v14 = vmul.f32 %v16086_v13, %v16078_v40  ;;  %v6004_v19 = vpop.permute.xlu0 %6003  ;;  %v13187_v13 = vld [vmem:[%s18699_s8 + $0x40] sm:$0xff] }
0x1e27   :  { %14521 = vmatmul.mubr.msk.f32.vlgmr.msra.gmra.mrb[44].mxu0 %vm249_vm3, %v5669_v14  ;;  %v13188_v14 = vld [vmem:[%s18699_s8 + $0x48] sm:$0xff] }
0x1e28   :  { %v16088_v15 = vpop.eup %16087  ;;  %14524 = vmatpush3.msra.mxu0 %v5749_v51  ;;  %14525 = vmatprep.mubr.msk.f32.mxu0 %vm16289_vm2, %v16288_v49 }
0x1e29   :  { %v5671_v16 = vmul.f32 %v16088_v15, %v16080_v42  ;;  %14539 = vmatprep.subr.mxu0 %v16288_v49  ;;  %v13189_v15 = vld [vmem:[%s18699_s8 + $0x50] sm:$0xff] }
0x1e2b   :  { %14526 = vmatmul.mubr.msk.f32.vlgmr.msra.gmra.mrb[46].mxu0 %vm249_vm3, %v5671_v16  ;;  %v15861_v16 = vpack.i.bf16 %v13188_v14, %v13187_v13 }
0x1e2c   :  { %14541 = vmatprep.mubr.msk.f32.mxu0 %vm16289_vm2, %v16288_v49 }
0x1e2f   :  { %14540 = vmatpush3.xpose.msk.msra.mxu0 %vm249_vm3, %v5926_v18 }
0x1e30   :  { %14544 = vmatprep.subr.mxu0 %v16288_v49 }
0x1e32   :  { %14542 = vmatmul.mubr.msk.f32.vlgmr.msra.gmra.mrb[48].mxu0 %vm249_vm3, %v5924_v7 }
0x1e33   :  { %14545 = vmatpush3.xpose.msk.msra.mxu0 %vm249_vm3, %v6004_v19  ;;  %14546 = vmatprep.mubr.msk.f32.mxu0 %vm16289_vm2, %v16288_v49 }
0x1e34   :  { %14549 = vmatprep.subr.mxu0 %v16288_v49 }
0x1e36   :  { %14547 = vmatmul.mubr.msk.f32.vlgmr.msra.gmra.mrb[50].mxu0 %vm249_vm3, %v6002_v20 }
0x1e37   :  { %14551 = vmatprep.mubr.msk.f32.mxu0 %vm16289_vm2, %v16288_v49 }
0x1ec5   :  { %v17418_v21 = vpop.f32.mrb[46].mxu1 }
0x1ec6   :  { %v14460_v22 = vpop.f32.mrb[47].mxu1 }
0x1ec9   :  { %v17420_v17 = vpop.f32.mrb[48].mxu1 }
0x1eca   :  { %v14465_v23 = vpop.f32.mrb[49].mxu1 }
0x1ed0   :  { %v5048_v24 = vpop.f32.mrb[50].mxu1 }
0x1ed1   :  { %v5049_v25 = vadd.f32 %v5048_v24, %v17344_v9  ;;  %v14470_v26 = vpop.f32.mrb[51].mxu1 }
0x1ed3   :  { %v5130_v27 = vsel %vm249_vm3, %v5049_v25, -inf }
0x1ed4   :  { %5131 = vmax.xlane.f32.xlu0 %v5130_v27  ;;  %v5126_v54 = vpop.f32.mrb[52].mxu1 }
0x1ed5   :  { %v5127_v28 = vadd.f32 %v5126_v54, %v17344_v9  ;;  %v14475_v36 = vpop.f32.mrb[53].mxu1 }
0x1ed7   :  { %v5133_v61 = vsel %vm249_vm3, %v5127_v28, -inf }
0x1ed8   :  { %5134 = vmax.xlane.f32.xlu1 %v5133_v61 }
0x1efa   :  { %v17426_v39 = vpop.f32.mrb[44].mxu0 }
0x1efb   :  { %v14522_v30 = vpop.f32.mrb[45].mxu0 }
0x1efe   :  { %v17428_v31 = vpop.f32.mrb[46].mxu0 }
0x1eff   :  { %v14527_v3 = vpop.f32.mrb[47].mxu0 }
0x1f05   :  { %v5997_v32 = vpop.f32.mrb[48].mxu0 }
0x1f06   :  { %v5998_v33 = vadd.f32 %v5997_v32, %v17344_v9  ;;  %v14543_v11 = vpop.f32.mrb[49].mxu0 }
0x1f08   :  { %v6079_v34 = vsel %vm249_vm3, %v5998_v33, -inf }
0x1f09   :  { %6080 = vmax.xlane.f32.xlu0 %v6079_v34  ;;  %v6075_v35 = vpop.f32.mrb[50].mxu0 }
0x1f0a   :  { %v6076_v37 = vadd.f32 %v6075_v35, %v17344_v9  ;;  %v14548_v38 = vpop.f32.mrb[51].mxu0 }
0x1f0c   :  { %v6082_v52 = vsel %vm249_vm3, %v6076_v37, -inf }
0x1f0d   :  { %6083 = vmax.xlane.f32.xlu0 %v6082_v52 }
0x1f61   :  { %v5132_v40 = vpop.xlane.xlu0 %5131 }
0x1f62   :  { %v5136_v41 = vsub.f32 %v5049_v25, %v5132_v40 }
0x1f64   :  { %v5138_v42 = vmul.f32 1.442695, %v5136_v41  ;;  %v15382_v41 = vpack.c.bf16 %v13188_v14, %v13187_v13 }
0x1f65   :  { %v5135_v53 = vpop.xlane.xlu1 %5134 }
0x1f66   :  { %16089 = vpow2.f32 %v5138_v42  ;;  %v5137_v47 = vsub.f32 %v5127_v28, %v5135_v53 }
0x1f68   :  { %v5140_v62 = vmul.f32 1.442695, %v5137_v47 }
0x1f6a   :  { %16091 = vpow2.f32 %v5140_v62 }
0x1f70   :  { %v16090_v0 = vpop.eup %16089 }
0x1f71   :  { %v5142_v1 = vsel %vm249_vm3, %v16090_v0, 0.0 }
0x1f72   :  { %5143 = vadd.xlane.f32.xlu0 %v5142_v1 }
0x1f74   :  { %v16092_v51 = vpop.eup %16091 }
0x1f75   :  { %v5145_v56 = vsel %vm249_vm3, %v16092_v51, 0.0 }
0x1f76   :  { %5146 = vadd.xlane.f32.xlu1 %v5145_v56 }
0x1f87   :  { %5228 = vrot.lane.b32.xlu1 %v17301_v48, %s18727_s18 }
0x1f88   :  { %5152 = vrot.lane.b32.xlu0 %v17303_v55, %s18727_s18 }
0x1f96   :  { %v6081_v57 = vpop.xlane.xlu0 %6080 }
0x1f97   :  { %v6085_v58 = vsub.f32 %v5998_v33, %v6081_v57 }
0x1f99   :  { %v6087_v59 = vmul.f32 1.442695, %v6085_v58 }
0x1f9a   :  { %v6084_v60 = vpop.xlane.xlu0 %6083 }
0x1f9b   :  { %v6086_v2 = vsub.f32 %v6076_v37, %v6084_v60  ;;  %16093 = vpow2.f32 %v6087_v59 }
0x1f9d   :  { %v6089_v44 = vmul.f32 1.442695, %v6086_v2 }
0x1f9f   :  { %16095 = vpow2.f32 %v6089_v44 }
0x1fa5   :  { %v16094_v7 = vpop.eup %16093 }
0x1fa6   :  { %v6091_v10 = vsel %vm249_vm3, %v16094_v7, 0.0 }
0x1fa9   :  { %v16096_v8 = vpop.eup %16095 }
0x1faa   :  { %v6094_v12 = vsel %vm249_vm3, %v16096_v8, 0.0 }
0x1fab   :  { %6092 = vadd.xlane.f32.xlu1 %v6091_v10  ;;  %6095 = vadd.xlane.f32.xlu0 %v6094_v12 }
0x1fbc   :  { %6177 = vrot.lane.b32.xlu1 %v17301_v48, %s18728_s19  ;;  %v13190_v48 = vld [vmem:[%s18699_s8 + $0x58] sm:$0xff] }
0x1fbd   :  { %v15388_v47 = vpack.c.bf16 %v13190_v48, %v13189_v15 }
0x1fc0   :  { %15862 = vrot.lane.b32.xlu1 %v15861_v16, %s16293_s29 }
0x1fc1   :  { %6101 = vrot.lane.b32.xlu0 %v17303_v55, %s18728_s19  ;;  %v15866_v55 = vpack.i.bf16 %v13190_v48, %v13189_v15  ;;  %v13239_v48 = vld [vmem:[%s18700_s9 + $0x2] ss:$0 sm:$0xff] }
0x1fc4   :  { %15867 = vrot.lane.b32.xlu1 %v15866_v55, %s16293_s29 }
0x1fc5   :  { %15872 = vrot.lane.b32.xlu0 %v15861_v16, %s16295_s22 }
0x1fc8   :  { %15877 = vrot.lane.b32.xlu1 %v15866_v55, %s16295_s22 }
0x1fc9   :  { %15882 = vrot.lane.b32.xlu0 %v15861_v16, %s16299_s3 }
0x1fcc   :  { %15887 = vrot.lane.b32.xlu1 %v15866_v55, %s16299_s3 }
0x1fff   :  { %v5144_v18 = vpop.xlane.xlu0 %5143 }
0x2000   :  { %16097 = vrcp.f32 %v5144_v18 }
0x2003   :  { %v5147_v19 = vpop.xlane.xlu1 %5146  ;;  %v5153_v20 = vpop.permute.xlu0 %5152 }
0x2004   :  { %16099 = vrcp.f32 %v5147_v19  ;;  %14477 = vmatpush3.msra.mxu1 %v5153_v20  ;;  %v4415_v19 = vadd.f32 %v17341_v43, %v17118_v50 }
0x2005   :  { %14481 = vmatprep.subr.mxu1 %v16288_v49 }
0x2007   :  { %v5229_v24 = vpop.permute.xlu1 %5228 }
0x200a   :  { %v16098_v22 = vpop.eup %16097 }
0x200b   :  { %v5149_v23 = vmul.f32 %v16098_v22, %v16090_v0  ;;  %v13155_v22 = vld [vmem:[%s18704_s13 + $0x1] ss:$0 sm:$0xff] }
0x200d   :  { %14479 = vmatmul.mubr.msk.f32.vlgmr.msra.gmra.mrb[54].mxu1 %vm249_vm3, %v5149_v23 }
0x200e   :  { %v16100_v25 = vpop.eup %16099  ;;  %14482 = vmatpush3.msra.mxu1 %v5229_v24  ;;  %14483 = vmatprep.mubr.msk.f32.mxu1 %vm16289_vm2, %v16288_v49 }
0x200f   :  { %v5151_v26 = vmul.f32 %v16100_v25, %v16092_v51 }
0x2011   :  { %14484 = vmatmul.mubr.msk.f32.vlgmr.msra.gmra.mrb[56].mxu1 %vm249_vm3, %v5151_v26  ;;  %v4422_v26 = vadd.f32 %v13155_v22, %v4415_v19  ;;  %v13248_v19 = vld [vmem:[%s18697_s6 + $0x1b0] sm:$0xff] }
0x2013   :  { %v4426_v43 = vsel %vm68_vm0, %v4422_v26, 0.0 }
0x2038   :  { %v6093_v27 = vpop.xlane.xlu1 %6092  ;;  %v6096_v54 = vpop.xlane.xlu0 %6095 }
0x2039   :  { %16101 = vrcp.f32 %v6093_v27 }
0x203a   :  { %16103 = vrcp.f32 %v6096_v54 }
0x203c   :  { %v6178_v28 = vpop.permute.xlu1 %6177  ;;  %v6102_v36 = vpop.permute.xlu0 %6101 }
0x203d   :  { %14550 = vmatpush3.msra.mxu0 %v6102_v36 }
0x203e   :  { %14554 = vmatprep.subr.mxu0 %v16288_v49 }
0x2040   :  { %v15863_v61 = vpop.permute.xlu1 %15862  ;;  %v15873_v0 = vpop.permute.xlu0 %15872 }
0x2041   :  { %v15865_v30 = vunpack.i.h.bf16 %v15863_v61  ;;  %v15864_v3 = vunpack.i.l.bf16 %v15863_v61  ;;  %v15875_v51 = vunpack.i.h.bf16 %v15873_v0  ;;  %v15874_v56 = vunpack.i.l.bf16 %v15873_v0 }
0x2043   :  { %v16102_v32 = vpop.eup %16101  ;;  %v15370_v33 = vpack.c.bf16 %v15865_v30, %v15864_v3  ;;  %v15394_v57 = vpack.c.bf16 %v15875_v51, %v15874_v56  ;;  %v13245_v51 = vld [vmem:[%s18697_s6 + $0x198] sm:$0xff] }
0x2044   :  { %v6098_v11 = vmul.f32 %v16102_v32, %v16094_v7  ;;  %v15868_v34 = vpop.permute.xlu1 %15867  ;;  %v16104_v35 = vpop.eup %16103 }
0x2045   :  { %15372 = vmatprep.subr.msk.bf16.mxu1 %vm16600_vm4, %v15370_v33  ;;  %v15870_v37 = vunpack.i.h.bf16 %v15868_v34  ;;  %v15869_v38 = vunpack.i.l.bf16 %v15868_v34  ;;  %v6100_v40 = vmul.f32 %v16104_v35, %v16096_v8  ;;  %v15883_v44 = vpop.permute.xlu0 %15882 }
0x2046   :  { %14552 = vmatmul.mubr.msk.f32.vlgmr.msra.gmra.mrb[52].mxu0 %vm249_vm3, %v6098_v11  ;;  %15375 = vmatpush3.bf16.xpose.msk.msra.mxu1 %vm16600_vm4, %v15370_v33  ;;  %v15884_v7 = vunpack.i.l.bf16 %v15883_v44 }
0x2047   :  { %14555 = vmatpush3.msra.mxu0 %v6178_v28  ;;  %14556 = vmatprep.mubr.msk.f32.mxu0 %vm16289_vm2, %v16288_v49  ;;  %v15376_v52 = vpack.c.bf16 %v15870_v37, %v15869_v38 }
0x2048   :  { %v15878_v58 = vpop.permute.xlu1 %15877 }
0x2049   :  { %15378 = vmatprep.subr.msk.bf16.mxu1 %vm16600_vm4, %v15376_v52  ;;  %v15880_v59 = vunpack.i.h.bf16 %v15878_v58  ;;  %v15879_v60 = vunpack.i.l.bf16 %v15878_v58  ;;  %v13247_v58 = vld [vmem:[%s18697_s6 + $0x1a8] sm:$0xff] }
0x204a   :  { %14557 = vmatmul.mubr.msk.f32.vlgmr.msra.gmra.mrb[54].mxu0 %vm249_vm3, %v6100_v40 }
0x204b   :  { %v15400_v2 = vpack.c.bf16 %v15880_v59, %v15879_v60  ;;  %v17584_v60 = vld [vmem:[%s18698_s7 + $0x4] ss:$0 sm:$0xff] }
0x204c   :  { %v15888_v10 = vpop.permute.xlu1 %15887 }
0x204d   :  { %v15889_v12 = vunpack.i.l.bf16 %v15888_v10 }
0x204e   :  { %15381 = vmatpush3.bf16.xpose.msk.msra.mxu1 %vm16600_vm4, %v15376_v52 }
0x204f   :  { %15384 = vmatprep.subr.msk.bf16.mxu1 %vm16600_vm4, %v15382_v41 }
0x20e0   :  { %v5224_v42 = vpop.f32.mrb[54].mxu1 }
0x20e1   :  { %v14480_v53 = vpop.f32.mrb[55].mxu1  ;;  %14494 = vmatprep.mubr.msk.f32.mxu1 %vm249_vm3, %v5224_v42 }
0x20e4   :  { %v5300_v62 = vpop.f32.mrb[56].mxu1 }
0x20e5   :  { %v14485_v1 = vpop.f32.mrb[57].mxu1  ;;  %14495 = vmatmul.mubr.msk.f32.vlgmr.msra.gmra.mrb[58].mxu1 %vm249_vm3, %v5300_v62  ;;  %v13243_v62 = vld [vmem:[%s18697_s6 + $0x188] sm:$0xff] }
0x20e6   :  { %15387 = vmatpush3.bf16.xpose.msk.msra.mxu1 %vm16600_vm4, %v15382_v41  ;;  %14505 = vmatprep.mubr.msk.f32.mxu1 %vm249_vm3, %v17418_v21  ;;  %v15885_v21 = vunpack.i.h.bf16 %v15883_v44  ;;  %v13244_v1 = vld [vmem:[%s18697_s6 + $0x190] sm:$0xff] }
0x20e7   :  { %15390 = vmatprep.subr.msk.bf16.mxu1 %vm16600_vm4, %v15388_v47  ;;  %v15424_v56 = vpack.c.bf16 %v13245_v51, %v13244_v1 }
0x20e8   :  { %v15406_v8 = vpack.c.bf16 %v15885_v21, %v15884_v7 }
0x20ee   :  { %15393 = vmatpush3.bf16.xpose.msk.msra.mxu1 %vm16600_vm4, %v15388_v47  ;;  %v13242_v47 = vld [vmem:[%s18697_s6 + $0x180] sm:$0xff] }
0x20ef   :  { %15396 = vmatprep.subr.msk.bf16.mxu1 %vm16600_vm4, %v15394_v57  ;;  %v15418_v0 = vpack.c.bf16 %v13243_v62, %v13242_v47 }
0x20f1   :  { %15420 = vmatprep.subr.msk.bf16.mxu0 %vm16412_vm1, %v15418_v0 }
0x20f2   :  { %15423 = vmatpush3.bf16.xpose.msk.msra.mxu0 %vm16412_vm1, %v15418_v0 }
0x20f3   :  { %15426 = vmatprep.subr.msk.bf16.mxu0 %vm16412_vm1, %v15424_v56 }
0x20f5   :  { %14506 = vmatmul.mubr.msk.f32.vlgmr.msra.gmra.mrb[58].mxu1 %vm249_vm3, %v17420_v17  ;;  %v15890_v17 = vunpack.i.h.bf16 %v15888_v10 }
0x20f6   :  { %15399 = vmatpush3.bf16.xpose.msk.msra.mxu1 %vm16600_vm4, %v15394_v57  ;;  %14536 = vmatprep.mubr.msk.f32.mxu1 %vm249_vm3, %v17426_v39  ;;  %v13246_v57 = vld [vmem:[%s18697_s6 + $0x1a0] sm:$0xff] }
0x20f7   :  { %15402 = vmatprep.subr.msk.bf16.mxu1 %vm16600_vm4, %v15400_v2  ;;  %v15412_v13 = vpack.c.bf16 %v15890_v17, %v15889_v12  ;;  %v15430_v59 = vpack.c.bf16 %v13247_v58, %v13246_v57 }
0x20fa   :  { %15429 = vmatpush3.bf16.xpose.msk.msra.mxu0 %vm16412_vm1, %v15424_v56 }
0x20fb   :  { %15432 = vmatprep.subr.msk.bf16.mxu0 %vm16412_vm1, %v15430_v59 }
0x20fe   :  { %15405 = vmatpush3.bf16.xpose.msk.msra.mxu1 %vm16600_vm4, %v15400_v2 }
0x20ff   :  { %15408 = vmatprep.subr.msk.bf16.mxu1 %vm16600_vm4, %v15406_v8 }
0x2105   :  { %14537 = vmatmul.mubr.msk.f32.vlgmr.msra.gmra.mrb[58].mxu1 %vm249_vm3, %v17428_v31 }
0x2106   :  { %15411 = vmatpush3.bf16.xpose.msk.msra.mxu1 %vm16600_vm4, %v15406_v8 }
0x2107   :  { %15414 = vmatprep.subr.msk.bf16.mxu1 %vm16600_vm4, %v15412_v13 }
0x210e   :  { %15417 = vmatpush3.bf16.xpose.msk.msra.mxu1 %vm16600_vm4, %v15412_v13 }
0x210f   :  { %14600 = vmatprep.subr.mxu1 %v16288_v49 }
0x2119   :  { %v6173_v39 = vpop.f32.mrb[52].mxu0 }
0x211a   :  { %v14553_v14 = vpop.f32.mrb[53].mxu0  ;;  %14567 = vmatprep.mubr.msk.f32.mxu1 %vm249_vm3, %v6173_v39 }
0x211b   :  { %v13240_v14 = vld [vmem:[%s18695_s4 + $0x6] ss:$0 sm:$0xff] }
0x211d   :  { %v6249_v15 = vpop.f32.mrb[54].mxu0 }
0x211e   :  { %v14558_v16 = vpop.f32.mrb[55].mxu0  ;;  %14568 = vmatmul.mubr.msk.f32.vlgmr.msra.gmra.mrb[58].mxu1 %vm249_vm3, %v6249_v15 }
0x211f   :  { %14602 = vmatprep.mubr.msk.f32.mxu1 %vm16289_vm2, %v16288_v49 }
0x21f1   :  { %v14569_v31 = vpop.f32.mrb[58].mxu1 }
0x21f2   :  { %v6353_v55 = vadd.f32 %v14569_v31, %v17134_v63  ;;  %v6341_v18 = vpop.f32.mrb[59].mxu1  ;;  %v4416_v63 = vadd.f32 %v17339_v5, %v17116_v45 }
0x21f3   :  { %v6352_v20 = vadd.f32 %v6341_v18, %v17125_v46 }
0x21f4   :  { %v17531_v23 = vadd.f32 %v13239_v48, %v6353_v55  ;;  %v4423_v46 = vadd.f32 %v13155_v22, %v4416_v63 }
0x21f5   :  { %v17533_v24 = vadd.f32 %v13239_v48, %v6352_v20  ;;  %v13241_v48 = vld [vmem:[%s18696_s5 + $0x6] ss:$0 sm:$0xff]  ;;  %v13249_v20 = vld [vmem:[%s18697_s6 + $0x1b8] sm:$0xff] }
0x21f6   :  { %v6366_v25 = vsel %vm68_vm0, %v17531_v23, 0.0  ;;  %v4429_v27 = vsel %vm68_vm0, %v4423_v46, 0.0 }
0x21f7   :  { %6367 = vadd.xlane.f32.xlu1 %v6366_v25  ;;  %v6363_v50 = vsel %vm68_vm0, %v17533_v24, 0.0  ;;  %v13156_v25 = vld [vmem:[%s18695_s4 + $0xa] ss:$0 sm:$0xff] }
0x21f8   :  { %6364 = vadd.xlane.f32.xlu0 %v6363_v50 }
0x21fc   :  { %4427 = vadd.xlane.f32.xlu0 %v4426_v43  ;;  %v13157_v43 = vld [vmem:[%s18696_s5 + $0xa] ss:$0 sm:$0xff] }
0x2200   :  { %4430 = vadd.xlane.f32.xlu0 %v4429_v27  ;;  %v15436_v27 = vpack.c.bf16 %v13249_v20, %v13248_v19 }
0x2284   :  { %v6368_v54 = vpop.xlane.xlu1 %6367 }
0x2285   :  { %v6370_v28 = vmul.f32 0.03125, %v6368_v54  ;;  %v6365_v36 = vpop.xlane.xlu0 %6364 }
0x2286   :  { %v6369_v61 = vmul.f32 0.03125, %v6365_v36 }
0x2287   :  { %v6372_v30 = vsub.f32 %v17531_v23, %v6370_v28 }
0x2288   :  { %v6371_v45 = vsub.f32 %v17533_v24, %v6369_v61  ;;  %v13250_v61 = vld [vmem:[%s18697_s6 + $0x1c0] sm:$0xff] }
0x2289   :  { %v4428_v5 = vpop.xlane.xlu0 %4427  ;;  %v6374_v3 = vmul.f32 %v6372_v30, %v6372_v30 }
0x228a   :  { %v4432_v32 = vmul.f32 0.03125, %v4428_v5  ;;  %v6373_v33 = vmul.f32 %v6371_v45, %v6371_v45 }
0x228b   :  { %v6378_v11 = vsel %vm68_vm0, %v6374_v3, 0.0  ;;  %v13252_v3 = vld [vmem:[%s18697_s6 + $0x1d0] sm:$0xff] }
0x228c   :  { %v4434_v34 = vsub.f32 %v4422_v26, %v4432_v32  ;;  %6379 = vadd.xlane.f32.xlu1 %v6378_v11  ;;  %v6375_v35 = vsel %vm68_vm0, %v6373_v33, 0.0  ;;  %v13253_v32 = vld [vmem:[%s18697_s6 + $0x1d8] sm:$0xff] }
0x228d   :  { %6376 = vadd.xlane.f32.xlu0 %v6375_v35  ;;  %v4431_v37 = vpop.xlane.xlu0 %4430  ;;  %v15448_v33 = vpack.c.bf16 %v13253_v32, %v13252_v3 }
0x228e   :  { %v4433_v38 = vmul.f32 0.03125, %v4431_v37  ;;  %v4436_v52 = vmul.f32 %v4434_v34, %v4434_v34 }
0x2290   :  { %v17547_v40 = vsub.f32 %v4423_v46, %v4433_v38  ;;  %v4438_v41 = vsel %vm68_vm0, %v4436_v52, 0.0 }
0x2291   :  { %4439 = vadd.xlane.f32.xlu0 %v4438_v41 }
0x2292   :  { %v4437_v42 = vmul.f32 %v17547_v40, %v17547_v40 }
0x2294   :  { %v4441_v53 = vsel %vm68_vm0, %v4437_v42, 0.0 }
0x2295   :  { %4442 = vadd.xlane.f32.xlu1 %v4441_v53 }
0x22a7   :  { %6513 = vrot.lane.b32.xlu0 %v17584_v60, %s16290_s26 }
0x2319   :  { %v6380_v2 = vpop.xlane.xlu1 %6379 }
0x231a   :  { %v6382_v44 = vmul.f32 0.03125, %v6380_v2  ;;  %v6377_v21 = vpop.xlane.xlu0 %6376 }
0x231b   :  { %v6381_v7 = vmul.f32 0.03125, %v6377_v21 }
0x231c   :  { %v6384_v8 = vadd.f32 1e-05, %v6382_v44 }
0x231d   :  { %v6383_v10 = vadd.f32 1e-05, %v6381_v7 }
0x231e   :  { %16105 = vrsqrt.f32 %v6384_v8  ;;  %v4440_v17 = vpop.xlane.xlu0 %4439 }
0x231f   :  { %16107 = vrsqrt.f32 %v6383_v10  ;;  %v4444_v12 = vmul.f32 0.03125, %v4440_v17 }
0x2321   :  { %v4446_v13 = vadd.f32 1e-05, %v4444_v12 }
0x2322   :  { %v4443_v50 = vpop.xlane.xlu1 %4442  ;;  %v6514_v41 = vpop.permute.xlu0 %6513 }
0x2323   :  { %16109 = vrsqrt.f32 %v4446_v13  ;;  %v4445_v28 = vmul.f32 0.03125, %v4443_v50 }
0x2328   :  { %v16106_v39 = vpop.eup %16105 }
0x2329   :  { %v16108_v15 = vpop.eup %16107  ;;  %v6388_v16 = vmul.f32 %v16106_v39, %v6372_v30  ;;  %v13251_v30 = vld [vmem:[%s18697_s6 + $0x1c8] sm:$0xff] }
0x232a   :  { %v6387_v31 = vmul.f32 %v16108_v15, %v6371_v45  ;;  %v4447_v45 = vadd.f32 1e-05, %v4445_v28  ;;  %v15442_v5 = vpack.c.bf16 %v13251_v30, %v13250_v61 }
0x232b   :  { %v6394_v55 = vmul.f32 %v13240_v14, %v6388_v16 }
0x232c   :  { %v6393_v18 = vmul.f32 %v13240_v14, %v6387_v31  ;;  %16111 = vrsqrt.f32 %v4447_v45 }
0x232d   :  { %v16110_v22 = vpop.eup %16109  ;;  %v6400_v46 = vadd.f32 %v13241_v48, %v6394_v55 }
0x232e   :  { %v6399_v63 = vadd.f32 %v13241_v48, %v6393_v18  ;;  %v4450_v26 = vmul.f32 %v16110_v22, %v4434_v34 }
0x2330   :  { %14578 = vmatprep.mubr.msk.f32.mxu0 %vm68_vm0, %v6399_v63  ;;  %v4456_v54 = vmul.f32 %v13156_v25, %v4450_v26 }
0x2331   :  { %14579 = vmatmul.mubr.msk.f32.vlgmr.msra.gmra.mrb[56].mxu0 %vm68_vm0, %v6400_v46 }
0x2332   :  { %15435 = vmatpush3.bf16.xpose.msk.msra.mxu0 %vm16412_vm1, %v15430_v59  ;;  %v17610_v36 = vadd.f32 %v13157_v43, %v4456_v54 }
0x2333   :  { %15438 = vmatprep.subr.msk.bf16.mxu0 %vm16412_vm1, %v15436_v27 }
0x2334   :  { %14597 = vmatprep.mubr.msk.f32.mxu0 %vm68_vm0, %v17610_v36 }
0x2336   :  { %v16112_v11 = vpop.eup %16111 }
0x2337   :  { %v4451_v34 = vmul.f32 %v16112_v11, %v17547_v40 }
0x2339   :  { %v4457_v35 = vmul.f32 %v13156_v25, %v4451_v34 }
0x233a   :  { %15441 = vmatpush3.bf16.xpose.msk.msra.mxu0 %vm16412_vm1, %v15436_v27 }
0x233b   :  { %15444 = vmatprep.subr.msk.bf16.mxu0 %vm16412_vm1, %v15442_v5  ;;  %v17639_v37 = vadd.f32 %v13157_v43, %v4457_v35 }
0x2342   :  { %15447 = vmatpush3.bf16.xpose.msk.msra.mxu0 %vm16412_vm1, %v15442_v5 }
0x2343   :  { %15450 = vmatprep.subr.msk.bf16.mxu0 %vm16412_vm1, %v15448_v33 }
0x234a   :  { %15453 = vmatpush3.bf16.xpose.msk.msra.mxu0 %vm16412_vm1, %v15448_v33 }
0x2351   :  { %14598 = vmatmul.mubr.msk.f32.vlgmr.msra.gmra.mrb[58].mxu0 %vm68_vm0, %v17639_v37 }
0x2404   :  { %v14580_v38 = vpop.f32.mrb[56].mxu0 }
0x2405   :  { %v6503_v52 = vpop.f32.mrb[57].mxu0  ;;  %v17664_v0 = vadd.f32 %v14580_v38, %v17584_v60 }
0x2406   :  { %v17652_v40 = vadd.f32 %v17584_v60, %v6503_v52 }
0x2424   :  { %v14599_v42 = vpop.f32.mrb[58].mxu0 }
0x2425   :  { %v17643_v53 = vadd.f32 %v14599_v42, %v6514_v41  ;;  %v6612_v47 = vpop.f32.mrb[59].mxu0 }
0x2426   :  { %v17645_v62 = vadd.f32 %v6612_v47, %v6514_v41 }
0x2427   :  { %6876 = vrot.lane.b32.xlu0 %v17643_v53, %s16290_s26 }
0x2428   :  { %14601 = vmatpush3.xpose.msk.msra.mxu1 %vm249_vm3, %v17645_v62 }
0x2429   :  { %14605 = vmatprep.subr.mxu1 %v16288_v49 }
0x242b   :  { %6954 = vrot.lane.b32.xlu0 %v17645_v62, %s16293_s29  ;;  %14603 = vmatmul.mubr.msk.f32.vlgmr.msra.gmra.mrb[60].mxu1 %vm249_vm3, %v17652_v40 }
0x242c   :  { %14606 = vmatpush3.xpose.msk.msra.mxu1 %vm249_vm3, %v17643_v53  ;;  %14607 = vmatprep.mubr.msk.f32.mxu1 %vm16289_vm2, %v16288_v49 }
0x242d   :  { %14610 = vmatprep.subr.mxu1 %v16288_v49 }
0x242f   :  { %6952 = vrot.lane.b32.xlu0 %v17652_v40, %s16293_s29  ;;  %14608 = vmatmul.mubr.msk.f32.vlgmr.msra.gmra.mrb[62].mxu1 %vm249_vm3, %v17664_v0 }
0x2430   :  { %14612 = vmatprep.mubr.msk.f32.mxu1 %vm16289_vm2, %v16288_v49 }
0x2433   :  { %7030 = vrot.lane.b32.xlu0 %v17664_v0, %s16293_s29 }
0x2499   :  { %v6877_v16 = vpop.permute.xlu0 %6876 }
0x249d   :  { %v6955_v18 = vpop.permute.xlu0 %6954 }
0x24a1   :  { %v6953_v20 = vpop.permute.xlu0 %6952 }
0x24a5   :  { %v7031_v25 = vpop.permute.xlu0 %7030 }
0x24fe   :  { %v6698_v1 = vpop.f32.mrb[60].mxu1 }
0x24ff   :  { %v14604_v51 = vpop.f32.mrb[61].mxu1  ;;  %v6778_v56 = vsel %vm249_vm3, %v6698_v1, -inf }
0x2500   :  { %6779 = vmax.xlane.f32.xlu1 %v6778_v56 }
0x2502   :  { %v6774_v57 = vpop.f32.mrb[62].mxu1 }
0x2503   :  { %v14609_v58 = vpop.f32.mrb[63].mxu1  ;;  %v6781_v59 = vsel %vm249_vm3, %v6774_v57, -inf }
0x2504   :  { %6782 = vmax.xlane.f32.xlu1 %v6781_v59 }
0x2515   :  { %6800 = vrot.lane.b32.xlu1 %v17645_v62, %s16290_s26 }
0x258d   :  { %v6780_v60 = vpop.xlane.xlu1 %6779 }
0x258e   :  { %v6784_v2 = vsub.f32 %v6698_v1, %v6780_v60 }
0x2590   :  { %v6786_v44 = vmul.f32 1.442695, %v6784_v2 }
0x2591   :  { %v6783_v21 = vpop.xlane.xlu1 %6782 }
0x2592   :  { %16113 = vpow2.f32 %v6786_v44  ;;  %v6785_v7 = vsub.f32 %v6774_v57, %v6783_v21 }
0x2594   :  { %v6788_v8 = vmul.f32 1.442695, %v6785_v7 }
0x2595   :  { %v6801_v10 = vpop.permute.xlu1 %6800 }
0x2596   :  { %16115 = vpow2.f32 %v6788_v8  ;;  %14611 = vmatpush3.msra.mxu1 %v6801_v10 }
0x2597   :  { %14615 = vmatprep.subr.mxu1 %v16288_v49 }
0x259c   :  { %v16114_v17 = vpop.eup %16113 }
0x259d   :  { %v6790_v12 = vsel %vm249_vm3, %v16114_v17, 0.0 }
0x259e   :  { %6791 = vadd.xlane.f32.xlu1 %v6790_v12 }
0x25a0   :  { %v16116_v13 = vpop.eup %16115 }
0x25a1   :  { %v6793_v39 = vsel %vm249_vm3, %v16116_v13, 0.0 }
0x25a2   :  { %6794 = vadd.xlane.f32.xlu1 %v6793_v39 }
0x25b3   :  { %7032 = vrot.lane.b32.xlu1 %v17643_v53, %s16293_s29 }
0x262b   :  { %v6792_v14 = vpop.xlane.xlu1 %6791 }
0x262c   :  { %16117 = vrcp.f32 %v6792_v14 }
0x262f   :  { %v6795_v15 = vpop.xlane.xlu1 %6794 }
0x2630   :  { %16119 = vrcp.f32 %v6795_v15 }
0x2633   :  { %v7033_v22 = vpop.permute.xlu1 %7032 }
0x2636   :  { %v16118_v31 = vpop.eup %16117 }
0x2637   :  { %v6797_v48 = vmul.f32 %v16118_v31, %v16114_v17 }
0x2639   :  { %14613 = vmatmul.mubr.msk.f32.vlgmr.msra.gmra.mrb[64].mxu1 %vm249_vm3, %v6797_v48 }
0x263a   :  { %v16120_v55 = vpop.eup %16119  ;;  %14616 = vmatpush3.msra.mxu1 %v6877_v16  ;;  %14617 = vmatprep.mubr.msk.f32.mxu1 %vm16289_vm2, %v16288_v49 }
0x263b   :  { %v6799_v19 = vmul.f32 %v16120_v55, %v16116_v13  ;;  %14620 = vmatprep.subr.mxu1 %v16288_v49 }
0x263d   :  { %14618 = vmatmul.mubr.msk.f32.vlgmr.msra.gmra.mrb[66].mxu1 %vm249_vm3, %v6799_v19 }
0x263e   :  { %14622 = vmatprep.mubr.msk.f32.mxu1 %vm16289_vm2, %v16288_v49 }
0x2641   :  { %14621 = vmatpush3.xpose.msk.msra.mxu1 %vm249_vm3, %v6955_v18 }
0x2642   :  { %14625 = vmatprep.subr.mxu1 %v16288_v49 }
0x2644   :  { %14623 = vmatmul.mubr.msk.f32.vlgmr.msra.gmra.mrb[68].mxu1 %vm249_vm3, %v6953_v20 }
0x2645   :  { %14626 = vmatpush3.xpose.msk.msra.mxu1 %vm249_vm3, %v7033_v22  ;;  %14627 = vmatprep.mubr.msk.f32.mxu1 %vm16289_vm2, %v16288_v49 }
0x2646   :  { %14630 = vmatprep.subr.mxu1 %v16288_v49 }
0x2648   :  { %14628 = vmatmul.mubr.msk.f32.vlgmr.msra.gmra.mrb[70].mxu1 %vm249_vm3, %v7031_v25 }
0x2649   :  { %14632 = vmatprep.mubr.msk.f32.mxu1 %vm16289_vm2, %v16288_v49 }
0x270c   :  { %v17701_v63 = vpop.f32.mrb[64].mxu1 }
0x270d   :  { %v14614_v26 = vpop.f32.mrb[65].mxu1 }
0x2710   :  { %v17703_v50 = vpop.f32.mrb[66].mxu1 }
0x2711   :  { %v14619_v46 = vpop.f32.mrb[67].mxu1 }
0x2717   :  { %v7026_v43 = vpop.f32.mrb[68].mxu1 }
0x2718   :  { %v14624_v27 = vpop.f32.mrb[69].mxu1  ;;  %v7108_v54 = vsel %vm249_vm3, %v7026_v43, -inf }
0x2719   :  { %7109 = vmax.xlane.f32.xlu1 %v7108_v54 }
0x271b   :  { %v7104_v28 = vpop.f32.mrb[70].mxu1 }
0x271c   :  { %v14629_v61 = vpop.f32.mrb[71].mxu1  ;;  %v7111_v30 = vsel %vm249_vm3, %v7104_v28, -inf }
0x271d   :  { %7112 = vmax.xlane.f32.xlu0 %v7111_v30 }
0x272a   :  { %7130 = vrot.lane.b32.xlu1 %v17645_v62, %s16292_s28 }
0x272e   :  { %7474 = vrot.lane.b32.xlu1 %v17645_v62, %s16295_s22 }
0x2732   :  { %7472 = vrot.lane.b32.xlu1 %v17652_v40, %s16295_s22 }
0x2736   :  { %7552 = vrot.lane.b32.xlu1 %v17643_v53, %s16295_s22 }
0x27a6   :  { %v7110_v45 = vpop.xlane.xlu1 %7109 }
0x27a7   :  { %v7114_v5 = vsub.f32 %v7026_v43, %v7110_v45 }
0x27a9   :  { %v7116_v3 = vmul.f32 1.442695, %v7114_v5 }
0x27aa   :  { %v7131_v32 = vpop.permute.xlu1 %7130  ;;  %v7113_v33 = vpop.xlane.xlu0 %7112 }
0x27ab   :  { %16121 = vpow2.f32 %v7116_v3  ;;  %v7115_v11 = vsub.f32 %v7104_v28, %v7113_v33  ;;  %14631 = vmatpush3.msra.mxu1 %v7131_v32 }
0x27ac   :  { %14635 = vmatprep.subr.mxu1 %v16288_v49 }
0x27ad   :  { %v7118_v34 = vmul.f32 1.442695, %v7115_v11 }
0x27ae   :  { %v7475_v56 = vpop.permute.xlu1 %7474 }
0x27af   :  { %16123 = vpow2.f32 %v7118_v34 }
0x27b2   :  { %v7473_v60 = vpop.permute.xlu1 %7472 }
0x27b5   :  { %v16122_v35 = vpop.eup %16121 }
0x27b6   :  { %v7120_v38 = vsel %vm249_vm3, %v16122_v35, 0.0  ;;  %v7553_v2 = vpop.permute.xlu1 %7552 }
0x27b7   :  { %7121 = vadd.xlane.f32.xlu0 %v7120_v38 }
0x27b9   :  { %v16124_v52 = vpop.eup %16123 }
0x27ba   :  { %v7123_v41 = vsel %vm249_vm3, %v16124_v52, 0.0 }
0x27bb   :  { %7124 = vadd.xlane.f32.xlu0 %v7123_v41 }
0x27d1   :  { %7206 = vrot.lane.b32.xlu0 %v17643_v53, %s16292_s28 }
0x27d5   :  { %7550 = vrot.lane.b32.xlu0 %v17664_v0, %s16295_s22 }
0x2844   :  { %v7122_v42 = vpop.xlane.xlu0 %7121 }
0x2845   :  { %16125 = vrcp.f32 %v7122_v42 }
0x2848   :  { %v7125_v47 = vpop.xlane.xlu0 %7124 }
0x2849   :  { %16127 = vrcp.f32 %v7125_v47 }
0x284c   :  { %v7207_v57 = vpop.permute.xlu0 %7206 }
0x284f   :  { %v16126_v1 = vpop.eup %16125 }
0x2850   :  { %v7127_v51 = vmul.f32 %v16126_v1, %v16122_v35  ;;  %v7551_v44 = vpop.permute.xlu0 %7550  ;;  %v13271_v1 = vld [vmem:[%s18699_s8 + $0x80] sm:$0xff] }
0x2852   :  { %14633 = vmatmul.mubr.msk.f32.vlgmr.msra.gmra.mrb[72].mxu1 %vm249_vm3, %v7127_v51  ;;  %v13272_v51 = vld [vmem:[%s18699_s8 + $0x88] sm:$0xff] }
0x2853   :  { %v16128_v58 = vpop.eup %16127  ;;  %14636 = vmatpush3.msra.mxu1 %v7207_v57  ;;  %14637 = vmatprep.mubr.msk.f32.mxu1 %vm16289_vm2, %v16288_v49  ;;  %v13273_v57 = vld [vmem:[%s18699_s8 + $0x90] sm:$0xff] }
0x2854   :  { %v7129_v59 = vmul.f32 %v16128_v58, %v16124_v52  ;;  %14662 = vmatprep.subr.mxu1 %v16288_v49  ;;  %v13274_v58 = vld [vmem:[%s18699_s8 + $0x98] sm:$0xff] }
0x2856   :  { %14638 = vmatmul.mubr.msk.f32.vlgmr.msra.gmra.mrb[74].mxu1 %vm249_vm3, %v7129_v59  ;;  %v15896_v59 = vpack.i.bf16 %v13274_v58, %v13273_v57 }
0x2857   :  { %14664 = vmatprep.mubr.msk.f32.mxu1 %vm16289_vm2, %v16288_v49 }
0x285a   :  { %14663 = vmatpush3.xpose.msk.msra.mxu1 %vm249_vm3, %v7475_v56  ;;  %v15891_v56 = vpack.i.bf16 %v13272_v51, %v13271_v1 }
0x285b   :  { %14667 = vmatprep.subr.mxu1 %v16288_v49 }
0x285d   :  { %14665 = vmatmul.mubr.msk.f32.vlgmr.msra.gmra.mrb[76].mxu1 %vm249_vm3, %v7473_v60 }
0x285e   :  { %14668 = vmatpush3.xpose.msk.msra.mxu1 %vm249_vm3, %v7553_v2  ;;  %14669 = vmatprep.mubr.msk.f32.mxu1 %vm16289_vm2, %v16288_v49 }
0x285f   :  { %14672 = vmatprep.subr.mxu1 %v16288_v49 }
0x2861   :  { %14670 = vmatmul.mubr.msk.f32.vlgmr.msra.gmra.mrb[78].mxu1 %vm249_vm3, %v7551_v44 }
0x2862   :  { %14674 = vmatprep.mubr.msk.f32.mxu1 %vm16289_vm2, %v16288_v49 }
0x2925   :  { %v7202_v21 = vpop.f32.mrb[72].mxu1 }
0x2926   :  { %v14634_v7 = vpop.f32.mrb[73].mxu1  ;;  %14648 = vmatprep.mubr.msk.f32.mxu0 %vm249_vm3, %v7202_v21 }
0x2929   :  { %v17740_v8 = vpop.f32.mrb[74].mxu1 }
0x292a   :  { %v14639_v10 = vpop.f32.mrb[75].mxu1 }
0x2930   :  { %v7546_v17 = vpop.f32.mrb[76].mxu1 }
0x2931   :  { %v14666_v12 = vpop.f32.mrb[77].mxu1  ;;  %v7628_v13 = vsel %vm249_vm3, %v7546_v17, -inf }
0x2932   :  { %7629 = vmax.xlane.f32.xlu1 %v7628_v13 }
0x2934   :  { %v7624_v39 = vpop.f32.mrb[78].mxu1 }
0x2935   :  { %v14671_v14 = vpop.f32.mrb[79].mxu1  ;;  %v7631_v15 = vsel %vm249_vm3, %v7624_v39, -inf }
0x2936   :  { %7632 = vmax.xlane.f32.xlu0 %v7631_v15 }
0x2943   :  { %7650 = vrot.lane.b32.xlu1 %v17645_v62, %s16296_s23 }
0x2947   :  { %7903 = vrot.lane.b32.xlu1 %v17645_v62, %s16299_s3 }
0x294b   :  { %7901 = vrot.lane.b32.xlu1 %v17652_v40, %s16299_s3 }
0x294f   :  { %7981 = vrot.lane.b32.xlu1 %v17643_v53, %s16299_s3 }
0x29bf   :  { %v7630_v16 = vpop.xlane.xlu1 %7629 }
0x29c0   :  { %v7634_v31 = vsub.f32 %v7546_v17, %v7630_v16 }
0x29c2   :  { %v7636_v48 = vmul.f32 1.442695, %v7634_v31 }
0x29c3   :  { %v7651_v55 = vpop.permute.xlu1 %7650  ;;  %v7633_v18 = vpop.xlane.xlu0 %7632 }
0x29c4   :  { %16129 = vpow2.f32 %v7636_v48  ;;  %v7635_v19 = vsub.f32 %v7624_v39, %v7633_v18  ;;  %14673 = vmatpush3.msra.mxu1 %v7651_v55 }
0x29c5   :  { %14677 = vmatprep.subr.mxu1 %v16288_v49 }
0x29c6   :  { %v7638_v20 = vmul.f32 1.442695, %v7635_v19  ;;  %v15466_v19 = vpack.c.bf16 %v13272_v51, %v13271_v1 }
0x29c7   :  { %v7904_v28 = vpop.permute.xlu1 %7903 }
0x29c8   :  { %16131 = vpow2.f32 %v7638_v20 }
0x29ce   :  { %v16130_v22 = vpop.eup %16129 }
0x29cf   :  { %v7640_v25 = vsel %vm249_vm3, %v16130_v22, 0.0 }
0x29d0   :  { %7641 = vadd.xlane.f32.xlu0 %v7640_v25 }
0x29d2   :  { %v16132_v40 = vpop.eup %16131 }
0x29d3   :  { %v7643_v26 = vsel %vm249_vm3, %v16132_v40, 0.0 }
0x29d4   :  { %7644 = vadd.xlane.f32.xlu0 %v7643_v26 }
0x29ea   :  { %7726 = vrot.lane.b32.xlu0 %v17643_v53, %s16296_s23 }
0x29ee   :  { %7979 = vrot.lane.b32.xlu0 %v17664_v0, %s16299_s3  ;;  %v7902_v0 = vpop.permute.xlu1 %7901 }
0x29f2   :  { %v7982_v5 = vpop.permute.xlu1 %7981 }
0x2a5d   :  { %v7642_v46 = vpop.xlane.xlu0 %7641 }
0x2a5e   :  { %16133 = vrcp.f32 %v7642_v46 }
0x2a61   :  { %v7645_v43 = vpop.xlane.xlu0 %7644 }
0x2a62   :  { %16135 = vrcp.f32 %v7645_v43 }
0x2a65   :  { %v7727_v61 = vpop.permute.xlu0 %7726 }
0x2a68   :  { %v16134_v27 = vpop.eup %16133 }
0x2a69   :  { %v7647_v54 = vmul.f32 %v16134_v27, %v16130_v22  ;;  %v7980_v3 = vpop.permute.xlu0 %7979  ;;  %v15472_v22 = vpack.c.bf16 %v13274_v58, %v13273_v57 }
0x2a6b   :  { %14675 = vmatmul.mubr.msk.f32.vlgmr.msra.gmra.mrb[80].mxu1 %vm249_vm3, %v7647_v54 }
0x2a6c   :  { %v16136_v30 = vpop.eup %16135  ;;  %14678 = vmatpush3.msra.mxu1 %v7727_v61  ;;  %14679 = vmatprep.mubr.msk.f32.mxu1 %vm16289_vm2, %v16288_v49 }
0x2a6d   :  { %v7649_v45 = vmul.f32 %v16136_v30, %v16132_v40  ;;  %14693 = vmatprep.subr.mxu1 %v16288_v49 }
0x2a6f   :  { %14680 = vmatmul.mubr.msk.f32.vlgmr.msra.gmra.mrb[82].mxu1 %vm249_vm3, %v7649_v45 }
0x2a70   :  { %14695 = vmatprep.mubr.msk.f32.mxu1 %vm16289_vm2, %v16288_v49 }
0x2a73   :  { %14694 = vmatpush3.xpose.msk.msra.mxu1 %vm249_vm3, %v7904_v28 }
0x2a74   :  { %14698 = vmatprep.subr.mxu1 %v16288_v49 }
0x2a76   :  { %14696 = vmatmul.mubr.msk.f32.vlgmr.msra.gmra.mrb[84].mxu1 %vm249_vm3, %v7902_v0 }
0x2a77   :  { %14699 = vmatpush3.xpose.msk.msra.mxu1 %vm249_vm3, %v7982_v5  ;;  %14700 = vmatprep.mubr.msk.f32.mxu1 %vm16289_vm2, %v16288_v49 }
0x2a78   :  { %14703 = vmatprep.subr.mxu1 %v16288_v49 }
0x2a7a   :  { %14701 = vmatmul.mubr.msk.f32.vlgmr.msra.gmra.mrb[86].mxu1 %vm249_vm3, %v7980_v3 }
0x2a7b   :  { %14705 = vmatprep.mubr.msk.f32.mxu1 %vm16289_vm2, %v16288_v49 }
0x2b3e   :  { %v17776_v32 = vpop.f32.mrb[80].mxu1 }
0x2b3f   :  { %v14676_v33 = vpop.f32.mrb[81].mxu1 }
0x2b42   :  { %v17778_v11 = vpop.f32.mrb[82].mxu1 }
0x2b43   :  { %v14681_v34 = vpop.f32.mrb[83].mxu1 }
0x2b49   :  { %v7975_v35 = vpop.f32.mrb[84].mxu1 }
0x2b4a   :  { %v14697_v38 = vpop.f32.mrb[85].mxu1  ;;  %v8057_v52 = vsel %vm249_vm3, %v7975_v35, -inf }
0x2b4b   :  { %8058 = vmax.xlane.f32.xlu1 %v8057_v52 }
0x2b4d   :  { %v8053_v41 = vpop.f32.mrb[86].mxu1 }
0x2b4e   :  { %v14702_v42 = vpop.f32.mrb[87].mxu1  ;;  %v8060_v47 = vsel %vm249_vm3, %v8053_v41, -inf }
0x2b4f   :  { %8061 = vmax.xlane.f32.xlu0 %v8060_v47 }
0x2b5c   :  { %8079 = vrot.lane.b32.xlu1 %v17645_v62, %s18730_s20 }
0x2b60   :  { %15892 = vrot.lane.b32.xlu1 %v15891_v56, %s16293_s29 }
0x2b64   :  { %15897 = vrot.lane.b32.xlu1 %v15896_v59, %s16293_s29 }
0x2b68   :  { %15902 = vrot.lane.b32.xlu1 %v15891_v56, %s16295_s22 }
0x2b6c   :  { %15912 = vrot.lane.b32.xlu1 %v15891_v56, %s16299_s3 }
0x2bd8   :  { %v8059_v60 = vpop.xlane.xlu1 %8058 }
0x2bd9   :  { %v8063_v2 = vsub.f32 %v7975_v35, %v8059_v60 }
0x2bdb   :  { %v8065_v44 = vmul.f32 1.442695, %v8063_v2 }
0x2bdc   :  { %v8080_v62 = vpop.permute.xlu1 %8079  ;;  %v8062_v21 = vpop.xlane.xlu0 %8061 }
0x2bdd   :  { %16137 = vpow2.f32 %v8065_v44  ;;  %v8064_v7 = vsub.f32 %v8053_v41, %v8062_v21  ;;  %14704 = vmatpush3.msra.mxu1 %v8080_v62  ;;  %v13326_v44 = vld [vmem:[%s18701_s10 + $0x80] sm:$0xff] }
0x2bde   :  { %14708 = vmatprep.subr.mxu1 %v16288_v49 }
0x2bdf   :  { %v8067_v10 = vmul.f32 1.442695, %v8064_v7 }
0x2be0   :  { %v15893_v17 = vpop.permute.xlu1 %15892 }
0x2be1   :  { %16139 = vpow2.f32 %v8067_v10  ;;  %v15895_v12 = vunpack.i.h.bf16 %v15893_v17  ;;  %v15894_v13 = vunpack.i.l.bf16 %v15893_v17 }
0x2be3   :  { %v15454_v39 = vpack.c.bf16 %v15895_v12, %v15894_v13 }
0x2be4   :  { %v15898_v14 = vpop.permute.xlu1 %15897 }
0x2be5   :  { %15456 = vmatprep.subr.msk.bf16.mxu0 %vm16600_vm4, %v15454_v39  ;;  %v15900_v15 = vunpack.i.h.bf16 %v15898_v14  ;;  %v15899_v16 = vunpack.i.l.bf16 %v15898_v14 }
0x2be6   :  { %15459 = vmatpush3.bf16.xpose.msk.msra.mxu0 %vm16600_vm4, %v15454_v39 }
0x2be7   :  { %v16138_v31 = vpop.eup %16137  ;;  %v15460_v48 = vpack.c.bf16 %v15900_v15, %v15899_v16  ;;  %v13328_v16 = vld [vmem:[%s18701_s10 + $0x90] sm:$0xff] }
0x2be8   :  { %v8069_v55 = vsel %vm249_vm3, %v16138_v31, 0.0  ;;  %v15903_v25 = vpop.permute.xlu1 %15902 }
0x2be9   :  { %8070 = vadd.xlane.f32.xlu0 %v8069_v55  ;;  %15462 = vmatprep.subr.msk.bf16.mxu0 %vm16600_vm4, %v15460_v48  ;;  %v15905_v40 = vunpack.i.h.bf16 %v15903_v25  ;;  %v15904_v26 = vunpack.i.l.bf16 %v15903_v25  ;;  %v13330_v55 = vld [vmem:[%s18701_s10 + $0xa0] sm:$0xff] }
0x2beb   :  { %v16140_v18 = vpop.eup %16139  ;;  %v15478_v46 = vpack.c.bf16 %v15905_v40, %v15904_v26 }
0x2bec   :  { %v8072_v20 = vsel %vm249_vm3, %v16140_v18, 0.0  ;;  %v15913_v61 = vpop.permute.xlu1 %15912 }
0x2bed   :  { %8073 = vadd.xlane.f32.xlu0 %v8072_v20  ;;  %v15915_v30 = vunpack.i.h.bf16 %v15913_v61  ;;  %v15914_v45 = vunpack.i.l.bf16 %v15913_v61  ;;  %v13332_v20 = vld [vmem:[%s18701_s10 + $0xb0] sm:$0xff] }
0x2bee   :  { %15465 = vmatpush3.bf16.xpose.msk.msra.mxu0 %vm16600_vm4, %v15460_v48 }
0x2bef   :  { %15468 = vmatprep.subr.msk.bf16.mxu0 %vm16600_vm4, %v15466_v19 }
0x2bf5   :  { %14649 = vmatmul.mubr.msk.f32.vlgmr.msra.gmra.mrb[60].mxu0 %vm249_vm3, %v17740_v8 }
0x2bf6   :  { %15471 = vmatpush3.bf16.xpose.msk.msra.mxu0 %vm16600_vm4, %v15466_v19  ;;  %14659 = vmatprep.mubr.msk.f32.mxu0 %vm249_vm3, %v17701_v63 }
0x2bf7   :  { %15474 = vmatprep.subr.msk.bf16.mxu0 %vm16600_vm4, %v15472_v22 }
0x2bfe   :  { %15477 = vmatpush3.bf16.xpose.msk.msra.mxu0 %vm16600_vm4, %v15472_v22  ;;  %v13333_v22 = vld [vmem:[%s18701_s10 + $0xb8] sm:$0xff] }
0x2bff   :  { %15480 = vmatprep.subr.msk.bf16.mxu0 %vm16600_vm4, %v15478_v46  ;;  %v15520_v25 = vpack.c.bf16 %v13333_v22, %v13332_v20 }
0x2c03   :  { %8155 = vrot.lane.b32.xlu0 %v17643_v53, %s18730_s20 }
0x2c05   :  { %14660 = vmatmul.mubr.msk.f32.vlgmr.msra.gmra.mrb[60].mxu0 %vm249_vm3, %v17703_v50 }
0x2c06   :  { %14690 = vmatprep.mubr.msk.f32.mxu0 %vm249_vm3, %v17776_v32  ;;  %15483 = vmatpush3.bf16.xpose.msk.msra.mxu0 %vm16600_vm4, %v15478_v46  ;;  %v15490_v32 = vpack.c.bf16 %v15915_v30, %v15914_v45 }
0x2c07   :  { %15907 = vrot.lane.b32.xlu0 %v15896_v59, %s16295_s22 }
0x2c0b   :  { %15917 = vrot.lane.b32.xlu0 %v15896_v59, %s16299_s3 }
0x2c76   :  { %v8071_v63 = vpop.xlane.xlu0 %8070 }
0x2c77   :  { %16141 = vrcp.f32 %v8071_v63 }
0x2c7a   :  { %v8074_v8 = vpop.xlane.xlu0 %8073 }
0x2c7b   :  { %16143 = vrcp.f32 %v8074_v8 }
0x2c7e   :  { %v8156_v53 = vpop.permute.xlu0 %8155 }
0x2c81   :  { %v16142_v43 = vpop.eup %16141 }
0x2c82   :  { %v15908_v27 = vpop.permute.xlu0 %15907  ;;  %v8076_v50 = vmul.f32 %v16142_v43, %v16138_v31  ;;  %v13329_v31 = vld [vmem:[%s18701_s10 + $0x98] sm:$0xff] }
0x2c83   :  { %v15910_v54 = vunpack.i.h.bf16 %v15908_v27  ;;  %v15909_v28 = vunpack.i.l.bf16 %v15908_v27  ;;  %v15508_v48 = vpack.c.bf16 %v13329_v31, %v13328_v16  ;;  %v13324_v27 = vld [vmem:[%s18695_s4 + $0x8] ss:$0 sm:$0xff]  ;;  %v13355_v16 = vld [vmem:[%s18704_s13 + $0x2] ss:$0 sm:$0xff] }
0x2c84   :  { %14706 = vmatmul.mubr.msk.f32.vlgmr.msra.gmra.mrb[88].mxu1 %vm249_vm3, %v8076_v50 }
0x2c85   :  { %v16144_v0 = vpop.eup %16143  ;;  %v15484_v5 = vpack.c.bf16 %v15910_v54, %v15909_v28  ;;  %14709 = vmatpush3.msra.mxu1 %v8156_v53  ;;  %14710 = vmatprep.mubr.msk.f32.mxu1 %vm16289_vm2, %v16288_v49  ;;  %v13325_v54 = vld [vmem:[%s18696_s5 + $0x8] ss:$0 sm:$0xff] }
0x2c86   :  { %v8078_v3 = vmul.f32 %v16144_v0, %v16140_v18  ;;  %v15918_v33 = vpop.permute.xlu0 %15917  ;;  %v13331_v18 = vld [vmem:[%s18701_s10 + $0xa8] sm:$0xff] }
0x2c87   :  { %15486 = vmatprep.subr.msk.bf16.mxu0 %vm16600_vm4, %v15484_v5  ;;  %v15920_v34 = vunpack.i.h.bf16 %v15918_v33  ;;  %v15919_v35 = vunpack.i.l.bf16 %v15918_v33  ;;  %v15514_v19 = vpack.c.bf16 %v13331_v18, %v13330_v55 }
0x2c88   :  { %15489 = vmatpush3.bf16.xpose.msk.msra.mxu0 %vm16600_vm4, %v15484_v5  ;;  %14711 = vmatmul.mubr.msk.f32.vlgmr.msra.gmra.mrb[90].mxu1 %vm249_vm3, %v8078_v3  ;;  %v13345_v3 = vld [vmem:[%s18703_s12 + $0x40] sm:$0xff] }
0x2c89   :  { %15492 = vmatprep.subr.msk.bf16.mxu0 %vm16600_vm4, %v15490_v32  ;;  %v15496_v38 = vpack.c.bf16 %v15920_v34, %v15919_v35  ;;  %v13347_v34 = vld [vmem:[%s18703_s12 + $0x50] sm:$0xff]  ;;  %v13348_v35 = vld [vmem:[%s18703_s12 + $0x58] sm:$0xff] }
0x2c8f   :  { %14691 = vmatmul.mubr.msk.f32.vlgmr.msra.gmra.mrb[60].mxu0 %vm249_vm3, %v17778_v11  ;;  %v13323_v11 = vld [vmem:[%s18700_s9 + $0x4] ss:$0 sm:$0xff] }
0x2c90   :  { %15495 = vmatpush3.bf16.xpose.msk.msra.mxu0 %vm16600_vm4, %v15490_v32  ;;  %v13346_v32 = vld [vmem:[%s18703_s12 + $0x48] sm:$0xff] }
0x2c91   :  { %15498 = vmatprep.subr.msk.bf16.mxu0 %vm16600_vm4, %v15496_v38  ;;  %v15526_v33 = vpack.c.bf16 %v13346_v32, %v13345_v3 }
0x2c98   :  { %15501 = vmatpush3.bf16.xpose.msk.msra.mxu0 %vm16600_vm4, %v15496_v38  ;;  %v15532_v38 = vpack.c.bf16 %v13348_v35, %v13347_v34  ;;  %v13366_v34 = vld [vmem:[%s18697_s6 + $0x160] sm:$0xff]  ;;  %v13367_v35 = vld [vmem:[%s18697_s6 + $0x168] sm:$0xff] }
0x2c99   :  { %15528 = vmatprep.subr.msk.bf16.mxu0 %vm16798_vm6, %v15526_v33 }
0x2d57   :  { %v8151_v52 = vpop.f32.mrb[88].mxu1 }
0x2d58   :  { %v14707_v41 = vpop.f32.mrb[89].mxu1  ;;  %14721 = vmatprep.mubr.msk.f32.mxu0 %vm249_vm3, %v8151_v52  ;;  %v13334_v52 = vld [vmem:[%s18702_s11 + $0x2] ss:$0 sm:$0xff] }
0x2d5b   :  { %v8227_v42 = vpop.f32.mrb[90].mxu1 }
0x2d5c   :  { %v14712_v47 = vpop.f32.mrb[91].mxu1  ;;  %14722 = vmatmul.mubr.msk.f32.vlgmr.msra.gmra.mrb[60].mxu0 %vm249_vm3, %v8227_v42 }
0x2d5d   :  { %15531 = vmatpush3.bf16.xpose.msk.msra.mxu0 %vm16798_vm6, %v15526_v33 }
0x2d5e   :  { %15534 = vmatprep.subr.msk.bf16.mxu0 %vm16798_vm6, %v15532_v38 }
0x2d65   :  { %15537 = vmatpush3.bf16.xpose.msk.msra.mxu0 %vm16798_vm6, %v15532_v38  ;;  %v15562_v38 = vpack.c.bf16 %v13367_v35, %v13366_v34 }
0x2d66   :  { %14781 = vmatprep.subr.mxu0 %v16288_v49 }
0x2e2f   :  { %v14723_v1 = vpop.f32.mrb[60].mxu0 }
0x2e30   :  { %v8331_v51 = vadd.f32 %v14723_v1, %v17531_v23  ;;  %v8319_v56 = vpop.f32.mrb[61].mxu0  ;;  %v13327_v23 = vld [vmem:[%s18701_s10 + $0x88] sm:$0xff] }
0x2e31   :  { %v8330_v57 = vadd.f32 %v8319_v56, %v17533_v24  ;;  %v15502_v24 = vpack.c.bf16 %v13327_v23, %v13326_v44 }
0x2e32   :  { %v17860_v58 = vadd.f32 %v13323_v11, %v8331_v51 }
0x2e33   :  { %v17862_v59 = vadd.f32 %v13323_v11, %v8330_v57  ;;  %15504 = vmatprep.subr.msk.bf16.mxu1 %vm16412_vm1, %v15502_v24 }
0x2e34   :  { %v8344_v60 = vsel %vm68_vm0, %v17860_v58, 0.0  ;;  %15507 = vmatpush3.bf16.xpose.msk.msra.mxu1 %vm16412_vm1, %v15502_v24 }
0x2e35   :  { %8345 = vadd.xlane.f32.xlu0 %v8344_v60  ;;  %v8341_v2 = vsel %vm68_vm0, %v17862_v59, 0.0  ;;  %15510 = vmatprep.subr.msk.bf16.mxu1 %vm16412_vm1, %v15508_v48 }
0x2e36   :  { %8342 = vadd.xlane.f32.xlu1 %v8341_v2 }
0x2e3c   :  { %15513 = vmatpush3.bf16.xpose.msk.msra.mxu1 %vm16412_vm1, %v15508_v48 }
0x2e3d   :  { %15516 = vmatprep.subr.msk.bf16.mxu1 %vm16412_vm1, %v15514_v19 }
0x2e44   :  { %15519 = vmatpush3.bf16.xpose.msk.msra.mxu1 %vm16412_vm1, %v15514_v19 }
0x2e45   :  { %15522 = vmatprep.subr.msk.bf16.mxu1 %vm16412_vm1, %v15520_v25 }
0x2e4c   :  { %15525 = vmatpush3.bf16.xpose.msk.msra.mxu1 %vm16412_vm1, %v15520_v25  ;;  %v13358_v25 = vld [vmem:[%s18697_s6 + $0x120] sm:$0xff] }
0x2ec2   :  { %v8346_v62 = vpop.xlane.xlu0 %8345 }
0x2ec3   :  { %v8348_v21 = vmul.f32 0.03125, %v8346_v62  ;;  %v8343_v7 = vpop.xlane.xlu1 %8342 }
0x2ec4   :  { %v8347_v10 = vmul.f32 0.03125, %v8343_v7 }
0x2ec5   :  { %v8350_v17 = vsub.f32 %v17860_v58, %v8348_v21 }
0x2ec6   :  { %v8349_v12 = vsub.f32 %v17862_v59, %v8347_v10 }
0x2ec7   :  { %v8352_v14 = vmul.f32 %v8350_v17, %v8350_v17 }
0x2ec8   :  { %v8351_v13 = vmul.f32 %v8349_v12, %v8349_v12 }
0x2ec9   :  { %v8356_v15 = vsel %vm68_vm0, %v8352_v14, 0.0 }
0x2eca   :  { %v8353_v39 = vsel %vm68_vm0, %v8351_v13, 0.0 }
0x2ecb   :  { %8354 = vadd.xlane.f32.xlu0 %v8353_v39 }
0x2ecf   :  { %8357 = vadd.xlane.f32.xlu0 %v8356_v15 }
0x2f58   :  { %v8355_v40 = vpop.xlane.xlu0 %8354 }
0x2f59   :  { %v8359_v26 = vmul.f32 0.03125, %v8355_v40 }
0x2f5b   :  { %v8361_v46 = vadd.f32 1e-05, %v8359_v26  ;;  %v13361_v26 = vld [vmem:[%s18697_s6 + $0x138] sm:$0xff] }
0x2f5c   :  { %v8358_v63 = vpop.xlane.xlu0 %8357 }
0x2f5d   :  { %16145 = vrsqrt.f32 %v8361_v46  ;;  %v8360_v8 = vmul.f32 0.03125, %v8358_v63  ;;  %v13362_v63 = vld [vmem:[%s18697_s6 + $0x140] sm:$0xff] }
0x2f5f   :  { %v8362_v53 = vadd.f32 1e-05, %v8360_v8  ;;  %v13363_v8 = vld [vmem:[%s18697_s6 + $0x148] sm:$0xff] }
0x2f61   :  { %16147 = vrsqrt.f32 %v8362_v53  ;;  %v15550_v53 = vpack.c.bf16 %v13363_v8, %v13362_v63 }
0x2f67   :  { %v16146_v43 = vpop.eup %16145 }
0x2f68   :  { %v8365_v50 = vmul.f32 %v16146_v43, %v8349_v12  ;;  %v13364_v43 = vld [vmem:[%s18697_s6 + $0x150] sm:$0xff] }
0x2f6a   :  { %v8371_v28 = vmul.f32 %v13324_v27, %v8365_v50 }
0x2f6b   :  { %v16148_v61 = vpop.eup %16147 }
0x2f6c   :  { %v8366_v30 = vmul.f32 %v16148_v61, %v8350_v17  ;;  %v8377_v45 = vadd.f32 %v13325_v54, %v8371_v28 }
0x2f6e   :  { %v8372_v0 = vmul.f32 %v13324_v27, %v8366_v30  ;;  %14740 = vmatprep.mubr.msk.f32.mxu1 %vm68_vm0, %v8377_v45  ;;  %v13365_v27 = vld [vmem:[%s18697_s6 + $0x158] sm:$0xff] }
0x2f6f   :  { %v15556_v50 = vpack.c.bf16 %v13365_v27, %v13364_v43 }
0x2f70   :  { %v8378_v5 = vadd.f32 %v13325_v54, %v8372_v0 }
0x2f72   :  { %14741 = vmatmul.mubr.msk.f32.vlgmr.msra.gmra.mrb[92].mxu1 %vm68_vm0, %v8378_v5 }
0x3045   :  { %v14742_v41 = vpop.f32.mrb[92].mxu1 }
0x3046   :  { %v8495_v42 = vadd.f32 %v14742_v41, %v13334_v52  ;;  %v8489_v47 = vpop.f32.mrb[93].mxu1  ;;  %v13369_v41 = vld [vmem:[%s18697_s6 + $0x178] sm:$0xff] }
0x3047   :  { %v8490_v1 = vadd.f32 %v13334_v52, %v8489_v47  ;;  %v13368_v52 = vld [vmem:[%s18697_s6 + $0x170] sm:$0xff] }
0x3048   :  { %v8501_v11 = vmul.f32 0.044715, %v8495_v42  ;;  %v8499_v13 = vmul.f32 0.5, %v8495_v42 }
0x3049   :  { %v8500_v51 = vmul.f32 0.044715, %v8490_v1  ;;  %v8498_v17 = vmul.f32 0.5, %v8490_v1 }
0x304a   :  { %v8503_v56 = vmul.f32 %v8501_v11, %v8495_v42 }
0x304b   :  { %v8502_v57 = vmul.f32 %v8500_v51, %v8490_v1 }
0x304c   :  { %v8505_v60 = vmul.f32 %v8503_v56, %v8495_v42 }
0x304d   :  { %v8504_v2 = vmul.f32 %v8502_v57, %v8490_v1 }
0x304e   :  { %v8507_v44 = vadd.f32 %v8505_v60, %v8495_v42  ;;  %v15568_v42 = vpack.c.bf16 %v13369_v41, %v13368_v52 }
0x304f   :  { %v8506_v23 = vadd.f32 %v8504_v2, %v8490_v1  ;;  %v13356_v2 = vld [vmem:[%s18695_s4 + $0x5] ss:$0 sm:$0xff] }
0x3050   :  { %v8509_v24 = vmul.f32 0.7978846, %v8507_v44 }
0x3051   :  { %v8508_v62 = vmul.f32 0.7978846, %v8506_v23 }
0x3052   :  { %16149 = vtanh.f32 %v8509_v24 }
0x3053   :  { %16151 = vtanh.f32 %v8508_v62  ;;  %v13357_v62 = vld [vmem:[%s18696_s5 + $0x5] ss:$0 sm:$0xff] }
0x305c   :  { %v16150_v21 = vpop.eup %16149 }
0x305d   :  { %v16152_v7 = vpop.eup %16151  ;;  %v8513_v10 = vadd.f32 1.0, %v16150_v21 }
0x305e   :  { %v8512_v12 = vadd.f32 1.0, %v16152_v7 }
0x305f   :  { %v8515_v14 = vmul.f32 %v8513_v10, %v8499_v13 }
0x3060   :  { %v8514_v39 = vmul.f32 %v8512_v12, %v8498_v17  ;;  %v13370_v12 = vld [vmem:[%s18698_s7 + $0x3] ss:$0 sm:$0xff] }
0x3062   :  { %14751 = vmatprep.mubr.msk.f32.mxu0 %vm2142_vm5, %v8514_v39 }
0x3063   :  { %14752 = vmatmul.mubr.msk.f32.vlgmr.msra.gmra.mrb[62].mxu0 %vm2142_vm5, %v8515_v14 }
0x3064   :  { %14783 = vmatprep.mubr.msk.f32.mxu0 %vm16289_vm2, %v16288_v49 }
0x3136   :  { %v14753_v15 = vpop.f32.mrb[62].mxu0 }
0x3137   :  { %v8615_v31 = vadd.f32 %v14753_v15, %v17860_v58  ;;  %v8605_v48 = vpop.f32.mrb[63].mxu0  ;;  %v13359_v58 = vld [vmem:[%s18697_s6 + $0x128] sm:$0xff] }
0x3138   :  { %v8614_v55 = vadd.f32 %v8605_v48, %v17862_v59  ;;  %v13360_v59 = vld [vmem:[%s18697_s6 + $0x130] sm:$0xff]  ;;  %v15538_v40 = vpack.c.bf16 %v13359_v58, %v13358_v25 }
0x3139   :  { %v17953_v18 = vadd.f32 %v13355_v16, %v8615_v31  ;;  %v15544_v46 = vpack.c.bf16 %v13361_v26, %v13360_v59 }
0x313a   :  { %v17955_v19 = vadd.f32 %v13355_v16, %v8614_v55  ;;  %15540 = vmatprep.subr.msk.bf16.mxu1 %vm16412_vm1, %v15538_v40 }
0x313b   :  { %v8628_v20 = vsel %vm68_vm0, %v17953_v18, 0.0  ;;  %15543 = vmatpush3.bf16.xpose.msk.msra.mxu1 %vm16412_vm1, %v15538_v40 }
0x313c   :  { %8629 = vadd.xlane.f32.xlu0 %v8628_v20  ;;  %v8625_v22 = vsel %vm68_vm0, %v17955_v19, 0.0  ;;  %15546 = vmatprep.subr.msk.bf16.mxu1 %vm16412_vm1, %v15544_v46 }
0x313d   :  { %8626 = vadd.xlane.f32.xlu1 %v8625_v22 }
0x3143   :  { %15549 = vmatpush3.bf16.xpose.msk.msra.mxu1 %vm16412_vm1, %v15544_v46 }
0x3144   :  { %15552 = vmatprep.subr.msk.bf16.mxu1 %vm16412_vm1, %v15550_v53 }
0x314b   :  { %15555 = vmatpush3.bf16.xpose.msk.msra.mxu1 %vm16412_vm1, %v15550_v53 }
0x314c   :  { %15558 = vmatprep.subr.msk.bf16.mxu1 %vm16412_vm1, %v15556_v50 }
0x3153   :  { %15561 = vmatpush3.bf16.xpose.msk.msra.mxu1 %vm16412_vm1, %v15556_v50 }
0x3154   :  { %15564 = vmatprep.subr.msk.bf16.mxu1 %vm16412_vm1, %v15562_v38 }
0x315b   :  { %15567 = vmatpush3.bf16.xpose.msk.msra.mxu1 %vm16412_vm1, %v15562_v38 }
0x315c   :  { %15570 = vmatprep.subr.msk.bf16.mxu1 %vm16412_vm1, %v15568_v42 }
0x3163   :  { %15573 = vmatpush3.bf16.xpose.msk.msra.mxu1 %vm16412_vm1, %v15568_v42 }
0x3164   :  { %14843 = vmatprep.subr.mxu1 %v16288_v49 }
0x31c9   :  { %v8630_v54 = vpop.xlane.xlu0 %8629 }
0x31ca   :  { %v8632_v28 = vmul.f32 0.03125, %v8630_v54  ;;  %v8627_v61 = vpop.xlane.xlu1 %8626 }
0x31cb   :  { %v8631_v30 = vmul.f32 0.03125, %v8627_v61 }
0x31cc   :  { %v8634_v45 = vsub.f32 %v17953_v18, %v8632_v28 }
0x31cd   :  { %v8633_v0 = vsub.f32 %v17955_v19, %v8631_v30 }
0x31ce   :  { %v8636_v5 = vmul.f32 %v8634_v45, %v8634_v45 }
0x31cf   :  { %v8635_v3 = vmul.f32 %v8633_v0, %v8633_v0 }
0x31d0   :  { %v8640_v32 = vsel %vm68_vm0, %v8636_v5, 0.0 }
0x31d1   :  { %8641 = vadd.xlane.f32.xlu0 %v8640_v32  ;;  %v8637_v33 = vsel %vm68_vm0, %v8635_v3, 0.0 }
0x31d2   :  { %8638 = vadd.xlane.f32.xlu1 %v8637_v33 }
0x325e   :  { %v8642_v47 = vpop.xlane.xlu0 %8641 }
0x325f   :  { %v8644_v1 = vmul.f32 0.03125, %v8642_v47  ;;  %v8639_v11 = vpop.xlane.xlu1 %8638 }
0x3260   :  { %v8643_v51 = vmul.f32 0.03125, %v8639_v11 }
0x3261   :  { %v8646_v56 = vadd.f32 1e-05, %v8644_v1 }
0x3262   :  { %v8645_v57 = vadd.f32 1e-05, %v8643_v51 }
0x3263   :  { %16153 = vrsqrt.f32 %v8646_v56 }
0x3264   :  { %16155 = vrsqrt.f32 %v8645_v57 }
0x326d   :  { %v16154_v60 = vpop.eup %16153 }
0x326e   :  { %v16156_v44 = vpop.eup %16155  ;;  %v8650_v23 = vmul.f32 %v16154_v60, %v8634_v45 }
0x326f   :  { %v8649_v24 = vmul.f32 %v16156_v44, %v8633_v0 }
0x3270   :  { %v8656_v21 = vmul.f32 %v13356_v2, %v8650_v23 }
0x3271   :  { %v8655_v7 = vmul.f32 %v13356_v2, %v8649_v24 }
0x3272   :  { %v8662_v17 = vadd.f32 %v13357_v62, %v8656_v21 }
0x3273   :  { %v8661_v10 = vadd.f32 %v13357_v62, %v8655_v7 }
0x3275   :  { %14778 = vmatprep.mubr.msk.f32.mxu1 %vm68_vm0, %v8661_v10 }
0x3276   :  { %14779 = vmatmul.mubr.msk.f32.vlgmr.msra.gmra.mrb[94].mxu1 %vm68_vm0, %v8662_v17 }
0x3277   :  { %14845 = vmatprep.mubr.msk.f32.mxu1 %vm16289_vm2, %v16288_v49 }
0x3349   :  { %v14780_v13 = vpop.f32.mrb[94].mxu1 }
0x334a   :  { %v18039_v39 = vadd.f32 %v14780_v13, %v13370_v12  ;;  %v8789_v14 = vpop.f32.mrb[95].mxu1 }
0x334b   :  { %v18041_v15 = vadd.f32 %v13370_v12, %v8789_v14 }
0x334c   :  { %8881 = vrot.lane.b32.xlu0 %v18039_v39, %s16290_s26 }
0x334d   :  { %8804 = vrot.lane.b32.xlu1 %v18041_v15, %s16290_s26 }
0x3350   :  { %9729 = vrot.lane.b32.xlu0 %v18039_v39, %s16295_s22 }
0x3351   :  { %9653 = vrot.lane.b32.xlu1 %v18041_v15, %s16296_s23 }
0x3355   :  { %9651 = vrot.lane.b32.xlu1 %v18041_v15, %s16295_s22 }
0x3359   :  { %9731 = vrot.lane.b32.xlu1 %v18039_v39, %s16296_s23 }
0x33be   :  { %v8882_v31 = vpop.permute.xlu0 %8881 }
0x33bf   :  { %v8805_v16 = vpop.permute.xlu1 %8804 }
0x33c0   :  { %14782 = vmatpush3.xpose.msk.msra.mxu0 %vm249_vm3, %v8805_v16 }
0x33c1   :  { %14786 = vmatprep.subr.mxu0 %v16288_v49 }
0x33c2   :  { %v9730_v22 = vpop.permute.xlu0 %9729 }
0x33c3   :  { %14784 = vmatmul.mubr.msk.f32.vlgmr.msra.gmra.mrb[64].mxu0 %vm249_vm3, %v18041_v15  ;;  %v9654_v48 = vpop.permute.xlu1 %9653 }
0x33c4   :  { %14787 = vmatpush3.xpose.msk.msra.mxu0 %vm249_vm3, %v8882_v31  ;;  %14844 = vmatpush3.xpose.msk.msra.mxu1 %vm249_vm3, %v9654_v48 }
0x33c5   :  { %14788 = vmatprep.mubr.msk.f32.mxu0 %vm16289_vm2, %v16288_v49  ;;  %14848 = vmatprep.subr.mxu1 %v16288_v49 }
0x33c6   :  { %14791 = vmatprep.subr.mxu0 %v16288_v49 }
0x33c7   :  { %14789 = vmatmul.mubr.msk.f32.vlgmr.msra.gmra.mrb[66].mxu0 %vm249_vm3, %v18039_v39  ;;  %v9652_v55 = vpop.permute.xlu1 %9651 }
0x33c8   :  { %14846 = vmatmul.mubr.msk.f32.vlgmr.msra.gmra.mrb[96].mxu1 %vm249_vm3, %v9652_v55  ;;  %14793 = vmatprep.mubr.msk.f32.mxu0 %vm16289_vm2, %v16288_v49 }
0x33c9   :  { %14850 = vmatprep.mubr.msk.f32.mxu1 %vm16289_vm2, %v16288_v49 }
0x33cb   :  { %v9732_v20 = vpop.permute.xlu1 %9731 }
0x33cc   :  { %14849 = vmatpush3.xpose.msk.msra.mxu1 %vm249_vm3, %v9732_v20 }
0x33cd   :  { %14853 = vmatprep.subr.mxu1 %v16288_v49 }
0x33cf   :  { %14851 = vmatmul.mubr.msk.f32.vlgmr.msra.gmra.mrb[98].mxu1 %vm249_vm3, %v9730_v22 }
0x33d0   :  { %14855 = vmatprep.mubr.msk.f32.mxu1 %vm16289_vm2, %v16288_v49 }
0x3496   :  { %v8876_v25 = vpop.f32.mrb[64].mxu0 }
0x3497   :  { %v8877_v58 = vadd.f32 %v8876_v25, %v17344_v9  ;;  %v14785_v59 = vpop.f32.mrb[65].mxu0 }
0x3499   :  { %v8957_v40 = vsel %vm249_vm3, %v8877_v58, -inf }
0x349a   :  { %8958 = vmax.xlane.f32.xlu1 %v8957_v40  ;;  %v8953_v26 = vpop.f32.mrb[66].mxu0 }
0x349b   :  { %v14790_v46 = vpop.f32.mrb[67].mxu0  ;;  %v9725_v63 = vpop.f32.mrb[96].mxu1  ;;  %v8954_v43 = vadd.f32 %v8953_v26, %v17344_v9 }
0x349c   :  { %v9726_v8 = vadd.f32 %v9725_v63, %v17344_v9  ;;  %v14847_v53 = vpop.f32.mrb[97].mxu1 }
0x349d   :  { %v8960_v54 = vsel %vm249_vm3, %v8954_v43, -inf }
0x349e   :  { %v9807_v27 = vsel %vm249_vm3, %v9726_v8, -inf }
0x349f   :  { %9808 = vmax.xlane.f32.xlu0 %v9807_v27 }
0x34a2   :  { %v9803_v50 = vpop.f32.mrb[98].mxu1 }
0x34a3   :  { %8961 = vmax.xlane.f32.xlu0 %v8960_v54  ;;  %v14852_v28 = vpop.f32.mrb[99].mxu1  ;;  %v9804_v61 = vadd.f32 %v9803_v50, %v17344_v9 }
0x34a5   :  { %v9810_v30 = vsel %vm249_vm3, %v9804_v61, -inf }
0x34ab   :  { %8979 = vrot.lane.b32.xlu1 %v18041_v15, %s18731_s1 }
0x34af   :  { %9133 = vrot.lane.b32.xlu1 %v18041_v15, %s16292_s28 }
0x34b3   :  { %9131 = vrot.lane.b32.xlu1 %v18041_v15, %s16293_s29 }
0x34b9   :  { %9055 = vrot.lane.b32.xlu0 %v18039_v39, %s18731_s1 }
0x34d8   :  { %9811 = vmax.xlane.f32.xlu0 %v9810_v30 }
0x34ee   :  { %9209 = vrot.lane.b32.xlu0 %v18039_v39, %s16293_s29 }
0x3527   :  { %v8959_v45 = vpop.xlane.xlu1 %8958 }
0x3528   :  { %v8963_v0 = vsub.f32 %v8877_v58, %v8959_v45 }
0x352a   :  { %v8965_v5 = vmul.f32 1.442695, %v8963_v0 }
0x352b   :  { %v8980_v3 = vpop.permute.xlu1 %8979 }
0x352c   :  { %16157 = vpow2.f32 %v8965_v5  ;;  %v9809_v32 = vpop.xlane.xlu0 %9808  ;;  %14792 = vmatpush3.msra.mxu0 %v8980_v3 }
0x352d   :  { %14796 = vmatprep.subr.mxu0 %v16288_v49  ;;  %v9813_v47 = vsub.f32 %v9726_v8, %v9809_v32 }
0x352f   :  { %v9815_v1 = vmul.f32 1.442695, %v9813_v47  ;;  %v9134_v24 = vpop.permute.xlu1 %9133 }
0x3530   :  { %v8962_v33 = vpop.xlane.xlu0 %8961 }
0x3531   :  { %v8964_v34 = vsub.f32 %v8954_v43, %v8962_v33 }
0x3533   :  { %v8967_v35 = vmul.f32 1.442695, %v8964_v34  ;;  %v9132_v62 = vpop.permute.xlu1 %9131 }
0x3534   :  { %v9056_v11 = vpop.permute.xlu0 %9055 }
0x3535   :  { %16159 = vpow2.f32 %v8967_v35 }
0x3536   :  { %v16158_v38 = vpop.eup %16157  ;;  %16161 = vpow2.f32 %v9815_v1 }
0x3537   :  { %v8969_v52 = vsel %vm249_vm3, %v16158_v38, 0.0 }
0x3538   :  { %8970 = vadd.xlane.f32.xlu1 %v8969_v52 }
0x353f   :  { %v16160_v41 = vpop.eup %16159 }
0x3540   :  { %v8972_v42 = vsel %vm249_vm3, %v16160_v41, 0.0  ;;  %v16162_v60 = vpop.eup %16161 }
0x3541   :  { %8973 = vadd.xlane.f32.xlu0 %v8972_v42  ;;  %v9819_v2 = vsel %vm249_vm3, %v16162_v60, 0.0 }
0x3549   :  { %9211 = vrot.lane.b32.xlu1 %v18039_v39, %s16292_s28 }
0x3557   :  { %9829 = vrot.lane.b32.xlu0 %v18041_v15, %s18729_s2 }
0x3565   :  { %v9812_v51 = vpop.xlane.xlu0 %9811 }
0x3566   :  { %v9814_v56 = vsub.f32 %v9804_v61, %v9812_v51 }
0x3568   :  { %v9817_v57 = vmul.f32 1.442695, %v9814_v56 }
0x3569   :  { %v9210_v7 = vpop.permute.xlu0 %9209 }
0x356a   :  { %16163 = vpow2.f32 %v9817_v57 }
0x356d   :  { %9820 = vadd.xlane.f32.xlu1 %v9819_v2 }
0x3574   :  { %v16164_v44 = vpop.eup %16163 }
0x3575   :  { %v9822_v23 = vsel %vm249_vm3, %v16164_v44, 0.0 }
0x3576   :  { %9823 = vadd.xlane.f32.xlu0 %v9822_v23 }
0x357e   :  { %9905 = vrot.lane.b32.xlu1 %v18039_v39, %s18729_s2  ;;  %s16283_s2 = smov 0  }
0x3582   :  { %10082 = vrot.lane.b32.xlu1 %v18041_v15, %s18730_s20 }
0x3586   :  { %10160 = vrot.lane.b32.xlu1 %v18039_v39, %s18730_s20 }
0x358c   :  { %10080 = vrot.lane.b32.xlu0 %v18041_v15, %s16299_s3 }
0x3590   :  { %10158 = vrot.lane.b32.xlu0 %v18039_v39, %s16299_s3 }
0x35c5   :  { %v8971_v21 = vpop.xlane.xlu1 %8970 }
0x35c6   :  { %16165 = vrcp.f32 %v8971_v21 }
0x35c9   :  { %v9212_v31 = vpop.permute.xlu1 %9211 }
0x35ce   :  { %v8974_v10 = vpop.xlane.xlu0 %8973 }
0x35cf   :  { %16167 = vrcp.f32 %v8974_v10 }
0x35d0   :  { %v16166_v17 = vpop.eup %16165 }
0x35d1   :  { %v8976_v12 = vmul.f32 %v16166_v17, %v16158_v38 }
0x35d2   :  { %v9830_v13 = vpop.permute.xlu0 %9829 }
0x35d3   :  { %14794 = vmatmul.mubr.msk.f32.vlgmr.msra.gmra.mrb[68].mxu0 %vm249_vm3, %v8976_v12  ;;  %14854 = vmatpush3.msra.mxu1 %v9830_v13 }
0x35d4   :  { %14797 = vmatpush3.msra.mxu0 %v9056_v11  ;;  %14798 = vmatprep.mubr.msk.f32.mxu0 %vm16289_vm2, %v16288_v49 }
0x35d5   :  { %14801 = vmatprep.subr.mxu0 %v16288_v49  ;;  %14858 = vmatprep.subr.mxu1 %v16288_v49 }
0x35d9   :  { %v16168_v14 = vpop.eup %16167 }
0x35da   :  { %v8978_v16 = vmul.f32 %v16168_v14, %v16160_v41 }
0x35dc   :  { %14799 = vmatmul.mubr.msk.f32.vlgmr.msra.gmra.mrb[70].mxu0 %vm249_vm3, %v8978_v16 }
0x35dd   :  { %14802 = vmatpush3.xpose.msk.msra.mxu0 %vm249_vm3, %v9134_v24  ;;  %14803 = vmatprep.mubr.msk.f32.mxu0 %vm16289_vm2, %v16288_v49 }
0x35de   :  { %14806 = vmatprep.subr.mxu0 %v16288_v49 }
0x35e0   :  { %14804 = vmatmul.mubr.msk.f32.vlgmr.msra.gmra.mrb[72].mxu0 %vm249_vm3, %v9132_v62 }
0x35e1   :  { %14807 = vmatpush3.xpose.msk.msra.mxu0 %vm249_vm3, %v9212_v31  ;;  %14808 = vmatprep.mubr.msk.f32.mxu0 %vm16289_vm2, %v16288_v49 }
0x35e2   :  { %14811 = vmatprep.subr.mxu0 %v16288_v49 }
0x35e4   :  { %14809 = vmatmul.mubr.msk.f32.vlgmr.msra.gmra.mrb[74].mxu0 %vm249_vm3, %v9210_v7 }
0x35e5   :  { %14813 = vmatprep.mubr.msk.f32.mxu0 %vm16289_vm2, %v16288_v49 }
0x35fa   :  { %v9821_v48 = vpop.xlane.xlu1 %9820 }
0x35fb   :  { %16169 = vrcp.f32 %v9821_v48 }
0x35fe   :  { %v9906_v25 = vpop.permute.xlu1 %9905 }
0x3602   :  { %v10083_v59 = vpop.permute.xlu1 %10082 }
0x3603   :  { %v9824_v55 = vpop.xlane.xlu0 %9823 }
0x3604   :  { %16171 = vrcp.f32 %v9824_v55  ;;  %v13385_v55 = vld [vmem:[%s18699_s8 + $0x60] sm:$0xff] }
0x3605   :  { %v16170_v20 = vpop.eup %16169 }
0x3606   :  { %v9826_v22 = vmul.f32 %v16170_v20, %v16162_v60  ;;  %v10161_v46 = vpop.permute.xlu1 %10160  ;;  %v13386_v20 = vld [vmem:[%s18699_s8 + $0x68] sm:$0xff] }
0x3607   :  { %v10081_v26 = vpop.permute.xlu0 %10080 }
0x3608   :  { %14856 = vmatmul.mubr.msk.f32.vlgmr.msra.gmra.mrb[100].mxu1 %vm249_vm3, %v9826_v22  ;;  %v13387_v22 = vld [vmem:[%s18699_s8 + $0x70] sm:$0xff] }
0x3609   :  { %14859 = vmatpush3.msra.mxu1 %v9906_v25  ;;  %14860 = vmatprep.mubr.msk.f32.mxu1 %vm16289_vm2, %v16288_v49  ;;  %v15921_v25 = vpack.i.bf16 %v13386_v20, %v13385_v55 }
0x360a   :  { %14874 = vmatprep.subr.mxu1 %v16288_v49 }
0x360b   :  { %v10159_v63 = vpop.permute.xlu0 %10158 }
0x360e   :  { %v16172_v58 = vpop.eup %16171 }
0x360f   :  { %v9828_v40 = vmul.f32 %v16172_v58, %v16164_v44 }
0x3611   :  { %14861 = vmatmul.mubr.msk.f32.vlgmr.msra.gmra.mrb[102].mxu1 %vm249_vm3, %v9828_v40 }
0x3612   :  { %14875 = vmatpush3.xpose.msk.msra.mxu1 %vm249_vm3, %v10083_v59  ;;  %14876 = vmatprep.mubr.msk.f32.mxu1 %vm16289_vm2, %v16288_v49 }
0x3613   :  { %14879 = vmatprep.subr.mxu1 %v16288_v49 }
0x3615   :  { %14877 = vmatmul.mubr.msk.f32.vlgmr.msra.gmra.mrb[104].mxu1 %vm249_vm3, %v10081_v26 }
0x3616   :  { %14880 = vmatpush3.xpose.msk.msra.mxu1 %vm249_vm3, %v10161_v46  ;;  %14881 = vmatprep.mubr.msk.f32.mxu1 %vm16289_vm2, %v16288_v49 }
0x3617   :  { %14884 = vmatprep.subr.mxu1 %v16288_v49 }
0x3619   :  { %14882 = vmatmul.mubr.msk.f32.vlgmr.msra.gmra.mrb[106].mxu1 %vm249_vm3, %v10159_v63 }
0x361a   :  { %14886 = vmatprep.mubr.msk.f32.mxu1 %vm16289_vm2, %v16288_v49 }
0x36a6   :  { %v18149_v8 = vpop.f32.mrb[68].mxu0 }
0x36a7   :  { %v14795_v53 = vpop.f32.mrb[69].mxu0 }
0x36af   :  { %v18151_v43 = vpop.f32.mrb[70].mxu0 }
0x36b0   :  { %v14800_v27 = vpop.f32.mrb[71].mxu0 }
0x36b3   :  { %v9205_v50 = vpop.f32.mrb[72].mxu0 }
0x36b4   :  { %v9206_v54 = vadd.f32 %v9205_v50, %v17344_v9  ;;  %v14805_v28 = vpop.f32.mrb[73].mxu0 }
0x36b6   :  { %v9287_v61 = vsel %vm249_vm3, %v9206_v54, -inf }
0x36b7   :  { %9288 = vmax.xlane.f32.xlu1 %v9287_v61  ;;  %v9283_v30 = vpop.f32.mrb[74].mxu0 }
0x36b8   :  { %v9284_v45 = vadd.f32 %v9283_v30, %v17344_v9  ;;  %v14810_v0 = vpop.f32.mrb[75].mxu0 }
0x36ba   :  { %v9290_v5 = vsel %vm249_vm3, %v9284_v45, -inf }
0x36bb   :  { %9291 = vmax.xlane.f32.xlu0 %v9290_v5 }
0x36db   :  { %v18157_v3 = vpop.f32.mrb[100].mxu1 }
0x36dc   :  { %v14857_v32 = vpop.f32.mrb[101].mxu1 }
0x36e4   :  { %v18159_v33 = vpop.f32.mrb[102].mxu1 }
0x36e5   :  { %v14862_v34 = vpop.f32.mrb[103].mxu1 }
0x36e8   :  { %v10154_v35 = vpop.f32.mrb[104].mxu1 }
0x36e9   :  { %v10155_v38 = vadd.f32 %v10154_v35, %v17344_v9  ;;  %v14878_v52 = vpop.f32.mrb[105].mxu1 }
0x36eb   :  { %v10236_v41 = vsel %vm249_vm3, %v10155_v38, -inf }
0x36ec   :  { %10237 = vmax.xlane.f32.xlu0 %v10236_v41  ;;  %v10232_v42 = vpop.f32.mrb[106].mxu1 }
0x36ed   :  { %v10233_v47 = vadd.f32 %v10232_v42, %v17344_v9  ;;  %v14883_v1 = vpop.f32.mrb[107].mxu1 }
0x36ee   :  { %v15586_v1 = vpack.c.bf16 %v13386_v20, %v13385_v55  ;;  %v13437_v20 = vld [vmem:[%s18700_s9 + $0x3] ss:$0 sm:$0xff] }
0x36ef   :  { %v10239_v11 = vsel %vm249_vm3, %v10233_v47, -inf }
0x36f0   :  { %10240 = vmax.xlane.f32.xlu0 %v10239_v11 }
0x3744   :  { %v9289_v51 = vpop.xlane.xlu1 %9288 }
0x3745   :  { %v9293_v56 = vsub.f32 %v9206_v54, %v9289_v51 }
0x3747   :  { %v9295_v57 = vmul.f32 1.442695, %v9293_v56 }
0x3748   :  { %v9292_v60 = vpop.xlane.xlu0 %9291 }
0x3749   :  { %16173 = vpow2.f32 %v9295_v57  ;;  %v9294_v2 = vsub.f32 %v9284_v45, %v9292_v60 }
0x374b   :  { %v9297_v44 = vmul.f32 1.442695, %v9294_v2 }
0x374d   :  { %16175 = vpow2.f32 %v9297_v44 }
0x3753   :  { %v16174_v23 = vpop.eup %16173 }
0x3754   :  { %v9299_v24 = vsel %vm249_vm3, %v16174_v23, 0.0 }
0x3755   :  { %9300 = vadd.xlane.f32.xlu1 %v9299_v24 }
0x3757   :  { %v16176_v62 = vpop.eup %16175 }
0x3758   :  { %v9302_v21 = vsel %vm249_vm3, %v16176_v62, 0.0 }
0x3759   :  { %9303 = vadd.xlane.f32.xlu0 %v9302_v21 }
0x3766   :  { %9309 = vrot.lane.b32.xlu1 %v18041_v15, %s18727_s18 }
0x376f   :  { %9385 = vrot.lane.b32.xlu0 %v18039_v39, %s18727_s18 }
0x3779   :  { %v10238_v9 = vpop.xlane.xlu0 %10237 }
0x377a   :  { %v10242_v7 = vsub.f32 %v10155_v38, %v10238_v9 }
0x377c   :  { %v10244_v10 = vmul.f32 1.442695, %v10242_v7 }
0x377d   :  { %v10241_v17 = vpop.xlane.xlu0 %10240 }
0x377e   :  { %16177 = vpow2.f32 %v10244_v10  ;;  %v10243_v12 = vsub.f32 %v10233_v47, %v10241_v17 }
0x3780   :  { %v10246_v13 = vmul.f32 1.442695, %v10243_v12 }
0x3782   :  { %16179 = vpow2.f32 %v10246_v13 }
0x3788   :  { %v16178_v14 = vpop.eup %16177 }
0x3789   :  { %v10248_v16 = vsel %vm249_vm3, %v16178_v14, 0.0 }
0x378a   :  { %10249 = vadd.xlane.f32.xlu1 %v10248_v16 }
0x378c   :  { %v16180_v31 = vpop.eup %16179 }
0x378d   :  { %v10251_v48 = vsel %vm249_vm3, %v16180_v31, 0.0 }
0x378e   :  { %10252 = vadd.xlane.f32.xlu0 %v10251_v48 }
0x379b   :  { %10258 = vrot.lane.b32.xlu1 %v18041_v15, %s18728_s19  ;;  %v13388_v15 = vld [vmem:[%s18699_s8 + $0x78] sm:$0xff] }
0x379c   :  { %v15936_v58 = vpack.i.bf16 %v13388_v15, %v13387_v22  ;;  %v15592_v56 = vpack.c.bf16 %v13388_v15, %v13387_v22 }
0x379f   :  { %15922 = vrot.lane.b32.xlu1 %v15921_v25, %s16293_s29 }
0x37a3   :  { %15927 = vrot.lane.b32.xlu1 %v15936_v58, %s16293_s29 }
0x37a4   :  { %10334 = vrot.lane.b32.xlu0 %v18039_v39, %s18728_s19 }
0x37a7   :  { %15932 = vrot.lane.b32.xlu1 %v15921_v25, %s16295_s22 }
0x37a8   :  { %15937 = vrot.lane.b32.xlu0 %v15936_v58, %s16295_s22 }
0x37ab   :  { %15942 = vrot.lane.b32.xlu1 %v15921_v25, %s16299_s3 }
0x37ac   :  { %15947 = vrot.lane.b32.xlu0 %v15936_v58, %s16299_s3 }
0x37e2   :  { %v9301_v39 = vpop.xlane.xlu1 %9300 }
0x37e3   :  { %16181 = vrcp.f32 %v9301_v39 }
0x37e6   :  { %v9304_v59 = vpop.xlane.xlu0 %9303  ;;  %v9310_v40 = vpop.permute.xlu1 %9309 }
0x37e7   :  { %16183 = vrcp.f32 %v9304_v59  ;;  %14812 = vmatpush3.msra.mxu0 %v9310_v40 }
0x37e8   :  { %14816 = vmatprep.subr.mxu0 %v16288_v49 }
0x37ea   :  { %v9386_v63 = vpop.permute.xlu0 %9385 }
0x37ed   :  { %v16182_v26 = vpop.eup %16181 }
0x37ee   :  { %v9306_v46 = vmul.f32 %v16182_v26, %v16174_v23 }
0x37f0   :  { %14814 = vmatmul.mubr.msk.f32.vlgmr.msra.gmra.mrb[76].mxu0 %vm249_vm3, %v9306_v46 }
0x37f1   :  { %v16184_v53 = vpop.eup %16183  ;;  %14817 = vmatpush3.msra.mxu0 %v9386_v63  ;;  %14818 = vmatprep.mubr.msk.f32.mxu0 %vm16289_vm2, %v16288_v49 }
0x37f2   :  { %v9308_v27 = vmul.f32 %v16184_v53, %v16176_v62 }
0x37f4   :  { %14819 = vmatmul.mubr.msk.f32.vlgmr.msra.gmra.mrb[78].mxu0 %vm249_vm3, %v9308_v27 }
0x3817   :  { %v10250_v50 = vpop.xlane.xlu1 %10249 }
0x3818   :  { %16185 = vrcp.f32 %v10250_v50 }
0x381b   :  { %v10253_v54 = vpop.xlane.xlu0 %10252  ;;  %v10259_v28 = vpop.permute.xlu1 %10258 }
0x381c   :  { %16187 = vrcp.f32 %v10253_v54  ;;  %14885 = vmatpush3.msra.mxu1 %v10259_v28 }
0x381d   :  { %14889 = vmatprep.subr.mxu1 %v16288_v49 }
0x381f   :  { %v15923_v61 = vpop.permute.xlu1 %15922  ;;  %v10335_v52 = vpop.permute.xlu0 %10334 }
0x3820   :  { %v15925_v30 = vunpack.i.h.bf16 %v15923_v61  ;;  %v15924_v45 = vunpack.i.l.bf16 %v15923_v61  ;;  %v13440_v61 = vld [vmem:[%s18697_s6 + $0x1e0] sm:$0xff] }
0x3822   :  { %v16186_v0 = vpop.eup %16185  ;;  %v15574_v5 = vpack.c.bf16 %v15925_v30, %v15924_v45  ;;  %v13441_v30 = vld [vmem:[%s18697_s6 + $0x1e8] sm:$0xff] }
0x3823   :  { %v10255_v32 = vmul.f32 %v16186_v0, %v16178_v14  ;;  %v15928_v34 = vpop.permute.xlu1 %15927  ;;  %v15938_v62 = vpop.permute.xlu0 %15937  ;;  %v15622_v45 = vpack.c.bf16 %v13441_v30, %v13440_v61  ;;  %v13442_v0 = vld [vmem:[%s18697_s6 + $0x1f0] sm:$0xff] }
0x3824   :  { %15576 = vmatprep.subr.msk.bf16.mxu0 %vm16600_vm4, %v15574_v5  ;;  %v15930_v35 = vunpack.i.h.bf16 %v15928_v34  ;;  %v15929_v38 = vunpack.i.l.bf16 %v15928_v34  ;;  %v15940_v21 = vunpack.i.h.bf16 %v15938_v62  ;;  %v15939_v9 = vunpack.i.l.bf16 %v15938_v62  ;;  %v13444_v34 = vld [vmem:[%s18697_s6 + $0x200] sm:$0xff] }
0x3825   :  { %14887 = vmatmul.mubr.msk.f32.vlgmr.msra.gmra.mrb[108].mxu1 %vm249_vm3, %v10255_v32  ;;  %15579 = vmatpush3.bf16.xpose.msk.msra.mxu0 %vm16600_vm4, %v15574_v5  ;;  %v13443_v5 = vld [vmem:[%s18697_s6 + $0x1f8] sm:$0xff] }
0x3826   :  { %v16188_v41 = vpop.eup %16187  ;;  %14890 = vmatpush3.msra.mxu1 %v10335_v52  ;;  %14891 = vmatprep.mubr.msk.f32.mxu1 %vm16289_vm2, %v16288_v49  ;;  %v15580_v42 = vpack.c.bf16 %v15930_v35, %v15929_v38  ;;  %v15604_v7 = vpack.c.bf16 %v15940_v21, %v15939_v9  ;;  %v15628_v32 = vpack.c.bf16 %v13443_v5, %v13442_v0  ;;  %v13445_v35 = vld [vmem:[%s18697_s6 + $0x208] sm:$0xff]  ;;  %v13452_v52 = vld [vmem:[%s18698_s7 + $0x5] ss:$0 sm:$0xff]  ;;  %v13446_v21 = vld [vmem:[%s18697_s6 + $0x210] sm:$0xff] }
0x3827   :  { %v10257_v47 = vmul.f32 %v16188_v41, %v16180_v31  ;;  %v15933_v60 = vpop.permute.xlu1 %15932  ;;  %v15948_v13 = vpop.permute.xlu0 %15947  ;;  %15624 = vmatprep.subr.msk.bf16.mxu1 %vm16412_vm1, %v15622_v45  ;;  %v15634_v38 = vpack.c.bf16 %v13445_v35, %v13444_v34  ;;  %v13447_v9 = vld [vmem:[%s18697_s6 + $0x218] sm:$0xff] }
0x3828   :  { %15582 = vmatprep.subr.msk.bf16.mxu0 %vm16600_vm4, %v15580_v42  ;;  %v15935_v44 = vunpack.i.h.bf16 %v15933_v60  ;;  %v15934_v23 = vunpack.i.l.bf16 %v15933_v60  ;;  %v15949_v14 = vunpack.i.l.bf16 %v15948_v13 }
0x3829   :  { %14892 = vmatmul.mubr.msk.f32.vlgmr.msra.gmra.mrb[110].mxu1 %vm249_vm3, %v10257_v47 }
0x382a   :  { %v15598_v24 = vpack.c.bf16 %v15935_v44, %v15934_v23 }
0x382b   :  { %v15943_v10 = vpop.permute.xlu1 %15942 }
0x382c   :  { %v15944_v17 = vunpack.i.l.bf16 %v15943_v10 }
0x382d   :  { %15585 = vmatpush3.bf16.xpose.msk.msra.mxu0 %vm16600_vm4, %v15580_v42  ;;  %15627 = vmatpush3.bf16.xpose.msk.msra.mxu1 %vm16412_vm1, %v15622_v45 }
0x382e   :  { %15588 = vmatprep.subr.msk.bf16.mxu0 %vm16600_vm4, %v15586_v1  ;;  %15630 = vmatprep.subr.msk.bf16.mxu1 %vm16412_vm1, %v15628_v32 }
0x3835   :  { %15633 = vmatpush3.bf16.xpose.msk.msra.mxu1 %vm16412_vm1, %v15628_v32 }
0x3836   :  { %15636 = vmatprep.subr.msk.bf16.mxu1 %vm16412_vm1, %v15634_v38 }
0x38c3   :  { %v9381_v11 = vpop.f32.mrb[76].mxu0 }
0x38c4   :  { %v14815_v51 = vpop.f32.mrb[77].mxu0  ;;  %14829 = vmatprep.mubr.msk.f32.mxu0 %vm249_vm3, %v9381_v11 }
0x38c7   :  { %v9457_v57 = vpop.f32.mrb[78].mxu0 }
0x38c8   :  { %v14820_v2 = vpop.f32.mrb[79].mxu0  ;;  %14830 = vmatmul.mubr.msk.f32.vlgmr.msra.gmra.mrb[80].mxu0 %vm249_vm3, %v9457_v57  ;;  %v13438_v57 = vld [vmem:[%s18695_s4 + $0x7] ss:$0 sm:$0xff] }
0x38c9   :  { %15591 = vmatpush3.bf16.xpose.msk.msra.mxu0 %vm16600_vm4, %v15586_v1  ;;  %14840 = vmatprep.mubr.msk.f32.mxu0 %vm249_vm3, %v18149_v8  ;;  %v15945_v8 = vunpack.i.h.bf16 %v15943_v10  ;;  %v13439_v2 = vld [vmem:[%s18696_s5 + $0x7] ss:$0 sm:$0xff] }
0x38ca   :  { %15594 = vmatprep.subr.msk.bf16.mxu0 %vm16600_vm4, %v15592_v56 }
0x38cb   :  { %v15610_v12 = vpack.c.bf16 %v15945_v8, %v15944_v17  ;;  %v15640_v8 = vpack.c.bf16 %v13447_v9, %v13446_v21  ;;  %v13448_v17 = vld [vmem:[%s18697_s6 + $0x220] sm:$0xff] }
0x38d1   :  { %15597 = vmatpush3.bf16.xpose.msk.msra.mxu0 %vm16600_vm4, %v15592_v56 }
0x38d2   :  { %15600 = vmatprep.subr.msk.bf16.mxu0 %vm16600_vm4, %v15598_v24 }
0x38d8   :  { %14841 = vmatmul.mubr.msk.f32.vlgmr.msra.gmra.mrb[80].mxu0 %vm249_vm3, %v18151_v43  ;;  %v15950_v43 = vunpack.i.h.bf16 %v15948_v13 }
0x38d9   :  { %15603 = vmatpush3.bf16.xpose.msk.msra.mxu0 %vm16600_vm4, %v15598_v24  ;;  %14871 = vmatprep.mubr.msk.f32.mxu0 %vm249_vm3, %v18157_v3 }
0x38da   :  { %15606 = vmatprep.subr.msk.bf16.mxu0 %vm16600_vm4, %v15604_v7  ;;  %v15616_v16 = vpack.c.bf16 %v15950_v43, %v15949_v14  ;;  %v13451_v43 = vld [vmem:[%s18697_s6 + $0x238] sm:$0xff] }
0x38e1   :  { %15609 = vmatpush3.bf16.xpose.msk.msra.mxu0 %vm16600_vm4, %v15604_v7 }
0x38e2   :  { %15612 = vmatprep.subr.msk.bf16.mxu0 %vm16600_vm4, %v15610_v12 }
0x38e8   :  { %14872 = vmatmul.mubr.msk.f32.vlgmr.msra.gmra.mrb[80].mxu0 %vm249_vm3, %v18159_v33 }
0x38e9   :  { %15615 = vmatpush3.bf16.xpose.msk.msra.mxu0 %vm16600_vm4, %v15610_v12  ;;  %v13449_v12 = vld [vmem:[%s18697_s6 + $0x228] sm:$0xff] }
0x38ea   :  { %15618 = vmatprep.subr.msk.bf16.mxu0 %vm16600_vm4, %v15616_v16  ;;  %v15646_v13 = vpack.c.bf16 %v13449_v12, %v13448_v17 }
0x38f1   :  { %15621 = vmatpush3.bf16.xpose.msk.msra.mxu0 %vm16600_vm4, %v15616_v16 }
0x38f2   :  { %14935 = vmatprep.subr.mxu0 %v16288_v49 }
0x38f8   :  { %v10330_v3 = vpop.f32.mrb[108].mxu1 }
0x38f9   :  { %v14888_v31 = vpop.f32.mrb[109].mxu1  ;;  %14902 = vmatprep.mubr.msk.f32.mxu0 %vm249_vm3, %v10330_v3 }
0x38fc   :  { %v10406_v48 = vpop.f32.mrb[110].mxu1 }
0x38fd   :  { %v14893_v55 = vpop.f32.mrb[111].mxu1  ;;  %14903 = vmatmul.mubr.msk.f32.vlgmr.msra.gmra.mrb[80].mxu0 %vm249_vm3, %v10406_v48 }
0x38fe   :  { %14937 = vmatprep.mubr.msk.f32.mxu0 %vm16289_vm2, %v16288_v49 }
0x39d0   :  { %v14904_v33 = vpop.f32.mrb[80].mxu0 }
0x39d1   :  { %v10510_v22 = vadd.f32 %v14904_v33, %v17953_v18  ;;  %v10498_v25 = vpop.f32.mrb[81].mxu0 }
0x39d2   :  { %v10509_v15 = vadd.f32 %v10498_v25, %v17955_v19 }
0x39d3   :  { %v18257_v58 = vadd.f32 %v13437_v20, %v10510_v22 }
0x39d4   :  { %v18259_v39 = vadd.f32 %v13437_v20, %v10509_v15 }
0x39d5   :  { %v10523_v59 = vsel %vm68_vm0, %v18257_v58, 0.0 }
0x39d6   :  { %10524 = vadd.xlane.f32.xlu0 %v10523_v59  ;;  %v10520_v40 = vsel %vm68_vm0, %v18259_v39, 0.0 }
0x39d7   :  { %10521 = vadd.xlane.f32.xlu1 %v10520_v40 }
0x39e8   :  { %10670 = vrot.lane.b32.xlu1 %v13452_v52, %s16290_s26 }
0x3a63   :  { %v10525_v26 = vpop.xlane.xlu0 %10524 }
0x3a64   :  { %v10527_v46 = vmul.f32 0.03125, %v10525_v26  ;;  %v10522_v63 = vpop.xlane.xlu1 %10521 }
0x3a65   :  { %v10526_v53 = vmul.f32 0.03125, %v10522_v63 }
0x3a66   :  { %v10529_v18 = vsub.f32 %v18257_v58, %v10527_v46 }
0x3a67   :  { %v10528_v19 = vsub.f32 %v18259_v39, %v10526_v53 }
0x3a68   :  { %v10531_v54 = vmul.f32 %v10529_v18, %v10529_v18  ;;  %v10671_v48 = vpop.permute.xlu1 %10670 }
0x3a69   :  { %v10530_v27 = vmul.f32 %v10528_v19, %v10528_v19 }
0x3a6a   :  { %v10535_v28 = vsel %vm68_vm0, %v10531_v54, 0.0 }
0x3a6b   :  { %v10532_v50 = vsel %vm68_vm0, %v10530_v27, 0.0 }
0x3a6c   :  { %10533 = vadd.xlane.f32.xlu0 %v10532_v50 }
0x3a70   :  { %10536 = vadd.xlane.f32.xlu0 %v10535_v28 }
0x3af9   :  { %v10534_v41 = vpop.xlane.xlu0 %10533 }
0x3afa   :  { %v10538_v42 = vmul.f32 0.03125, %v10534_v41 }
0x3afc   :  { %v10540_v47 = vadd.f32 1e-05, %v10538_v42 }
0x3afd   :  { %v10537_v1 = vpop.xlane.xlu0 %10536 }
0x3afe   :  { %16189 = vrsqrt.f32 %v10540_v47  ;;  %v10539_v11 = vmul.f32 0.03125, %v10537_v1 }
0x3b00   :  { %v10541_v51 = vadd.f32 1e-05, %v10539_v11 }
0x3b02   :  { %16191 = vrsqrt.f32 %v10541_v51 }
0x3b08   :  { %v16190_v56 = vpop.eup %16189 }
0x3b09   :  { %v10544_v60 = vmul.f32 %v16190_v56, %v10528_v19 }
0x3b0b   :  { %v10550_v44 = vmul.f32 %v13438_v57, %v10544_v60 }
0x3b0c   :  { %v16192_v23 = vpop.eup %16191 }
0x3b0d   :  { %v10545_v24 = vmul.f32 %v16192_v23, %v10529_v18  ;;  %v10556_v62 = vadd.f32 %v13439_v2, %v10550_v44 }
0x3b0f   :  { %v10551_v7 = vmul.f32 %v13438_v57, %v10545_v24  ;;  %14913 = vmatprep.mubr.msk.f32.mxu1 %vm68_vm0, %v10556_v62 }
0x3b11   :  { %v10557_v10 = vadd.f32 %v13439_v2, %v10551_v7 }
0x3b13   :  { %14914 = vmatmul.mubr.msk.f32.vlgmr.msra.gmra.mrb[112].mxu1 %vm68_vm0, %v10557_v10 }
0x3b14   :  { %15639 = vmatpush3.bf16.xpose.msk.msra.mxu1 %vm16412_vm1, %v15634_v38  ;;  %14932 = vmatprep.mubr.msk.f32.mxu1 %vm68_vm0, %v17610_v36  ;;  %v13450_v36 = vld [vmem:[%s18697_s6 + $0x230] sm:$0xff] }
0x3b15   :  { %15642 = vmatprep.subr.msk.bf16.mxu1 %vm16412_vm1, %v15640_v8  ;;  %v15652_v14 = vpack.c.bf16 %v13451_v43, %v13450_v36 }
0x3b1c   :  { %15645 = vmatpush3.bf16.xpose.msk.msra.mxu1 %vm16412_vm1, %v15640_v8 }
0x3b1d   :  { %15648 = vmatprep.subr.msk.bf16.mxu1 %vm16412_vm1, %v15646_v13 }
0x3b24   :  { %15651 = vmatpush3.bf16.xpose.msk.msra.mxu1 %vm16412_vm1, %v15646_v13 }
0x3b25   :  { %15654 = vmatprep.subr.msk.bf16.mxu1 %vm16412_vm1, %v15652_v14 }
0x3b2c   :  { %15657 = vmatpush3.bf16.xpose.msk.msra.mxu1 %vm16412_vm1, %v15652_v14 }
0x3b2d   :  { %14960 = vmatprep.subr.mxu1 %v16288_v49 }
0x3b33   :  { %14933 = vmatmul.mubr.msk.f32.vlgmr.msra.gmra.mrb[114].mxu1 %vm68_vm0, %v17639_v37 }
0x3b34   :  { %14962 = vmatprep.mubr.msk.f32.mxu1 %vm16289_vm2, %v16288_v49 }
0x3be6   :  { %v14915_v16 = vpop.f32.mrb[112].mxu1 }
0x3be7   :  { %v18348_v3 = vadd.f32 %v14915_v16, %v13452_v52  ;;  %v10660_v31 = vpop.f32.mrb[113].mxu1 }
0x3be8   :  { %v18360_v37 = vadd.f32 %v13452_v52, %v10660_v31 }
0x3be9   :  { %11181 = vrot.lane.b32.xlu1 %v18348_v3, %s16293_s29 }
0x3c06   :  { %v14934_v55 = vpop.f32.mrb[114].mxu1 }
0x3c07   :  { %v18352_v33 = vadd.f32 %v14934_v55, %v10671_v48  ;;  %v10763_v20 = vpop.f32.mrb[115].mxu1 }
0x3c08   :  { %v18354_v22 = vadd.f32 %v10763_v20, %v10671_v48 }
0x3c09   :  { %11183 = vrot.lane.b32.xlu0 %v18352_v33, %s16293_s29 }
0x3c0a   :  { %14936 = vmatpush3.xpose.msk.msra.mxu0 %vm249_vm3, %v18354_v22 }
0x3c0b   :  { %14940 = vmatprep.subr.mxu0 %v16288_v49 }
0x3c0d   :  { %14938 = vmatmul.mubr.msk.f32.vlgmr.msra.gmra.mrb[82].mxu0 %vm249_vm3, %v18360_v37 }
0x3c0e   :  { %14941 = vmatpush3.xpose.msk.msra.mxu0 %vm249_vm3, %v18352_v33  ;;  %14942 = vmatprep.mubr.msk.f32.mxu0 %vm16289_vm2, %v16288_v49 }
0x3c0f   :  { %14945 = vmatprep.subr.mxu0 %v16288_v49 }
0x3c11   :  { %14943 = vmatmul.mubr.msk.f32.vlgmr.msra.gmra.mrb[84].mxu0 %vm249_vm3, %v18348_v3 }
0x3c12   :  { %14947 = vmatprep.mubr.msk.f32.mxu0 %vm16289_vm2, %v16288_v49 }
0x3c5b   :  { %v11182_v15 = vpop.permute.xlu1 %11181 }
0x3c7b   :  { %v11184_v25 = vpop.permute.xlu0 %11183 }
0x3c7c   :  { %14961 = vmatpush3.xpose.msk.msra.mxu1 %vm249_vm3, %v11184_v25 }
0x3c7d   :  { %14970 = vmatprep.subr.mxu1 %v16288_v49 }
0x3c7f   :  { %14963 = vmatmul.mubr.msk.f32.vlgmr.msra.gmra.mrb[116].mxu1 %vm249_vm3, %v11182_v15 }
0x3c80   :  { %14972 = vmatprep.mubr.msk.f32.mxu1 %vm16289_vm2, %v16288_v49 }
0x3ce0   :  { %v10849_v59 = vpop.f32.mrb[82].mxu0 }
0x3ce1   :  { %v14939_v40 = vpop.f32.mrb[83].mxu0  ;;  %v10929_v19 = vsel %vm249_vm3, %v10849_v59, -inf }
0x3ce4   :  { %v18379_v26 = vpop.f32.mrb[84].mxu0 }
0x3ce5   :  { %v14944_v46 = vpop.f32.mrb[85].mxu0  ;;  %v10932_v35 = vsel %vm249_vm3, %v18379_v26, -inf }
0x3d52   :  { %v11255_v63 = vpop.f32.mrb[116].mxu1 }
0x3d53   :  { %v14964_v53 = vpop.f32.mrb[117].mxu1  ;;  %v11262_v18 = vsel %vm249_vm3, %v11255_v63, -inf }
0x3d54   :  { %11263 = vmax.xlane.f32.xlu1 %v11262_v18 }
0x3d65   :  { %11625 = vrot.lane.b32.xlu1 %v18354_v22, %s16295_s22 }
0x3d69   :  { %11623 = vrot.lane.b32.xlu1 %v18360_v37, %s16295_s22 }
0x3d6d   :  { %11703 = vrot.lane.b32.xlu1 %v18352_v33, %s16295_s22 }
0x3d91   :  { %10930 = vmax.xlane.f32.xlu1 %v10929_v19 }
0x3de1   :  { %v11264_v27 = vpop.xlane.xlu1 %11263 }
0x3de2   :  { %v11266_v50 = vsub.f32 %v11255_v63, %v11264_v27 }
0x3de4   :  { %v11269_v54 = vmul.f32 1.442695, %v11266_v50 }
0x3de5   :  { %v11626_v30 = vpop.permute.xlu1 %11625 }
0x3de6   :  { %16193 = vpow2.f32 %v11269_v54 }
0x3de9   :  { %v11624_v45 = vpop.permute.xlu1 %11623 }
0x3ded   :  { %v11704_v0 = vpop.permute.xlu1 %11703 }
0x3df0   :  { %v16194_v28 = vpop.eup %16193 }
0x3df1   :  { %v11274_v61 = vsel %vm249_vm3, %v16194_v28, 0.0 }
0x3df2   :  { %11275 = vadd.xlane.f32.xlu0 %v11274_v61 }
0x3e08   :  { %11357 = vrot.lane.b32.xlu0 %v18352_v33, %s16292_s28 }
0x3e0c   :  { %11701 = vrot.lane.b32.xlu0 %v18348_v3, %s16295_s22 }
0x3e1e   :  { %v10931_v5 = vpop.xlane.xlu1 %10930 }
0x3e1f   :  { %v10935_v32 = vsub.f32 %v10849_v59, %v10931_v5 }
0x3e21   :  { %v10937_v34 = vmul.f32 1.442695, %v10935_v32 }
0x3e23   :  { %16195 = vpow2.f32 %v10937_v34 }
0x3e2b   :  { %10933 = vmax.xlane.f32.xlu0 %v10932_v35 }
0x3e2d   :  { %v16196_v38 = vpop.eup %16195 }
0x3e2e   :  { %v10941_v52 = vsel %vm249_vm3, %v16196_v38, 0.0 }
0x3e2f   :  { %10942 = vadd.xlane.f32.xlu1 %v10941_v52 }
0x3e40   :  { %10951 = vrot.lane.b32.xlu1 %v18354_v22, %s16290_s26 }
0x3e44   :  { %11105 = vrot.lane.b32.xlu1 %v18354_v22, %s16293_s29 }
0x3e48   :  { %11103 = vrot.lane.b32.xlu1 %v18360_v37, %s16293_s29 }
0x3e4c   :  { %11877 = vrot.lane.b32.xlu1 %v18352_v33, %s16296_s23 }
0x3e7f   :  { %v11276_v41 = vpop.xlane.xlu0 %11275 }
0x3e80   :  { %16197 = vrcp.f32 %v11276_v41 }
0x3e83   :  { %v11358_v42 = vpop.permute.xlu0 %11357 }
0x3e84   :  { %14971 = vmatpush3.msra.mxu1 %v11358_v42 }
0x3e85   :  { %14997 = vmatprep.subr.mxu1 %v16288_v49 }
0x3e87   :  { %v11702_v11 = vpop.permute.xlu0 %11701 }
0x3e8a   :  { %v16198_v47 = vpop.eup %16197 }
0x3e8b   :  { %v11280_v1 = vmul.f32 %v16198_v47, %v16194_v28 }
0x3e8d   :  { %14973 = vmatmul.mubr.msk.f32.vlgmr.msra.gmra.mrb[118].mxu1 %vm249_vm3, %v11280_v1 }
0x3e8e   :  { %14998 = vmatpush3.xpose.msk.msra.mxu1 %vm249_vm3, %v11626_v30  ;;  %14999 = vmatprep.mubr.msk.f32.mxu1 %vm16289_vm2, %v16288_v49 }
0x3e8f   :  { %15002 = vmatprep.subr.mxu1 %v16288_v49 }
0x3e91   :  { %15000 = vmatmul.mubr.msk.f32.vlgmr.msra.gmra.mrb[120].mxu1 %vm249_vm3, %v11624_v45 }
0x3e92   :  { %15003 = vmatpush3.xpose.msk.msra.mxu1 %vm249_vm3, %v11704_v0  ;;  %15004 = vmatprep.mubr.msk.f32.mxu1 %vm16289_vm2, %v16288_v49 }
0x3e93   :  { %15007 = vmatprep.subr.mxu1 %v16288_v49 }
0x3e95   :  { %15005 = vmatmul.mubr.msk.f32.vlgmr.msra.gmra.mrb[122].mxu1 %vm249_vm3, %v11702_v11 }
0x3e96   :  { %15009 = vmatprep.mubr.msk.f32.mxu1 %vm16289_vm2, %v16288_v49 }
0x3eb8   :  { %v10934_v2 = vpop.xlane.xlu0 %10933 }
0x3eb9   :  { %v10936_v44 = vsub.f32 %v18379_v26, %v10934_v2 }
0x3ebb   :  { %v10939_v23 = vmul.f32 1.442695, %v10936_v44 }
0x3ebc   :  { %v10943_v51 = vpop.xlane.xlu1 %10942 }
0x3ebd   :  { %16199 = vrcp.f32 %v10943_v51 }
0x3ebe   :  { %16201 = vpow2.f32 %v10939_v23 }
0x3ec0   :  { %v10952_v56 = vpop.permute.xlu1 %10951 }
0x3ec1   :  { %14946 = vmatpush3.msra.mxu0 %v10952_v56 }
0x3ec2   :  { %14950 = vmatprep.subr.mxu0 %v16288_v49 }
0x3ec4   :  { %v11106_v53 = vpop.permute.xlu1 %11105 }
0x3ec7   :  { %v16200_v57 = vpop.eup %16199 }
0x3ec8   :  { %v10948_v60 = vmul.f32 %v16200_v57, %v16196_v38  ;;  %v16202_v12 = vpop.eup %16201  ;;  %v11104_v27 = vpop.permute.xlu1 %11103 }
0x3ec9   :  { %v10944_v13 = vsel %vm249_vm3, %v16202_v12, 0.0 }
0x3eca   :  { %14948 = vmatmul.mubr.msk.f32.vlgmr.msra.gmra.mrb[86].mxu0 %vm249_vm3, %v10948_v60 }
0x3ecb   :  { %14952 = vmatprep.mubr.msk.f32.mxu0 %vm16289_vm2, %v16288_v49 }
0x3ecc   :  { %v11878_v50 = vpop.permute.xlu1 %11877 }
0x3f60   :  { %v18424_v24 = vpop.f32.mrb[118].mxu1 }
0x3f61   :  { %v14974_v62 = vpop.f32.mrb[119].mxu1 }
0x3f64   :  { %v11697_v21 = vpop.f32.mrb[120].mxu1 }
0x3f65   :  { %v15001_v9 = vpop.f32.mrb[121].mxu1  ;;  %v11779_v7 = vsel %vm249_vm3, %v11697_v21, -inf }
0x3f66   :  { %11780 = vmax.xlane.f32.xlu0 %v11779_v7 }
0x3f68   :  { %v11775_v10 = vpop.f32.mrb[122].mxu1 }
0x3f69   :  { %v15006_v8 = vpop.f32.mrb[123].mxu1  ;;  %v11782_v17 = vsel %vm249_vm3, %v11775_v10, -inf }
0x3f6a   :  { %11783 = vmax.xlane.f32.xlu0 %v11782_v17  ;;  %v13470_v8 = vld [vmem:[%s18699_s8 + $0xa8] sm:$0xff]  ;;  %v13471_v17 = vld [vmem:[%s18699_s8 + $0xb0] sm:$0xff] }
0x3f6e   :  { %10945 = vadd.xlane.f32.xlu0 %v10944_v13  ;;  %v13472_v13 = vld [vmem:[%s18699_s8 + $0xb8] sm:$0xff] }
0x3f84   :  { %11027 = vrot.lane.b32.xlu0 %v18352_v33, %s16290_s26 }
0x3f88   :  { %11801 = vrot.lane.b32.xlu0 %v18354_v22, %s16296_s23 }
0x3f9d   :  { %v18433_v36 = vpop.f32.mrb[86].mxu0 }
0x3f9e   :  { %v14949_v43 = vpop.f32.mrb[87].mxu0 }
0x3f9f   :  { %v15956_v43 = vpack.i.bf16 %v13472_v13, %v13471_v17 }
0x3ff3   :  { %v11781_v14 = vpop.xlane.xlu0 %11780 }
0x3ff4   :  { %v11785_v16 = vsub.f32 %v11697_v21, %v11781_v14 }
0x3ff6   :  { %v11787_v31 = vmul.f32 1.442695, %v11785_v16 }
0x3ff7   :  { %v11784_v48 = vpop.xlane.xlu0 %11783 }
0x3ff8   :  { %16203 = vpow2.f32 %v11787_v31  ;;  %v11786_v55 = vsub.f32 %v11775_v10, %v11784_v48  ;;  %v13469_v10 = vld [vmem:[%s18699_s8 + $0xa0] sm:$0xff] }
0x3ffa   :  { %v11789_v20 = vmul.f32 1.442695, %v11786_v55 }
0x3ffb   :  { %v10946_v25 = vpop.xlane.xlu0 %10945 }
0x3ffc   :  { %16205 = vpow2.f32 %v11789_v20 }
0x3ffd   :  { %16207 = vrcp.f32 %v10946_v25 }
0x3fff   :  { %v11028_v15 = vpop.permute.xlu0 %11027 }
0x4000   :  { %14951 = vmatpush3.msra.mxu0 %v11028_v15 }
0x4001   :  { %14955 = vmatprep.subr.mxu0 %v16288_v49 }
0x4002   :  { %v16204_v59 = vpop.eup %16203 }
0x4003   :  { %v11802_v40 = vpop.permute.xlu0 %11801  ;;  %v11791_v26 = vsel %vm249_vm3, %v16204_v59, 0.0 }
0x4004   :  { %11792 = vadd.xlane.f32.xlu1 %v11791_v26  ;;  %15008 = vmatpush3.msra.mxu1 %v11802_v40 }
0x4005   :  { %15012 = vmatprep.subr.mxu1 %v16288_v49 }
0x4006   :  { %v16206_v46 = vpop.eup %16205 }
0x4007   :  { %v16208_v63 = vpop.eup %16207  ;;  %v11794_v18 = vsel %vm249_vm3, %v16206_v46, 0.0 }
0x4008   :  { %v10950_v19 = vmul.f32 %v16208_v63, %v16202_v12  ;;  %11795 = vadd.xlane.f32.xlu0 %v11794_v18  ;;  %v15951_v12 = vpack.i.bf16 %v13470_v8, %v13469_v10 }
0x400a   :  { %14953 = vmatmul.mubr.msk.f32.vlgmr.msra.gmra.mrb[88].mxu0 %vm249_vm3, %v10950_v19 }
0x400b   :  { %14956 = vmatpush3.xpose.msk.msra.mxu0 %vm249_vm3, %v11106_v53  ;;  %14957 = vmatprep.mubr.msk.f32.mxu0 %vm16289_vm2, %v16288_v49 }
0x400c   :  { %14965 = vmatprep.subr.mxu0 %v16288_v49 }
0x400e   :  { %14958 = vmatmul.mubr.msk.f32.vlgmr.msra.gmra.mrb[90].mxu0 %vm249_vm3, %v11104_v27 }
0x400f   :  { %14967 = vmatprep.mubr.msk.f32.mxu0 %vm16289_vm2, %v16288_v49 }
0x4015   :  { %12054 = vrot.lane.b32.xlu1 %v18354_v22, %s16299_s3 }
0x4019   :  { %12132 = vrot.lane.b32.xlu1 %v18352_v33, %s16299_s3 }
0x401e   :  { %12052 = vrot.lane.b32.xlu0 %v18360_v37, %s16299_s3 }
0x4022   :  { %12130 = vrot.lane.b32.xlu0 %v18348_v3, %s16299_s3 }
0x4091   :  { %v11793_v54 = vpop.xlane.xlu1 %11792 }
0x4092   :  { %16209 = vrcp.f32 %v11793_v54 }
0x4095   :  { %v11796_v28 = vpop.xlane.xlu0 %11795  ;;  %v12055_v3 = vpop.permute.xlu1 %12054 }
0x4096   :  { %16211 = vrcp.f32 %v11796_v28 }
0x4099   :  { %v12053_v37 = vpop.permute.xlu0 %12052  ;;  %v12133_v5 = vpop.permute.xlu1 %12132 }
0x409c   :  { %v16210_v61 = vpop.eup %16209 }
0x409d   :  { %v11798_v30 = vmul.f32 %v16210_v61, %v16204_v59  ;;  %v12131_v32 = vpop.permute.xlu0 %12130 }
0x409f   :  { %15010 = vmatmul.mubr.msk.f32.vlgmr.msra.gmra.mrb[124].mxu1 %vm249_vm3, %v11798_v30 }
0x40a0   :  { %v16212_v45 = vpop.eup %16211  ;;  %15013 = vmatpush3.msra.mxu1 %v11878_v50  ;;  %15014 = vmatprep.mubr.msk.f32.mxu1 %vm16289_vm2, %v16288_v49 }
0x40a1   :  { %v11800_v0 = vmul.f32 %v16212_v45, %v16206_v46  ;;  %15028 = vmatprep.subr.mxu1 %v16288_v49 }
0x40a3   :  { %15015 = vmatmul.mubr.msk.f32.vlgmr.msra.gmra.mrb[126].mxu1 %vm249_vm3, %v11800_v0 }
0x40a4   :  { %15030 = vmatprep.mubr.msk.f32.mxu1 %vm16289_vm2, %v16288_v49 }
0x40a7   :  { %15029 = vmatpush3.xpose.msk.msra.mxu1 %vm249_vm3, %v12055_v3 }
0x40a8   :  { %15033 = vmatprep.subr.mxu1 %v16288_v49 }
0x40aa   :  { %15031 = vmatmul.mubr.msk.f32.vlgmr.msra.gmra.mrb[128].mxu1 %vm249_vm3, %v12053_v37 }
0x40ab   :  { %15034 = vmatpush3.xpose.msk.msra.mxu1 %vm249_vm3, %v12133_v5  ;;  %15035 = vmatprep.mubr.msk.f32.mxu1 %vm16289_vm2, %v16288_v49 }
0x40ac   :  { %15038 = vmatprep.subr.mxu1 %v16288_v49 }
0x40ae   :  { %15036 = vmatmul.mubr.msk.f32.vlgmr.msra.gmra.mrb[130].mxu1 %vm249_vm3, %v12131_v32 }
0x40af   :  { %15040 = vmatprep.mubr.msk.f32.mxu1 %vm16289_vm2, %v16288_v49 }
0x40dd   :  { %v18472_v34 = vpop.f32.mrb[88].mxu0 }
0x40de   :  { %v14954_v35 = vpop.f32.mrb[89].mxu0 }
0x40e1   :  { %v11177_v38 = vpop.f32.mrb[90].mxu0 }
0x40e2   :  { %v14959_v52 = vpop.f32.mrb[91].mxu0  ;;  %v11259_v41 = vsel %vm249_vm3, %v11177_v38, -inf }
0x40e3   :  { %11260 = vmax.xlane.f32.xlu1 %v11259_v41  ;;  %v15676_v52 = vpack.c.bf16 %v13472_v13, %v13471_v17 }
0x40f4   :  { %11281 = vrot.lane.b32.xlu1 %v18354_v22, %s16292_s28 }
0x40f8   :  { %12306 = vrot.lane.b32.xlu1 %v18352_v33, %s18730_s20 }
0x40fc   :  { %15952 = vrot.lane.b32.xlu1 %v15951_v12, %s16293_s29 }
0x4100   :  { %15957 = vrot.lane.b32.xlu1 %v15956_v43, %s16293_s29 }
0x4104   :  { %15962 = vrot.lane.b32.xlu1 %v15951_v12, %s16295_s22 }
0x4108   :  { %15967 = vrot.lane.b32.xlu1 %v15956_v43, %s16295_s22 }
0x410c   :  { %15977 = vrot.lane.b32.xlu1 %v15956_v43, %s16299_s3 }
0x4170   :  { %v11261_v42 = vpop.xlane.xlu1 %11260 }
0x4171   :  { %v11265_v47 = vsub.f32 %v11177_v38, %v11261_v42 }
0x4172   :  { %v18479_v1 = vpop.f32.mrb[124].mxu1 }
0x4173   :  { %v15011_v11 = vpop.f32.mrb[125].mxu1  ;;  %v11267_v56 = vmul.f32 1.442695, %v11265_v47 }
0x4174   :  { %v11282_v51 = vpop.permute.xlu1 %11281 }
0x4175   :  { %14966 = vmatpush3.msra.mxu0 %v11282_v51  ;;  %16213 = vpow2.f32 %v11267_v56 }
0x4176   :  { %v18481_v57 = vpop.f32.mrb[126].mxu1 }
0x4177   :  { %v15016_v60 = vpop.f32.mrb[127].mxu1 }
0x4178   :  { %v12307_v53 = vpop.permute.xlu1 %12306 }
0x417c   :  { %v15953_v18 = vpop.permute.xlu1 %15952 }
0x417d   :  { %v12126_v2 = vpop.f32.mrb[128].mxu1  ;;  %v15955_v19 = vunpack.i.h.bf16 %v15953_v18  ;;  %v15954_v27 = vunpack.i.l.bf16 %v15953_v18  ;;  %v13526_v18 = vld [vmem:[%s18701_s10 + $0xd0] sm:$0xff] }
0x417e   :  { %v15032_v44 = vpop.f32.mrb[129].mxu1  ;;  %v12208_v23 = vsel %vm249_vm3, %v12126_v2, -inf }
0x417f   :  { %12209 = vmax.xlane.f32.xlu0 %v12208_v23  ;;  %v16214_v9 = vpop.eup %16213  ;;  %v15658_v50 = vpack.c.bf16 %v15955_v19, %v15954_v27  ;;  %v13527_v19 = vld [vmem:[%s18701_s10 + $0xd8] sm:$0xff] }
0x4180   :  { %v11271_v7 = vsel %vm249_vm3, %v16214_v9, 0.0  ;;  %v15958_v54 = vpop.permute.xlu1 %15957  ;;  %v15712_v27 = vpack.c.bf16 %v13527_v19, %v13526_v18 }
0x4181   :  { %v12204_v62 = vpop.f32.mrb[130].mxu1  ;;  %15660 = vmatprep.subr.msk.bf16.mxu0 %vm16600_vm4, %v15658_v50  ;;  %v15960_v28 = vunpack.i.h.bf16 %v15958_v54  ;;  %v15959_v61 = vunpack.i.l.bf16 %v15958_v54  ;;  %v13529_v54 = vld [vmem:[%s18701_s10 + $0xe8] sm:$0xff] }
0x4182   :  { %v15037_v21 = vpop.f32.mrb[131].mxu1  ;;  %v12211_v33 = vsel %vm249_vm3, %v12204_v62, -inf }
0x4183   :  { %12212 = vmax.xlane.f32.xlu0 %v12211_v33  ;;  %v15664_v30 = vpack.c.bf16 %v15960_v28, %v15959_v61  ;;  %v13530_v61 = vld [vmem:[%s18701_s10 + $0xf0] sm:$0xff] }
0x4184   :  { %v15963_v42 = vpop.permute.xlu1 %15962 }
0x4185   :  { %v15965_v47 = vunpack.i.h.bf16 %v15963_v42  ;;  %v15964_v11 = vunpack.i.l.bf16 %v15963_v42 }
0x4187   :  { %11272 = vadd.xlane.f32.xlu0 %v11271_v7  ;;  %v15682_v51 = vpack.c.bf16 %v15965_v47, %v15964_v11 }
0x4188   :  { %v15968_v56 = vpop.permute.xlu1 %15967 }
0x4189   :  { %v15969_v60 = vunpack.i.l.bf16 %v15968_v56 }
0x418c   :  { %v15978_v21 = vpop.permute.xlu1 %15977 }
0x418d   :  { %v15979_v33 = vunpack.i.l.bf16 %v15978_v21 }
0x420c   :  { %v12210_v14 = vpop.xlane.xlu0 %12209 }
0x420d   :  { %v12214_v16 = vsub.f32 %v12126_v2, %v12210_v14 }
0x420f   :  { %v12216_v31 = vmul.f32 1.442695, %v12214_v16 }
0x4210   :  { %v12213_v48 = vpop.xlane.xlu0 %12212 }
0x4211   :  { %16215 = vpow2.f32 %v12216_v31  ;;  %v12215_v55 = vsub.f32 %v12204_v62, %v12213_v48  ;;  %v13524_v48 = vld [vmem:[%s18701_s10 + $0xc0] sm:$0xff] }
0x4213   :  { %v12218_v20 = vmul.f32 1.442695, %v12215_v55 }
0x4214   :  { %v11273_v25 = vpop.xlane.xlu0 %11272 }
0x4215   :  { %16217 = vpow2.f32 %v12218_v20 }
0x4216   :  { %16219 = vrcp.f32 %v11273_v25 }
0x421b   :  { %v16216_v15 = vpop.eup %16215 }
0x421c   :  { %v12220_v59 = vsel %vm249_vm3, %v16216_v15, 0.0 }
0x421d   :  { %12221 = vadd.xlane.f32.xlu0 %v12220_v59 }
0x421f   :  { %v16218_v40 = vpop.eup %16217 }
0x4220   :  { %v16220_v26 = vpop.eup %16219  ;;  %v12223_v46 = vsel %vm249_vm3, %v16218_v40, 0.0 }
0x4221   :  { %v11278_v63 = vmul.f32 %v16220_v26, %v16214_v9  ;;  %12224 = vadd.xlane.f32.xlu0 %v12223_v46 }
0x4223   :  { %14968 = vmatmul.mubr.msk.f32.vlgmr.msra.gmra.mrb[92].mxu0 %vm249_vm3, %v11278_v63 }
0x4224   :  { %15663 = vmatpush3.bf16.xpose.msk.msra.mxu0 %vm16600_vm4, %v15658_v50  ;;  %v13528_v50 = vld [vmem:[%s18701_s10 + $0xe0] sm:$0xff] }
0x4225   :  { %15666 = vmatprep.subr.msk.bf16.mxu0 %vm16600_vm4, %v15664_v30  ;;  %v15718_v28 = vpack.c.bf16 %v13529_v54, %v13528_v50 }
0x422c   :  { %15669 = vmatpush3.bf16.xpose.msk.msra.mxu0 %vm16600_vm4, %v15664_v30  ;;  %v13531_v30 = vld [vmem:[%s18701_s10 + $0xf8] sm:$0xff] }
0x4237   :  { %12230 = vrot.lane.b32.xlu0 %v18354_v22, %s18730_s20  ;;  %v15670_v22 = vpack.c.bf16 %v13470_v8, %v13469_v10 }
0x4239   :  { %15672 = vmatprep.subr.msk.bf16.mxu0 %vm16600_vm4, %v15670_v22 }
0x423b   :  { %15972 = vrot.lane.b32.xlu0 %v15951_v12, %s16299_s3 }
0x42aa   :  { %v12222_v45 = vpop.xlane.xlu0 %12221 }
0x42ab   :  { %16221 = vrcp.f32 %v12222_v45 }
0x42ae   :  { %v12225_v0 = vpop.xlane.xlu0 %12224 }
0x42af   :  { %16223 = vrcp.f32 %v12225_v0 }
0x42b2   :  { %v12231_v3 = vpop.permute.xlu0 %12230 }
0x42b3   :  { %15039 = vmatpush3.msra.mxu1 %v12231_v3 }
0x42b4   :  { %15043 = vmatprep.subr.mxu1 %v16288_v49 }
0x42b5   :  { %v16222_v37 = vpop.eup %16221 }
0x42b6   :  { %v12227_v5 = vmul.f32 %v16222_v37, %v16216_v15  ;;  %v15973_v44 = vpop.permute.xlu0 %15972 }
0x42b7   :  { %v15974_v23 = vunpack.i.l.bf16 %v15973_v44 }
0x42b8   :  { %15041 = vmatmul.mubr.msk.f32.vlgmr.msra.gmra.mrb[132].mxu1 %vm249_vm3, %v12227_v5 }
0x42b9   :  { %v16224_v32 = vpop.eup %16223  ;;  %15044 = vmatpush3.msra.mxu1 %v12307_v53  ;;  %15045 = vmatprep.mubr.msk.f32.mxu1 %vm16289_vm2, %v16288_v49 }
0x42ba   :  { %v12229_v35 = vmul.f32 %v16224_v32, %v16218_v40 }
0x42bc   :  { %15046 = vmatmul.mubr.msk.f32.vlgmr.msra.gmra.mrb[134].mxu1 %vm249_vm3, %v12229_v35 }
0x42f6   :  { %v11353_v38 = vpop.f32.mrb[92].mxu0 }
0x42f7   :  { %v14969_v41 = vpop.f32.mrb[93].mxu0  ;;  %14983 = vmatprep.mubr.msk.f32.mxu0 %vm249_vm3, %v11353_v38  ;;  %v13522_v38 = vld [vmem:[%s18695_s4 + $0x9] ss:$0 sm:$0xff] }
0x42f8   :  { %14984 = vmatmul.mubr.msk.f32.vlgmr.msra.gmra.mrb[94].mxu0 %vm249_vm3, %v18424_v24  ;;  %v15970_v24 = vunpack.i.h.bf16 %v15968_v56  ;;  %v13523_v41 = vld [vmem:[%s18696_s5 + $0x9] ss:$0 sm:$0xff] }
0x42f9   :  { %15675 = vmatpush3.bf16.xpose.msk.msra.mxu0 %vm16600_vm4, %v15670_v22  ;;  %14994 = vmatprep.mubr.msk.f32.mxu0 %vm249_vm3, %v18433_v36  ;;  %v15975_v36 = vunpack.i.h.bf16 %v15973_v44  ;;  %v15724_v22 = vpack.c.bf16 %v13531_v30, %v13530_v61 }
0x42fa   :  { %15678 = vmatprep.subr.msk.bf16.mxu0 %vm16600_vm4, %v15676_v52  ;;  %v15688_v2 = vpack.c.bf16 %v15970_v24, %v15969_v60  ;;  %v13543_v24 = vld [vmem:[%s18703_s12 + $0x60] sm:$0xff]  ;;  %v13544_v60 = vld [vmem:[%s18703_s12 + $0x68] sm:$0xff] }
0x42fb   :  { %v15694_v62 = vpack.c.bf16 %v15975_v36, %v15974_v23  ;;  %v15730_v44 = vpack.c.bf16 %v13544_v60, %v13543_v24  ;;  %v13546_v36 = vld [vmem:[%s18703_s12 + $0x78] sm:$0xff] }
0x4301   :  { %15681 = vmatpush3.bf16.xpose.msk.msra.mxu0 %vm16600_vm4, %v15676_v52 }
0x4302   :  { %15684 = vmatprep.subr.msk.bf16.mxu0 %vm16600_vm4, %v15682_v51 }
0x4308   :  { %14995 = vmatmul.mubr.msk.f32.vlgmr.msra.gmra.mrb[94].mxu0 %vm249_vm3, %v18472_v34  ;;  %v15980_v34 = vunpack.i.h.bf16 %v15978_v21 }
0x4309   :  { %15687 = vmatpush3.bf16.xpose.msk.msra.mxu0 %vm16600_vm4, %v15682_v51  ;;  %15025 = vmatprep.mubr.msk.f32.mxu0 %vm249_vm3, %v18479_v1 }
0x430a   :  { %15690 = vmatprep.subr.msk.bf16.mxu0 %vm16600_vm4, %v15688_v2  ;;  %v15700_v9 = vpack.c.bf16 %v15980_v34, %v15979_v33 }
0x4311   :  { %15693 = vmatpush3.bf16.xpose.msk.msra.mxu0 %vm16600_vm4, %v15688_v2  ;;  %v13545_v2 = vld [vmem:[%s18703_s12 + $0x70] sm:$0xff] }
0x4312   :  { %15696 = vmatprep.subr.msk.bf16.mxu0 %vm16600_vm4, %v15694_v62  ;;  %v15736_v23 = vpack.c.bf16 %v13546_v36, %v13545_v2 }
0x4318   :  { %15026 = vmatmul.mubr.msk.f32.vlgmr.msra.gmra.mrb[94].mxu0 %vm249_vm3, %v18481_v57  ;;  %v13521_v57 = vld [vmem:[%s18700_s9 + $0x5] ss:$0 sm:$0xff] }
0x4319   :  { %15699 = vmatpush3.bf16.xpose.msk.msra.mxu0 %vm16600_vm4, %v15694_v62  ;;  %v13532_v62 = vld [vmem:[%s18702_s11 + $0x3] ss:$0 sm:$0xff] }
0x431a   :  { %15702 = vmatprep.subr.msk.bf16.mxu0 %vm16600_vm4, %v15700_v9 }
0x4321   :  { %15705 = vmatpush3.bf16.xpose.msk.msra.mxu0 %vm16600_vm4, %v15700_v9 }
0x4322   :  { %15732 = vmatprep.subr.msk.bf16.mxu0 %vm16798_vm6, %v15730_v44 }
0x438b   :  { %v12302_v1 = vpop.f32.mrb[132].mxu1 }
0x438c   :  { %v15042_v7 = vpop.f32.mrb[133].mxu1  ;;  %15056 = vmatprep.mubr.msk.f32.mxu0 %vm249_vm3, %v12302_v1 }
0x438f   :  { %v12378_v10 = vpop.f32.mrb[134].mxu1 }
0x4390   :  { %v15047_v8 = vpop.f32.mrb[135].mxu1  ;;  %15057 = vmatmul.mubr.msk.f32.vlgmr.msra.gmra.mrb[94].mxu0 %vm249_vm3, %v12378_v10 }
0x4391   :  { %15735 = vmatpush3.bf16.xpose.msk.msra.mxu0 %vm16798_vm6, %v15730_v44 }
0x4392   :  { %15738 = vmatprep.subr.msk.bf16.mxu0 %vm16798_vm6, %v15736_v23 }
0x4399   :  { %15741 = vmatpush3.bf16.xpose.msk.msra.mxu0 %vm16798_vm6, %v15736_v23 }
0x4463   :  { %v15058_v17 = vpop.f32.mrb[94].mxu0 }
0x4464   :  { %v12482_v12 = vadd.f32 %v15058_v17, %v18257_v58  ;;  %v12470_v13 = vpop.f32.mrb[95].mxu0  ;;  %v13525_v58 = vld [vmem:[%s18701_s10 + $0xc8] sm:$0xff] }
0x4465   :  { %v12481_v43 = vadd.f32 %v12470_v13, %v18259_v39  ;;  %v15706_v39 = vpack.c.bf16 %v13525_v58, %v13524_v48 }
0x4466   :  { %v18564_v4 = vadd.f32 %v13521_v57, %v12482_v12 }
0x4467   :  { %v18566_v14 = vadd.f32 %v13521_v57, %v12481_v43  ;;  %15708 = vmatprep.subr.msk.bf16.mxu1 %vm16412_vm1, %v15706_v39 }
0x4468   :  { %v12495_v16 = vsel %vm68_vm0, %v18564_v4, 0.0  ;;  %15711 = vmatpush3.bf16.xpose.msk.msra.mxu1 %vm16412_vm1, %v15706_v39 }
0x4469   :  { %12496 = vadd.xlane.f32.xlu1 %v12495_v16  ;;  %v12492_v31 = vsel %vm68_vm0, %v18566_v14, 0.0  ;;  %15714 = vmatprep.subr.msk.bf16.mxu1 %vm16412_vm1, %v15712_v27 }
0x446a   :  { %12493 = vadd.xlane.f32.xlu0 %v12492_v31 }
0x4470   :  { %15717 = vmatpush3.bf16.xpose.msk.msra.mxu1 %vm16412_vm1, %v15712_v27 }
0x4471   :  { %15720 = vmatprep.subr.msk.bf16.mxu1 %vm16412_vm1, %v15718_v28 }
0x4478   :  { %15723 = vmatpush3.bf16.xpose.msk.msra.mxu1 %vm16412_vm1, %v15718_v28 }
0x4479   :  { %15726 = vmatprep.subr.msk.bf16.mxu1 %vm16412_vm1, %v15724_v22 }
0x4480   :  { %15729 = vmatpush3.bf16.xpose.msk.msra.mxu1 %vm16412_vm1, %v15724_v22 }
0x44f6   :  { %v12497_v55 = vpop.xlane.xlu1 %12496 }
0x44f7   :  { %v12499_v20 = vmul.f32 0.03125, %v12497_v55  ;;  %v12494_v25 = vpop.xlane.xlu0 %12493 }
0x44f8   :  { %v12498_v15 = vmul.f32 0.03125, %v12494_v25 }
0x44f9   :  { %v12501_v59 = vsub.f32 %v18564_v4, %v12499_v20 }
0x44fa   :  { %v12500_v40 = vsub.f32 %v18566_v14, %v12498_v15 }
0x44fb   :  { %v12503_v63 = vmul.f32 %v12501_v59, %v12501_v59 }
0x44fc   :  { %v12502_v26 = vmul.f32 %v12500_v40, %v12500_v40 }
0x44fd   :  { %v12507_v53 = vsel %vm68_vm0, %v12503_v63, 0.0 }
0x44fe   :  { %v12504_v46 = vsel %vm68_vm0, %v12502_v26, 0.0 }
0x44ff   :  { %12505 = vadd.xlane.f32.xlu0 %v12504_v46 }
0x4503   :  { %12508 = vadd.xlane.f32.xlu0 %v12507_v53 }
0x458c   :  { %v12506_v45 = vpop.xlane.xlu0 %12505 }
0x458d   :  { %v12510_v0 = vmul.f32 0.03125, %v12506_v45 }
0x458f   :  { %v12512_v3 = vadd.f32 1e-05, %v12510_v0 }
0x4590   :  { %v12509_v37 = vpop.xlane.xlu0 %12508 }
0x4591   :  { %16225 = vrsqrt.f32 %v12512_v3  ;;  %v12511_v5 = vmul.f32 0.03125, %v12509_v37 }
0x4593   :  { %v12513_v32 = vadd.f32 1e-05, %v12511_v5 }
0x4595   :  { %16227 = vrsqrt.f32 %v12513_v32 }
0x459b   :  { %v16226_v35 = vpop.eup %16225 }
0x459c   :  { %v12516_v52 = vmul.f32 %v16226_v35, %v12500_v40 }
0x459e   :  { %v12522_v6 = vmul.f32 %v13522_v38, %v12516_v52 }
0x459f   :  { %v16228_v42 = vpop.eup %16227 }
0x45a0   :  { %v12517_v47 = vmul.f32 %v16228_v42, %v12501_v59  ;;  %v12528_v11 = vadd.f32 %v13523_v41, %v12522_v6  ;;  %v13553_v59 = vld [vmem:[%s18704_s13 + $0x3] ss:$0 sm:$0xff] }
0x45a2   :  { %v12523_v51 = vmul.f32 %v13522_v38, %v12517_v47  ;;  %15075 = vmatprep.mubr.msk.f32.mxu1 %vm68_vm0, %v12528_v11 }
0x45a4   :  { %v12529_v56 = vadd.f32 %v13523_v41, %v12523_v51 }
0x45a6   :  { %15076 = vmatmul.mubr.msk.f32.vlgmr.msra.gmra.mrb[136].mxu1 %vm68_vm0, %v12529_v56 }
0x4679   :  { %v15077_v21 = vpop.f32.mrb[136].mxu1 }
0x467a   :  { %v12646_v34 = vadd.f32 %v15077_v21, %v13532_v62  ;;  %v12640_v33 = vpop.f32.mrb[137].mxu1 }
0x467b   :  { %v12641_v9 = vadd.f32 %v13532_v62, %v12640_v33 }
0x467c   :  { %v12652_v1 = vmul.f32 0.044715, %v12646_v34  ;;  %v12650_v55 = vmul.f32 0.5, %v12646_v34 }
0x467d   :  { %v12651_v7 = vmul.f32 0.044715, %v12641_v9  ;;  %v12649_v58 = vmul.f32 0.5, %v12641_v9 }
0x467e   :  { %v12654_v10 = vmul.f32 %v12652_v1, %v12646_v34 }
0x467f   :  { %v12653_v8 = vmul.f32 %v12651_v7, %v12641_v9 }
0x4680   :  { %v12656_v17 = vmul.f32 %v12654_v10, %v12646_v34 }
0x4681   :  { %v12655_v57 = vmul.f32 %v12653_v8, %v12641_v9 }
0x4682   :  { %v12658_v12 = vadd.f32 %v12656_v17, %v12646_v34 }
0x4683   :  { %v12657_v13 = vadd.f32 %v12655_v57, %v12641_v9 }
0x4684   :  { %v12660_v43 = vmul.f32 0.7978846, %v12658_v12 }
0x4685   :  { %v12659_v16 = vmul.f32 0.7978846, %v12657_v13 }
0x4686   :  { %16229 = vtanh.f32 %v12660_v43 }
0x4687   :  { %16231 = vtanh.f32 %v12659_v16 }
0x4690   :  { %v16230_v29 = vpop.eup %16229 }
0x4691   :  { %v16232_v31 = vpop.eup %16231  ;;  %v12664_v48 = vadd.f32 1.0, %v16230_v29 }
0x4692   :  { %v12663_v39 = vadd.f32 1.0, %v16232_v31 }
0x4693   :  { %v12666_v25 = vmul.f32 %v12664_v48, %v12650_v55 }
0x4694   :  { %v12665_v20 = vmul.f32 %v12663_v39, %v12649_v58 }
0x4696   :  { %15086 = vmatprep.mubr.msk.f32.mxu0 %vm2142_vm5, %v12665_v20 }
0x4697   :  { %15087 = vmatmul.mubr.msk.f32.vlgmr.msra.gmra.mrb[96].mxu0 %vm2142_vm5, %v12666_v25 }
0x476a   :  { %v15088_v15 = vpop.f32.mrb[96].mxu0 }
0x476b   :  { %v12766_v40 = vadd.f32 %v15088_v15, %v18564_v4  ;;  %v12756_v26 = vpop.f32.mrb[97].mxu0 }
0x476c   :  { %v12765_v46 = vadd.f32 %v12756_v26, %v18566_v14 }
0x476d   :  { %v12773_v63 = vadd.f32 %v13553_v59, %v12766_v40 }
0x476e   :  { %v12772_v53 = vadd.f32 %v13553_v59, %v12765_v46 }
0x476f   :  { %12775 = vst.msk [vmem:[#allocation2 + $0x8] sm:$0xff] %vm68_vm0, %v12773_v63 }
0x4770   :  { %12774 = vst.msk [vmem:[#allocation2] sm:$0xff] %vm68_vm0, %v12772_v53 }
0x4771 LB: > { %s12784_s30 = sld [smem:[#allocation5 + %s16285_s2]]  ;;  %s13559_s13 = sshll.u32 %s16285_s2, 3  ;;  %vm12795_vm8 = vcmask 253952   ;;  %s16285_s2 = sphi %s16283_s2, %s12782_s2  }
0x4772   : > { %s12794_s6 = scalar_lea.vmem [#allocation3], %s16285_s2  ;;  %s12782_s2 = sadd.s32 1, %s16285_s2  }
0x4773   : > { %p12779_p7 = scmp.ge.s32.totalorder %s12782_s2, 2  }
0x4774   :  { %vm12800_vm9 = vcmask (%p12779_p7), 254976   ;;  %15089 = vmatprep.subr.mxu1 (%p12779_p7), %v16288_v49  ;;  %15091 = vmatprep.mubr.msk.f32.mxu1 (%p12779_p7), %vm16289_vm2, %v16288_v49  ;;  %v12833_v61 = vld [vmem:[%s18705_s14] sm:$0xff] (%p12779_p7)  ;;  %v13560_v49 = vld [vmem:[%s18695_s4 + $0xb] ss:$0 sm:$0xff] (%p12779_p7)  ;;  %s18732_s24 = sld [smem:[#allocation11_spill]] (%p12779_p7)  ;;  %vm12920_vm11 = vcmask (%p12779_p7), 58368  }
0x4775   :  { %15090 = vmatpush3.xpose.msk.msra.mxu1 (%p12779_p7), %vm68_vm0, %v12833_v61  ;;  %v13561_v37 = vld [vmem:[%s18696_s5 + $0xb] ss:$0 sm:$0xff] (%p12779_p7)  ;;  %v13562_v24 = vld [vmem:[%s18706_s15] ss:$0 sm:$0xff] (%p12779_p7)  ;;  %s16301_s15 = smov (%p12779_p7), [#allocation6]  }
0x4776   :  { %s12939_s8 = sshll.u32 (%p12779_p7), %s16301_s15, 4  ;;  %s12940_s8 = int_to_ptr.vmem [resolvable:$true] %s12939_s8 }
0x4777   : > { %s12785_s27 = sadd.s32 1, %s12784_s30  ;;  %s16253_s29 = scalar_lea.vmem (%p12779_p7), %s12940_s8, 32 }
0x4778   : > { %p12786_p5 = scmp.gt.s32.totalorder %s12785_s27, 0  ;;  %p13554_p6 = scmp.lt.s32.totalorder %s12785_s27, 7 }
0x4779   :  { %12781 = sbr.rel (!%p12779_p7) target bundleno = 18289 (0x4771), region = 105  ;;  %p16254_p8 = scmp.ne.s32.totalorder (%p12779_p7), %s12940_s8, %s16253_s29 }
0x477a   : > { %s18734_s27 = smov (!%p12786_p5, %s12785_s27), 0  ;;  %v12917_v56 = vld [vmem:[%s18732_s24] sm:$0x3] (%p12779_p7)  ;;  %p16258_p9 = scmp.lt.s32.totalorder (%p12779_p7), %s12940_s8, %s12940_s8 }
0x477b   : > { %s18736_s27 = smov (!%p13554_p6, %s18734_s27), 7  ;;  %vm12918_vm10 = vcmp.gt.f32.partialorder (%p12779_p7), %v12917_v56, 0.0  ;;  %p16259_p10 = scmp.lt.s32.totalorder (%p12779_p7), %s16253_s29, %s16253_s29 }
0x477c   : > { %s12791_s21 = sadd.s32 %s18736_s27, %s13559_s13 }
0x477d   : > { %s12792_s0 = scalar_lea.vmem [#allocation2], %s12791_s21  ;;  %p16260_p11 = por (%p12779_p7), %p16259_p10, %p16258_p9 }
0x477e   : > { %v12793_v4 = vld [vmem:[%s12792_s0] sm:$0x1] }
0x477f   : > { %12796 = vst.msk [vmem:[%s12794_s6] sm:$0x1] %vm12795_vm8, %v12793_v4  ;;  %p16261_p12 = pnand (%p12779_p7), %p16260_p11, %p16254_p8 }
0x4786   :  { %v12797_v14 = vld [vmem:[#allocation3] sm:$0x3] }
0x4787   :  { %v12801_v18 = vsel %vm12800_vm9, %v12797_v14, 0.0 }
0x4788   :  { %12802 = vadd.xlane.f32.xlu0 %v12801_v18 }
0x4815   :  { %v12803_v19 = vpop.xlane.xlu0 %12802 }
0x4816   :  { %v12804_v27 = vmul.f32 0.03125, %v12803_v19 }
0x4818   :  { %v12805_v50 = vsub.f32 %v12797_v14, %v12804_v27 }
0x481a   :  { %v12806_v54 = vmul.f32 %v12805_v50, %v12805_v50 }
0x481c   :  { %v12807_v28 = vsel %vm12800_vm9, %v12806_v54, 0.0 }
0x481d   :  { %12808 = vadd.xlane.f32.xlu0 %v12807_v28 }
0x48aa   :  { %v12809_v30 = vpop.xlane.xlu0 %12808 }
0x48ab   :  { %v12810_v22 = vmul.f32 0.03125, %v12809_v30 }
0x48ad   :  { %v12811_v45 = vadd.f32 1e-05, %v12810_v22 }
0x48af   :  { %16233 = vrsqrt.f32 %v12811_v45 }
0x48b9   :  { %v16234_v0 = vpop.eup %16233 }
0x48ba   :  { %v12813_v3 = vmul.f32 %v16234_v0, %v12805_v50 }
0x48bc   :  { %v12818_v5 = vmul.f32 %v13560_v49, %v12813_v3 }
0x48be   :  { %v12823_v32 = vadd.f32 %v13561_v37, %v12818_v5 }
0x48c0   :  { %v12825_v35 = vmul.f32 0.044715, %v12823_v32  ;;  %v12824_v47 = vmul.f32 0.5, %v12823_v32 }
0x48c2   :  { %v12826_v38 = vmul.f32 %v12825_v35, %v12823_v32 }
0x48c4   :  { %v12827_v52 = vmul.f32 %v12826_v38, %v12823_v32 }
0x48c6   :  { %v12828_v41 = vadd.f32 %v12827_v52, %v12823_v32 }
0x48c8   :  { %v12829_v6 = vmul.f32 0.7978846, %v12828_v41 }
0x48ca   :  { %16235 = vtanh.f32 %v12829_v6 }
0x48d4   :  { %v16236_v42 = vpop.eup %16235 }
0x48d5   :  { %v12831_v11 = vadd.f32 1.0, %v16236_v42 }
0x48d7   :  { %v12832_v51 = vmul.f32 %v12831_v11, %v12824_v47 }
0x48d9   :  { %15092 = vmatmul.mubr.msk.f32.vlgmr.msra.gmra.mrb[138].mxu1 %vm68_vm0, %v12832_v51 }
0x49ac   :  { %v12913_v60 = vpop.f32.mrb[138].mxu1 }
0x49ad   :  { %v12914_v2 = vadd.f32 %v13562_v24, %v12913_v60  ;;  %v15093_v44 = vpop.f32.mrb[139].mxu1 }
0x49af   :  { %v12919_v36 = vsel %vm12918_vm10, %v12914_v2, -1e+09 }
0x49b0   :  { %v12921_v23 = vsel %vm12920_vm11, %v12919_v36, -inf }
0x49b1   :  { %12922 = vmax.xlane.f32.xlu1 %v12921_v23 }
0x4a3e   :  { %v12923_v62 = vpop.xlane.xlu1 %12922 }
0x4a3f   :  { %v12924_v21 = vsub.f32 %v12919_v36, %v12923_v62 }
0x4a41   :  { %v12925_v34 = vmul.f32 1.442695, %v12924_v21 }
0x4a43   :  { %16237 = vpow2.f32 %v12925_v34 }
0x4a4d   :  { %v16238_v33 = vpop.eup %16237 }
0x4a4e   :  { %v12927_v9 = vsel %vm12920_vm11, %v16238_v33, 0.0 }
0x4a4f   :  { %12928 = vadd.xlane.f32.xlu1 %v12927_v9 }
0x4adc   :  { %v12929_v1 = vpop.xlane.xlu1 %12928 }
0x4add   :  { %16239 = vrcp.f32 %v12929_v1 }
0x4ae7   :  { %v16240_v7 = vpop.eup %16239 }
0x4ae8   :  { %v12931_v10 = vmul.f32 %v16240_v7, %v16238_v33 }
0x4aea   :  { %12932 = vst.msk [vmem:[#allocation6] sm:$0x3] %vm12920_vm11, %v12931_v10 }
0x4aeb   :  { %16264 = shalt.err (!%p16261_p12)
}
0x4aec   :  { %s16265_s9 = scalar_lea.hbm %s18707_s16, 32 }
0x4aed   :  { %p16266_p13 = scmp.ne.s32.totalorder %s18707_s16, %s16265_s9  ;;  %p16269_p0 = scmp.lt.u32.totalorder %s16265_s9, %s18707_s16 }
0x4aef   :  { %p16271_p1 = pnand %p16269_p0, %p16266_p13 }
0x4af1   :  { %16274 = shalt.err (!%p16271_p1)
}
0x4af2   :  { %12942 = dma.vmem_to_hbm [thread:$0]  %s12940_s8, 32, %s18707_s16, [#allocation7]  }
0x4af3   :  { %16281 = dma.done.wait [#allocation7], 32  }
0x4af4   :  { %16282 = vsyncadd [#allocation7], 4294967264 }
0x4af5   :  { %12946 = vsyncpa [#allocation7], 1 }

</bundles_post_ra>
